<compile_context>
chip_gen: v7x
topology: tpu7x:2x2x1
jax: 0.10.0
libtpu: 0.0.40
codegen_flags: <defaults>
</compile_context>

<pallas_src>
import functools
import math

import jax
import jax.numpy as jnp
from jax import lax
from jax.experimental import pallas as pl
from jax.experimental.pallas import tpu as pltpu


def _pick_tile(dim, candidates):
    """Largest candidate tile that divides `dim`, else the full dim."""
    for c in candidates:
        if dim % c == 0:
            return c
    return dim


# ----------------------------- tiled matmul (MXU) -------------------------------

def _matmul_kernel(x_ref, w_ref, o_ref, acc_ref):
    k = pl.program_id(2)
    prod = jnp.dot(x_ref[...], w_ref[...], preferred_element_type=jnp.float32)

    @pl.when(k == 0)
    def _first():                     # direct assign: no zero-store + add
        acc_ref[...] = prod

    @pl.when(k > 0)
    def _accum():
        acc_ref[...] += prod

    @pl.when(k == pl.num_programs(2) - 1)
    def _store():
        o_ref[...] = acc_ref[...].astype(o_ref.dtype)


def pallas_matmul(x, w):
    """x: (M, K), w: (K, N) -> (M, N); bf16-friendly, fp32 VMEM accumulation."""
    M, K = x.shape
    K2, N = w.shape
    assert K == K2
    tm = _pick_tile(M, (512, 256, 128))
    tk = _pick_tile(K, (1024, 512, 256, 128))
    # Full-N output tile when it fits: the (i,k) activation tile is then read
    # once instead of once per j tile.  Worst-case double-buffered budget at
    # tm=512/tk=1024/tn=2048 bf16 is ~20 MiB -> safe under v7x's 64 MiB VMEM.
    tn = N if N <= 2048 else _pick_tile(N, (2048, 1024, 512, 256, 128))
    bytes_el = x.dtype.itemsize
    cost = pl.CostEstimate(
        flops=2 * M * N * K,
        transcendentals=0,
        bytes_accessed=(M * K + K * N + M * N) * bytes_el,
    )
    return pl.pallas_call(
        _matmul_kernel,
        out_shape=jax.ShapeDtypeStruct((M, N), x.dtype),
        grid=(M // tm, N // tn, K // tk),
        in_specs=[
            pl.BlockSpec((tm, tk), lambda i, j, k: (i, k)),
            pl.BlockSpec((tk, tn), lambda i, j, k: (k, j)),
        ],
        out_specs=pl.BlockSpec((tm, tn), lambda i, j, k: (i, j)),
        scratch_shapes=[pltpu.VMEM((tm, tn), jnp.float32)],
        compiler_params=pltpu.CompilerParams(
            dimension_semantics=("parallel", "parallel", "arbitrary"),
            vmem_limit_bytes=48 * 1024 * 1024,
        ),
        cost_estimate=cost,
    )(x, w)


# --------------------------- K RoPE pre-rotation kernel ---------------------------

def _rope_k_kernel(k_ref, cos_ref, sin_ref, o_ref, *, half):
    k = k_ref[0]                                           # (ts, hd)
    # rotate_half(k) == pltpu.roll(k, hd/2); the sign is folded into sin.
    o_ref[0] = k * cos_ref[0] + pltpu.roll(k, half, 1) * sin_ref[0]


def rope_k(qkv, cos_k, sin_k, *, num_heads, num_kv_heads, head_dim):
    """Apply RoPE to the K columns of the packed qkv activation -> (B,S,nKV*hd)."""
    B, S, _ = qkv.shape
    ts = _pick_tile(S, (512, 256, 128, 64, 32, 16, 8))
    bytes_el = qkv.dtype.itemsize
    n_k = B * S * num_kv_heads * head_dim
    cost = pl.CostEstimate(
        flops=4 * n_k, transcendentals=0,
        bytes_accessed=(2 * n_k + 2 * B * S * head_dim) * bytes_el)
    kernel = functools.partial(_rope_k_kernel, half=head_dim // 2)
    return pl.pallas_call(
        kernel,
        out_shape=jax.ShapeDtypeStruct((B, S, num_kv_heads * head_dim), qkv.dtype),
        grid=(B, num_kv_heads, S // ts),
        in_specs=[
            # K head g lives at column block (num_heads + g) of the packed qkv.
            pl.BlockSpec((1, ts, head_dim), lambda b, g, s: (b, s, num_heads + g)),
            pl.BlockSpec((1, ts, head_dim), lambda b, g, s: (b, s, 0)),
            pl.BlockSpec((1, ts, head_dim), lambda b, g, s: (b, s, 0)),
        ],
        out_specs=pl.BlockSpec((1, ts, head_dim), lambda b, g, s: (b, s, g)),
        compiler_params=pltpu.CompilerParams(
            dimension_semantics=("parallel", "parallel", "parallel"),
            vmem_limit_bytes=32 * 1024 * 1024,
        ),
        cost_estimate=cost,
    )(qkv, cos_k, sin_k)


# ------------------------ flash attention (+ fused Q RoPE) -------------------------

def _flash_attention_kernel(q_ref, k_ref, v_ref, cosq_ref, sinq_ref, o_ref,
                            q_scr, m_scr, l_scr, acc_scr,
                            *, n_rep, head_dim, tq, tk):
    qi = pl.program_id(2)
    ki = pl.program_id(3)
    q_start = qi * tq
    k_start = ki * tk
    half = head_dim // 2
    rows = n_rep * tq

    @pl.when(ki == 0)
    def _init():
        m_scr[...] = jnp.full_like(m_scr, -jnp.inf)
        l_scr[...] = jnp.zeros_like(l_scr)
        acc_scr[...] = jnp.zeros_like(acc_scr)
        # Q RoPE (+ folded 1/sqrt(d) scale) computed ONCE per Q tile, stacked
        # head-major into (n_rep*tq, hd) so QK^T/PV are single wide matmuls.
        cos_q = cosq_ref[0]                   # (tq, hd), pre-scaled by 1/sqrt(d)
        sin_q = sinq_ref[0]                   # sign-folded + pre-scaled
        for r in range(n_rep):
            q_r = q_ref[0, :, r * head_dim:(r + 1) * head_dim]
            q_scr[r * tq:(r + 1) * tq, :] = (
                q_r * cos_q + pltpu.roll(q_r, half, 1) * sin_q)

    def _attend(masked):
        k_blk = k_ref[0]                      # (tk, hd) bf16, already RoPE'd
        v_blk = v_ref[0]                      # (tk, hd) bf16
        # All n_rep heads in one MXU pass: (n_rep*tq, hd) x (tk, hd)^T.
        s = lax.dot_general(q_scr[...], k_blk, (((1,), (1,)), ((), ())),
                            preferred_element_type=jnp.float32)   # (rows, tk)
        if masked:
            row = lax.broadcasted_iota(jnp.int32, (rows, tk), 0)
            q_pos = q_start + row % tq
            k_pos = k_start + lax.broadcasted_iota(jnp.int32, (rows, tk), 1)
            s = jnp.where(q_pos >= k_pos, s, -1e30)
        m_prev = m_scr[...]
        m_new = jnp.maximum(m_prev, jnp.max(s, axis=-1, keepdims=True))
        alpha = jnp.exp(m_prev - m_new)
        p = jnp.exp(s - m_new)
        l_scr[...] = alpha * l_scr[...] + jnp.sum(p, axis=-1, keepdims=True)
        acc_scr[...] = alpha * acc_scr[...] + jnp.dot(
            p.astype(v_blk.dtype), v_blk, preferred_element_type=jnp.float32)
        m_scr[...] = m_new

    needs_compute = k_start <= q_start + (tq - 1)      # tile not fully in the future
    needs_mask = k_start + (tk - 1) > q_start          # tile crosses the diagonal

    @pl.when(needs_compute & needs_mask)
    def _diag_tile():
        _attend(True)

    @pl.when(needs_compute & jnp.logical_not(needs_mask))
    def _full_tile():                                   # mask-free fast path
        _attend(False)

    @pl.when(ki == pl.num_programs(3) - 1)
    def _finalize():
        inv_l = pl.reciprocal(l_scr[...], approx=True)  # EUP slot, VALU-free
        out = acc_scr[...] * inv_l
        for r in range(n_rep):
            o_ref[0, :, r * head_dim:(r + 1) * head_dim] = (
                out[r * tq:(r + 1) * tq, :].astype(o_ref.dtype))


def flash_attention(q_arr, k_rope, v_arr, cos_q, sin_q, *, num_heads,
                    num_kv_heads, head_dim, v_col_block_off, tq=128, tk=128):
    """Causal flash attention with GQA head-stacking.

    q_arr: packed qkv (or q-only) array whose first nH*hd columns are Q.
    k_rope: (B, S, nKV*hd) pre-RoPE'd keys.
    v_arr: packed qkv array; V head g is at column block (v_col_block_off + g).
    cos_q/sin_q: (B, S, hd) Q-side RoPE tables with 1/sqrt(hd) folded in.
    """
    B, S, _ = q_arr.shape
    n_rep = num_heads // num_kv_heads
    tq = min(tq, S)
    tk = min(tk, S)
    assert S % tq == 0 and S % tk == 0
    assert tq % 8 == 0 and tk % 8 == 0
    assert head_dim % 128 == 0 and head_dim % 2 == 0   # lane-aligned head slices

    kernel = functools.partial(_flash_attention_kernel, n_rep=n_rep,
                               head_dim=head_dim, tq=tq, tk=tk)

    bytes_el = q_arr.dtype.itemsize
    n_q_tiles = S // tq
    # Causal: ~half the kv tiles are live per q tile (clamped DMAs included).
    cost = pl.CostEstimate(
        flops=2 * B * num_heads * S * S * head_dim,
        transcendentals=B * num_heads * S * S // 2,
        bytes_accessed=int((2 * B * S * num_heads * head_dim
                            + 2 * B * S * head_dim
                            + 2 * B * num_kv_heads * n_q_tiles
                            * (S // 2 + tk) * head_dim) * bytes_el),
    )

    # Clamp the kv block index for the causal structure: fully-future tiles map
    # to the last useful block -> Pallas sees an unchanged index and skips the DMA.
    def kv_block(i, j):
        return jnp.minimum(j, (i * tq + tq - 1) // tk)

    return pl.pallas_call(
        kernel,
        out_shape=jax.ShapeDtypeStruct((B, S, num_heads * head_dim), q_arr.dtype),
        grid=(B, num_kv_heads, S // tq, S // tk),
        in_specs=[
            # Q: all n_rep heads of KV group g (Q occupies the leading columns).
            pl.BlockSpec((1, tq, n_rep * head_dim), lambda b, g, i, j: (b, i, g)),
            # K (pre-RoPE'd) / V (straight from packed qkv), causally clamped.
            pl.BlockSpec((1, tk, head_dim),
                         lambda b, g, i, j: (b, kv_block(i, j), g)),
            pl.BlockSpec((1, tk, head_dim),
                         lambda b, g, i, j: (b, kv_block(i, j), v_col_block_off + g)),
            # Q-side RoPE tables (scale folded in), fetched once per q tile.
            pl.BlockSpec((1, tq, head_dim), lambda b, g, i, j: (b, i, 0)),
            pl.BlockSpec((1, tq, head_dim), lambda b, g, i, j: (b, i, 0)),
        ],
        out_specs=pl.BlockSpec((1, tq, n_rep * head_dim),
                               lambda b, g, i, j: (b, i, g)),
        scratch_shapes=[
            pltpu.VMEM((n_rep * tq, head_dim), q_arr.dtype),   # RoPE'd, scaled Q
            pltpu.VMEM((n_rep * tq, 1), jnp.float32),          # m
            pltpu.VMEM((n_rep * tq, 1), jnp.float32),          # l
            pltpu.VMEM((n_rep * tq, head_dim), jnp.float32),   # acc
        ],
        compiler_params=pltpu.CompilerParams(
            dimension_semantics=("parallel", "parallel", "parallel", "arbitrary"),
            vmem_limit_bytes=32 * 1024 * 1024,
        ),
        cost_estimate=cost,
    )(q_arr, k_rope, v_arr, cos_q, sin_q)


# ------------------------------- RoPE tables (glue) ------------------------------

def build_rope_cache(head_dim, max_position_embeddings, base=10000.0):
    inv_freq = 1.0 / (base ** (jnp.arange(0, head_dim, 2, dtype=jnp.float32) / head_dim))
    t = jnp.arange(max_position_embeddings, dtype=jnp.float32)
    freqs = jnp.einsum("i,j->ij", t, inv_freq)
    emb = jnp.concatenate([freqs, freqs], axis=-1)        # (max_pos, head_dim)
    return jnp.cos(emb), jnp.sin(emb)


# --------------------------- one-time parameter preparation ----------------------

def init_llama_attention(params, cfg, compute_dtype=jnp.bfloat16):
    """Hoisted out of the per-call path: fused QKV weight + RoPE cache (review)."""
    hd = cfg["hidden_size"] // cfg["num_attention_heads"]
    w_qkv = jnp.concatenate([params["wq"], params["wk"], params["wv"]],
                            axis=1).astype(compute_dtype)
    wo = params["wo"].astype(compute_dtype)
    cos_c, sin_c = build_rope_cache(hd, cfg["max_position_embeddings"],
                                    cfg.get("rope_theta", 10000.0))
    # Sign-fold sin so kernels can use pltpu.roll(x, D/2) instead of concat+negate:
    #   rotate_half(x) * sin == roll(x, D/2) * (sign * sin),  sign = [-1.., +1..]
    sign = jnp.concatenate([-jnp.ones((hd // 2,), jnp.float32),
                            jnp.ones((hd // 2,), jnp.float32)])
    return dict(w_qkv=w_qkv, wo=wo, cos_cache=cos_c, sin_signed_cache=sin_c * sign)


# ----------------------------- LlamaAttention forward ----------------------------

def llama_attention_forward(hidden_states, position_ids, prepared, cfg, *,
                            tq=128, tk=128):
    B, S, in_dim = hidden_states.shape
    H = cfg["hidden_size"]
    nH = cfg["num_attention_heads"]
    nKV = cfg["num_key_value_heads"]
    hd = H // nH
    n_rep = nH // nKV
    cdt = prepared["w_qkv"].dtype                        # bf16 compute dtype

    # Fused Q/K/V projection (bf16 operands, fp32 accumulation).
    x = hidden_states.astype(cdt).reshape(B * S, in_dim)
    qkv = pallas_matmul(x, prepared["w_qkv"]).reshape(B, S, (nH + 2 * nKV) * hd)

    # RoPE tables per (batch, position); scale folded into the Q-side tables.
    cos = prepared["cos_cache"][position_ids]            # (B, S, hd) f32
    sin_signed = prepared["sin_signed_cache"][position_ids]
    scale = 1.0 / math.sqrt(hd)
    cos_k = cos.astype(cdt)
    sin_k = sin_signed.astype(cdt)
    cos_q = (cos * scale).astype(cdt)
    sin_q = (sin_signed * scale).astype(cdt)

    # Pre-apply RoPE to K once (reads K columns straight out of packed qkv).
    k_rope = rope_k(qkv, cos_k, sin_k, num_heads=nH, num_kv_heads=nKV, head_dim=hd)

    # Q / V are read directly from the packed qkv by the flash BlockSpecs
    # (no wrapper-side slice copies).
    if ((nH + 2 * nKV) % n_rep) == 0:
        q_arr = qkv
    else:
        # TODO(synk): rare layout where n_rep*hd doesn't tile packed qkv; fall back to a slice copy.
        q_arr = qkv[:, :, :nH * hd]

    attn_out = flash_attention(q_arr, k_rope, qkv, cos_q, sin_q,
                               num_heads=nH, num_kv_heads=nKV, head_dim=hd,
                               v_col_block_off=nH + nKV, tq=tq, tk=tk)

    out = pallas_matmul(attn_out.reshape(B * S, H), prepared["wo"]).reshape(B, S, H)
    return out.astype(hidden_states.dtype)


# ------------------------- pure-JAX reference (torch semantics) ------------------

def llama_attention_reference(hidden_states, attention_mask, position_ids, params, cfg):
    B, S, _ = hidden_states.shape
    H = cfg["hidden_size"]
    nH = cfg["num_attention_heads"]
    nKV = cfg["num_key_value_heads"]
    hd = H // nH
    n_rep = nH // nKV
    prec = jax.lax.Precision.HIGHEST

    q = jnp.dot(hidden_states, params["wq"], precision=prec)
    k = jnp.dot(hidden_states, params["wk"], precision=prec)
    v = jnp.dot(hidden_states, params["wv"], precision=prec)
    q = q.reshape(B, S, nH, hd).transpose(0, 2, 1, 3)
    k = k.reshape(B, S, nKV, hd).transpose(0, 2, 1, 3)
    v = v.reshape(B, S, nKV, hd).transpose(0, 2, 1, 3)

    cos_c, sin_c = build_rope_cache(hd, cfg["max_position_embeddings"],
                                    cfg.get("rope_theta", 10000.0))
    cos = cos_c[position_ids][:, None, :, :]
    sin = sin_c[position_ids][:, None, :, :]

    def rot_half(x):
        h = x.shape[-1] // 2
        return jnp.concatenate([-x[..., h:], x[..., :h]], axis=-1)

    q = q * cos + rot_half(q) * sin
    k = k * cos + rot_half(k) * sin
    k = jnp.repeat(k, n_rep, axis=1)
    v = jnp.repeat(v, n_rep, axis=1)

    scores = jnp.einsum("bhqd,bhkd->bhqk", q, k, precision=prec) / math.sqrt(hd)
    scores = scores + attention_mask
    attn = jax.nn.softmax(scores.astype(jnp.float32), axis=-1).astype(q.dtype)
    out = jnp.einsum("bhqk,bhkd->bhqd", attn, v, precision=prec)
    out = out.transpose(0, 2, 1, 3).reshape(B, S, H)
    return jnp.dot(out, params["wo"], precision=prec)


if __name__ == "__main__":
    # Small config with real-Llama head_dim=128 (lane-aligned head indexing):
    #   hidden_size=512, 4 query heads, 2 KV heads (GQA x2),
    #   q/k/v projections consume hidden_size*2 = 1024 features (as in the module).
    cfg = dict(
        hidden_size=512,
        num_attention_heads=4,
        num_key_value_heads=2,
        max_position_embeddings=512,
        rope_theta=10000.0,
    )
    B, S = 2, 256
    H = cfg["hidden_size"]
    nH, nKV = cfg["num_attention_heads"], cfg["num_key_value_heads"]
    hd = H // nH

    key = jax.random.PRNGKey(0)
    k_x, k_q, k_k, k_v, k_o = jax.random.split(key, 5)

    hidden_states = jax.random.normal(k_x, (B, S, 2 * H), dtype=jnp.float32)
    # weights stored as (in_features, out_features) == torch Linear weight.T
    params = {
        "wq": 0.02 * jax.random.normal(k_q, (2 * H, nH * hd), dtype=jnp.float32),
        "wk": 0.02 * jax.random.normal(k_k, (2 * H, nKV * hd), dtype=jnp.float32),
        "wv": 0.02 * jax.random.normal(k_v, (2 * H, nKV * hd), dtype=jnp.float32),
        "wo": 0.02 * jax.random.normal(k_o, (nH * hd, H), dtype=jnp.float32),
    }
    # Round operands through bf16 once so the fp32 reference and the bf16 Pallas
    # path see identical inputs; the remaining delta is kernel-internal
    # (bf16 intermediates, online softmax, approx reciprocal).
    rb = lambda a: a.astype(jnp.bfloat16).astype(jnp.float32)
    hidden_states = rb(hidden_states)
    params = {k_: rb(v_) for k_, v_ in params.items()}
    position_ids = jnp.broadcast_to(jnp.arange(S, dtype=jnp.int32)[None, :], (B, S))

    prepared = init_llama_attention(params, cfg, compute_dtype=jnp.bfloat16)

    # tq=tk=128 -> 2x2 q/kv tiles per (batch, kv-head): exercises online-softmax
    # accumulation, diagonal vs interior mask paths, the causal DMA clamp and the
    # init/finalize pl.when paths.
    out = llama_attention_forward(hidden_states, position_ids, prepared, cfg,
                                  tq=128, tk=128)
    out = jax.block_until_ready(out)

    # Reference uses the module's explicit additive causal mask + repeat_kv path.
    causal = jnp.tril(jnp.ones((S, S), dtype=bool))
    attention_mask = jnp.where(causal, 0.0, jnp.finfo(jnp.float32).min)
    attention_mask = jnp.broadcast_to(attention_mask[None, None], (B, 1, S, S))
    ref = llama_attention_reference(hidden_states, attention_mask, position_ids,
                                    params, cfg)

    assert out.shape == (B, S, H)
    max_err = float(jnp.max(jnp.abs(out - ref)))
    assert max_err < 3e-2, f"max abs err {max_err}"

    print("KERNEL_OK")
</pallas_src>

<mosaic_0001>
module attributes {stable_mosaic.version = 11 : i64} {
  func.func @_matmul_kernel(%arg0: i32, %arg1: i32, %arg2: i32, %arg3: memref<512x1024xbf16, #tpu.memory_space<vmem>>, %arg4: memref<1024x1024xbf16, #tpu.memory_space<vmem>>, %arg5: memref<512x1024xbf16, #tpu.memory_space<vmem>>, %arg6: memref<512x1024xf32, #tpu.memory_space<vmem>>) attributes {dimension_semantics = [#tpu.dimension_semantics<parallel>, #tpu.dimension_semantics<parallel>, #tpu.dimension_semantics<arbitrary>], iteration_bounds = array<i64: 1, 1, 1>, scalar_prefetch = 0 : i64, scratch_operands = 1 : i64, tpu.core_type = #tpu.core_type<tc>, window_params = [{transform_indices = @transform_0, window_bounds = array<i64: 512, 1024>}, {transform_indices = @transform_1, window_bounds = array<i64: 1024, 1024>}, {transform_indices = @transform_2, window_bounds = array<i64: 512, 1024>}]} {
    %c0 = arith.constant 0 : index
    %c0_0 = arith.constant 0 : index
    %0 = vector.load %arg3[%c0, %c0_0] : memref<512x1024xbf16, #tpu.memory_space<vmem>>, vector<512x1024xbf16>
    %c0_1 = arith.constant 0 : index
    %c0_2 = arith.constant 0 : index
    %1 = vector.load %arg4[%c0_1, %c0_2] : memref<1024x1024xbf16, #tpu.memory_space<vmem>>, vector<1024x1024xbf16>
    %cst = arith.constant dense<0.000000e+00> : vector<512x1024xf32>
    %2 = tpu.matmul %0, %1, %cst {dimension_numbers = #tpu.dot_dimension_numbers<[1], [0], [0], [1], [0, 0, 1, 1], [], []>} : vector<512x1024xbf16>, vector<1024x1024xbf16>, vector<512x1024xf32> -> vector<512x1024xf32>
    %c0_i32 = arith.constant 0 : i32
    %3 = arith.cmpi eq, %arg2, %c0_i32 : i32
    %4 = arith.extui %3 : i1 to i32
    %c0_i32_3 = arith.constant 0 : i32
    %5 = arith.cmpi ne, %4, %c0_i32_3 : i32
    scf.if %5 {
      %c0_8 = arith.constant 0 : index
      %c0_9 = arith.constant 0 : index
      %12 = vector.load %arg6[%c0_8, %c0_9] : memref<512x1024xf32, #tpu.memory_space<vmem>>, vector<512x1024xf32>
      tpu.vector_store %arg6[%c0_8, %c0_9], %2 {strides = array<i32>} : memref<512x1024xf32, #tpu.memory_space<vmem>>, vector<512x1024xf32>,
    } else {
    }
    %c0_i32_4 = arith.constant 0 : i32
    %6 = arith.cmpi sgt, %arg2, %c0_i32_4 : i32
    %7 = arith.extui %6 : i1 to i32
    %c0_i32_5 = arith.constant 0 : i32
    %8 = arith.cmpi ne, %7, %c0_i32_5 : i32
    scf.if %8 {
      %c0_8 = arith.constant 0 : index
      %c0_9 = arith.constant 0 : index
      %12 = vector.load %arg6[%c0_8, %c0_9] : memref<512x1024xf32, #tpu.memory_space<vmem>>, vector<512x1024xf32>
      %13 = arith.addf %12, %2 : vector<512x1024xf32>
      %c0_10 = arith.constant 0 : index
      %c0_11 = arith.constant 0 : index
      %14 = vector.load %arg6[%c0_10, %c0_11] : memref<512x1024xf32, #tpu.memory_space<vmem>>, vector<512x1024xf32>
      tpu.vector_store %arg6[%c0_10, %c0_11], %13 {strides = array<i32>} : memref<512x1024xf32, #tpu.memory_space<vmem>>, vector<512x1024xf32>,
    } else {
    }
    %c0_i32_6 = arith.constant 0 : i32
    %9 = arith.cmpi eq, %arg2, %c0_i32_6 : i32
    %10 = arith.extui %9 : i1 to i32
    %c0_i32_7 = arith.constant 0 : i32
    %11 = arith.cmpi ne, %10, %c0_i32_7 : i32
    scf.if %11 {
      %c0_8 = arith.constant 0 : index
      %c0_9 = arith.constant 0 : index
      %12 = vector.load %arg6[%c0_8, %c0_9] : memref<512x1024xf32, #tpu.memory_space<vmem>>, vector<512x1024xf32>
      %13 = arith.truncf %12 : vector<512x1024xf32> to vector<512x1024xbf16>
      %c0_10 = arith.constant 0 : index
      %c0_11 = arith.constant 0 : index
      %14 = vector.load %arg5[%c0_10, %c0_11] : memref<512x1024xbf16, #tpu.memory_space<vmem>>, vector<512x1024xbf16>
      tpu.vector_store %arg5[%c0_10, %c0_11], %13 {strides = array<i32>} : memref<512x1024xbf16, #tpu.memory_space<vmem>>, vector<512x1024xbf16>,
    } else {
    }
    return
  }
  func.func @transform_0(%arg0: i32, %arg1: i32, %arg2: i32) -> (i32, i32) {
    %c0_i32 = arith.constant 0 : i32
    return %arg0, %arg2 : i32, i32
  }
  func.func @transform_1(%arg0: i32, %arg1: i32, %arg2: i32) -> (i32, i32) {
    %c0_i32 = arith.constant 0 : i32
    return %arg2, %arg1 : i32, i32
  }
  func.func @transform_2(%arg0: i32, %arg1: i32, %arg2: i32) -> (i32, i32) {
    %c0_i32 = arith.constant 0 : i32
    return %arg0, %arg1 : i32, i32
  }
}

</mosaic_0001>

<bundles_post_ra>
// kernel: tpu_custom_call.1
= control target key start
LH: loop header
LB: loop body
LE: loop exit
PB: predicated region body
PF: predicated region fallthrough
CT: control target
= control target key end

     0   :  { %7 = vsyncpa [#allocation4], 0  ;;  %s19311_s0 = inlined_call_operand.hbm [shape: bf16[512,1024], index: 0, kind: input, shape index: {}]   ;;  %s19312_s1 = inlined_call_operand.hbm [shape: bf16[1024,1024], index: 1, kind: input, shape index: {}]   ;;  %s19313_s2 = inlined_call_operand.hbm [shape: bf16[512,1024], index: 2, kind: output, shape index: {}]  }
   0x1   :  { %8 = vsyncpa [#allocation7], 0 }
   0x2   :  { %9 = vsyncpa [#allocation5], 0  ;;  %s17570_s9 = smov [#allocation3]   ;;  %s17498_s13 = scalar_lea.hbm %s19311_s0, 32768 }
   0x3   :  { %s15_s10 = sshll.u32 %s17570_s9, 4  ;;  %p17499_p0 = scmp.ne.s32.totalorder %s19311_s0, %s17498_s13  ;;  %s16_s10 = int_to_ptr.vmem [resolvable:$true] %s15_s10 }
   0x4   :  { %p17502_p1 = scmp.lt.u32.totalorder %s17498_s13, %s19311_s0 }
   0x6   :  { %p17504_p2 = pnand %p17502_p1, %p17499_p0 }
   0x8   :  { %17507 = shalt.err (!%p17504_p2)
}
   0x9   :  { %s17508_s18 = scalar_lea.vmem %s16_s10, 32768  ;;  %p17513_p4 = scmp.lt.s32.totalorder %s16_s10, %s16_s10 }
   0xa   :  { %p17509_p3 = scmp.ne.s32.totalorder %s16_s10, %s17508_s18  ;;  %p17514_p5 = scmp.lt.s32.totalorder %s17508_s18, %s17508_s18 }
   0xc   :  { %p17515_p6 = por %p17514_p5, %p17513_p4 }
   0xe   :  { %p17516_p7 = pnand %p17515_p6, %p17509_p3 }
  0x10   :  { %17519 = shalt.err (!%p17516_p7)
}
  0x11   :  { %s17571_s19 = smov 512   ;;  %s17572_s20 = smov 32  }
  0x12   :  { %21 = dma.hbm_to_vmem [thread:$0]  %s19311_s0, 32768, %s16_s10, [#allocation4], %s17571_s19, %s17571_s19, %s17572_s20  }
  0x13   :  { %s17573_s23 = smov [#allocation6]   ;;  %s17520_s27 = scalar_lea.hbm %s19312_s1, 65536 }
  0x14   :  { %s27_s24 = sshll.u32 %s17573_s23, 4  ;;  %p17521_p8 = scmp.ne.s32.totalorder %s19312_s1, %s17520_s27  ;;  %s28_s24 = int_to_ptr.vmem [resolvable:$true] %s27_s24 }
  0x15   :  { %p17524_p9 = scmp.lt.u32.totalorder %s17520_s27, %s19312_s1 }
  0x17   :  { %p17526_p10 = pnand %p17524_p9, %p17521_p8 }
  0x19   :  { %17529 = shalt.err (!%p17526_p10)
}
  0x1a   :  { %s17530_s4 = scalar_lea.vmem %s28_s24, 65536  ;;  %p17535_p12 = scmp.lt.s32.totalorder %s28_s24, %s28_s24 }
  0x1b   :  { %p17531_p11 = scmp.ne.s32.totalorder %s28_s24, %s17530_s4  ;;  %p17536_p13 = scmp.lt.s32.totalorder %s17530_s4, %s17530_s4 }
  0x1d   :  { %p17537_p0 = por %p17536_p13, %p17535_p12 }
  0x1f   :  { %p17538_p1 = pnand %p17537_p0, %p17531_p11 }
  0x21   :  { %17541 = shalt.err (!%p17538_p1)
}
  0x22   :  { %33 = dma.hbm_to_vmem [thread:$0]  %s19312_s1, 65536, %s28_s24, [#allocation7], %s17571_s19, %s17571_s19, %s17572_s20  }
  0x23   :  { %17564 = dma.done.wait [#allocation4], 32768  }
  0x24   :  { %17565 = vsyncadd [#allocation4], 4294934528 }
  0x25   :  { %17566 = dma.done.wait [#allocation7], 65536  }
  0x26   :  { %17567 = vsyncadd [#allocation7], 4294901760  ;;  %v296_v0 = vld [vmem:[#allocation6] sm:$0xff]  ;;  %v297_v2 = vld [vmem:[#allocation6 + $0x8] sm:$0xff]  ;;  %s17574_s1 = smov [#allocation8]  }
  0x27   :  { %v300_v1 = vld [vmem:[#allocation6 + $0x20] sm:$0xff]  ;;  %v301_v4 = vld [vmem:[#allocation6 + $0x28] sm:$0xff]  ;;  %s14664_s6 = sshll.u32 %s17574_s1, 4  ;;  %s14665_s6 = int_to_ptr.vmem [resolvable:$true] %s14664_s6 }
  0x28   :  { %v14934_v3 = vcombine.high %v296_v0, %v300_v1  ;;  %v14933_v5 = vcombine.low %v296_v0, %v300_v1  ;;  %v304_v6 = vld [vmem:[#allocation6 + $0x40] sm:$0xff]  ;;  %v14936_v8 = vcombine.high %v297_v2, %v301_v4  ;;  %v14935_v9 = vcombine.low %v297_v2, %v301_v4  ;;  %v305_v11 = vld [vmem:[#allocation6 + $0x48] sm:$0xff]  ;;  %s17542_s7 = scalar_lea.vmem %s14665_s6, 32768  ;;  %p17547_p3 = scmp.lt.s32.totalorder %s14665_s6, %s14665_s6 }
  0x29   :  { %v308_v7 = vld [vmem:[#allocation6 + $0x60] sm:$0xff]  ;;  %v309_v12 = vld [vmem:[#allocation6 + $0x68] sm:$0xff]  ;;  %p17543_p2 = scmp.ne.s32.totalorder %s14665_s6, %s17542_s7  ;;  %p17548_p4 = scmp.lt.s32.totalorder %s17542_s7, %s17542_s7 }
  0x2a   :  { %v14942_v10 = vcombine.high %v304_v6, %v308_v7  ;;  %v312_v13 = vld [vmem:[#allocation6 + $0x80] sm:$0xff]  ;;  %4648 = vmatprep.subr.bf16.mxu0 %v14934_v3  ;;  %v14944_v14 = vcombine.high %v305_v11, %v309_v12  ;;  %v313_v16 = vld [vmem:[#allocation6 + $0x88] sm:$0xff]  ;;  %6060 = vmatprep.subr.bf16.mxu1 %v14936_v8  ;;  %v14941_v18 = vcombine.low %v304_v6, %v308_v7 }
  0x2b   :  { %v316_v15 = vld [vmem:[#allocation6 + $0xa0] sm:$0xff]  ;;  %v317_v17 = vld [vmem:[#allocation6 + $0xa8] sm:$0xff]  ;;  %4649 = vmatpush1.bf16.msra.mxu0 %v14933_v5  ;;  %6061 = vmatpush1.bf16.msra.mxu1 %v14935_v9  ;;  %v14943_v19 = vcombine.low %v305_v11, %v309_v12  ;;  %p17549_p5 = por %p17548_p4, %p17547_p3 }
  0x2c   :  { %4650 = vmatprep.subr.bf16.mxu0 %v14942_v10  ;;  %v14950_v20 = vcombine.high %v312_v13, %v316_v15  ;;  %6062 = vmatprep.subr.bf16.mxu1 %v14944_v14  ;;  %v14952_v21 = vcombine.high %v313_v16, %v317_v17  ;;  %v320_v22 = vld [vmem:[#allocation6 + $0xc0] sm:$0xff]  ;;  %v321_v24 = vld [vmem:[#allocation6 + $0xc8] sm:$0xff]  ;;  %v14949_v26 = vcombine.low %v312_v13, %v316_v15 }
  0x2d   :  { %v324_v23 = vld [vmem:[#allocation6 + $0xe0] sm:$0xff]  ;;  %v325_v25 = vld [vmem:[#allocation6 + $0xe8] sm:$0xff]  ;;  %v14951_v27 = vcombine.low %v313_v16, %v317_v17  ;;  %p17550_p6 = pnand %p17549_p5, %p17543_p2 }
  0x2e   :  { %v14958_v28 = vcombine.high %v320_v22, %v324_v23  ;;  %v14960_v29 = vcombine.high %v321_v24, %v325_v25  ;;  %v328_v30 = vld [vmem:[#allocation6 + $0x100] sm:$0xff]  ;;  %v329_v32 = vld [vmem:[#allocation6 + $0x108] sm:$0xff]  ;;  %v14957_v34 = vcombine.low %v320_v22, %v324_v23  ;;  %v14959_v35 = vcombine.low %v321_v24, %v325_v25 }
  0x2f   :  { %4651 = vmatpush1.bf16.msra.mxu0 %v14941_v18  ;;  %6063 = vmatpush1.bf16.msra.mxu1 %v14943_v19  ;;  %v332_v31 = vld [vmem:[#allocation6 + $0x120] sm:$0xff]  ;;  %v333_v33 = vld [vmem:[#allocation6 + $0x128] sm:$0xff] }
  0x30   :  { %4652 = vmatprep.subr.bf16.mxu0 %v14950_v20  ;;  %6064 = vmatprep.subr.bf16.mxu1 %v14952_v21  ;;  %v14966_v36 = vcombine.high %v328_v30, %v332_v31  ;;  %v14968_v37 = vcombine.high %v329_v32, %v333_v33  ;;  %v336_v38 = vld [vmem:[#allocation6 + $0x140] sm:$0xff]  ;;  %v337_v40 = vld [vmem:[#allocation6 + $0x148] sm:$0xff]  ;;  %v14965_v42 = vcombine.low %v328_v30, %v332_v31 }
  0x31   :  { %v340_v39 = vld [vmem:[#allocation6 + $0x160] sm:$0xff]  ;;  %v341_v41 = vld [vmem:[#allocation6 + $0x168] sm:$0xff]  ;;  %v14967_v43 = vcombine.low %v329_v32, %v333_v33 }
  0x32   :  { %v14974_v44 = vcombine.high %v336_v38, %v340_v39  ;;  %v14976_v45 = vcombine.high %v337_v40, %v341_v41  ;;  %v344_v46 = vld [vmem:[#allocation6 + $0x180] sm:$0xff]  ;;  %v345_v48 = vld [vmem:[#allocation6 + $0x188] sm:$0xff]  ;;  %v14973_v50 = vcombine.low %v336_v38, %v340_v39  ;;  %v14975_v51 = vcombine.low %v337_v40, %v341_v41 }
  0x33   :  { %4653 = vmatpush1.bf16.msra.mxu0 %v14949_v26  ;;  %6065 = vmatpush1.bf16.msra.mxu1 %v14951_v27  ;;  %v348_v47 = vld [vmem:[#allocation6 + $0x1a0] sm:$0xff]  ;;  %v349_v49 = vld [vmem:[#allocation6 + $0x1a8] sm:$0xff] }
  0x34   :  { %4654 = vmatprep.subr.bf16.mxu0 %v14958_v28  ;;  %6066 = vmatprep.subr.bf16.mxu1 %v14960_v29  ;;  %v14982_v52 = vcombine.high %v344_v46, %v348_v47  ;;  %v17620_v53 = vld [vmem:[#allocation3] sm:$0xff]  ;;  %v14984_v55 = vcombine.high %v345_v48, %v349_v49  ;;  %v353_v59 = vld [vmem:[#allocation6 + $0x1c8] sm:$0xff]  ;;  %v14981_v61 = vcombine.low %v344_v46, %v348_v47 }
  0x35   :  { %v17622_v54 = vld [vmem:[#allocation3 + $0x20] sm:$0xff]  ;;  %v357_v60 = vld [vmem:[#allocation6 + $0x1e8] sm:$0xff]  ;;  %v14983_v62 = vcombine.low %v345_v48, %v349_v49 }
  0x36   :  { %v352_v56 = vld [vmem:[#allocation6 + $0x1c0] sm:$0xff]  ;;  %v17626_v58 = vcombine.high %v17620_v53, %v17622_v54  ;;  %v14992_v0 = vcombine.high %v353_v59, %v357_v60  ;;  %v361_v3 = vld [vmem:[#allocation6 + $0x208] sm:$0xff]  ;;  %v14991_v6 = vcombine.low %v353_v59, %v357_v60 }
  0x37   :  { %4655 = vmatpush1.bf16.msra.mxu0 %v14957_v34  ;;  %6067 = vmatpush1.bf16.msra.mxu1 %v14959_v35  ;;  %v356_v57 = vld [vmem:[#allocation6 + $0x1e0] sm:$0xff]  ;;  %v365_v4 = vld [vmem:[#allocation6 + $0x228] sm:$0xff] }
  0x38   :  { %4656 = vmatprep.subr.bf16.mxu0 %v14966_v36  ;;  %6068 = vmatprep.subr.bf16.mxu1 %v14968_v37  ;;  %v14990_v63 = vcombine.high %v352_v56, %v356_v57  ;;  %v360_v1 = vld [vmem:[#allocation6 + $0x200] sm:$0xff]  ;;  %v14989_v5 = vcombine.low %v352_v56, %v356_v57  ;;  %v15000_v8 = vcombine.high %v361_v3, %v365_v4  ;;  %v369_v11 = vld [vmem:[#allocation6 + $0x248] sm:$0xff] }
  0x39   :  { %4680 = vmatprep.mubr.bf16.mxu0 %v17626_v58  ;;  %v364_v2 = vld [vmem:[#allocation6 + $0x220] sm:$0xff]  ;;  %6092 = vmatprep.mubr.bf16.mxu1 %v17626_v58  ;;  %v373_v12 = vld [vmem:[#allocation6 + $0x268] sm:$0xff]  ;;  %v14999_v14 = vcombine.low %v361_v3, %v365_v4 }
  0x3a   :  { %v14998_v7 = vcombine.high %v360_v1, %v364_v2  ;;  %v368_v9 = vld [vmem:[#allocation6 + $0x240] sm:$0xff]  ;;  %v14997_v13 = vcombine.low %v360_v1, %v364_v2  ;;  %v15008_v16 = vcombine.high %v369_v11, %v373_v12  ;;  %v377_v19 = vld [vmem:[#allocation6 + $0x288] sm:$0xff]  ;;  %v15007_v22 = vcombine.low %v369_v11, %v373_v12 }
  0x3b   :  { %4657 = vmatpush1.bf16.msra.mxu0 %v14965_v42  ;;  %6069 = vmatpush1.bf16.msra.mxu1 %v14967_v43  ;;  %v372_v10 = vld [vmem:[#allocation6 + $0x260] sm:$0xff]  ;;  %v381_v20 = vld [vmem:[#allocation6 + $0x2a8] sm:$0xff] }
  0x3c   :  { %4658 = vmatprep.subr.bf16.mxu0 %v14974_v44  ;;  %6070 = vmatprep.subr.bf16.mxu1 %v14976_v45  ;;  %v15006_v15 = vcombine.high %v368_v9, %v372_v10  ;;  %v376_v17 = vld [vmem:[#allocation6 + $0x280] sm:$0xff]  ;;  %v15005_v21 = vcombine.low %v368_v9, %v372_v10  ;;  %v15016_v24 = vcombine.high %v377_v19, %v381_v20  ;;  %v385_v27 = vld [vmem:[#allocation6 + $0x2c8] sm:$0xff] }
  0x3d   :  { %v380_v18 = vld [vmem:[#allocation6 + $0x2a0] sm:$0xff]  ;;  %v389_v28 = vld [vmem:[#allocation6 + $0x2e8] sm:$0xff]  ;;  %v15015_v30 = vcombine.low %v377_v19, %v381_v20 }
  0x3e   :  { %v15014_v23 = vcombine.high %v376_v17, %v380_v18  ;;  %v384_v25 = vld [vmem:[#allocation6 + $0x2c0] sm:$0xff]  ;;  %v15013_v29 = vcombine.low %v376_v17, %v380_v18  ;;  %v15024_v32 = vcombine.high %v385_v27, %v389_v28  ;;  %v393_v35 = vld [vmem:[#allocation6 + $0x308] sm:$0xff]  ;;  %v15023_v38 = vcombine.low %v385_v27, %v389_v28 }
  0x3f   :  { %4659 = vmatpush1.bf16.msra.mxu0 %v14973_v50  ;;  %6071 = vmatpush1.bf16.msra.mxu1 %v14975_v51  ;;  %v388_v26 = vld [vmem:[#allocation6 + $0x2e0] sm:$0xff]  ;;  %v397_v36 = vld [vmem:[#allocation6 + $0x328] sm:$0xff] }
  0x40   :  { %4660 = vmatprep.subr.bf16.mxu0 %v14982_v52  ;;  %6072 = vmatprep.subr.bf16.mxu1 %v14984_v55  ;;  %v15022_v31 = vcombine.high %v384_v25, %v388_v26  ;;  %v392_v33 = vld [vmem:[#allocation6 + $0x300] sm:$0xff]  ;;  %v15021_v37 = vcombine.low %v384_v25, %v388_v26  ;;  %v15032_v40 = vcombine.high %v393_v35, %v397_v36  ;;  %v401_v43 = vld [vmem:[#allocation6 + $0x348] sm:$0xff] }
  0x41   :  { %v396_v34 = vld [vmem:[#allocation6 + $0x320] sm:$0xff]  ;;  %v405_v44 = vld [vmem:[#allocation6 + $0x368] sm:$0xff]  ;;  %v15031_v46 = vcombine.low %v393_v35, %v397_v36 }
  0x42   :  { %v15030_v39 = vcombine.high %v392_v33, %v396_v34  ;;  %v400_v41 = vld [vmem:[#allocation6 + $0x340] sm:$0xff]  ;;  %v15029_v45 = vcombine.low %v392_v33, %v396_v34  ;;  %v15040_v48 = vcombine.high %v401_v43, %v405_v44  ;;  %v409_v51 = vld [vmem:[#allocation6 + $0x388] sm:$0xff]  ;;  %v15039_v56 = vcombine.low %v401_v43, %v405_v44 }
  0x43   :  { %4661 = vmatpush1.bf16.msra.mxu0 %v14981_v61  ;;  %6073 = vmatpush1.bf16.msra.mxu1 %v14983_v62  ;;  %v404_v42 = vld [vmem:[#allocation6 + $0x360] sm:$0xff]  ;;  %v413_v52 = vld [vmem:[#allocation6 + $0x3a8] sm:$0xff] }
  0x44   :  { %4662 = vmatprep.subr.bf16.mxu0 %v14990_v63  ;;  %6074 = vmatprep.subr.bf16.mxu1 %v14992_v0  ;;  %v15038_v47 = vcombine.high %v400_v41, %v404_v42  ;;  %v408_v49 = vld [vmem:[#allocation6 + $0x380] sm:$0xff]  ;;  %v15037_v55 = vcombine.low %v400_v41, %v404_v42  ;;  %v15048_v59 = vcombine.high %v409_v51, %v413_v52  ;;  %v417_v62 = vld [vmem:[#allocation6 + $0x3c8] sm:$0xff] }
  0x45   :  { %v412_v50 = vld [vmem:[#allocation6 + $0x3a0] sm:$0xff]  ;;  %v421_v63 = vld [vmem:[#allocation6 + $0x3e8] sm:$0xff]  ;;  %v15047_v1 = vcombine.low %v409_v51, %v413_v52 }
  0x46   :  { %v15046_v57 = vcombine.high %v408_v49, %v412_v50  ;;  %v416_v60 = vld [vmem:[#allocation6 + $0x3c0] sm:$0xff]  ;;  %v15045_v0 = vcombine.low %v408_v49, %v412_v50  ;;  %v15056_v3 = vcombine.high %v417_v62, %v421_v63  ;;  %v15055_v9 = vcombine.low %v417_v62, %v421_v63  ;;  %v433_v18 = vld [vmem:[#allocation6 + $0x448] sm:$0xff] }
  0x47   :  { %4663 = vmatpush1.bf16.msra.mxu0 %v14989_v5  ;;  %6075 = vmatpush1.bf16.msra.mxu1 %v14991_v6  ;;  %v420_v61 = vld [vmem:[#allocation6 + $0x3e0] sm:$0xff]  ;;  %v425_v6 = vld [vmem:[#allocation6 + $0x408] sm:$0xff] }
  0x48   :  { %4664 = vmatprep.subr.bf16.mxu0 %v14998_v7  ;;  %6076 = vmatprep.subr.bf16.mxu1 %v15000_v8  ;;  %v15054_v2 = vcombine.high %v416_v60, %v420_v61  ;;  %v424_v4 = vld [vmem:[#allocation6 + $0x400] sm:$0xff]  ;;  %v429_v7 = vld [vmem:[#allocation6 + $0x428] sm:$0xff]  ;;  %v15053_v8 = vcombine.low %v416_v60, %v420_v61 }
  0x49   :  { %v428_v5 = vld [vmem:[#allocation6 + $0x420] sm:$0xff]  ;;  %v15064_v11 = vcombine.high %v425_v6, %v429_v7  ;;  %v437_v19 = vld [vmem:[#allocation6 + $0x468] sm:$0xff]  ;;  %v15063_v20 = vcombine.low %v425_v6, %v429_v7 }
  0x4a   :  { %v15062_v10 = vcombine.high %v424_v4, %v428_v5  ;;  %v48_v12 = vld [vmem:[#allocation3 + $0x40] sm:$0xff]  ;;  %v15061_v17 = vcombine.low %v424_v4, %v428_v5  ;;  %v15072_v25 = vcombine.high %v433_v18, %v437_v19  ;;  %v449_v36 = vld [vmem:[#allocation6 + $0x4c8] sm:$0xff] }
  0x4b   :  { %4665 = vmatpush1.bf16.msra.mxu0 %v14997_v13  ;;  %6077 = vmatpush1.bf16.msra.mxu1 %v14999_v14  ;;  %v52_v13 = vld [vmem:[#allocation3 + $0x60] sm:$0xff]  ;;  %v17632_v14 = vcombine.low %v17620_v53, %v17622_v54  ;;  %v441_v53 = vld [vmem:[#allocation6 + $0x488] sm:$0xff] }
  0x4c   :  { %4666 = vmatprep.subr.bf16.mxu0 %v15006_v15  ;;  %6078 = vmatprep.subr.bf16.mxu1 %v15008_v16  ;;  %v432_v15 = vld [vmem:[#allocation6 + $0x440] sm:$0xff]  ;;  %v445_v54 = vld [vmem:[#allocation6 + $0x4a8] sm:$0xff] }
  0x4d   :  { %v436_v16 = vld [vmem:[#allocation6 + $0x460] sm:$0xff]  ;;  %v457_v44 = vld [vmem:[#allocation6 + $0x508] sm:$0xff] }
  0x4e   :  { %v15069_v26 = vcombine.low %v432_v15, %v436_v16  ;;  %v56_v27 = vld [vmem:[#allocation3 + $0x80] sm:$0xff]  ;;  %v469_v60 = vld [vmem:[#allocation6 + $0x568] sm:$0xff] }
  0x4f   :  { %4667 = vmatpush1.bf16.msra.mxu0 %v15005_v21  ;;  %6079 = vmatpush1.bf16.msra.mxu1 %v15007_v22  ;;  %v17634_v21 = vcombine.high %v48_v12, %v52_v13  ;;  %v15070_v22 = vcombine.high %v432_v15, %v436_v16  ;;  %v60_v28 = vld [vmem:[#allocation3 + $0xa0] sm:$0xff]  ;;  %v477_v4 = vld [vmem:[#allocation6 + $0x5a8] sm:$0xff] }
  0x50   :  { %4668 = vmatprep.subr.bf16.mxu0 %v15014_v23  ;;  %6080 = vmatprep.subr.bf16.mxu1 %v15016_v24  ;;  %v440_v23 = vld [vmem:[#allocation6 + $0x480] sm:$0xff]  ;;  %v17642_v35 = vcombine.high %v56_v27, %v60_v28  ;;  %v17648_v51 = vcombine.low %v56_v27, %v60_v28  ;;  %v481_v16 = vld [vmem:[#allocation6 + $0x5c8] sm:$0xff] }
  0x51   :  { %v444_v24 = vld [vmem:[#allocation6 + $0x4a0] sm:$0xff] }
  0x52   :  { %v448_v33 = vld [vmem:[#allocation6 + $0x4c0] sm:$0xff] }
  0x53   :  { %4669 = vmatpush1.bf16.msra.mxu0 %v15013_v29  ;;  %6081 = vmatpush1.bf16.msra.mxu1 %v15015_v30  ;;  %v15071_v29 = vcombine.low %v433_v18, %v437_v19  ;;  %v15078_v30 = vcombine.high %v440_v23, %v444_v24  ;;  %v452_v34 = vld [vmem:[#allocation6 + $0x4e0] sm:$0xff] }
  0x54   :  { %4670 = vmatprep.subr.bf16.mxu0 %v15022_v31  ;;  %6082 = vmatprep.subr.bf16.mxu1 %v15024_v32  ;;  %v15080_v31 = vcombine.high %v441_v53, %v445_v54  ;;  %v17640_v32 = vcombine.low %v48_v12, %v52_v13  ;;  %v456_v42 = vld [vmem:[#allocation6 + $0x500] sm:$0xff] }
  0x55   :  { %v460_v43 = vld [vmem:[#allocation6 + $0x520] sm:$0xff] }
  0x56   :  { %v15094_v50 = vcombine.high %v456_v42, %v460_v43  ;;  %v15093_v61 = vcombine.low %v456_v42, %v460_v43  ;;  %v72_v5 = vld [vmem:[#allocation3 + $0x100] sm:$0xff] }
  0x57   :  { %4671 = vmatpush1.bf16.msra.mxu0 %v15021_v37  ;;  %6083 = vmatpush1.bf16.msra.mxu1 %v15023_v38  ;;  %v453_v37 = vld [vmem:[#allocation6 + $0x4e8] sm:$0xff]  ;;  %v15077_v38 = vcombine.low %v440_v23, %v444_v24  ;;  %v76_v6 = vld [vmem:[#allocation3 + $0x120] sm:$0xff] }
  0x58   :  { %4672 = vmatprep.subr.bf16.mxu0 %v15030_v39  ;;  %6084 = vmatprep.subr.bf16.mxu1 %v15032_v40  ;;  %v15079_v39 = vcombine.low %v441_v53, %v445_v54  ;;  %v15086_v40 = vcombine.high %v448_v33, %v452_v34  ;;  %v15088_v41 = vcombine.high %v449_v36, %v453_v37  ;;  %v480_v12 = vld [vmem:[#allocation6 + $0x5c0] sm:$0xff]  ;;  %v493_v53 = vld [vmem:[#allocation6 + $0x628] sm:$0xff] }
  0x59   :  { %v15087_v49 = vcombine.low %v449_v36, %v453_v37  ;;  %v484_v13 = vld [vmem:[#allocation6 + $0x5e0] sm:$0xff]  ;;  %v17658_v15 = vcombine.high %v72_v5, %v76_v6  ;;  %v497_v37 = vld [vmem:[#allocation6 + $0x648] sm:$0xff] }
  0x5a   :  { %v488_v23 = vld [vmem:[#allocation6 + $0x600] sm:$0xff]  ;;  %v15117_v27 = vcombine.low %v480_v12, %v484_v13 }
  0x5b   :  { %4673 = vmatpush1.bf16.msra.mxu0 %v15029_v45  ;;  %6085 = vmatpush1.bf16.msra.mxu1 %v15031_v46  ;;  %v461_v45 = vld [vmem:[#allocation6 + $0x528] sm:$0xff]  ;;  %v64_v46 = vld [vmem:[#allocation3 + $0xc0] sm:$0xff] }
  0x5c   :  { %4674 = vmatprep.subr.bf16.mxu0 %v15038_v47  ;;  %6086 = vmatprep.subr.bf16.mxu1 %v15040_v48  ;;  %v68_v47 = vld [vmem:[#allocation3 + $0xe0] sm:$0xff]  ;;  %v15085_v48 = vcombine.low %v448_v33, %v452_v34  ;;  %v15096_v52 = vcombine.high %v457_v44, %v461_v45  ;;  %v15095_v62 = vcombine.low %v457_v44, %v461_v45  ;;  %v505_v45 = vld [vmem:[#allocation6 + $0x688] sm:$0xff] }
  0x5d   :  { %v492_v24 = vld [vmem:[#allocation6 + $0x620] sm:$0xff] }
  0x5e   :  { %v80_v54 = vld [vmem:[#allocation3 + $0x140] sm:$0xff] }
  0x5f   :  { %4675 = vmatpush1.bf16.msra.mxu0 %v15037_v55  ;;  %6087 = vmatpush1.bf16.msra.mxu1 %v15039_v56  ;;  %v464_v55 = vld [vmem:[#allocation6 + $0x540] sm:$0xff] }
  0x60   :  { %4676 = vmatprep.subr.bf16.mxu0 %v15046_v57  ;;  %6088 = vmatprep.subr.bf16.mxu1 %v15048_v59  ;;  %v468_v56 = vld [vmem:[#allocation6 + $0x560] sm:$0xff]  ;;  %v17650_v57 = vcombine.high %v64_v46, %v68_v47  ;;  %v465_v59 = vld [vmem:[#allocation6 + $0x548] sm:$0xff] }
  0x61   :  { %v15102_v63 = vcombine.high %v464_v55, %v468_v56  ;;  %v15101_v7 = vcombine.low %v464_v55, %v468_v56  ;;  %v496_v33 = vld [vmem:[#allocation6 + $0x640] sm:$0xff] }
  0x62   :  { %v500_v34 = vld [vmem:[#allocation6 + $0x660] sm:$0xff] }
  0x63   :  { %4677 = vmatpush1.bf16.msra.mxu0 %v15045_v0  ;;  %6089 = vmatpush1.bf16.msra.mxu1 %v15047_v1  ;;  %v15104_v0 = vcombine.high %v465_v59, %v469_v60  ;;  %v472_v1 = vld [vmem:[#allocation6 + $0x580] sm:$0xff] }
  0x64   :  { %4678 = vmatprep.subr.bf16.mxu0 %v15054_v2  ;;  %6090 = vmatprep.subr.bf16.mxu1 %v15056_v3  ;;  %v476_v2 = vld [vmem:[#allocation6 + $0x5a0] sm:$0xff]  ;;  %v473_v3 = vld [vmem:[#allocation6 + $0x588] sm:$0xff] }
  0x65   :  { %v15109_v18 = vcombine.low %v472_v1, %v476_v2  ;;  %v15111_v19 = vcombine.low %v473_v3, %v477_v4  ;;  %v504_v43 = vld [vmem:[#allocation6 + $0x680] sm:$0xff] }
  0x66   :  { %v508_v44 = vld [vmem:[#allocation6 + $0x6a0] sm:$0xff] }
  0x67   :  { %4679 = vmatpush1.bf16.msra.mxu0 %v15053_v8  ;;  %6091 = vmatpush1.bf16.msra.mxu1 %v15055_v9  ;;  %v15103_v8 = vcombine.low %v465_v59, %v469_v60  ;;  %v15110_v9 = vcombine.high %v472_v1, %v476_v2  ;;  %v15141_v60 = vcombine.low %v504_v43, %v508_v44  ;;  %v512_v2 = vld [vmem:[#allocation6 + $0x6c0] sm:$0xff] }
  0x68   :  { %5001 = vmatprep.subr.bf16.mxu0 %v15062_v10  ;;  %6413 = vmatprep.subr.bf16.mxu1 %v15064_v11  ;;  %v17656_v10 = vcombine.low %v64_v46, %v68_v47  ;;  %v15112_v11 = vcombine.high %v473_v3, %v477_v4  ;;  %v509_v46 = vld [vmem:[#allocation6 + $0x6a8] sm:$0xff]  ;;  %v88_v47 = vld [vmem:[#allocation3 + $0x180] sm:$0xff] }
  0x69   :  { %v15144_v56 = vcombine.high %v505_v45, %v509_v46  ;;  %v516_v3 = vld [vmem:[#allocation6 + $0x6e0] sm:$0xff] }
  0x6a   :  { %4681 = vmatmul.mubr.bf16.vlgmr.msra.gmra.mrb[0].mxu0 %v17632_v14  ;;  %6093 = vmatmul.mubr.bf16.vlgmr.msra.gmra.mrb[0].mxu1 %v17632_v14  ;;  %v15149_v4 = vcombine.low %v512_v2, %v516_v3 }
  0x6b   :  { %5002 = vmatpush1.bf16.msra.mxu0 %v15061_v17  ;;  %6414 = vmatpush1.bf16.msra.mxu1 %v15063_v20  ;;  %v485_v17 = vld [vmem:[#allocation6 + $0x5e8] sm:$0xff]  ;;  %v15118_v20 = vcombine.high %v480_v12, %v484_v13 }
  0x6c   :  { %4690 = vmatprep.mubr.bf16.mxu0 %v17634_v21  ;;  %6102 = vmatprep.mubr.bf16.mxu1 %v17634_v21  ;;  %v15119_v28 = vcombine.low %v481_v16, %v485_v17 }
  0x6d   :  { %5003 = vmatprep.subr.bf16.mxu0 %v15070_v22  ;;  %6415 = vmatprep.subr.bf16.mxu1 %v15072_v25  ;;  %v15120_v22 = vcombine.high %v481_v16, %v485_v17  ;;  %v489_v25 = vld [vmem:[#allocation6 + $0x608] sm:$0xff]  ;;  %v112_v17 = vld [vmem:[#allocation3 + $0x240] sm:$0xff] }
  0x6f   :  { %5004 = vmatpush1.bf16.msra.mxu0 %v15069_v26  ;;  %6416 = vmatpush1.bf16.msra.mxu1 %v15071_v29  ;;  %v84_v26 = vld [vmem:[#allocation3 + $0x160] sm:$0xff]  ;;  %v15126_v29 = vcombine.high %v488_v23, %v492_v24 }
  0x70   :  { %5005 = vmatprep.subr.bf16.mxu0 %v15078_v30  ;;  %6417 = vmatprep.subr.bf16.mxu1 %v15080_v31  ;;  %v17664_v30 = vcombine.low %v72_v5, %v76_v6  ;;  %v15128_v31 = vcombine.high %v489_v25, %v493_v53  ;;  %v17666_v36 = vcombine.high %v80_v54, %v84_v26  ;;  %v513_v6 = vld [vmem:[#allocation6 + $0x6c8] sm:$0xff] }
  0x71   :  { %v17672_v55 = vcombine.low %v80_v54, %v84_v26  ;;  %v15150_v5 = vcombine.high %v512_v2, %v516_v3  ;;  %v525_v54 = vld [vmem:[#allocation6 + $0x728] sm:$0xff]  ;;  %v120_v26 = vld [vmem:[#allocation3 + $0x280] sm:$0xff] }
  0x72   :  { %4691 = vmatmul.mubr.bf16.gmra.mrb[4].mxu0 %v17640_v32  ;;  %6103 = vmatmul.mubr.bf16.gmra.mrb[4].mxu1 %v17640_v32  ;;  %v540_v2 = vld [vmem:[#allocation6 + $0x7a0] sm:$0xff] }
  0x73   :  { %4700 = vmatprep.mubr.bf16.mxu0 %v17642_v35  ;;  %6112 = vmatprep.mubr.bf16.mxu1 %v17642_v35 }
  0x74   :  { %5006 = vmatpush1.bf16.msra.mxu0 %v15077_v38  ;;  %6418 = vmatpush1.bf16.msra.mxu1 %v15079_v39  ;;  %v501_v38 = vld [vmem:[#allocation6 + $0x668] sm:$0xff]  ;;  %v15125_v39 = vcombine.low %v488_v23, %v492_v24  ;;  %v524_v23 = vld [vmem:[#allocation6 + $0x720] sm:$0xff] }
  0x75   :  { %5007 = vmatprep.subr.bf16.mxu0 %v15086_v40  ;;  %6419 = vmatprep.subr.bf16.mxu1 %v15088_v41  ;;  %v15127_v40 = vcombine.low %v489_v25, %v493_v53  ;;  %v15134_v41 = vcombine.high %v496_v33, %v500_v34  ;;  %v15136_v42 = vcombine.high %v497_v37, %v501_v38  ;;  %v521_v53 = vld [vmem:[#allocation6 + $0x708] sm:$0xff] }
  0x78   :  { %5008 = vmatpush1.bf16.msra.mxu0 %v15085_v48  ;;  %6420 = vmatpush1.bf16.msra.mxu1 %v15087_v49  ;;  %v92_v48 = vld [vmem:[#allocation3 + $0x1a0] sm:$0xff]  ;;  %v15133_v49 = vcombine.low %v496_v33, %v500_v34 }
  0x79   :  { %5009 = vmatprep.subr.bf16.mxu0 %v15094_v50  ;;  %6421 = vmatprep.subr.bf16.mxu1 %v15096_v52  ;;  %v15135_v50 = vcombine.low %v497_v37, %v501_v38  ;;  %v15142_v52 = vcombine.high %v504_v43, %v508_v44  ;;  %v17674_v59 = vcombine.high %v88_v47, %v92_v48  ;;  %v128_v34 = vld [vmem:[#allocation3 + $0x2c0] sm:$0xff]  ;;  %v529_v44 = vld [vmem:[#allocation6 + $0x748] sm:$0xff] }
  0x7a   :  { %4701 = vmatmul.mubr.bf16.gmra.mrb[8].mxu0 %v17648_v51  ;;  %6113 = vmatmul.mubr.bf16.gmra.mrb[8].mxu1 %v17648_v51  ;;  %v132_v37 = vld [vmem:[#allocation3 + $0x2e0] sm:$0xff] }
  0x7b   :  { %4710 = vmatprep.mubr.bf16.mxu0 %v17650_v57  ;;  %6122 = vmatprep.mubr.bf16.mxu1 %v17650_v57 }
  0x7c   :  { %5010 = vmatpush1.bf16.msra.mxu0 %v15093_v61  ;;  %6422 = vmatpush1.bf16.msra.mxu1 %v15095_v62  ;;  %v15143_v61 = vcombine.low %v505_v45, %v509_v46  ;;  %v96_v62 = vld [vmem:[#allocation3 + $0x1c0] sm:$0xff]  ;;  %v533_v45 = vld [vmem:[#allocation6 + $0x768] sm:$0xff] }
  0x7d   :  { %5011 = vmatprep.subr.bf16.mxu0 %v15102_v63  ;;  %6423 = vmatprep.subr.bf16.mxu1 %v15104_v0  ;;  %v100_v63 = vld [vmem:[#allocation3 + $0x1e0] sm:$0xff]  ;;  %v17680_v0 = vcombine.low %v88_v47, %v92_v48  ;;  %v15167_v48 = vcombine.low %v529_v44, %v533_v45 }
  0x7e   :  { %v17682_v1 = vcombine.high %v96_v62, %v100_v63  ;;  %v17688_v13 = vcombine.low %v96_v62, %v100_v63  ;;  %v136_v46 = vld [vmem:[#allocation3 + $0x300] sm:$0xff] }
  0x7f   :  { %v140_v47 = vld [vmem:[#allocation3 + $0x320] sm:$0xff] }
  0x80   :  { %5012 = vmatpush1.bf16.msra.mxu0 %v15101_v7  ;;  %6424 = vmatpush1.bf16.msra.mxu1 %v15103_v8  ;;  %v517_v7 = vld [vmem:[#allocation6 + $0x6e8] sm:$0xff]  ;;  %v104_v8 = vld [vmem:[#allocation3 + $0x200] sm:$0xff] }
  0x81   :  { %5013 = vmatprep.subr.bf16.mxu0 %v15110_v9  ;;  %6425 = vmatprep.subr.bf16.mxu1 %v15112_v11  ;;  %v108_v9 = vld [vmem:[#allocation3 + $0x220] sm:$0xff]  ;;  %v15151_v11 = vcombine.low %v513_v6, %v517_v7  ;;  %v15152_v12 = vcombine.high %v513_v6, %v517_v7  ;;  %v541_v6 = vld [vmem:[#allocation6 + $0x7a8] sm:$0xff] }
  0x82   :  { %4711 = vmatmul.mubr.bf16.gmra.mrb[12].mxu0 %v17656_v10  ;;  %6123 = vmatmul.mubr.bf16.gmra.mrb[12].mxu1 %v17656_v10  ;;  %v17690_v16 = vcombine.high %v104_v8, %v108_v9  ;;  %v536_v63 = vld [vmem:[#allocation6 + $0x780] sm:$0xff] }
  0x83   :  { %4720 = vmatprep.mubr.bf16.mxu0 %v17658_v15  ;;  %6132 = vmatprep.mubr.bf16.mxu1 %v17658_v15  ;;  %v15173_v3 = vcombine.low %v536_v63, %v540_v2  ;;  %v152_v7 = vld [vmem:[#allocation3 + $0x380] sm:$0xff] }
  0x84   :  { %5014 = vmatpush1.bf16.msra.mxu0 %v15109_v18  ;;  %6426 = vmatpush1.bf16.msra.mxu1 %v15111_v19  ;;  %v116_v18 = vld [vmem:[#allocation3 + $0x260] sm:$0xff]  ;;  %v17696_v19 = vcombine.low %v104_v8, %v108_v9 }
  0x85   :  { %5015 = vmatprep.subr.bf16.mxu0 %v15118_v20  ;;  %6427 = vmatprep.subr.bf16.mxu1 %v15120_v22  ;;  %v17698_v20 = vcombine.high %v112_v17, %v116_v18  ;;  %v520_v22 = vld [vmem:[#allocation6 + $0x700] sm:$0xff] }
  0x86   :  { %v15157_v24 = vcombine.low %v520_v22, %v524_v23  ;;  %v15158_v25 = vcombine.high %v520_v22, %v524_v23  ;;  %v156_v8 = vld [vmem:[#allocation3 + $0x3a0] sm:$0xff] }
  0x87   :  { %v164_v22 = vld [vmem:[#allocation3 + $0x3e0] sm:$0xff]  ;;  %v17744_v23 = vcombine.low %v152_v7, %v156_v8 }
  0x88   :  { %5016 = vmatpush1.bf16.msra.mxu0 %v15117_v27  ;;  %6428 = vmatpush1.bf16.msra.mxu1 %v15119_v28  ;;  %v124_v27 = vld [vmem:[#allocation3 + $0x2a0] sm:$0xff]  ;;  %v15159_v28 = vcombine.low %v521_v53, %v525_v54 }
  0x89   :  { %5017 = vmatprep.subr.bf16.mxu0 %v15126_v29  ;;  %6429 = vmatprep.subr.bf16.mxu1 %v15128_v31  ;;  %v15160_v29 = vcombine.high %v521_v53, %v525_v54  ;;  %v17704_v31 = vcombine.low %v112_v17, %v116_v18  ;;  %v17706_v33 = vcombine.high %v120_v26, %v124_v27  ;;  %v160_v18 = vld [vmem:[#allocation3 + $0x3c0] sm:$0xff] }
  0x8a   :  { %4721 = vmatmul.mubr.bf16.gmra.mrb[16].mxu0 %v17664_v30  ;;  %6133 = vmatmul.mubr.bf16.gmra.mrb[16].mxu1 %v17664_v30  ;;  %v17712_v38 = vcombine.low %v120_v26, %v124_v27  ;;  %v17738_v17 = vcombine.high %v152_v7, %v156_v8  ;;  %v548_v53 = vld [vmem:[#allocation6 + $0x7e0] sm:$0xff]  ;;  %v545_v27 = vld [vmem:[#allocation6 + $0x7c8] sm:$0xff] }
  0x8b   :  { %4730 = vmatprep.mubr.bf16.mxu0 %v17666_v36  ;;  %6142 = vmatprep.mubr.bf16.mxu1 %v17666_v36  ;;  %v192_v8 = vld [vmem:[#allocation3 + $0x4c0] sm:$0xff] }
  0x8c   :  { %5018 = vmatpush1.bf16.msra.mxu0 %v15125_v39  ;;  %6430 = vmatpush1.bf16.msra.mxu1 %v15127_v40  ;;  %v17714_v39 = vcombine.high %v128_v34, %v132_v37  ;;  %v528_v40 = vld [vmem:[#allocation6 + $0x740] sm:$0xff] }
  0x8d   :  { %5019 = vmatprep.subr.bf16.mxu0 %v15134_v41  ;;  %6431 = vmatprep.subr.bf16.mxu1 %v15136_v42  ;;  %v532_v41 = vld [vmem:[#allocation6 + $0x760] sm:$0xff] }
  0x8e   :  { %v15165_v42 = vcombine.low %v528_v40, %v532_v41  ;;  %v15166_v43 = vcombine.high %v528_v40, %v532_v41  ;;  %v17752_v41 = vcombine.low %v160_v18, %v164_v22 }
  0x90   :  { %5020 = vmatpush1.bf16.msra.mxu0 %v15133_v49  ;;  %6432 = vmatpush1.bf16.msra.mxu1 %v15135_v50  ;;  %v15168_v49 = vcombine.high %v529_v44, %v533_v45  ;;  %v17720_v50 = vcombine.low %v128_v34, %v132_v37  ;;  %v172_v34 = vld [vmem:[#allocation3 + $0x420] sm:$0xff] }
  0x91   :  { %5021 = vmatprep.subr.bf16.mxu0 %v15142_v52  ;;  %6433 = vmatprep.subr.bf16.mxu1 %v15144_v56  ;;  %v17722_v52 = vcombine.high %v136_v46, %v140_v47  ;;  %v144_v56 = vld [vmem:[#allocation3 + $0x340] sm:$0xff] }
  0x92   :  { %4731 = vmatmul.mubr.bf16.gmra.mrb[20].mxu0 %v17672_v55  ;;  %6143 = vmatmul.mubr.bf16.gmra.mrb[20].mxu1 %v17672_v55  ;;  %v180_v44 = vld [vmem:[#allocation3 + $0x460] sm:$0xff] }
  0x93   :  { %4740 = vmatprep.mubr.bf16.mxu0 %v17674_v59  ;;  %6152 = vmatprep.mubr.bf16.mxu1 %v17674_v59 }
  0x94   :  { %5022 = vmatpush1.bf16.msra.mxu0 %v15141_v60  ;;  %6434 = vmatpush1.bf16.msra.mxu1 %v15143_v61  ;;  %v148_v60 = vld [vmem:[#allocation3 + $0x360] sm:$0xff]  ;;  %v17728_v61 = vcombine.low %v136_v46, %v140_v47 }
  0x95   :  { %5023 = vmatprep.subr.bf16.mxu0 %v15150_v5  ;;  %6435 = vmatprep.subr.bf16.mxu1 %v15152_v12  ;;  %v17730_v62 = vcombine.high %v144_v56, %v148_v60  ;;  %v537_v5 = vld [vmem:[#allocation6 + $0x788] sm:$0xff]  ;;  %v17736_v12 = vcombine.low %v144_v56, %v148_v60  ;;  %v17765_v47 = vld [vmem:[#allocation6 + $0x800] sm:$0xff] }
  0x96   :  { %v15175_v9 = vcombine.low %v537_v5, %v541_v6  ;;  %v17775_v60 = vld [vmem:[#allocation6 + $0x808] sm:$0xff] }
  0x98   :  { %5024 = vmatpush1.bf16.msra.mxu0 %v15149_v4  ;;  %6436 = vmatpush1.bf16.msra.mxu1 %v15151_v11  ;;  %v15174_v4 = vcombine.high %v536_v63, %v540_v2  ;;  %v15176_v11 = vcombine.high %v537_v5, %v541_v6  ;;  %v17777_v63 = vld [vmem:[#allocation6 + $0x828] sm:$0xff]  ;;  %v184_v2 = vld [vmem:[#allocation3 + $0x480] sm:$0xff] }
  0x99   :  { %5025 = vmatprep.subr.bf16.mxu0 %v15158_v25  ;;  %6437 = vmatprep.subr.bf16.mxu1 %v15160_v29  ;;  %v544_v25 = vld [vmem:[#allocation6 + $0x7c0] sm:$0xff]  ;;  %v15192_v5 = vcombine.high %v17775_v60, %v17777_v63 }
  0x9a   :  { %4741 = vmatmul.mubr.bf16.gmra.mrb[24].mxu0 %v17680_v0  ;;  %6153 = vmatmul.mubr.bf16.gmra.mrb[24].mxu1 %v17680_v0  ;;  %v15181_v54 = vcombine.low %v544_v25, %v548_v53  ;;  %v15182_v26 = vcombine.high %v544_v25, %v548_v53  ;;  %v168_v29 = vld [vmem:[#allocation3 + $0x400] sm:$0xff] }
  0x9b   :  { %4750 = vmatprep.mubr.bf16.mxu0 %v17682_v1  ;;  %6162 = vmatprep.mubr.bf16.mxu1 %v17682_v1  ;;  %v17760_v45 = vcombine.low %v168_v29, %v172_v34  ;;  %v204_v25 = vld [vmem:[#allocation3 + $0x520] sm:$0xff] }
  0x9c   :  { %5026 = vmatpush1.bf16.msra.mxu0 %v15157_v24  ;;  %6438 = vmatpush1.bf16.msra.mxu1 %v15159_v28  ;;  %v17746_v24 = vcombine.high %v160_v18, %v164_v22  ;;  %v549_v28 = vld [vmem:[#allocation6 + $0x7e8] sm:$0xff]  ;;  %v200_v22 = vld [vmem:[#allocation3 + $0x500] sm:$0xff] }
  0x9d   :  { %5027 = vmatprep.subr.bf16.mxu0 %v15166_v43  ;;  %6439 = vmatprep.subr.bf16.mxu1 %v15168_v49  ;;  %v15183_v37 = vcombine.low %v545_v27, %v549_v28  ;;  %v15184_v40 = vcombine.high %v545_v27, %v549_v28  ;;  %v176_v43 = vld [vmem:[#allocation3 + $0x440] sm:$0xff]  ;;  %v17808_v28 = vcombine.low %v200_v22, %v204_v25 }
  0x9e   :  { %v17762_v46 = vcombine.high %v176_v43, %v180_v44  ;;  %v17784_v6 = vcombine.low %v176_v43, %v180_v44  ;;  %v212_v27 = vld [vmem:[#allocation3 + $0x560] sm:$0xff] }
  0x9f   :  { %19750 = vst [vmem:[#allocation16_spill] sm:$0xff] %v17808_v28  ;;  %v224_v44 = vld [vmem:[#allocation3 + $0x5c0] sm:$0xff] }
  0xa0   :  { %5028 = vmatpush1.bf16.msra.mxu0 %v15165_v42  ;;  %6440 = vmatpush1.bf16.msra.mxu1 %v15167_v48  ;;  %v17754_v42 = vcombine.high %v168_v29, %v172_v34  ;;  %v17767_v48 = vld [vmem:[#allocation6 + $0x820] sm:$0xff] }
  0xa1   :  { %5029 = vmatprep.subr.bf16.mxu0 %v15174_v4  ;;  %6441 = vmatprep.subr.bf16.mxu1 %v15176_v11  ;;  %v15190_v56 = vcombine.high %v17765_v47, %v17767_v48  ;;  %v216_v34 = vld [vmem:[#allocation3 + $0x580] sm:$0xff] }
  0xa2   :  { %4751 = vmatmul.mubr.bf16.gmra.mrb[28].mxu0 %v17688_v13  ;;  %6163 = vmatmul.mubr.bf16.gmra.mrb[28].mxu1 %v17688_v13 }
  0xa3   :  { %4760 = vmatprep.mubr.bf16.mxu0 %v17690_v16  ;;  %6172 = vmatprep.mubr.bf16.mxu1 %v17690_v16 }
  0xa4   :  { %5030 = vmatpush1.bf16.msra.mxu0 %v15173_v3  ;;  %6442 = vmatpush1.bf16.msra.mxu1 %v15175_v9  ;;  %v188_v3 = vld [vmem:[#allocation3 + $0x4a0] sm:$0xff] }
  0xa5   :  { %5031 = vmatprep.subr.bf16.mxu0 %v15182_v26  ;;  %6443 = vmatprep.subr.bf16.mxu1 %v15184_v40  ;;  %v17786_v7 = vcombine.high %v184_v2, %v188_v3  ;;  %v196_v9 = vld [vmem:[#allocation3 + $0x4e0] sm:$0xff]  ;;  %v17792_v11 = vcombine.low %v184_v2, %v188_v3 }
  0xa6   :  { %v17794_v18 = vcombine.high %v192_v8, %v196_v9  ;;  %v17800_v53 = vcombine.low %v192_v8, %v196_v9  ;;  %v208_v26 = vld [vmem:[#allocation3 + $0x540] sm:$0xff] }
  0xa7   :  { %19746 = vst [vmem:[#allocation12_spill] sm:$0xff] %v17792_v11  ;;  %v17810_v29 = vcombine.high %v208_v26, %v212_v27  ;;  %v17816_v40 = vcombine.low %v208_v26, %v212_v27  ;;  %v236_v8 = vld [vmem:[#allocation3 + $0x620] sm:$0xff] }
  0xa8   :  { %5032 = vmatpush1.bf16.msra.mxu0 %v15181_v54  ;;  %6444 = vmatpush1.bf16.msra.mxu1 %v15183_v37  ;;  %19747 = vst [vmem:[#allocation13_spill] sm:$0xff] %v17794_v18  ;;  %19748 = vst [vmem:[#allocation14_spill] sm:$0xff] %v17800_v53  ;;  %v17802_v54 = vcombine.high %v200_v22, %v204_v25  ;;  %v220_v37 = vld [vmem:[#allocation3 + $0x5a0] sm:$0xff] }
  0xa9   :  { %5354 = vmatprep.subr.bf16.mxu0 %v15190_v56  ;;  %6766 = vmatprep.subr.bf16.mxu1 %v15192_v5  ;;  %19751 = vst [vmem:[#allocation17_spill] sm:$0xff] %v17810_v29  ;;  %19752 = vst [vmem:[#allocation18_spill] sm:$0xff] %v17816_v40  ;;  %v17818_v43 = vcombine.high %v216_v34, %v220_v37  ;;  %v228_v56 = vld [vmem:[#allocation3 + $0x5e0] sm:$0xff]  ;;  %v17824_v2 = vcombine.low %v216_v34, %v220_v37 }
  0xaa   :  { %4761 = vmatmul.mubr.bf16.gmra.mrb[32].mxu0 %v17696_v19  ;;  %6173 = vmatmul.mubr.bf16.gmra.mrb[32].mxu1 %v17696_v19  ;;  %19749 = vst [vmem:[#allocation15_spill] sm:$0xff] %v17802_v54  ;;  %v17826_v3 = vcombine.high %v224_v44, %v228_v56  ;;  %v232_v5 = vld [vmem:[#allocation3 + $0x600] sm:$0xff]  ;;  %v17832_v9 = vcombine.low %v224_v44, %v228_v56 }
  0xab   :  { %4770 = vmatprep.mubr.bf16.mxu0 %v17698_v20  ;;  %6182 = vmatprep.mubr.bf16.mxu1 %v17698_v20  ;;  %19753 = vst [vmem:[#allocation19_spill] sm:$0xff] %v17818_v43  ;;  %19754 = vst [vmem:[#allocation20_spill] sm:$0xff] %v17824_v2  ;;  %v17834_v22 = vcombine.high %v232_v5, %v236_v8  ;;  %v240_v25 = vld [vmem:[#allocation3 + $0x640] sm:$0xff]  ;;  %v17840_v27 = vcombine.low %v232_v5, %v236_v8 }
  0xac   :  { %19755 = vst [vmem:[#allocation21_spill] sm:$0xff] %v17826_v3  ;;  %19756 = vst [vmem:[#allocation22_spill] sm:$0xff] %v17832_v9  ;;  %v244_v26 = vld [vmem:[#allocation3 + $0x660] sm:$0xff] }
  0xad   :  { %19757 = vst [vmem:[#allocation23_spill] sm:$0xff] %v17834_v22  ;;  %19758 = vst [vmem:[#allocation24_spill] sm:$0xff] %v17840_v27  ;;  %v17842_v34 = vcombine.high %v240_v25, %v244_v26  ;;  %v248_v37 = vld [vmem:[#allocation3 + $0x680] sm:$0xff]  ;;  %v17848_v56 = vcombine.low %v240_v25, %v244_v26 }
  0xae   :  { %v252_v44 = vld [vmem:[#allocation3 + $0x6a0] sm:$0xff] }
  0xaf   :  { %19759 = vst [vmem:[#allocation25_spill] sm:$0xff] %v17842_v34  ;;  %19760 = vst [vmem:[#allocation26_spill] sm:$0xff] %v17848_v56  ;;  %v17850_v4 = vcombine.high %v248_v37, %v252_v44  ;;  %v256_v5 = vld [vmem:[#allocation3 + $0x6c0] sm:$0xff]  ;;  %v17856_v49 = vcombine.low %v248_v37, %v252_v44 }
  0xb0   :  { %v260_v8 = vld [vmem:[#allocation3 + $0x6e0] sm:$0xff] }
  0xb1   :  { %19761 = vst [vmem:[#allocation27_spill] sm:$0xff] %v17850_v4  ;;  %19762 = vst [vmem:[#allocation28_spill] sm:$0xff] %v17856_v49  ;;  %v264_v25 = vld [vmem:[#allocation3 + $0x700] sm:$0xff] }
  0xb2   :  { %4771 = vmatmul.mubr.bf16.gmra.mrb[36].mxu0 %v17704_v31  ;;  %6183 = vmatmul.mubr.bf16.gmra.mrb[36].mxu1 %v17704_v31  ;;  %v268_v26 = vld [vmem:[#allocation3 + $0x720] sm:$0xff] }
  0xb3   :  { %4780 = vmatprep.mubr.bf16.mxu0 %v17706_v33  ;;  %6192 = vmatprep.mubr.bf16.mxu1 %v17706_v33  ;;  %v272_v37 = vld [vmem:[#allocation3 + $0x740] sm:$0xff] }
  0xb4   :  { %v276_v44 = vld [vmem:[#allocation3 + $0x760] sm:$0xff] }
  0xba   :  { %4781 = vmatmul.mubr.bf16.gmra.mrb[40].mxu0 %v17712_v38  ;;  %6193 = vmatmul.mubr.bf16.gmra.mrb[40].mxu1 %v17712_v38 }
  0xbb   :  { %4790 = vmatprep.mubr.bf16.mxu0 %v17714_v39  ;;  %6202 = vmatprep.mubr.bf16.mxu1 %v17714_v39 }
  0xc2   :  { %4791 = vmatmul.mubr.bf16.gmra.mrb[44].mxu0 %v17720_v50  ;;  %6203 = vmatmul.mubr.bf16.gmra.mrb[44].mxu1 %v17720_v50 }
  0xc3   :  { %4800 = vmatprep.mubr.bf16.mxu0 %v17722_v52  ;;  %6212 = vmatprep.mubr.bf16.mxu1 %v17722_v52 }
  0xca   :  { %4801 = vmatmul.mubr.bf16.gmra.mrb[48].mxu0 %v17728_v61  ;;  %6213 = vmatmul.mubr.bf16.gmra.mrb[48].mxu1 %v17728_v61 }
  0xcb   :  { %4810 = vmatprep.mubr.bf16.mxu0 %v17730_v62  ;;  %6222 = vmatprep.mubr.bf16.mxu1 %v17730_v62 }
  0xd2   :  { %4811 = vmatmul.mubr.bf16.gmra.mrb[52].mxu0 %v17736_v12  ;;  %6223 = vmatmul.mubr.bf16.gmra.mrb[52].mxu1 %v17736_v12 }
  0xd3   :  { %4820 = vmatprep.mubr.bf16.mxu0 %v17738_v17  ;;  %6232 = vmatprep.mubr.bf16.mxu1 %v17738_v17 }
  0xda   :  { %4821 = vmatmul.mubr.bf16.gmra.mrb[56].mxu0 %v17744_v23  ;;  %6233 = vmatmul.mubr.bf16.gmra.mrb[56].mxu1 %v17744_v23 }
  0xdb   :  { %4830 = vmatprep.mubr.bf16.mxu0 %v17746_v24  ;;  %6242 = vmatprep.mubr.bf16.mxu1 %v17746_v24 }
  0xe2   :  { %4831 = vmatmul.mubr.bf16.gmra.mrb[60].mxu0 %v17752_v41  ;;  %6243 = vmatmul.mubr.bf16.gmra.mrb[60].mxu1 %v17752_v41 }
  0xe3   :  { %4840 = vmatprep.mubr.bf16.mxu0 %v17754_v42  ;;  %6252 = vmatprep.mubr.bf16.mxu1 %v17754_v42 }
  0xea   :  { %4841 = vmatmul.mubr.bf16.gmra.mrb[64].mxu0 %v17760_v45  ;;  %6253 = vmatmul.mubr.bf16.gmra.mrb[64].mxu1 %v17760_v45 }
  0xeb   :  { %4850 = vmatprep.mubr.bf16.mxu0 %v17762_v46  ;;  %6262 = vmatprep.mubr.bf16.mxu1 %v17762_v46 }
  0xf2   :  { %4851 = vmatmul.mubr.bf16.gmra.mrb[68].mxu0 %v17784_v6  ;;  %6263 = vmatmul.mubr.bf16.gmra.mrb[68].mxu1 %v17784_v6 }
  0xf3   :  { %4860 = vmatprep.mubr.bf16.mxu0 %v17786_v7  ;;  %6272 = vmatprep.mubr.bf16.mxu1 %v17786_v7 }
  0xfa   :  { %4861 = vmatmul.mubr.bf16.gmra.mrb[72].mxu0 %v17792_v11  ;;  %6273 = vmatmul.mubr.bf16.gmra.mrb[72].mxu1 %v17792_v11  ;;  %v597_v11 = vld [vmem:[#allocation6 + $0x968] sm:$0xff] }
  0xfb   :  { %4870 = vmatprep.mubr.bf16.mxu0 %v17794_v18  ;;  %6282 = vmatprep.mubr.bf16.mxu1 %v17794_v18 }
 0x102   :  { %4871 = vmatmul.mubr.bf16.gmra.mrb[76].mxu0 %v17800_v53  ;;  %6283 = vmatmul.mubr.bf16.gmra.mrb[76].mxu1 %v17800_v53 }
 0x103   :  { %4880 = vmatprep.mubr.bf16.mxu0 %v17802_v54  ;;  %6292 = vmatprep.mubr.bf16.mxu1 %v17802_v54 }
 0x10a   :  { %4881 = vmatmul.mubr.bf16.gmra.mrb[80].mxu0 %v17808_v28  ;;  %6293 = vmatmul.mubr.bf16.gmra.mrb[80].mxu1 %v17808_v28  ;;  %v61_v28 = vld [vmem:[#allocation3 + $0xa8] sm:$0xff] }
 0x10b   :  { %4890 = vmatprep.mubr.bf16.mxu0 %v17810_v29  ;;  %6302 = vmatprep.mubr.bf16.mxu1 %v17810_v29  ;;  %v57_v29 = vld [vmem:[#allocation3 + $0x88] sm:$0xff] }
 0x112   :  { %4891 = vmatmul.mubr.bf16.gmra.mrb[84].mxu0 %v17816_v40  ;;  %6303 = vmatmul.mubr.bf16.gmra.mrb[84].mxu1 %v17816_v40  ;;  %v573_v40 = vld [vmem:[#allocation6 + $0x8a8] sm:$0xff] }
 0x113   :  { %4900 = vmatprep.mubr.bf16.mxu0 %v17818_v43  ;;  %6312 = vmatprep.mubr.bf16.mxu1 %v17818_v43  ;;  %v569_v43 = vld [vmem:[#allocation6 + $0x888] sm:$0xff] }
 0x114   :  { %v15208_v18 = vcombine.high %v569_v43, %v573_v40 }
 0x11a   :  { %4901 = vmatmul.mubr.bf16.gmra.mrb[88].mxu0 %v17824_v2  ;;  %6313 = vmatmul.mubr.bf16.gmra.mrb[88].mxu1 %v17824_v2  ;;  %v572_v2 = vld [vmem:[#allocation6 + $0x8a0] sm:$0xff] }
 0x11b   :  { %4910 = vmatprep.mubr.bf16.mxu0 %v17826_v3  ;;  %6322 = vmatprep.mubr.bf16.mxu1 %v17826_v3  ;;  %v568_v3 = vld [vmem:[#allocation6 + $0x880] sm:$0xff] }
 0x11c   :  { %v15206_v53 = vcombine.high %v568_v3, %v572_v2 }
 0x122   :  { %4911 = vmatmul.mubr.bf16.gmra.mrb[92].mxu0 %v17832_v9  ;;  %6323 = vmatmul.mubr.bf16.gmra.mrb[92].mxu1 %v17832_v9  ;;  %v565_v9 = vld [vmem:[#allocation6 + $0x868] sm:$0xff] }
 0x123   :  { %4920 = vmatprep.mubr.bf16.mxu0 %v17834_v22  ;;  %6332 = vmatprep.mubr.bf16.mxu1 %v17834_v22  ;;  %v561_v22 = vld [vmem:[#allocation6 + $0x848] sm:$0xff] }
 0x124   :  { %v15199_v54 = vcombine.low %v561_v22, %v565_v9 }
 0x12a   :  { %4921 = vmatmul.mubr.bf16.gmra.mrb[96].mxu0 %v17840_v27  ;;  %6333 = vmatmul.mubr.bf16.gmra.mrb[96].mxu1 %v17840_v27  ;;  %v17858_v27 = vcombine.high %v256_v5, %v260_v8 }
 0x12b   :  { %4930 = vmatprep.mubr.bf16.mxu0 %v17842_v34  ;;  %6342 = vmatprep.mubr.bf16.mxu1 %v17842_v34  ;;  %v17866_v34 = vcombine.high %v264_v25, %v268_v26 }
 0x12c   :  { %19763 = vst [vmem:[#allocation29_spill] sm:$0xff] %v17858_v27 }
 0x12d   :  { %19765 = vst [vmem:[#allocation31_spill] sm:$0xff] %v17866_v34 }
 0x132   :  { %4931 = vmatmul.mubr.bf16.gmra.mrb[100].mxu0 %v17848_v56  ;;  %6343 = vmatmul.mubr.bf16.gmra.mrb[100].mxu1 %v17848_v56  ;;  %v17864_v56 = vcombine.low %v256_v5, %v260_v8  ;;  %v280_v5 = vld [vmem:[#allocation3 + $0x780] sm:$0xff] }
 0x133   :  { %4940 = vmatprep.mubr.bf16.mxu0 %v17850_v4  ;;  %6352 = vmatprep.mubr.bf16.mxu1 %v17850_v4  ;;  %v17874_v4 = vcombine.high %v272_v37, %v276_v44  ;;  %v284_v8 = vld [vmem:[#allocation3 + $0x7a0] sm:$0xff] }
 0x134   :  { %19764 = vst [vmem:[#allocation30_spill] sm:$0xff] %v17864_v56 }
 0x135   :  { %19767 = vst [vmem:[#allocation33_spill] sm:$0xff] %v17874_v4 }
 0x13a   :  { %4941 = vmatmul.mubr.bf16.gmra.mrb[104].mxu0 %v17856_v49  ;;  %6353 = vmatmul.mubr.bf16.gmra.mrb[104].mxu1 %v17856_v49  ;;  %v17872_v49 = vcombine.low %v264_v25, %v268_v26  ;;  %v288_v25 = vld [vmem:[#allocation3 + $0x7c0] sm:$0xff] }
 0x13b   :  { %4950 = vmatprep.mubr.bf16.mxu0 %v17858_v27  ;;  %6362 = vmatprep.mubr.bf16.mxu1 %v17858_v27  ;;  %v17882_v27 = vcombine.high %v280_v5, %v284_v8  ;;  %v292_v26 = vld [vmem:[#allocation3 + $0x7e0] sm:$0xff] }
 0x13c   :  { %19766 = vst [vmem:[#allocation32_spill] sm:$0xff] %v17872_v49 }
 0x13d   :  { %19769 = vst [vmem:[#allocation35_spill] sm:$0xff] %v17882_v27 }
 0x142   :  { %4951 = vmatmul.mubr.bf16.gmra.mrb[108].mxu0 %v17864_v56  ;;  %6363 = vmatmul.mubr.bf16.gmra.mrb[108].mxu1 %v17864_v56  ;;  %v17880_v56 = vcombine.low %v272_v37, %v276_v44  ;;  %v41_v37 = vld [vmem:[#allocation3 + $0x8] sm:$0xff] }
 0x143   :  { %4960 = vmatprep.mubr.bf16.mxu0 %v17866_v34  ;;  %6372 = vmatprep.mubr.bf16.mxu1 %v17866_v34  ;;  %v17890_v34 = vcombine.high %v288_v25, %v292_v26  ;;  %v45_v44 = vld [vmem:[#allocation3 + $0x28] sm:$0xff] }
 0x144   :  { %19768 = vst [vmem:[#allocation34_spill] sm:$0xff] %v17880_v56 }
 0x145   :  { %19771 = vst [vmem:[#allocation37_spill] sm:$0xff] %v17890_v34 }
 0x14a   :  { %4961 = vmatmul.mubr.bf16.gmra.mrb[112].mxu0 %v17872_v49  ;;  %6373 = vmatmul.mubr.bf16.gmra.mrb[112].mxu1 %v17872_v49  ;;  %v17888_v49 = vcombine.low %v280_v5, %v284_v8  ;;  %v49_v5 = vld [vmem:[#allocation3 + $0x48] sm:$0xff] }
 0x14b   :  { %4970 = vmatprep.mubr.bf16.mxu0 %v17874_v4  ;;  %6382 = vmatprep.mubr.bf16.mxu1 %v17874_v4  ;;  %v17898_v4 = vcombine.high %v41_v37, %v45_v44  ;;  %v53_v8 = vld [vmem:[#allocation3 + $0x68] sm:$0xff] }
 0x14c   :  { %19770 = vst [vmem:[#allocation36_spill] sm:$0xff] %v17888_v49 }
 0x14d   :  { %19773 = vst [vmem:[#allocation39_spill] sm:$0xff] %v17898_v4 }
 0x152   :  { %4971 = vmatmul.mubr.bf16.gmra.mrb[116].mxu0 %v17880_v56  ;;  %6383 = vmatmul.mubr.bf16.gmra.mrb[116].mxu1 %v17880_v56  ;;  %v17896_v56 = vcombine.low %v288_v25, %v292_v26  ;;  %v17906_v25 = vcombine.high %v49_v5, %v53_v8 }
 0x153   :  { %4980 = vmatprep.mubr.bf16.mxu0 %v17882_v27  ;;  %6392 = vmatprep.mubr.bf16.mxu1 %v17882_v27  ;;  %v560_v27 = vld [vmem:[#allocation6 + $0x840] sm:$0xff] }
 0x154   :  { %19772 = vst [vmem:[#allocation38_spill] sm:$0xff] %v17896_v56  ;;  %19775 = vst [vmem:[#allocation41_spill] sm:$0xff] %v17906_v25 }
 0x15a   :  { %4981 = vmatmul.mubr.bf16.gmra.mrb[120].mxu0 %v17888_v49  ;;  %6393 = vmatmul.mubr.bf16.gmra.mrb[120].mxu1 %v17888_v49  ;;  %v17904_v49 = vcombine.low %v41_v37, %v45_v44  ;;  %v19776_v37 = vcombine.low %v17765_v47, %v17767_v48  ;;  %v576_v47 = vld [vmem:[#allocation6 + $0x8c0] sm:$0xff] }
 0x15b   :  { %4990 = vmatprep.mubr.bf16.mxu0 %v17890_v34  ;;  %6402 = vmatprep.mubr.bf16.mxu1 %v17890_v34  ;;  %v564_v34 = vld [vmem:[#allocation6 + $0x860] sm:$0xff] }
 0x15c   :  { %19774 = vst [vmem:[#allocation40_spill] sm:$0xff] %v17904_v49  ;;  %v15198_v26 = vcombine.high %v560_v27, %v564_v34  ;;  %v15197_v44 = vcombine.low %v560_v27, %v564_v34  ;;  %v580_v48 = vld [vmem:[#allocation6 + $0x8e0] sm:$0xff]  ;;  %v17920_v27 = vcombine.high %v57_v29, %v61_v28  ;;  %v15207_v34 = vcombine.low %v569_v43, %v573_v40 }
 0x15d   :  { %v17926_v43 = vcombine.low %v57_v29, %v61_v28  ;;  %v600_v28 = vld [vmem:[#allocation6 + $0x980] sm:$0xff] }
 0x15e   :  { %19779 = vst [vmem:[#allocation43_spill] sm:$0xff] %v17920_v27  ;;  %v604_v29 = vld [vmem:[#allocation6 + $0x9a0] sm:$0xff] }
 0x15f   :  { %19780 = vst [vmem:[#allocation44_spill] sm:$0xff] %v17926_v43 }
 0x162   :  { %4991 = vmatmul.mubr.bf16.gmra.mrb[124].mxu0 %v17896_v56  ;;  %6403 = vmatmul.mubr.bf16.gmra.mrb[124].mxu1 %v17896_v56  ;;  %v15200_v56 = vcombine.high %v561_v22, %v565_v9  ;;  %v15214_v9 = vcombine.high %v576_v47, %v580_v48 }
 0x163   :  { %5033 = vmatprep.mubr.bf16.mxu0 %v17898_v4  ;;  %6445 = vmatprep.mubr.bf16.mxu1 %v17898_v4  ;;  %v19777_v4 = vcombine.low %v17775_v60, %v17777_v63  ;;  %v577_v60 = vld [vmem:[#allocation6 + $0x8c8] sm:$0xff] }
 0x164   :  { %v581_v63 = vld [vmem:[#allocation6 + $0x8e8] sm:$0xff] }
 0x165   :  { %v15216_v22 = vcombine.high %v577_v60, %v581_v63 }
 0x16a   :  { %5034 = vmatmul.mubr.bf16.vlgmr.msra.gmra.mrb[0].mxu0 %v17904_v49  ;;  %6446 = vmatmul.mubr.bf16.vlgmr.msra.gmra.mrb[0].mxu1 %v17904_v49  ;;  %v17918_v49 = vcombine.low %v49_v5, %v53_v8  ;;  %v588_v5 = vld [vmem:[#allocation6 + $0x920] sm:$0xff]  ;;  %v589_v8 = vld [vmem:[#allocation6 + $0x928] sm:$0xff] }
 0x16b   :  { %5355 = vmatpush1.bf16.msra.mxu0 %v19776_v37  ;;  %6767 = vmatpush1.bf16.msra.mxu1 %v19777_v4  ;;  %v15205_v4 = vcombine.low %v568_v3, %v572_v2  ;;  %v65_v37 = vld [vmem:[#allocation3 + $0xc8] sm:$0xff]  ;;  %v592_v3 = vld [vmem:[#allocation6 + $0x940] sm:$0xff] }
 0x16c   :  { %5043 = vmatprep.mubr.bf16.mxu0 %v17906_v25  ;;  %6455 = vmatprep.mubr.bf16.mxu1 %v17906_v25  ;;  %19778 = vst [vmem:[#allocation42_spill] sm:$0xff] %v17918_v49  ;;  %v593_v25 = vld [vmem:[#allocation6 + $0x948] sm:$0xff] }
 0x16d   :  { %5356 = vmatprep.subr.bf16.mxu0 %v15198_v26  ;;  %6768 = vmatprep.subr.bf16.mxu1 %v15200_v56  ;;  %v584_v26 = vld [vmem:[#allocation6 + $0x900] sm:$0xff]  ;;  %v585_v56 = vld [vmem:[#allocation6 + $0x908] sm:$0xff] }
 0x16e   :  { %v15222_v40 = vcombine.high %v584_v26, %v588_v5  ;;  %v15224_v2 = vcombine.high %v585_v56, %v589_v8 }
 0x16f   :  { %5357 = vmatpush1.bf16.msra.mxu0 %v15197_v44  ;;  %6769 = vmatpush1.bf16.msra.mxu1 %v15199_v54  ;;  %v69_v54 = vld [vmem:[#allocation3 + $0xe8] sm:$0xff]  ;;  %v596_v44 = vld [vmem:[#allocation6 + $0x960] sm:$0xff] }
 0x170   :  { %5358 = vmatprep.subr.bf16.mxu0 %v15206_v53  ;;  %6770 = vmatprep.subr.bf16.mxu1 %v15208_v18  ;;  %v15213_v53 = vcombine.low %v576_v47, %v580_v48  ;;  %v15215_v18 = vcombine.low %v577_v60, %v581_v63  ;;  %v15230_v47 = vcombine.high %v592_v3, %v596_v44  ;;  %v601_v60 = vld [vmem:[#allocation6 + $0x988] sm:$0xff] }
 0x171   :  { %v15232_v48 = vcombine.high %v593_v25, %v597_v11  ;;  %v605_v63 = vld [vmem:[#allocation6 + $0x9a8] sm:$0xff] }
 0x172   :  { %5044 = vmatmul.mubr.bf16.gmra.mrb[4].mxu0 %v17918_v49  ;;  %6456 = vmatmul.mubr.bf16.gmra.mrb[4].mxu1 %v17918_v49  ;;  %v17928_v49 = vcombine.high %v65_v37, %v69_v54 }
 0x173   :  { %5053 = vmatprep.mubr.bf16.mxu0 %v17920_v27  ;;  %6465 = vmatprep.mubr.bf16.mxu1 %v17920_v27  ;;  %v15221_v27 = vcombine.low %v584_v26, %v588_v5  ;;  %v15231_v26 = vcombine.low %v593_v25, %v597_v11  ;;  %v15238_v5 = vcombine.high %v600_v28, %v604_v29  ;;  %v616_v25 = vld [vmem:[#allocation6 + $0xa00] sm:$0xff] }
 0x174   :  { %5359 = vmatpush1.bf16.msra.mxu0 %v15205_v4  ;;  %6771 = vmatpush1.bf16.msra.mxu1 %v15207_v34  ;;  %19781 = vst [vmem:[#allocation45_spill] sm:$0xff] %v17928_v49  ;;  %v15223_v4 = vcombine.low %v585_v56, %v589_v8  ;;  %v73_v34 = vld [vmem:[#allocation3 + $0x108] sm:$0xff]  ;;  %v17934_v56 = vcombine.low %v65_v37, %v69_v54  ;;  %v620_v37 = vld [vmem:[#allocation6 + $0xa20] sm:$0xff] }
 0x175   :  { %5360 = vmatprep.subr.bf16.mxu0 %v15214_v9  ;;  %6772 = vmatprep.subr.bf16.mxu1 %v15216_v22  ;;  %v77_v9 = vld [vmem:[#allocation3 + $0x128] sm:$0xff]  ;;  %v15229_v22 = vcombine.low %v592_v3, %v596_v44  ;;  %v15240_v8 = vcombine.high %v601_v60, %v605_v63 }
 0x176   :  { %19782 = vst [vmem:[#allocation46_spill] sm:$0xff] %v17934_v56  ;;  %v617_v54 = vld [vmem:[#allocation6 + $0xa08] sm:$0xff] }
 0x177   :  { %v621_v44 = vld [vmem:[#allocation6 + $0xa28] sm:$0xff] }
 0x178   :  { %5361 = vmatpush1.bf16.msra.mxu0 %v15213_v53  ;;  %6773 = vmatpush1.bf16.msra.mxu1 %v15215_v18  ;;  %v608_v53 = vld [vmem:[#allocation6 + $0x9c0] sm:$0xff] }
 0x179   :  { %5362 = vmatprep.subr.bf16.mxu0 %v15222_v40  ;;  %6774 = vmatprep.subr.bf16.mxu1 %v15224_v2  ;;  %v612_v18 = vld [vmem:[#allocation6 + $0x9e0] sm:$0xff]  ;;  %v17936_v40 = vcombine.high %v73_v34, %v77_v9  ;;  %v609_v2 = vld [vmem:[#allocation6 + $0x9c8] sm:$0xff] }
 0x17a   :  { %5054 = vmatmul.mubr.bf16.gmra.mrb[8].mxu0 %v17926_v43  ;;  %6466 = vmatmul.mubr.bf16.gmra.mrb[8].mxu1 %v17926_v43  ;;  %v613_v43 = vld [vmem:[#allocation6 + $0x9e8] sm:$0xff]  ;;  %v15246_v3 = vcombine.high %v608_v53, %v612_v18 }
 0x17b   :  { %5063 = vmatprep.mubr.bf16.mxu0 %v17928_v49  ;;  %6475 = vmatprep.mubr.bf16.mxu1 %v17928_v49  ;;  %19783 = vst [vmem:[#allocation47_spill] sm:$0xff] %v17936_v40  ;;  %v15237_v49 = vcombine.low %v600_v28, %v604_v29  ;;  %v15248_v11 = vcombine.high %v609_v2, %v613_v43 }
 0x17c   :  { %5363 = vmatpush1.bf16.msra.mxu0 %v15221_v27  ;;  %6775 = vmatpush1.bf16.msra.mxu1 %v15223_v4  ;;  %v15239_v27 = vcombine.low %v601_v60, %v605_v63  ;;  %v81_v4 = vld [vmem:[#allocation3 + $0x148] sm:$0xff]  ;;  %v15247_v28 = vcombine.low %v609_v2, %v613_v43  ;;  %v15254_v29 = vcombine.high %v616_v25, %v620_v37 }
 0x17d   :  { %5364 = vmatprep.subr.bf16.mxu0 %v15230_v47  ;;  %6776 = vmatprep.subr.bf16.mxu1 %v15232_v48  ;;  %v85_v47 = vld [vmem:[#allocation3 + $0x168] sm:$0xff]  ;;  %v15245_v48 = vcombine.low %v608_v53, %v612_v18  ;;  %v17942_v60 = vcombine.low %v73_v34, %v77_v9  ;;  %v15256_v63 = vcombine.high %v617_v54, %v621_v44  ;;  %v632_v34 = vld [vmem:[#allocation6 + $0xa80] sm:$0xff] }
 0x17e   :  { %v636_v9 = vld [vmem:[#allocation6 + $0xaa0] sm:$0xff]  ;;  %v633_v18 = vld [vmem:[#allocation6 + $0xa88] sm:$0xff] }
 0x17f   :  { %19784 = vst [vmem:[#allocation48_spill] sm:$0xff] %v17942_v60  ;;  %v637_v2 = vld [vmem:[#allocation6 + $0xaa8] sm:$0xff] }
 0x180   :  { %5365 = vmatpush1.bf16.msra.mxu0 %v15229_v22  ;;  %6777 = vmatpush1.bf16.msra.mxu1 %v15231_v26  ;;  %v624_v22 = vld [vmem:[#allocation6 + $0xa40] sm:$0xff] }
 0x181   :  { %5366 = vmatprep.subr.bf16.mxu0 %v15238_v5  ;;  %6778 = vmatprep.subr.bf16.mxu1 %v15240_v8  ;;  %v628_v26 = vld [vmem:[#allocation6 + $0xa60] sm:$0xff]  ;;  %v17944_v5 = vcombine.high %v81_v4, %v85_v47  ;;  %v625_v8 = vld [vmem:[#allocation6 + $0xa48] sm:$0xff] }
 0x182   :  { %5064 = vmatmul.mubr.bf16.gmra.mrb[12].mxu0 %v17934_v56  ;;  %6476 = vmatmul.mubr.bf16.gmra.mrb[12].mxu1 %v17934_v56  ;;  %v629_v56 = vld [vmem:[#allocation6 + $0xa68] sm:$0xff]  ;;  %v15262_v53 = vcombine.high %v624_v22, %v628_v26 }
 0x183   :  { %5073 = vmatprep.mubr.bf16.mxu0 %v17936_v40  ;;  %6485 = vmatprep.mubr.bf16.mxu1 %v17936_v40  ;;  %19785 = vst [vmem:[#allocation49_spill] sm:$0xff] %v17944_v5  ;;  %v15253_v40 = vcombine.low %v616_v25, %v620_v37  ;;  %v15264_v43 = vcombine.high %v625_v8, %v629_v56 }
 0x184   :  { %5367 = vmatpush1.bf16.msra.mxu0 %v15237_v49  ;;  %6779 = vmatpush1.bf16.msra.mxu1 %v15239_v27  ;;  %v15255_v49 = vcombine.low %v617_v54, %v621_v44  ;;  %v89_v27 = vld [vmem:[#allocation3 + $0x188] sm:$0xff]  ;;  %v15263_v25 = vcombine.low %v625_v8, %v629_v56  ;;  %v15270_v37 = vcombine.high %v632_v34, %v636_v9 }
 0x185   :  { %5368 = vmatprep.subr.bf16.mxu0 %v15246_v3  ;;  %6780 = vmatprep.subr.bf16.mxu1 %v15248_v11  ;;  %v93_v3 = vld [vmem:[#allocation3 + $0x1a8] sm:$0xff]  ;;  %v15261_v11 = vcombine.low %v624_v22, %v628_v26  ;;  %v17950_v54 = vcombine.low %v81_v4, %v85_v47  ;;  %v15272_v44 = vcombine.high %v633_v18, %v637_v2  ;;  %v644_v22 = vld [vmem:[#allocation6 + $0xae0] sm:$0xff] }
 0x186   :  { %v97_v56 = vld [vmem:[#allocation3 + $0x1c8] sm:$0xff]  ;;  %v17958_v4 = vcombine.low %v89_v27, %v93_v3 }
 0x187   :  { %19786 = vst [vmem:[#allocation50_spill] sm:$0xff] %v17950_v54 }
 0x188   :  { %5369 = vmatpush1.bf16.msra.mxu0 %v15245_v48  ;;  %6781 = vmatpush1.bf16.msra.mxu1 %v15247_v28  ;;  %v17952_v48 = vcombine.high %v89_v27, %v93_v3  ;;  %v15269_v28 = vcombine.low %v632_v34, %v636_v9  ;;  %19788 = vst [vmem:[#allocation52_spill] sm:$0xff] %v17958_v4  ;;  %v109_v34 = vld [vmem:[#allocation3 + $0x228] sm:$0xff] }
 0x189   :  { %5370 = vmatprep.subr.bf16.mxu0 %v15254_v29  ;;  %6782 = vmatprep.subr.bf16.mxu1 %v15256_v63  ;;  %v15271_v29 = vcombine.low %v633_v18, %v637_v2  ;;  %v640_v63 = vld [vmem:[#allocation6 + $0xac0] sm:$0xff]  ;;  %v113_v3 = vld [vmem:[#allocation3 + $0x248] sm:$0xff] }
 0x18a   :  { %5074 = vmatmul.mubr.bf16.gmra.mrb[16].mxu0 %v17942_v60  ;;  %6486 = vmatmul.mubr.bf16.gmra.mrb[16].mxu1 %v17942_v60  ;;  %19787 = vst [vmem:[#allocation51_spill] sm:$0xff] %v17952_v48  ;;  %v15277_v26 = vcombine.low %v640_v63, %v644_v22  ;;  %v15278_v8 = vcombine.high %v640_v63, %v644_v22  ;;  %v653_v63 = vld [vmem:[#allocation6 + $0xb28] sm:$0xff] }
 0x18b   :  { %5083 = vmatprep.mubr.bf16.mxu0 %v17944_v5  ;;  %6495 = vmatprep.mubr.bf16.mxu1 %v17944_v5  ;;  %v121_v22 = vld [vmem:[#allocation3 + $0x288] sm:$0xff] }
 0x18c   :  { %5371 = vmatpush1.bf16.msra.mxu0 %v15253_v40  ;;  %6783 = vmatpush1.bf16.msra.mxu1 %v15255_v49  ;;  %v101_v40 = vld [vmem:[#allocation3 + $0x1e8] sm:$0xff] }
 0x18d   :  { %5372 = vmatprep.subr.bf16.mxu0 %v15262_v53  ;;  %6784 = vmatprep.subr.bf16.mxu1 %v15264_v43  ;;  %v17960_v47 = vcombine.high %v97_v56, %v101_v40  ;;  %v641_v49 = vld [vmem:[#allocation6 + $0xac8] sm:$0xff]  ;;  %v17966_v2 = vcombine.low %v97_v56, %v101_v40 }
 0x18e   :  { %v645_v53 = vld [vmem:[#allocation6 + $0xae8] sm:$0xff] }
 0x18f   :  { %19789 = vst [vmem:[#allocation53_spill] sm:$0xff] %v17960_v47  ;;  %v105_v43 = vld [vmem:[#allocation3 + $0x208] sm:$0xff]  ;;  %v15279_v9 = vcombine.low %v641_v49, %v645_v53  ;;  %v15280_v18 = vcombine.high %v641_v49, %v645_v53  ;;  %19790 = vst [vmem:[#allocation54_spill] sm:$0xff] %v17966_v2 }
 0x190   :  { %5373 = vmatpush1.bf16.msra.mxu0 %v15261_v11  ;;  %6785 = vmatpush1.bf16.msra.mxu1 %v15263_v25  ;;  %v17968_v27 = vcombine.high %v105_v43, %v109_v34  ;;  %v117_v11 = vld [vmem:[#allocation3 + $0x268] sm:$0xff]  ;;  %v17974_v25 = vcombine.low %v105_v43, %v109_v34 }
 0x191   :  { %5374 = vmatprep.subr.bf16.mxu0 %v15270_v37  ;;  %6786 = vmatprep.subr.bf16.mxu1 %v15272_v44  ;;  %v17976_v37 = vcombine.high %v113_v3, %v117_v11  ;;  %v648_v44 = vld [vmem:[#allocation6 + $0xb00] sm:$0xff]  ;;  %v649_v40 = vld [vmem:[#allocation6 + $0xb08] sm:$0xff]  ;;  %v17982_v53 = vcombine.low %v113_v3, %v117_v11 }
 0x192   :  { %5084 = vmatmul.mubr.bf16.gmra.mrb[20].mxu0 %v17950_v54  ;;  %6496 = vmatmul.mubr.bf16.gmra.mrb[20].mxu1 %v17950_v54  ;;  %19791 = vst [vmem:[#allocation55_spill] sm:$0xff] %v17968_v27  ;;  %19792 = vst [vmem:[#allocation56_spill] sm:$0xff] %v17974_v25  ;;  %v15288_v49 = vcombine.high %v649_v40, %v653_v63  ;;  %v129_v34 = vld [vmem:[#allocation3 + $0x2c8] sm:$0xff]  ;;  %v656_v3 = vld [vmem:[#allocation6 + $0xb40] sm:$0xff] }
 0x193   :  { %5093 = vmatprep.mubr.bf16.mxu0 %v17952_v48  ;;  %6505 = vmatprep.mubr.bf16.mxu1 %v17952_v48  ;;  %19793 = vst [vmem:[#allocation57_spill] sm:$0xff] %v17976_v37  ;;  %19794 = vst [vmem:[#allocation58_spill] sm:$0xff] %v17982_v53  ;;  %v660_v11 = vld [vmem:[#allocation6 + $0xb60] sm:$0xff]  ;;  %v725_v60 = vld [vmem:[#allocation6 + $0xd68] sm:$0xff] }
 0x194   :  { %5375 = vmatpush1.bf16.msra.mxu0 %v15269_v28  ;;  %6787 = vmatpush1.bf16.msra.mxu1 %v15271_v29  ;;  %v652_v28 = vld [vmem:[#allocation6 + $0xb20] sm:$0xff] }
 0x195   :  { %5376 = vmatprep.subr.bf16.mxu0 %v15278_v8  ;;  %6788 = vmatprep.subr.bf16.mxu1 %v15280_v18  ;;  %v15285_v29 = vcombine.low %v648_v44, %v652_v28  ;;  %v15286_v56 = vcombine.high %v648_v44, %v652_v28  ;;  %v15287_v8 = vcombine.low %v649_v40, %v653_v63  ;;  %v661_v40 = vld [vmem:[#allocation6 + $0xb68] sm:$0xff] }
 0x196   :  { %v15293_v28 = vcombine.low %v656_v3, %v660_v11  ;;  %v137_v63 = vld [vmem:[#allocation3 + $0x308] sm:$0xff] }
 0x198   :  { %5377 = vmatpush1.bf16.msra.mxu0 %v15277_v26  ;;  %6789 = vmatpush1.bf16.msra.mxu1 %v15279_v9  ;;  %v125_v26 = vld [vmem:[#allocation3 + $0x2a8] sm:$0xff] }
 0x199   :  { %5378 = vmatprep.subr.bf16.mxu0 %v15286_v56  ;;  %6790 = vmatprep.subr.bf16.mxu1 %v15288_v49  ;;  %v17984_v43 = vcombine.high %v121_v22, %v125_v26  ;;  %v133_v9 = vld [vmem:[#allocation3 + $0x2e8] sm:$0xff]  ;;  %v17990_v18 = vcombine.low %v121_v22, %v125_v26 }
 0x19a   :  { %5094 = vmatmul.mubr.bf16.gmra.mrb[24].mxu0 %v17958_v4  ;;  %6506 = vmatmul.mubr.bf16.gmra.mrb[24].mxu1 %v17958_v4  ;;  %v17992_v44 = vcombine.high %v129_v34, %v133_v9  ;;  %v657_v56 = vld [vmem:[#allocation6 + $0xb48] sm:$0xff]  ;;  %v17998_v49 = vcombine.low %v129_v34, %v133_v9  ;;  %v664_v34 = vld [vmem:[#allocation6 + $0xb80] sm:$0xff]  ;;  %v62_v4 = vld [vmem:[#allocation3 + $0xb0] sm:$0xff] }
 0x19b   :  { %5103 = vmatprep.mubr.bf16.mxu0 %v17960_v47  ;;  %6515 = vmatprep.mubr.bf16.mxu1 %v17960_v47  ;;  %19795 = vst [vmem:[#allocation59_spill] sm:$0xff] %v17984_v43  ;;  %19796 = vst [vmem:[#allocation60_spill] sm:$0xff] %v17990_v18  ;;  %v15295_v22 = vcombine.low %v657_v56, %v661_v40  ;;  %v15296_v26 = vcombine.high %v657_v56, %v661_v40  ;;  %v668_v9 = vld [vmem:[#allocation6 + $0xba0] sm:$0xff]  ;;  %v665_v40 = vld [vmem:[#allocation6 + $0xb88] sm:$0xff] }
 0x19c   :  { %5379 = vmatpush1.bf16.msra.mxu0 %v15285_v29  ;;  %6791 = vmatpush1.bf16.msra.mxu1 %v15287_v8  ;;  %19797 = vst [vmem:[#allocation61_spill] sm:$0xff] %v17992_v44  ;;  %v15294_v29 = vcombine.high %v656_v3, %v660_v11  ;;  %v141_v8 = vld [vmem:[#allocation3 + $0x328] sm:$0xff]  ;;  %19798 = vst [vmem:[#allocation62_spill] sm:$0xff] %v17998_v49  ;;  %v15302_v56 = vcombine.high %v664_v34, %v668_v9  ;;  %v58_v47 = vld [vmem:[#allocation3 + $0x90] sm:$0xff] }
 0x19d   :  { %6792 = vmatprep.subr.bf16.mxu1 %v15296_v26  ;;  %v145_v3 = vld [vmem:[#allocation3 + $0x348] sm:$0xff] }
 0x19e   :  { %5380 = vmatprep.subr.bf16.mxu0 %v15294_v29  ;;  %v149_v11 = vld [vmem:[#allocation3 + $0x368] sm:$0xff] }
 0x19f   :  { %v18008_v29 = vcombine.high %v145_v3, %v149_v11  ;;  %v153_v26 = vld [vmem:[#allocation3 + $0x388] sm:$0xff] }
 0x1a0   :  { %5381 = vmatpush1.bf16.msra.mxu0 %v15293_v28  ;;  %6793 = vmatpush1.bf16.msra.mxu1 %v15295_v22  ;;  %v15301_v28 = vcombine.low %v664_v34, %v668_v9  ;;  %v669_v22 = vld [vmem:[#allocation6 + $0xba8] sm:$0xff] }
 0x1a1   :  { %19801 = vst [vmem:[#allocation65_spill] sm:$0xff] %v18008_v29  ;;  %5382 = vmatprep.subr.bf16.mxu0 %v15302_v56  ;;  %v161_v34 = vld [vmem:[#allocation3 + $0x3c8] sm:$0xff] }
 0x1a2   :  { %5104 = vmatmul.mubr.bf16.gmra.mrb[28].mxu0 %v17966_v2  ;;  %6516 = vmatmul.mubr.bf16.gmra.mrb[28].mxu1 %v17966_v2  ;;  %v165_v9 = vld [vmem:[#allocation3 + $0x3e8] sm:$0xff] }
 0x1a3   :  { %5113 = vmatprep.mubr.bf16.mxu0 %v17968_v27  ;;  %6525 = vmatprep.mubr.bf16.mxu1 %v17968_v27  ;;  %v18024_v56 = vcombine.high %v161_v34, %v165_v9  ;;  %v697_v27 = vld [vmem:[#allocation6 + $0xc88] sm:$0xff] }
 0x1a4   :  { %5383 = vmatpush1.bf16.msra.mxu0 %v15301_v28  ;;  %v701_v2 = vld [vmem:[#allocation6 + $0xca8] sm:$0xff] }
 0x1a5   :  { %19805 = vst [vmem:[#allocation69_spill] sm:$0xff] %v18024_v56  ;;  %v15336_v5 = vcombine.high %v697_v27, %v701_v2 }
 0x1aa   :  { %5114 = vmatmul.mubr.bf16.gmra.mrb[32].mxu0 %v17974_v25  ;;  %6526 = vmatmul.mubr.bf16.gmra.mrb[32].mxu1 %v17974_v25  ;;  %v700_v25 = vld [vmem:[#allocation6 + $0xca0] sm:$0xff] }
 0x1ab   :  { %5123 = vmatprep.mubr.bf16.mxu0 %v17976_v37  ;;  %6535 = vmatprep.mubr.bf16.mxu1 %v17976_v37  ;;  %v696_v37 = vld [vmem:[#allocation6 + $0xc80] sm:$0xff] }
 0x1ac   :  { %v15334_v54 = vcombine.high %v696_v37, %v700_v25 }
 0x1b2   :  { %5124 = vmatmul.mubr.bf16.gmra.mrb[36].mxu0 %v17982_v53  ;;  %6536 = vmatmul.mubr.bf16.gmra.mrb[36].mxu1 %v17982_v53  ;;  %v693_v53 = vld [vmem:[#allocation6 + $0xc68] sm:$0xff] }
 0x1b3   :  { %5133 = vmatprep.mubr.bf16.mxu0 %v17984_v43  ;;  %6545 = vmatprep.mubr.bf16.mxu1 %v17984_v43  ;;  %v18000_v43 = vcombine.high %v137_v63, %v141_v8 }
 0x1b5   :  { %19799 = vst [vmem:[#allocation63_spill] sm:$0xff] %v18000_v43 }
 0x1ba   :  { %5134 = vmatmul.mubr.bf16.gmra.mrb[40].mxu0 %v17990_v18  ;;  %6546 = vmatmul.mubr.bf16.gmra.mrb[40].mxu1 %v17990_v18 }
 0x1bb   :  { %5143 = vmatprep.mubr.bf16.mxu0 %v17992_v44  ;;  %6555 = vmatprep.mubr.bf16.mxu1 %v17992_v44  ;;  %v18006_v44 = vcombine.low %v137_v63, %v141_v8  ;;  %v15303_v63 = vcombine.low %v665_v40, %v669_v22  ;;  %v15304_v8 = vcombine.high %v665_v40, %v669_v22  ;;  %v673_v22 = vld [vmem:[#allocation6 + $0xbc8] sm:$0xff] }
 0x1bd   :  { %19800 = vst [vmem:[#allocation64_spill] sm:$0xff] %v18006_v44  ;;  %6794 = vmatprep.subr.bf16.mxu1 %v15304_v8  ;;  %v169_v8 = vld [vmem:[#allocation3 + $0x408] sm:$0xff] }
 0x1be   :  { %6795 = vmatpush1.bf16.msra.mxu1 %v15303_v63  ;;  %v677_v63 = vld [vmem:[#allocation6 + $0xbe8] sm:$0xff] }
 0x1c2   :  { %5144 = vmatmul.mubr.bf16.gmra.mrb[44].mxu0 %v17998_v49  ;;  %6556 = vmatmul.mubr.bf16.gmra.mrb[44].mxu1 %v17998_v49  ;;  %v18014_v49 = vcombine.low %v145_v3, %v149_v11  ;;  %v672_v3 = vld [vmem:[#allocation6 + $0xbc0] sm:$0xff] }
 0x1c3   :  { %5153 = vmatprep.mubr.bf16.mxu0 %v18000_v43  ;;  %6565 = vmatprep.mubr.bf16.mxu1 %v18000_v43  ;;  %v157_v43 = vld [vmem:[#allocation3 + $0x3a8] sm:$0xff]  ;;  %v676_v11 = vld [vmem:[#allocation6 + $0xbe0] sm:$0xff] }
 0x1c4   :  { %19802 = vst [vmem:[#allocation66_spill] sm:$0xff] %v18014_v49  ;;  %v18016_v18 = vcombine.high %v153_v26, %v157_v43  ;;  %v15309_v28 = vcombine.low %v672_v3, %v676_v11  ;;  %v15310_v40 = vcombine.high %v672_v3, %v676_v11  ;;  %v177_v3 = vld [vmem:[#allocation3 + $0x448] sm:$0xff] }
 0x1c5   :  { %v181_v11 = vld [vmem:[#allocation3 + $0x468] sm:$0xff] }
 0x1c6   :  { %19803 = vst [vmem:[#allocation67_spill] sm:$0xff] %v18016_v18  ;;  %5384 = vmatprep.subr.bf16.mxu0 %v15310_v40  ;;  %v18040_v40 = vcombine.high %v177_v3, %v181_v11 }
 0x1c7   :  { %5385 = vmatpush1.bf16.msra.mxu0 %v15309_v28 }
 0x1c8   :  { %19809 = vst [vmem:[#allocation73_spill] sm:$0xff] %v18040_v40 }
 0x1ca   :  { %5154 = vmatmul.mubr.bf16.gmra.mrb[48].mxu0 %v18006_v44  ;;  %6566 = vmatmul.mubr.bf16.gmra.mrb[48].mxu1 %v18006_v44 }
 0x1cb   :  { %5163 = vmatprep.mubr.bf16.mxu0 %v18008_v29  ;;  %6575 = vmatprep.mubr.bf16.mxu1 %v18008_v29  ;;  %v18022_v29 = vcombine.low %v153_v26, %v157_v43  ;;  %v15311_v43 = vcombine.low %v673_v22, %v677_v63  ;;  %v15312_v26 = vcombine.high %v673_v22, %v677_v63  ;;  %v18055_v63 = vld [vmem:[#allocation6 + $0xc28] sm:$0xff] }
 0x1cd   :  { %19804 = vst [vmem:[#allocation68_spill] sm:$0xff] %v18022_v29  ;;  %6796 = vmatprep.subr.bf16.mxu1 %v15312_v26 }
 0x1ce   :  { %6797 = vmatpush1.bf16.msra.mxu1 %v15311_v43  ;;  %v189_v43 = vld [vmem:[#allocation3 + $0x4a8] sm:$0xff] }
 0x1d2   :  { %5164 = vmatmul.mubr.bf16.gmra.mrb[52].mxu0 %v18014_v49  ;;  %6576 = vmatmul.mubr.bf16.gmra.mrb[52].mxu1 %v18014_v49  ;;  %v18030_v49 = vcombine.low %v161_v34, %v165_v9  ;;  %v18043_v34 = vld [vmem:[#allocation6 + $0xc00] sm:$0xff] }
 0x1d3   :  { %5173 = vmatprep.mubr.bf16.mxu0 %v18016_v18  ;;  %6585 = vmatprep.mubr.bf16.mxu1 %v18016_v18  ;;  %v173_v18 = vld [vmem:[#allocation3 + $0x428] sm:$0xff]  ;;  %v18045_v9 = vld [vmem:[#allocation6 + $0xc20] sm:$0xff] }
 0x1d4   :  { %19806 = vst [vmem:[#allocation70_spill] sm:$0xff] %v18030_v49  ;;  %v18032_v44 = vcombine.high %v169_v8, %v173_v18  ;;  %v15318_v22 = vcombine.high %v18043_v34, %v18045_v9 }
 0x1d6   :  { %19807 = vst [vmem:[#allocation71_spill] sm:$0xff] %v18032_v44  ;;  %5707 = vmatprep.subr.bf16.mxu0 %v15318_v22 }
 0x1da   :  { %5174 = vmatmul.mubr.bf16.gmra.mrb[56].mxu0 %v18022_v29  ;;  %6586 = vmatmul.mubr.bf16.gmra.mrb[56].mxu1 %v18022_v29 }
 0x1db   :  { %5183 = vmatprep.mubr.bf16.mxu0 %v18024_v56  ;;  %6595 = vmatprep.mubr.bf16.mxu1 %v18024_v56  ;;  %v18038_v56 = vcombine.low %v169_v8, %v173_v18  ;;  %v18053_v18 = vld [vmem:[#allocation6 + $0xc08] sm:$0xff] }
 0x1dc   :  { %v185_v8 = vld [vmem:[#allocation3 + $0x488] sm:$0xff] }
 0x1dd   :  { %19808 = vst [vmem:[#allocation72_spill] sm:$0xff] %v18038_v56  ;;  %v18064_v28 = vcombine.high %v185_v8, %v189_v43  ;;  %v18070_v26 = vcombine.low %v185_v8, %v189_v43  ;;  %v209_v8 = vld [vmem:[#allocation3 + $0x548] sm:$0xff] }
 0x1de   :  { %v213_v43 = vld [vmem:[#allocation3 + $0x568] sm:$0xff] }
 0x1df   :  { %19811 = vst [vmem:[#allocation75_spill] sm:$0xff] %v18064_v28  ;;  %19812 = vst [vmem:[#allocation76_spill] sm:$0xff] %v18070_v26 }
 0x1e2   :  { %5184 = vmatmul.mubr.bf16.gmra.mrb[60].mxu0 %v18030_v49  ;;  %6596 = vmatmul.mubr.bf16.gmra.mrb[60].mxu1 %v18030_v49  ;;  %v197_v49 = vld [vmem:[#allocation3 + $0x4e8] sm:$0xff] }
 0x1e3   :  { %5193 = vmatprep.mubr.bf16.mxu0 %v18032_v44  ;;  %6605 = vmatprep.mubr.bf16.mxu1 %v18032_v44  ;;  %v18062_v44 = vcombine.low %v177_v3, %v181_v11  ;;  %v205_v3 = vld [vmem:[#allocation3 + $0x528] sm:$0xff] }
 0x1e5   :  { %19810 = vst [vmem:[#allocation74_spill] sm:$0xff] %v18062_v44 }
 0x1ea   :  { %5194 = vmatmul.mubr.bf16.gmra.mrb[64].mxu0 %v18038_v56  ;;  %6606 = vmatmul.mubr.bf16.gmra.mrb[64].mxu1 %v18038_v56  ;;  %v15320_v56 = vcombine.high %v18053_v18, %v18055_v63 }
 0x1eb   :  { %5203 = vmatprep.mubr.bf16.mxu0 %v18040_v40  ;;  %6615 = vmatprep.mubr.bf16.mxu1 %v18040_v40  ;;  %v193_v40 = vld [vmem:[#allocation3 + $0x4c8] sm:$0xff] }
 0x1ec   :  { %7119 = vmatprep.subr.bf16.mxu1 %v15320_v56  ;;  %v18072_v29 = vcombine.high %v193_v40, %v197_v49  ;;  %v201_v56 = vld [vmem:[#allocation3 + $0x508] sm:$0xff]  ;;  %v18078_v11 = vcombine.low %v193_v40, %v197_v49 }
 0x1ed   :  { %v18080_v22 = vcombine.high %v201_v56, %v205_v3  ;;  %v217_v49 = vld [vmem:[#allocation3 + $0x588] sm:$0xff] }
 0x1ee   :  { %19813 = vst [vmem:[#allocation77_spill] sm:$0xff] %v18072_v29  ;;  %19814 = vst [vmem:[#allocation78_spill] sm:$0xff] %v18078_v11  ;;  %v221_v40 = vld [vmem:[#allocation3 + $0x5a8] sm:$0xff] }
 0x1ef   :  { %19815 = vst [vmem:[#allocation79_spill] sm:$0xff] %v18080_v22 }
 0x1f2   :  { %5204 = vmatmul.mubr.bf16.gmra.mrb[68].mxu0 %v18062_v44  ;;  %6616 = vmatmul.mubr.bf16.gmra.mrb[68].mxu1 %v18062_v44  ;;  %v689_v44 = vld [vmem:[#allocation6 + $0xc48] sm:$0xff] }
 0x1f3   :  { %5213 = vmatprep.mubr.bf16.mxu0 %v18064_v28  ;;  %6625 = vmatprep.mubr.bf16.mxu1 %v18064_v28  ;;  %v18088_v28 = vcombine.high %v209_v8, %v213_v43  ;;  %v15327_v48 = vcombine.low %v689_v44, %v693_v53 }
 0x1f5   :  { %19817 = vst [vmem:[#allocation81_spill] sm:$0xff] %v18088_v28 }
 0x1fa   :  { %5214 = vmatmul.mubr.bf16.gmra.mrb[72].mxu0 %v18070_v26  ;;  %6626 = vmatmul.mubr.bf16.gmra.mrb[72].mxu1 %v18070_v26  ;;  %v18086_v26 = vcombine.low %v201_v56, %v205_v3  ;;  %v225_v56 = vld [vmem:[#allocation3 + $0x5c8] sm:$0xff] }
 0x1fb   :  { %5223 = vmatprep.mubr.bf16.mxu0 %v18072_v29  ;;  %6635 = vmatprep.mubr.bf16.mxu1 %v18072_v29  ;;  %v18096_v29 = vcombine.high %v217_v49, %v221_v40  ;;  %v229_v3 = vld [vmem:[#allocation3 + $0x5e8] sm:$0xff] }
 0x1fc   :  { %19816 = vst [vmem:[#allocation80_spill] sm:$0xff] %v18086_v26 }
 0x1fd   :  { %19819 = vst [vmem:[#allocation83_spill] sm:$0xff] %v18096_v29 }
 0x202   :  { %5224 = vmatmul.mubr.bf16.gmra.mrb[76].mxu0 %v18078_v11  ;;  %6636 = vmatmul.mubr.bf16.gmra.mrb[76].mxu1 %v18078_v11  ;;  %v18094_v11 = vcombine.low %v209_v8, %v213_v43  ;;  %v233_v8 = vld [vmem:[#allocation3 + $0x608] sm:$0xff] }
 0x203   :  { %5233 = vmatprep.mubr.bf16.mxu0 %v18080_v22  ;;  %6645 = vmatprep.mubr.bf16.mxu1 %v18080_v22  ;;  %v18104_v22 = vcombine.high %v225_v56, %v229_v3  ;;  %v237_v43 = vld [vmem:[#allocation3 + $0x628] sm:$0xff] }
 0x204   :  { %19818 = vst [vmem:[#allocation82_spill] sm:$0xff] %v18094_v11 }
 0x205   :  { %19821 = vst [vmem:[#allocation85_spill] sm:$0xff] %v18104_v22 }
 0x20a   :  { %5234 = vmatmul.mubr.bf16.gmra.mrb[80].mxu0 %v18086_v26  ;;  %6646 = vmatmul.mubr.bf16.gmra.mrb[80].mxu1 %v18086_v26  ;;  %v18102_v26 = vcombine.low %v217_v49, %v221_v40  ;;  %v241_v49 = vld [vmem:[#allocation3 + $0x648] sm:$0xff] }
 0x20b   :  { %5243 = vmatprep.mubr.bf16.mxu0 %v18088_v28  ;;  %6655 = vmatprep.mubr.bf16.mxu1 %v18088_v28  ;;  %v18112_v28 = vcombine.high %v233_v8, %v237_v43  ;;  %v245_v40 = vld [vmem:[#allocation3 + $0x668] sm:$0xff] }
 0x20c   :  { %19820 = vst [vmem:[#allocation84_spill] sm:$0xff] %v18102_v26 }
 0x20d   :  { %19823 = vst [vmem:[#allocation87_spill] sm:$0xff] %v18112_v28 }
 0x212   :  { %5244 = vmatmul.mubr.bf16.gmra.mrb[84].mxu0 %v18094_v11  ;;  %6656 = vmatmul.mubr.bf16.gmra.mrb[84].mxu1 %v18094_v11  ;;  %v18110_v11 = vcombine.low %v225_v56, %v229_v3  ;;  %v249_v56 = vld [vmem:[#allocation3 + $0x688] sm:$0xff] }
 0x213   :  { %5253 = vmatprep.mubr.bf16.mxu0 %v18096_v29  ;;  %6665 = vmatprep.mubr.bf16.mxu1 %v18096_v29  ;;  %v18120_v29 = vcombine.high %v241_v49, %v245_v40  ;;  %v253_v3 = vld [vmem:[#allocation3 + $0x6a8] sm:$0xff] }
 0x214   :  { %19822 = vst [vmem:[#allocation86_spill] sm:$0xff] %v18110_v11 }
 0x215   :  { %19825 = vst [vmem:[#allocation89_spill] sm:$0xff] %v18120_v29 }
 0x21a   :  { %5254 = vmatmul.mubr.bf16.gmra.mrb[88].mxu0 %v18102_v26  ;;  %6666 = vmatmul.mubr.bf16.gmra.mrb[88].mxu1 %v18102_v26  ;;  %v18118_v26 = vcombine.low %v233_v8, %v237_v43  ;;  %v257_v8 = vld [vmem:[#allocation3 + $0x6c8] sm:$0xff] }
 0x21b   :  { %5263 = vmatprep.mubr.bf16.mxu0 %v18104_v22  ;;  %6675 = vmatprep.mubr.bf16.mxu1 %v18104_v22  ;;  %v18128_v22 = vcombine.high %v249_v56, %v253_v3  ;;  %v261_v43 = vld [vmem:[#allocation3 + $0x6e8] sm:$0xff] }
 0x21c   :  { %19824 = vst [vmem:[#allocation88_spill] sm:$0xff] %v18118_v26 }
 0x21d   :  { %19827 = vst [vmem:[#allocation91_spill] sm:$0xff] %v18128_v22 }
 0x222   :  { %5264 = vmatmul.mubr.bf16.gmra.mrb[92].mxu0 %v18110_v11  ;;  %6676 = vmatmul.mubr.bf16.gmra.mrb[92].mxu1 %v18110_v11  ;;  %v18126_v11 = vcombine.low %v241_v49, %v245_v40  ;;  %v265_v49 = vld [vmem:[#allocation3 + $0x708] sm:$0xff] }
 0x223   :  { %5273 = vmatprep.mubr.bf16.mxu0 %v18112_v28  ;;  %6685 = vmatprep.mubr.bf16.mxu1 %v18112_v28  ;;  %v18136_v28 = vcombine.high %v257_v8, %v261_v43  ;;  %v269_v40 = vld [vmem:[#allocation3 + $0x728] sm:$0xff] }
 0x224   :  { %19826 = vst [vmem:[#allocation90_spill] sm:$0xff] %v18126_v11 }
 0x225   :  { %19829 = vst [vmem:[#allocation93_spill] sm:$0xff] %v18136_v28 }
 0x22a   :  { %5274 = vmatmul.mubr.bf16.gmra.mrb[96].mxu0 %v18118_v26  ;;  %6686 = vmatmul.mubr.bf16.gmra.mrb[96].mxu1 %v18118_v26  ;;  %v18134_v26 = vcombine.low %v249_v56, %v253_v3  ;;  %v273_v56 = vld [vmem:[#allocation3 + $0x748] sm:$0xff] }
 0x22b   :  { %5283 = vmatprep.mubr.bf16.mxu0 %v18120_v29  ;;  %6695 = vmatprep.mubr.bf16.mxu1 %v18120_v29  ;;  %v18144_v29 = vcombine.high %v265_v49, %v269_v40  ;;  %v277_v3 = vld [vmem:[#allocation3 + $0x768] sm:$0xff] }
 0x22c   :  { %19828 = vst [vmem:[#allocation92_spill] sm:$0xff] %v18134_v26 }
 0x22d   :  { %19831 = vst [vmem:[#allocation95_spill] sm:$0xff] %v18144_v29 }
 0x232   :  { %5284 = vmatmul.mubr.bf16.gmra.mrb[100].mxu0 %v18126_v11  ;;  %6696 = vmatmul.mubr.bf16.gmra.mrb[100].mxu1 %v18126_v11  ;;  %v18142_v11 = vcombine.low %v257_v8, %v261_v43  ;;  %v281_v8 = vld [vmem:[#allocation3 + $0x788] sm:$0xff] }
 0x233   :  { %5293 = vmatprep.mubr.bf16.mxu0 %v18128_v22  ;;  %6705 = vmatprep.mubr.bf16.mxu1 %v18128_v22  ;;  %v18152_v22 = vcombine.high %v273_v56, %v277_v3  ;;  %v285_v43 = vld [vmem:[#allocation3 + $0x7a8] sm:$0xff] }
 0x234   :  { %19830 = vst [vmem:[#allocation94_spill] sm:$0xff] %v18142_v11 }
 0x235   :  { %19833 = vst [vmem:[#allocation97_spill] sm:$0xff] %v18152_v22 }
 0x23a   :  { %5294 = vmatmul.mubr.bf16.gmra.mrb[104].mxu0 %v18134_v26  ;;  %6706 = vmatmul.mubr.bf16.gmra.mrb[104].mxu1 %v18134_v26  ;;  %v18150_v26 = vcombine.low %v265_v49, %v269_v40  ;;  %v289_v49 = vld [vmem:[#allocation3 + $0x7c8] sm:$0xff] }
 0x23b   :  { %5303 = vmatprep.mubr.bf16.mxu0 %v18136_v28  ;;  %6715 = vmatprep.mubr.bf16.mxu1 %v18136_v28  ;;  %v18160_v28 = vcombine.high %v281_v8, %v285_v43  ;;  %v293_v40 = vld [vmem:[#allocation3 + $0x7e8] sm:$0xff] }
 0x23c   :  { %19832 = vst [vmem:[#allocation96_spill] sm:$0xff] %v18150_v26 }
 0x23d   :  { %19835 = vst [vmem:[#allocation99_spill] sm:$0xff] %v18160_v28 }
 0x242   :  { %5304 = vmatmul.mubr.bf16.gmra.mrb[108].mxu0 %v18142_v11  ;;  %6716 = vmatmul.mubr.bf16.gmra.mrb[108].mxu1 %v18142_v11  ;;  %v18158_v11 = vcombine.low %v273_v56, %v277_v3  ;;  %v42_v56 = vld [vmem:[#allocation3 + $0x10] sm:$0xff] }
 0x243   :  { %5313 = vmatprep.mubr.bf16.mxu0 %v18144_v29  ;;  %6725 = vmatprep.mubr.bf16.mxu1 %v18144_v29  ;;  %v18168_v29 = vcombine.high %v289_v49, %v293_v40  ;;  %v46_v3 = vld [vmem:[#allocation3 + $0x30] sm:$0xff] }
 0x244   :  { %19834 = vst [vmem:[#allocation98_spill] sm:$0xff] %v18158_v11 }
 0x245   :  { %19837 = vst [vmem:[#allocation101_spill] sm:$0xff] %v18168_v29 }
 0x24a   :  { %5314 = vmatmul.mubr.bf16.gmra.mrb[112].mxu0 %v18150_v26  ;;  %6726 = vmatmul.mubr.bf16.gmra.mrb[112].mxu1 %v18150_v26  ;;  %v18166_v26 = vcombine.low %v281_v8, %v285_v43  ;;  %v50_v8 = vld [vmem:[#allocation3 + $0x50] sm:$0xff] }
 0x24b   :  { %5323 = vmatprep.mubr.bf16.mxu0 %v18152_v22  ;;  %6735 = vmatprep.mubr.bf16.mxu1 %v18152_v22  ;;  %v18176_v22 = vcombine.high %v42_v56, %v46_v3  ;;  %v54_v43 = vld [vmem:[#allocation3 + $0x70] sm:$0xff] }
 0x24c   :  { %19836 = vst [vmem:[#allocation100_spill] sm:$0xff] %v18166_v26 }
 0x24d   :  { %19839 = vst [vmem:[#allocation103_spill] sm:$0xff] %v18176_v22 }
 0x252   :  { %5324 = vmatmul.mubr.bf16.gmra.mrb[116].mxu0 %v18158_v11  ;;  %6736 = vmatmul.mubr.bf16.gmra.mrb[116].mxu1 %v18158_v11  ;;  %v18174_v11 = vcombine.low %v289_v49, %v293_v40  ;;  %v18184_v49 = vcombine.high %v50_v8, %v54_v43 }
 0x253   :  { %5333 = vmatprep.mubr.bf16.mxu0 %v18160_v28  ;;  %6745 = vmatprep.mubr.bf16.mxu1 %v18160_v28  ;;  %v688_v28 = vld [vmem:[#allocation6 + $0xc40] sm:$0xff] }
 0x254   :  { %19838 = vst [vmem:[#allocation102_spill] sm:$0xff] %v18174_v11  ;;  %19841 = vst [vmem:[#allocation105_spill] sm:$0xff] %v18184_v49 }
 0x25a   :  { %5334 = vmatmul.mubr.bf16.gmra.mrb[120].mxu0 %v18166_v26  ;;  %6746 = vmatmul.mubr.bf16.gmra.mrb[120].mxu1 %v18166_v26  ;;  %v18182_v26 = vcombine.low %v42_v56, %v46_v3  ;;  %v19842_v56 = vcombine.low %v18043_v34, %v18045_v9  ;;  %v704_v34 = vld [vmem:[#allocation6 + $0xcc0] sm:$0xff] }
 0x25b   :  { %5343 = vmatprep.mubr.bf16.mxu0 %v18168_v29  ;;  %6755 = vmatprep.mubr.bf16.mxu1 %v18168_v29  ;;  %v692_v29 = vld [vmem:[#allocation6 + $0xc60] sm:$0xff] }
 0x25c   :  { %19840 = vst [vmem:[#allocation104_spill] sm:$0xff] %v18182_v26  ;;  %v15326_v40 = vcombine.high %v688_v28, %v692_v29  ;;  %v15325_v3 = vcombine.low %v688_v28, %v692_v29  ;;  %v708_v9 = vld [vmem:[#allocation6 + $0xce0] sm:$0xff]  ;;  %v18198_v29 = vcombine.high %v58_v47, %v62_v4  ;;  %v705_v28 = vld [vmem:[#allocation6 + $0xcc8] sm:$0xff] }
 0x25e   :  { %19845 = vst [vmem:[#allocation107_spill] sm:$0xff] %v18198_v29 }
 0x262   :  { %5344 = vmatmul.mubr.bf16.gmra.mrb[124].mxu0 %v18174_v11  ;;  %6756 = vmatmul.mubr.bf16.gmra.mrb[124].mxu1 %v18174_v11  ;;  %v15328_v11 = vcombine.high %v689_v44, %v693_v53  ;;  %v15342_v53 = vcombine.high %v704_v34, %v708_v9 }
 0x263   :  { %5386 = vmatprep.mubr.bf16.mxu0 %v18176_v22  ;;  %6798 = vmatprep.mubr.bf16.mxu1 %v18176_v22  ;;  %v19843_v22 = vcombine.low %v18053_v18, %v18055_v63  ;;  %v709_v18 = vld [vmem:[#allocation6 + $0xce8] sm:$0xff]  ;;  %v15333_v63 = vcombine.low %v696_v37, %v700_v25  ;;  %v720_v37 = vld [vmem:[#allocation6 + $0xd40] sm:$0xff] }
 0x264   :  { %v15344_v44 = vcombine.high %v705_v28, %v709_v18 }
 0x26a   :  { %5387 = vmatmul.mubr.bf16.vlgmr.msra.gmra.mrb[0].mxu0 %v18182_v26  ;;  %6799 = vmatmul.mubr.bf16.vlgmr.msra.gmra.mrb[0].mxu1 %v18182_v26  ;;  %v18196_v26 = vcombine.low %v50_v8, %v54_v43  ;;  %v716_v8 = vld [vmem:[#allocation6 + $0xd20] sm:$0xff]  ;;  %v717_v43 = vld [vmem:[#allocation6 + $0xd28] sm:$0xff] }
 0x26b   :  { %5708 = vmatpush1.bf16.msra.mxu0 %v19842_v56  ;;  %7120 = vmatpush1.bf16.msra.mxu1 %v19843_v22  ;;  %v15335_v22 = vcombine.low %v697_v27, %v701_v2  ;;  %v66_v56 = vld [vmem:[#allocation3 + $0xd0] sm:$0xff]  ;;  %v18204_v27 = vcombine.low %v58_v47, %v62_v4  ;;  %v728_v4 = vld [vmem:[#allocation6 + $0xd80] sm:$0xff] }
 0x26c   :  { %5396 = vmatprep.mubr.bf16.mxu0 %v18184_v49  ;;  %6808 = vmatprep.mubr.bf16.mxu1 %v18184_v49  ;;  %19844 = vst [vmem:[#allocation106_spill] sm:$0xff] %v18196_v26  ;;  %v721_v49 = vld [vmem:[#allocation6 + $0xd48] sm:$0xff]  ;;  %v732_v47 = vld [vmem:[#allocation6 + $0xda0] sm:$0xff] }
 0x26d   :  { %5709 = vmatprep.subr.bf16.mxu0 %v15326_v40  ;;  %7121 = vmatprep.subr.bf16.mxu1 %v15328_v11  ;;  %v712_v40 = vld [vmem:[#allocation6 + $0xd00] sm:$0xff]  ;;  %v713_v11 = vld [vmem:[#allocation6 + $0xd08] sm:$0xff]  ;;  %19846 = vst [vmem:[#allocation108_spill] sm:$0xff] %v18204_v27 }
 0x26e   :  { %v15350_v2 = vcombine.high %v712_v40, %v716_v8  ;;  %v15352_v25 = vcombine.high %v713_v11, %v717_v43 }
 0x26f   :  { %5710 = vmatpush1.bf16.msra.mxu0 %v15325_v3  ;;  %7122 = vmatpush1.bf16.msra.mxu1 %v15327_v48  ;;  %v70_v48 = vld [vmem:[#allocation3 + $0xf0] sm:$0xff]  ;;  %v724_v3 = vld [vmem:[#allocation6 + $0xd60] sm:$0xff] }
 0x270   :  { %5711 = vmatprep.subr.bf16.mxu0 %v15334_v54  ;;  %7123 = vmatprep.subr.bf16.mxu1 %v15336_v5  ;;  %v15341_v54 = vcombine.low %v704_v34, %v708_v9  ;;  %v15343_v5 = vcombine.low %v705_v28, %v709_v18  ;;  %v15358_v34 = vcombine.high %v720_v37, %v724_v3  ;;  %v729_v28 = vld [vmem:[#allocation6 + $0xd88] sm:$0xff] }
 0x271   :  { %v15360_v9 = vcombine.high %v721_v49, %v725_v60  ;;  %v733_v18 = vld [vmem:[#allocation6 + $0xda8] sm:$0xff] }
 0x272   :  { %5397 = vmatmul.mubr.bf16.gmra.mrb[4].mxu0 %v18196_v26  ;;  %6809 = vmatmul.mubr.bf16.gmra.mrb[4].mxu1 %v18196_v26  ;;  %v18206_v26 = vcombine.high %v66_v56, %v70_v48 }
 0x273   :  { %5406 = vmatprep.mubr.bf16.mxu0 %v18198_v29  ;;  %6818 = vmatprep.mubr.bf16.mxu1 %v18198_v29  ;;  %v15349_v29 = vcombine.low %v712_v40, %v716_v8  ;;  %v15359_v40 = vcombine.low %v721_v49, %v725_v60  ;;  %v15366_v8 = vcombine.high %v728_v4, %v732_v47  ;;  %v744_v49 = vld [vmem:[#allocation6 + $0xe00] sm:$0xff] }
 0x274   :  { %5712 = vmatpush1.bf16.msra.mxu0 %v15333_v63  ;;  %7124 = vmatpush1.bf16.msra.mxu1 %v15335_v22  ;;  %19847 = vst [vmem:[#allocation109_spill] sm:$0xff] %v18206_v26  ;;  %v15351_v63 = vcombine.low %v713_v11, %v717_v43  ;;  %v74_v22 = vld [vmem:[#allocation3 + $0x110] sm:$0xff]  ;;  %v18212_v11 = vcombine.low %v66_v56, %v70_v48  ;;  %v748_v56 = vld [vmem:[#allocation6 + $0xe20] sm:$0xff]  ;;  %v745_v48 = vld [vmem:[#allocation6 + $0xe08] sm:$0xff] }
 0x275   :  { %5713 = vmatprep.subr.bf16.mxu0 %v15342_v53  ;;  %7125 = vmatprep.subr.bf16.mxu1 %v15344_v44  ;;  %v78_v53 = vld [vmem:[#allocation3 + $0x130] sm:$0xff]  ;;  %v15357_v44 = vcombine.low %v720_v37, %v724_v3  ;;  %v15368_v43 = vcombine.high %v729_v28, %v733_v18  ;;  %v749_v3 = vld [vmem:[#allocation6 + $0xe28] sm:$0xff] }
 0x276   :  { %19848 = vst [vmem:[#allocation110_spill] sm:$0xff] %v18212_v11 }
 0x278   :  { %5714 = vmatpush1.bf16.msra.mxu0 %v15341_v54  ;;  %7126 = vmatpush1.bf16.msra.mxu1 %v15343_v5  ;;  %v736_v54 = vld [vmem:[#allocation6 + $0xdc0] sm:$0xff] }
 0x279   :  { %5715 = vmatprep.subr.bf16.mxu0 %v15350_v2  ;;  %7127 = vmatprep.subr.bf16.mxu1 %v15352_v25  ;;  %v740_v5 = vld [vmem:[#allocation6 + $0xde0] sm:$0xff]  ;;  %v18214_v2 = vcombine.high %v74_v22, %v78_v53  ;;  %v737_v25 = vld [vmem:[#allocation6 + $0xdc8] sm:$0xff] }
 0x27a   :  { %5407 = vmatmul.mubr.bf16.gmra.mrb[8].mxu0 %v18204_v27  ;;  %6819 = vmatmul.mubr.bf16.gmra.mrb[8].mxu1 %v18204_v27  ;;  %v741_v27 = vld [vmem:[#allocation6 + $0xde8] sm:$0xff]  ;;  %v15374_v37 = vcombine.high %v736_v54, %v740_v5 }
 0x27b   :  { %5416 = vmatprep.mubr.bf16.mxu0 %v18206_v26  ;;  %6828 = vmatprep.mubr.bf16.mxu1 %v18206_v26  ;;  %19849 = vst [vmem:[#allocation111_spill] sm:$0xff] %v18214_v2  ;;  %v15365_v26 = vcombine.low %v728_v4, %v732_v47  ;;  %v15376_v60 = vcombine.high %v737_v25, %v741_v27 }
 0x27c   :  { %5716 = vmatpush1.bf16.msra.mxu0 %v15349_v29  ;;  %7128 = vmatpush1.bf16.msra.mxu1 %v15351_v63  ;;  %v15367_v29 = vcombine.low %v729_v28, %v733_v18  ;;  %v82_v63 = vld [vmem:[#allocation3 + $0x150] sm:$0xff]  ;;  %v15375_v4 = vcombine.low %v737_v25, %v741_v27  ;;  %v15382_v47 = vcombine.high %v744_v49, %v748_v56  ;;  %v765_v25 = vld [vmem:[#allocation6 + $0xea8] sm:$0xff] }
 0x27d   :  { %5717 = vmatprep.subr.bf16.mxu0 %v15358_v34  ;;  %7129 = vmatprep.subr.bf16.mxu1 %v15360_v9  ;;  %v86_v34 = vld [vmem:[#allocation3 + $0x170] sm:$0xff]  ;;  %v15373_v9 = vcombine.low %v736_v54, %v740_v5  ;;  %v18220_v28 = vcombine.low %v74_v22, %v78_v53  ;;  %v15384_v18 = vcombine.high %v745_v48, %v749_v3  ;;  %v760_v22 = vld [vmem:[#allocation6 + $0xe80] sm:$0xff]  ;;  %v761_v5 = vld [vmem:[#allocation6 + $0xe88] sm:$0xff] }
 0x27e   :  { %v764_v53 = vld [vmem:[#allocation6 + $0xea0] sm:$0xff] }
 0x27f   :  { %19850 = vst [vmem:[#allocation112_spill] sm:$0xff] %v18220_v28 }
 0x280   :  { %5718 = vmatpush1.bf16.msra.mxu0 %v15357_v44  ;;  %7130 = vmatpush1.bf16.msra.mxu1 %v15359_v40  ;;  %v752_v44 = vld [vmem:[#allocation6 + $0xe40] sm:$0xff] }
 0x281   :  { %5719 = vmatprep.subr.bf16.mxu0 %v15366_v8  ;;  %7131 = vmatprep.subr.bf16.mxu1 %v15368_v43  ;;  %v756_v40 = vld [vmem:[#allocation6 + $0xe60] sm:$0xff]  ;;  %v18222_v8 = vcombine.high %v82_v63, %v86_v34  ;;  %v753_v43 = vld [vmem:[#allocation6 + $0xe48] sm:$0xff] }
 0x282   :  { %5417 = vmatmul.mubr.bf16.gmra.mrb[12].mxu0 %v18212_v11  ;;  %6829 = vmatmul.mubr.bf16.gmra.mrb[12].mxu1 %v18212_v11  ;;  %v757_v11 = vld [vmem:[#allocation6 + $0xe68] sm:$0xff]  ;;  %v15390_v54 = vcombine.high %v752_v44, %v756_v40 }
 0x283   :  { %5426 = vmatprep.mubr.bf16.mxu0 %v18214_v2  ;;  %6838 = vmatprep.mubr.bf16.mxu1 %v18214_v2  ;;  %19851 = vst [vmem:[#allocation113_spill] sm:$0xff] %v18222_v8  ;;  %v15381_v2 = vcombine.low %v744_v49, %v748_v56  ;;  %v15392_v27 = vcombine.high %v753_v43, %v757_v11 }
 0x284   :  { %5720 = vmatpush1.bf16.msra.mxu0 %v15365_v26  ;;  %7132 = vmatpush1.bf16.msra.mxu1 %v15367_v29  ;;  %v15383_v26 = vcombine.low %v745_v48, %v749_v3  ;;  %v90_v29 = vld [vmem:[#allocation3 + $0x190] sm:$0xff]  ;;  %v15391_v49 = vcombine.low %v753_v43, %v757_v11  ;;  %v15398_v56 = vcombine.high %v760_v22, %v764_v53 }
 0x285   :  { %5721 = vmatprep.subr.bf16.mxu0 %v15374_v37  ;;  %7133 = vmatprep.subr.bf16.mxu1 %v15376_v60  ;;  %v94_v37 = vld [vmem:[#allocation3 + $0x1b0] sm:$0xff]  ;;  %v15389_v60 = vcombine.low %v752_v44, %v756_v40  ;;  %v18228_v48 = vcombine.low %v82_v63, %v86_v34  ;;  %v15400_v3 = vcombine.high %v761_v5, %v765_v25  ;;  %v772_v44 = vld [vmem:[#allocation6 + $0xee0] sm:$0xff] }
 0x286   :  { %v98_v11 = vld [vmem:[#allocation3 + $0x1d0] sm:$0xff]  ;;  %v18236_v63 = vcombine.low %v90_v29, %v94_v37 }
 0x287   :  { %19852 = vst [vmem:[#allocation114_spill] sm:$0xff] %v18228_v48 }
 0x288   :  { %5722 = vmatpush1.bf16.msra.mxu0 %v15373_v9  ;;  %7134 = vmatpush1.bf16.msra.mxu1 %v15375_v4  ;;  %v18230_v9 = vcombine.high %v90_v29, %v94_v37  ;;  %v15397_v4 = vcombine.low %v760_v22, %v764_v53  ;;  %19854 = vst [vmem:[#allocation116_spill] sm:$0xff] %v18236_v63  ;;  %v110_v22 = vld [vmem:[#allocation3 + $0x230] sm:$0xff] }
 0x289   :  { %5723 = vmatprep.subr.bf16.mxu0 %v15382_v47  ;;  %7135 = vmatprep.subr.bf16.mxu1 %v15384_v18  ;;  %v15399_v47 = vcombine.low %v761_v5, %v765_v25  ;;  %v768_v18 = vld [vmem:[#allocation6 + $0xec0] sm:$0xff]  ;;  %v114_v37 = vld [vmem:[#allocation3 + $0x250] sm:$0xff] }
 0x28a   :  { %5427 = vmatmul.mubr.bf16.gmra.mrb[16].mxu0 %v18220_v28  ;;  %6839 = vmatmul.mubr.bf16.gmra.mrb[16].mxu1 %v18220_v28  ;;  %19853 = vst [vmem:[#allocation115_spill] sm:$0xff] %v18230_v9  ;;  %v15405_v40 = vcombine.low %v768_v18, %v772_v44  ;;  %v15406_v43 = vcombine.high %v768_v18, %v772_v44  ;;  %v781_v18 = vld [vmem:[#allocation6 + $0xf28] sm:$0xff]  ;;  %v122_v44 = vld [vmem:[#allocation3 + $0x290] sm:$0xff]  ;;  %v343_v28 = vld [vmem:[#allocation6 + $0x178] sm:$0xff] }
 0x28b   :  { %5436 = vmatprep.mubr.bf16.mxu0 %v18222_v8  ;;  %6848 = vmatprep.mubr.bf16.mxu1 %v18222_v8 }
 0x28c   :  { %5724 = vmatpush1.bf16.msra.mxu0 %v15381_v2  ;;  %7136 = vmatpush1.bf16.msra.mxu1 %v15383_v26  ;;  %v102_v2 = vld [vmem:[#allocation3 + $0x1f0] sm:$0xff]  ;;  %v769_v26 = vld [vmem:[#allocation6 + $0xec8] sm:$0xff] }
 0x28d   :  { %5725 = vmatprep.subr.bf16.mxu0 %v15390_v54  ;;  %7137 = vmatprep.subr.bf16.mxu1 %v15392_v27  ;;  %v18238_v34 = vcombine.high %v98_v11, %v102_v2  ;;  %v773_v54 = vld [vmem:[#allocation6 + $0xee8] sm:$0xff]  ;;  %v106_v27 = vld [vmem:[#allocation3 + $0x210] sm:$0xff]  ;;  %v18244_v25 = vcombine.low %v98_v11, %v102_v2 }
 0x28e   :  { %v15407_v53 = vcombine.low %v769_v26, %v773_v54  ;;  %v15408_v5 = vcombine.high %v769_v26, %v773_v54  ;;  %v18246_v29 = vcombine.high %v106_v27, %v110_v22  ;;  %v777_v2 = vld [vmem:[#allocation6 + $0xf08] sm:$0xff] }
 0x28f   :  { %19855 = vst [vmem:[#allocation117_spill] sm:$0xff] %v18238_v34  ;;  %19856 = vst [vmem:[#allocation118_spill] sm:$0xff] %v18244_v25  ;;  %v15416_v26 = vcombine.high %v777_v2, %v781_v18 }
 0x290   :  { %5726 = vmatpush1.bf16.msra.mxu0 %v15389_v60  ;;  %7138 = vmatpush1.bf16.msra.mxu1 %v15391_v49  ;;  %19857 = vst [vmem:[#allocation119_spill] sm:$0xff] %v18246_v29  ;;  %v118_v60 = vld [vmem:[#allocation3 + $0x270] sm:$0xff]  ;;  %v18252_v49 = vcombine.low %v106_v27, %v110_v22 }
 0x291   :  { %5727 = vmatprep.subr.bf16.mxu0 %v15398_v56  ;;  %7139 = vmatprep.subr.bf16.mxu1 %v15400_v3  ;;  %v18254_v56 = vcombine.high %v114_v37, %v118_v60  ;;  %v776_v3 = vld [vmem:[#allocation6 + $0xf00] sm:$0xff]  ;;  %v18260_v54 = vcombine.low %v114_v37, %v118_v60  ;;  %v130_v22 = vld [vmem:[#allocation3 + $0x2d0] sm:$0xff] }
 0x292   :  { %5437 = vmatmul.mubr.bf16.gmra.mrb[20].mxu0 %v18228_v48  ;;  %6849 = vmatmul.mubr.bf16.gmra.mrb[20].mxu1 %v18228_v48  ;;  %19858 = vst [vmem:[#allocation120_spill] sm:$0xff] %v18252_v49  ;;  %v784_v37 = vld [vmem:[#allocation6 + $0xf40] sm:$0xff] }
 0x293   :  { %5446 = vmatprep.mubr.bf16.mxu0 %v18230_v9  ;;  %6858 = vmatprep.mubr.bf16.mxu1 %v18230_v9  ;;  %19859 = vst [vmem:[#allocation121_spill] sm:$0xff] %v18254_v56  ;;  %19860 = vst [vmem:[#allocation122_spill] sm:$0xff] %v18260_v54  ;;  %v788_v60 = vld [vmem:[#allocation6 + $0xf60] sm:$0xff] }
 0x294   :  { %5728 = vmatpush1.bf16.msra.mxu0 %v15397_v4  ;;  %7140 = vmatpush1.bf16.msra.mxu1 %v15399_v47  ;;  %v780_v4 = vld [vmem:[#allocation6 + $0xf20] sm:$0xff] }
 0x295   :  { %5729 = vmatprep.subr.bf16.mxu0 %v15406_v43  ;;  %7141 = vmatprep.subr.bf16.mxu1 %v15408_v5  ;;  %v15413_v47 = vcombine.low %v776_v3, %v780_v4  ;;  %v15414_v11 = vcombine.high %v776_v3, %v780_v4  ;;  %v15415_v43 = vcombine.low %v777_v2, %v781_v18  ;;  %v789_v2 = vld [vmem:[#allocation6 + $0xf68] sm:$0xff]  ;;  %v138_v18 = vld [vmem:[#allocation3 + $0x310] sm:$0xff] }
 0x296   :  { %v15421_v4 = vcombine.low %v784_v37, %v788_v60 }
 0x298   :  { %5730 = vmatpush1.bf16.msra.mxu0 %v15405_v40  ;;  %7142 = vmatpush1.bf16.msra.mxu1 %v15407_v53  ;;  %v126_v40 = vld [vmem:[#allocation3 + $0x2b0] sm:$0xff] }
 0x299   :  { %5731 = vmatprep.subr.bf16.mxu0 %v15414_v11  ;;  %7143 = vmatprep.subr.bf16.mxu1 %v15416_v26  ;;  %v18262_v27 = vcombine.high %v122_v44, %v126_v40  ;;  %v134_v53 = vld [vmem:[#allocation3 + $0x2f0] sm:$0xff]  ;;  %v18268_v5 = vcombine.low %v122_v44, %v126_v40  ;;  %v785_v11 = vld [vmem:[#allocation6 + $0xf48] sm:$0xff] }
 0x29a   :  { %5447 = vmatmul.mubr.bf16.gmra.mrb[24].mxu0 %v18236_v63  ;;  %6859 = vmatmul.mubr.bf16.gmra.mrb[24].mxu1 %v18236_v63  ;;  %v18270_v3 = vcombine.high %v130_v22, %v134_v53  ;;  %v15423_v44 = vcombine.low %v785_v11, %v789_v2  ;;  %v15424_v40 = vcombine.high %v785_v11, %v789_v2  ;;  %v793_v2 = vld [vmem:[#allocation6 + $0xf88] sm:$0xff]  ;;  %v63_v63 = vld [vmem:[#allocation3 + $0xb8] sm:$0xff] }
 0x29b   :  { %5456 = vmatprep.mubr.bf16.mxu0 %v18238_v34  ;;  %6868 = vmatprep.mubr.bf16.mxu1 %v18238_v34  ;;  %19861 = vst [vmem:[#allocation123_spill] sm:$0xff] %v18262_v27  ;;  %19862 = vst [vmem:[#allocation124_spill] sm:$0xff] %v18268_v5  ;;  %v18276_v26 = vcombine.low %v130_v22, %v134_v53  ;;  %v792_v22 = vld [vmem:[#allocation6 + $0xf80] sm:$0xff]  ;;  %v59_v34 = vld [vmem:[#allocation3 + $0x98] sm:$0xff] }
 0x29c   :  { %5732 = vmatpush1.bf16.msra.mxu0 %v15413_v47  ;;  %7144 = vmatpush1.bf16.msra.mxu1 %v15415_v43  ;;  %19863 = vst [vmem:[#allocation125_spill] sm:$0xff] %v18270_v3  ;;  %v15422_v47 = vcombine.high %v784_v37, %v788_v60  ;;  %v142_v43 = vld [vmem:[#allocation3 + $0x330] sm:$0xff]  ;;  %v796_v53 = vld [vmem:[#allocation6 + $0xfa0] sm:$0xff] }
 0x29d   :  { %19864 = vst [vmem:[#allocation126_spill] sm:$0xff] %v18276_v26  ;;  %7145 = vmatprep.subr.bf16.mxu1 %v15424_v40  ;;  %v146_v37 = vld [vmem:[#allocation3 + $0x350] sm:$0xff]  ;;  %v15430_v11 = vcombine.high %v792_v22, %v796_v53 }
 0x29e   :  { %5733 = vmatprep.subr.bf16.mxu0 %v15422_v47  ;;  %v150_v60 = vld [vmem:[#allocation3 + $0x370] sm:$0xff] }
 0x29f   :  { %v18286_v47 = vcombine.high %v146_v37, %v150_v60  ;;  %v154_v40 = vld [vmem:[#allocation3 + $0x390] sm:$0xff] }
 0x2a0   :  { %5734 = vmatpush1.bf16.msra.mxu0 %v15421_v4  ;;  %7146 = vmatpush1.bf16.msra.mxu1 %v15423_v44  ;;  %v15429_v4 = vcombine.low %v792_v22, %v796_v53  ;;  %v797_v44 = vld [vmem:[#allocation6 + $0xfa8] sm:$0xff]  ;;  %v162_v22 = vld [vmem:[#allocation3 + $0x3d0] sm:$0xff] }
 0x2a1   :  { %19867 = vst [vmem:[#allocation129_spill] sm:$0xff] %v18286_v47  ;;  %5735 = vmatprep.subr.bf16.mxu0 %v15430_v11  ;;  %v166_v53 = vld [vmem:[#allocation3 + $0x3f0] sm:$0xff] }
 0x2a2   :  { %5457 = vmatmul.mubr.bf16.gmra.mrb[28].mxu0 %v18244_v25  ;;  %6869 = vmatmul.mubr.bf16.gmra.mrb[28].mxu1 %v18244_v25  ;;  %v18302_v11 = vcombine.high %v162_v22, %v166_v53  ;;  %v319_v25 = vld [vmem:[#allocation6 + $0xb8] sm:$0xff] }
 0x2a3   :  { %5466 = vmatprep.mubr.bf16.mxu0 %v18246_v29  ;;  %6878 = vmatprep.mubr.bf16.mxu1 %v18246_v29  ;;  %v315_v29 = vld [vmem:[#allocation6 + $0x98] sm:$0xff] }
 0x2a4   :  { %5736 = vmatpush1.bf16.msra.mxu0 %v15429_v4  ;;  %19871 = vst [vmem:[#allocation133_spill] sm:$0xff] %v18302_v11  ;;  %v14956_v8 = vcombine.high %v315_v29, %v319_v25 }
 0x2aa   :  { %5467 = vmatmul.mubr.bf16.gmra.mrb[32].mxu0 %v18252_v49  ;;  %6879 = vmatmul.mubr.bf16.gmra.mrb[32].mxu1 %v18252_v49  ;;  %v318_v49 = vld [vmem:[#allocation6 + $0xb0] sm:$0xff] }
 0x2ab   :  { %5476 = vmatprep.mubr.bf16.mxu0 %v18254_v56  ;;  %6888 = vmatprep.mubr.bf16.mxu1 %v18254_v56  ;;  %v314_v56 = vld [vmem:[#allocation6 + $0x90] sm:$0xff] }
 0x2ac   :  { %v14954_v48 = vcombine.high %v314_v56, %v318_v49 }
 0x2b2   :  { %5477 = vmatmul.mubr.bf16.gmra.mrb[36].mxu0 %v18260_v54  ;;  %6889 = vmatmul.mubr.bf16.gmra.mrb[36].mxu1 %v18260_v54  ;;  %v311_v54 = vld [vmem:[#allocation6 + $0x78] sm:$0xff] }
 0x2b3   :  { %5486 = vmatprep.mubr.bf16.mxu0 %v18262_v27  ;;  %6898 = vmatprep.mubr.bf16.mxu1 %v18262_v27  ;;  %v18278_v27 = vcombine.high %v138_v18, %v142_v43 }
 0x2b5   :  { %19865 = vst [vmem:[#allocation127_spill] sm:$0xff] %v18278_v27 }
 0x2ba   :  { %5487 = vmatmul.mubr.bf16.gmra.mrb[40].mxu0 %v18268_v5  ;;  %6899 = vmatmul.mubr.bf16.gmra.mrb[40].mxu1 %v18268_v5 }
 0x2bb   :  { %5496 = vmatprep.mubr.bf16.mxu0 %v18270_v3  ;;  %6908 = vmatprep.mubr.bf16.mxu1 %v18270_v3  ;;  %v18284_v3 = vcombine.low %v138_v18, %v142_v43  ;;  %v15431_v18 = vcombine.low %v793_v2, %v797_v44  ;;  %v15432_v43 = vcombine.high %v793_v2, %v797_v44  ;;  %v801_v44 = vld [vmem:[#allocation6 + $0xfc8] sm:$0xff] }
 0x2bd   :  { %19866 = vst [vmem:[#allocation128_spill] sm:$0xff] %v18284_v3  ;;  %7147 = vmatprep.subr.bf16.mxu1 %v15432_v43  ;;  %v170_v43 = vld [vmem:[#allocation3 + $0x410] sm:$0xff] }
 0x2be   :  { %7148 = vmatpush1.bf16.msra.mxu1 %v15431_v18  ;;  %v805_v18 = vld [vmem:[#allocation6 + $0xfe8] sm:$0xff] }
 0x2c2   :  { %5497 = vmatmul.mubr.bf16.gmra.mrb[44].mxu0 %v18276_v26  ;;  %6909 = vmatmul.mubr.bf16.gmra.mrb[44].mxu1 %v18276_v26  ;;  %v18292_v26 = vcombine.low %v146_v37, %v150_v60  ;;  %v800_v37 = vld [vmem:[#allocation6 + $0xfc0] sm:$0xff] }
 0x2c3   :  { %5506 = vmatprep.mubr.bf16.mxu0 %v18278_v27  ;;  %6918 = vmatprep.mubr.bf16.mxu1 %v18278_v27  ;;  %v158_v27 = vld [vmem:[#allocation3 + $0x3b0] sm:$0xff]  ;;  %v804_v60 = vld [vmem:[#allocation6 + $0xfe0] sm:$0xff] }
 0x2c4   :  { %19868 = vst [vmem:[#allocation130_spill] sm:$0xff] %v18292_v26  ;;  %v18294_v5 = vcombine.high %v154_v40, %v158_v27  ;;  %v15437_v4 = vcombine.low %v800_v37, %v804_v60  ;;  %v15438_v2 = vcombine.high %v800_v37, %v804_v60  ;;  %v178_v37 = vld [vmem:[#allocation3 + $0x450] sm:$0xff] }
 0x2c5   :  { %v182_v60 = vld [vmem:[#allocation3 + $0x470] sm:$0xff] }
 0x2c6   :  { %19869 = vst [vmem:[#allocation131_spill] sm:$0xff] %v18294_v5  ;;  %5737 = vmatprep.subr.bf16.mxu0 %v15438_v2  ;;  %v18318_v2 = vcombine.high %v178_v37, %v182_v60 }
 0x2c7   :  { %5738 = vmatpush1.bf16.msra.mxu0 %v15437_v4  ;;  %v18327_v4 = vld [vmem:[#allocation6 + $0x18] sm:$0xff] }
 0x2c8   :  { %19875 = vst [vmem:[#allocation137_spill] sm:$0xff] %v18318_v2 }
 0x2ca   :  { %5507 = vmatmul.mubr.bf16.gmra.mrb[48].mxu0 %v18284_v3  ;;  %6919 = vmatmul.mubr.bf16.gmra.mrb[48].mxu1 %v18284_v3 }
 0x2cb   :  { %5516 = vmatprep.mubr.bf16.mxu0 %v18286_v47  ;;  %6928 = vmatprep.mubr.bf16.mxu1 %v18286_v47  ;;  %v18300_v47 = vcombine.low %v154_v40, %v158_v27  ;;  %v15439_v27 = vcombine.low %v801_v44, %v805_v18  ;;  %v15440_v40 = vcombine.high %v801_v44, %v805_v18  ;;  %v186_v44 = vld [vmem:[#allocation3 + $0x490] sm:$0xff] }
 0x2cc   :  { %v190_v18 = vld [vmem:[#allocation3 + $0x4b0] sm:$0xff] }
 0x2cd   :  { %19870 = vst [vmem:[#allocation132_spill] sm:$0xff] %v18300_v47  ;;  %7149 = vmatprep.subr.bf16.mxu1 %v15440_v40  ;;  %v18348_v40 = vcombine.low %v186_v44, %v190_v18 }
 0x2ce   :  { %7150 = vmatpush1.bf16.msra.mxu1 %v15439_v27  ;;  %v18334_v27 = vld [vmem:[#allocation6 + $0x38] sm:$0xff] }
 0x2cf   :  { %19878 = vst [vmem:[#allocation140_spill] sm:$0xff] %v18348_v40 }
 0x2d2   :  { %5517 = vmatmul.mubr.bf16.gmra.mrb[52].mxu0 %v18292_v26  ;;  %6929 = vmatmul.mubr.bf16.gmra.mrb[52].mxu1 %v18292_v26  ;;  %v18308_v26 = vcombine.low %v162_v22, %v166_v53  ;;  %v18323_v22 = vld [vmem:[#allocation6 + $0x10] sm:$0xff] }
 0x2d3   :  { %5526 = vmatprep.mubr.bf16.mxu0 %v18294_v5  ;;  %6938 = vmatprep.mubr.bf16.mxu1 %v18294_v5  ;;  %v174_v5 = vld [vmem:[#allocation3 + $0x430] sm:$0xff] }
 0x2d4   :  { %19872 = vst [vmem:[#allocation134_spill] sm:$0xff] %v18308_v26  ;;  %v18310_v3 = vcombine.high %v170_v43, %v174_v5  ;;  %v18325_v53 = vld [vmem:[#allocation6 + $0x30] sm:$0xff] }
 0x2d6   :  { %19873 = vst [vmem:[#allocation135_spill] sm:$0xff] %v18310_v3 }
 0x2da   :  { %5527 = vmatmul.mubr.bf16.gmra.mrb[56].mxu0 %v18300_v47  ;;  %6939 = vmatmul.mubr.bf16.gmra.mrb[56].mxu1 %v18300_v47 }
 0x2db   :  { %5536 = vmatprep.mubr.bf16.mxu0 %v18302_v11  ;;  %6948 = vmatprep.mubr.bf16.mxu1 %v18302_v11  ;;  %v18316_v11 = vcombine.low %v170_v43, %v174_v5  ;;  %v14938_v43 = vcombine.high %v18323_v22, %v18325_v53  ;;  %v194_v5 = vld [vmem:[#allocation3 + $0x4d0] sm:$0xff] }
 0x2dd   :  { %19874 = vst [vmem:[#allocation136_spill] sm:$0xff] %v18316_v11  ;;  %7472 = vmatprep.subr.bf16.mxu0 %v14938_v43 }
 0x2e2   :  { %5537 = vmatmul.mubr.bf16.gmra.mrb[60].mxu0 %v18308_v26  ;;  %6949 = vmatmul.mubr.bf16.gmra.mrb[60].mxu1 %v18308_v26  ;;  %v198_v26 = vld [vmem:[#allocation3 + $0x4f0] sm:$0xff] }
 0x2e3   :  { %5546 = vmatprep.mubr.bf16.mxu0 %v18310_v3  ;;  %6958 = vmatprep.mubr.bf16.mxu1 %v18310_v3  ;;  %v18340_v3 = vcombine.low %v178_v37, %v182_v60  ;;  %v18350_v47 = vcombine.high %v194_v5, %v198_v26  ;;  %v206_v37 = vld [vmem:[#allocation3 + $0x530] sm:$0xff]  ;;  %v18356_v60 = vcombine.low %v194_v5, %v198_v26 }
 0x2e4   :  { %v218_v26 = vld [vmem:[#allocation3 + $0x590] sm:$0xff] }
 0x2e5   :  { %19876 = vst [vmem:[#allocation138_spill] sm:$0xff] %v18340_v3  ;;  %19879 = vst [vmem:[#allocation141_spill] sm:$0xff] %v18350_v47  ;;  %v222_v5 = vld [vmem:[#allocation3 + $0x5b0] sm:$0xff] }
 0x2e6   :  { %19880 = vst [vmem:[#allocation142_spill] sm:$0xff] %v18356_v60 }
 0x2ea   :  { %5547 = vmatmul.mubr.bf16.gmra.mrb[64].mxu0 %v18316_v11  ;;  %6959 = vmatmul.mubr.bf16.gmra.mrb[64].mxu1 %v18316_v11  ;;  %v14940_v11 = vcombine.high %v18327_v4, %v18334_v27 }
 0x2eb   :  { %5556 = vmatprep.mubr.bf16.mxu0 %v18318_v2  ;;  %6968 = vmatprep.mubr.bf16.mxu1 %v18318_v2  ;;  %v18342_v2 = vcombine.high %v186_v44, %v190_v18  ;;  %v210_v44 = vld [vmem:[#allocation3 + $0x550] sm:$0xff] }
 0x2ec   :  { %8884 = vmatprep.subr.bf16.mxu1 %v14940_v11  ;;  %v202_v11 = vld [vmem:[#allocation3 + $0x510] sm:$0xff] }
 0x2ed   :  { %19877 = vst [vmem:[#allocation139_spill] sm:$0xff] %v18342_v2  ;;  %v18358_v43 = vcombine.high %v202_v11, %v206_v37  ;;  %v214_v18 = vld [vmem:[#allocation3 + $0x570] sm:$0xff] }
 0x2ef   :  { %19881 = vst [vmem:[#allocation143_spill] sm:$0xff] %v18358_v43 }
 0x2f2   :  { %5557 = vmatmul.mubr.bf16.gmra.mrb[68].mxu0 %v18340_v3  ;;  %6969 = vmatmul.mubr.bf16.gmra.mrb[68].mxu1 %v18340_v3  ;;  %v307_v3 = vld [vmem:[#allocation6 + $0x58] sm:$0xff] }
 0x2f3   :  { %5566 = vmatprep.mubr.bf16.mxu0 %v18342_v2  ;;  %6978 = vmatprep.mubr.bf16.mxu1 %v18342_v2  ;;  %v18366_v2 = vcombine.high %v210_v44, %v214_v18  ;;  %v14947_v9 = vcombine.low %v307_v3, %v311_v54 }
 0x2f5   :  { %19883 = vst [vmem:[#allocation145_spill] sm:$0xff] %v18366_v2 }
 0x2fa   :  { %5567 = vmatmul.mubr.bf16.gmra.mrb[72].mxu0 %v18348_v40  ;;  %6979 = vmatmul.mubr.bf16.gmra.mrb[72].mxu1 %v18348_v40  ;;  %v18364_v40 = vcombine.low %v202_v11, %v206_v37  ;;  %v226_v11 = vld [vmem:[#allocation3 + $0x5d0] sm:$0xff] }
 0x2fb   :  { %5576 = vmatprep.mubr.bf16.mxu0 %v18350_v47  ;;  %6988 = vmatprep.mubr.bf16.mxu1 %v18350_v47  ;;  %v18374_v47 = vcombine.high %v218_v26, %v222_v5  ;;  %v230_v37 = vld [vmem:[#allocation3 + $0x5f0] sm:$0xff] }
 0x2fc   :  { %19882 = vst [vmem:[#allocation144_spill] sm:$0xff] %v18364_v40 }
 0x2fd   :  { %19885 = vst [vmem:[#allocation147_spill] sm:$0xff] %v18374_v47 }
 0x302   :  { %5577 = vmatmul.mubr.bf16.gmra.mrb[76].mxu0 %v18356_v60  ;;  %6989 = vmatmul.mubr.bf16.gmra.mrb[76].mxu1 %v18356_v60  ;;  %v18372_v60 = vcombine.low %v210_v44, %v214_v18  ;;  %v234_v44 = vld [vmem:[#allocation3 + $0x610] sm:$0xff] }
 0x303   :  { %5586 = vmatprep.mubr.bf16.mxu0 %v18358_v43  ;;  %6998 = vmatprep.mubr.bf16.mxu1 %v18358_v43  ;;  %v18382_v43 = vcombine.high %v226_v11, %v230_v37  ;;  %v238_v18 = vld [vmem:[#allocation3 + $0x630] sm:$0xff] }
 0x304   :  { %19884 = vst [vmem:[#allocation146_spill] sm:$0xff] %v18372_v60 }
 0x305   :  { %19887 = vst [vmem:[#allocation149_spill] sm:$0xff] %v18382_v43 }
 0x30a   :  { %5587 = vmatmul.mubr.bf16.gmra.mrb[80].mxu0 %v18364_v40  ;;  %6999 = vmatmul.mubr.bf16.gmra.mrb[80].mxu1 %v18364_v40  ;;  %v18380_v40 = vcombine.low %v218_v26, %v222_v5  ;;  %v242_v26 = vld [vmem:[#allocation3 + $0x650] sm:$0xff] }
 0x30b   :  { %5596 = vmatprep.mubr.bf16.mxu0 %v18366_v2  ;;  %7008 = vmatprep.mubr.bf16.mxu1 %v18366_v2  ;;  %v18390_v2 = vcombine.high %v234_v44, %v238_v18  ;;  %v246_v5 = vld [vmem:[#allocation3 + $0x670] sm:$0xff] }
 0x30c   :  { %19886 = vst [vmem:[#allocation148_spill] sm:$0xff] %v18380_v40 }
 0x30d   :  { %19889 = vst [vmem:[#allocation151_spill] sm:$0xff] %v18390_v2 }
 0x312   :  { %5597 = vmatmul.mubr.bf16.gmra.mrb[84].mxu0 %v18372_v60  ;;  %7009 = vmatmul.mubr.bf16.gmra.mrb[84].mxu1 %v18372_v60  ;;  %v18388_v60 = vcombine.low %v226_v11, %v230_v37  ;;  %v250_v11 = vld [vmem:[#allocation3 + $0x690] sm:$0xff] }
 0x313   :  { %5606 = vmatprep.mubr.bf16.mxu0 %v18374_v47  ;;  %7018 = vmatprep.mubr.bf16.mxu1 %v18374_v47  ;;  %v18398_v47 = vcombine.high %v242_v26, %v246_v5  ;;  %v254_v37 = vld [vmem:[#allocation3 + $0x6b0] sm:$0xff] }
 0x314   :  { %19888 = vst [vmem:[#allocation150_spill] sm:$0xff] %v18388_v60 }
 0x315   :  { %19891 = vst [vmem:[#allocation153_spill] sm:$0xff] %v18398_v47 }
 0x31a   :  { %5607 = vmatmul.mubr.bf16.gmra.mrb[88].mxu0 %v18380_v40  ;;  %7019 = vmatmul.mubr.bf16.gmra.mrb[88].mxu1 %v18380_v40  ;;  %v18396_v40 = vcombine.low %v234_v44, %v238_v18  ;;  %v258_v44 = vld [vmem:[#allocation3 + $0x6d0] sm:$0xff] }
 0x31b   :  { %5616 = vmatprep.mubr.bf16.mxu0 %v18382_v43  ;;  %7028 = vmatprep.mubr.bf16.mxu1 %v18382_v43  ;;  %v18406_v43 = vcombine.high %v250_v11, %v254_v37  ;;  %v262_v18 = vld [vmem:[#allocation3 + $0x6f0] sm:$0xff] }
 0x31c   :  { %19890 = vst [vmem:[#allocation152_spill] sm:$0xff] %v18396_v40 }
 0x31d   :  { %19893 = vst [vmem:[#allocation155_spill] sm:$0xff] %v18406_v43 }
 0x322   :  { %5617 = vmatmul.mubr.bf16.gmra.mrb[92].mxu0 %v18388_v60  ;;  %7029 = vmatmul.mubr.bf16.gmra.mrb[92].mxu1 %v18388_v60  ;;  %v18404_v60 = vcombine.low %v242_v26, %v246_v5  ;;  %v266_v26 = vld [vmem:[#allocation3 + $0x710] sm:$0xff] }
 0x323   :  { %5626 = vmatprep.mubr.bf16.mxu0 %v18390_v2  ;;  %7038 = vmatprep.mubr.bf16.mxu1 %v18390_v2  ;;  %v18414_v2 = vcombine.high %v258_v44, %v262_v18  ;;  %v270_v5 = vld [vmem:[#allocation3 + $0x730] sm:$0xff] }
 0x324   :  { %19892 = vst [vmem:[#allocation154_spill] sm:$0xff] %v18404_v60 }
 0x325   :  { %19895 = vst [vmem:[#allocation157_spill] sm:$0xff] %v18414_v2 }
 0x32a   :  { %5627 = vmatmul.mubr.bf16.gmra.mrb[96].mxu0 %v18396_v40  ;;  %7039 = vmatmul.mubr.bf16.gmra.mrb[96].mxu1 %v18396_v40  ;;  %v18412_v40 = vcombine.low %v250_v11, %v254_v37  ;;  %v274_v11 = vld [vmem:[#allocation3 + $0x750] sm:$0xff] }
 0x32b   :  { %5636 = vmatprep.mubr.bf16.mxu0 %v18398_v47  ;;  %7048 = vmatprep.mubr.bf16.mxu1 %v18398_v47  ;;  %v18422_v47 = vcombine.high %v266_v26, %v270_v5  ;;  %v278_v37 = vld [vmem:[#allocation3 + $0x770] sm:$0xff] }
 0x32c   :  { %19894 = vst [vmem:[#allocation156_spill] sm:$0xff] %v18412_v40 }
 0x32d   :  { %19897 = vst [vmem:[#allocation159_spill] sm:$0xff] %v18422_v47 }
 0x332   :  { %5637 = vmatmul.mubr.bf16.gmra.mrb[100].mxu0 %v18404_v60  ;;  %7049 = vmatmul.mubr.bf16.gmra.mrb[100].mxu1 %v18404_v60  ;;  %v18420_v60 = vcombine.low %v258_v44, %v262_v18  ;;  %v282_v44 = vld [vmem:[#allocation3 + $0x790] sm:$0xff] }
 0x333   :  { %5646 = vmatprep.mubr.bf16.mxu0 %v18406_v43  ;;  %7058 = vmatprep.mubr.bf16.mxu1 %v18406_v43  ;;  %v18430_v43 = vcombine.high %v274_v11, %v278_v37  ;;  %v286_v18 = vld [vmem:[#allocation3 + $0x7b0] sm:$0xff] }
 0x334   :  { %19896 = vst [vmem:[#allocation158_spill] sm:$0xff] %v18420_v60 }
 0x335   :  { %19899 = vst [vmem:[#allocation161_spill] sm:$0xff] %v18430_v43 }
 0x33a   :  { %5647 = vmatmul.mubr.bf16.gmra.mrb[104].mxu0 %v18412_v40  ;;  %7059 = vmatmul.mubr.bf16.gmra.mrb[104].mxu1 %v18412_v40  ;;  %v18428_v40 = vcombine.low %v266_v26, %v270_v5  ;;  %v290_v26 = vld [vmem:[#allocation3 + $0x7d0] sm:$0xff] }
 0x33b   :  { %5656 = vmatprep.mubr.bf16.mxu0 %v18414_v2  ;;  %7068 = vmatprep.mubr.bf16.mxu1 %v18414_v2  ;;  %v18438_v2 = vcombine.high %v282_v44, %v286_v18  ;;  %v294_v5 = vld [vmem:[#allocation3 + $0x7f0] sm:$0xff] }
 0x33c   :  { %19898 = vst [vmem:[#allocation160_spill] sm:$0xff] %v18428_v40 }
 0x33d   :  { %19901 = vst [vmem:[#allocation163_spill] sm:$0xff] %v18438_v2 }
 0x342   :  { %5657 = vmatmul.mubr.bf16.gmra.mrb[108].mxu0 %v18420_v60  ;;  %7069 = vmatmul.mubr.bf16.gmra.mrb[108].mxu1 %v18420_v60  ;;  %v18436_v60 = vcombine.low %v274_v11, %v278_v37  ;;  %v43_v11 = vld [vmem:[#allocation3 + $0x18] sm:$0xff] }
 0x343   :  { %5666 = vmatprep.mubr.bf16.mxu0 %v18422_v47  ;;  %7078 = vmatprep.mubr.bf16.mxu1 %v18422_v47  ;;  %v18446_v47 = vcombine.high %v290_v26, %v294_v5  ;;  %v47_v37 = vld [vmem:[#allocation3 + $0x38] sm:$0xff] }
 0x344   :  { %19900 = vst [vmem:[#allocation162_spill] sm:$0xff] %v18436_v60 }
 0x345   :  { %19903 = vst [vmem:[#allocation165_spill] sm:$0xff] %v18446_v47 }
 0x34a   :  { %5667 = vmatmul.mubr.bf16.gmra.mrb[112].mxu0 %v18428_v40  ;;  %7079 = vmatmul.mubr.bf16.gmra.mrb[112].mxu1 %v18428_v40  ;;  %v18444_v40 = vcombine.low %v282_v44, %v286_v18  ;;  %v51_v44 = vld [vmem:[#allocation3 + $0x58] sm:$0xff] }
 0x34b   :  { %5676 = vmatprep.mubr.bf16.mxu0 %v18430_v43  ;;  %7088 = vmatprep.mubr.bf16.mxu1 %v18430_v43  ;;  %v18454_v43 = vcombine.high %v43_v11, %v47_v37  ;;  %v55_v18 = vld [vmem:[#allocation3 + $0x78] sm:$0xff] }
 0x34c   :  { %19902 = vst [vmem:[#allocation164_spill] sm:$0xff] %v18444_v40 }
 0x34d   :  { %19905 = vst [vmem:[#allocation167_spill] sm:$0xff] %v18454_v43 }
 0x352   :  { %5677 = vmatmul.mubr.bf16.gmra.mrb[116].mxu0 %v18436_v60  ;;  %7089 = vmatmul.mubr.bf16.gmra.mrb[116].mxu1 %v18436_v60  ;;  %v18452_v60 = vcombine.low %v290_v26, %v294_v5  ;;  %v18462_v26 = vcombine.high %v51_v44, %v55_v18 }
 0x353   :  { %5686 = vmatprep.mubr.bf16.mxu0 %v18438_v2  ;;  %7098 = vmatprep.mubr.bf16.mxu1 %v18438_v2  ;;  %v306_v2 = vld [vmem:[#allocation6 + $0x50] sm:$0xff] }
 0x354   :  { %19904 = vst [vmem:[#allocation166_spill] sm:$0xff] %v18452_v60  ;;  %19907 = vst [vmem:[#allocation169_spill] sm:$0xff] %v18462_v26 }
 0x35a   :  { %5687 = vmatmul.mubr.bf16.gmra.mrb[120].mxu0 %v18444_v40  ;;  %7099 = vmatmul.mubr.bf16.gmra.mrb[120].mxu1 %v18444_v40  ;;  %v18460_v40 = vcombine.low %v43_v11, %v47_v37  ;;  %v19908_v11 = vcombine.low %v18323_v22, %v18325_v53  ;;  %v322_v22 = vld [vmem:[#allocation6 + $0xd0] sm:$0xff] }
 0x35b   :  { %5696 = vmatprep.mubr.bf16.mxu0 %v18446_v47  ;;  %7108 = vmatprep.mubr.bf16.mxu1 %v18446_v47  ;;  %v310_v47 = vld [vmem:[#allocation6 + $0x70] sm:$0xff] }
 0x35c   :  { %19906 = vst [vmem:[#allocation168_spill] sm:$0xff] %v18460_v40  ;;  %v14946_v5 = vcombine.high %v306_v2, %v310_v47  ;;  %v14945_v37 = vcombine.low %v306_v2, %v310_v47  ;;  %v326_v53 = vld [vmem:[#allocation6 + $0xf0] sm:$0xff]  ;;  %v18476_v47 = vcombine.high %v59_v34, %v63_v63  ;;  %v323_v2 = vld [vmem:[#allocation6 + $0xd8] sm:$0xff] }
 0x35e   :  { %19911 = vst [vmem:[#allocation171_spill] sm:$0xff] %v18476_v47 }
 0x362   :  { %5697 = vmatmul.mubr.bf16.gmra.mrb[124].mxu0 %v18452_v60  ;;  %7109 = vmatmul.mubr.bf16.gmra.mrb[124].mxu1 %v18452_v60  ;;  %v14948_v60 = vcombine.high %v307_v3, %v311_v54  ;;  %v14962_v54 = vcombine.high %v322_v22, %v326_v53 }
 0x363   :  { %5739 = vmatprep.mubr.bf16.mxu0 %v18454_v43  ;;  %7151 = vmatprep.mubr.bf16.mxu1 %v18454_v43  ;;  %v19909_v43 = vcombine.low %v18327_v4, %v18334_v27  ;;  %v327_v4 = vld [vmem:[#allocation6 + $0xf8] sm:$0xff]  ;;  %v14953_v27 = vcombine.low %v314_v56, %v318_v49  ;;  %v338_v56 = vld [vmem:[#allocation6 + $0x150] sm:$0xff] }
 0x364   :  { %v14964_v3 = vcombine.high %v323_v2, %v327_v4 }
 0x36a   :  { %5740 = vmatmul.mubr.bf16.vlgmr.msra.gmra.mrb[0].mxu0 %v18460_v40  ;;  %7152 = vmatmul.mubr.bf16.vlgmr.msra.gmra.mrb[0].mxu1 %v18460_v40  ;;  %v18474_v40 = vcombine.low %v51_v44, %v55_v18  ;;  %v334_v44 = vld [vmem:[#allocation6 + $0x130] sm:$0xff]  ;;  %v335_v18 = vld [vmem:[#allocation6 + $0x138] sm:$0xff] }
 0x36b   :  { %7473 = vmatpush1.bf16.msra.mxu0 %v19908_v11  ;;  %8885 = vmatpush1.bf16.msra.mxu1 %v19909_v43  ;;  %v14955_v43 = vcombine.low %v315_v29, %v319_v25  ;;  %v67_v11 = vld [vmem:[#allocation3 + $0xd8] sm:$0xff]  ;;  %v18482_v29 = vcombine.low %v59_v34, %v63_v63  ;;  %v346_v63 = vld [vmem:[#allocation6 + $0x190] sm:$0xff] }
 0x36c   :  { %5749 = vmatprep.mubr.bf16.mxu0 %v18462_v26  ;;  %7161 = vmatprep.mubr.bf16.mxu1 %v18462_v26  ;;  %19910 = vst [vmem:[#allocation170_spill] sm:$0xff] %v18474_v40  ;;  %v339_v26 = vld [vmem:[#allocation6 + $0x158] sm:$0xff]  ;;  %v350_v34 = vld [vmem:[#allocation6 + $0x1b0] sm:$0xff] }
 0x36d   :  { %7474 = vmatprep.subr.bf16.mxu0 %v14946_v5  ;;  %8886 = vmatprep.subr.bf16.mxu1 %v14948_v60  ;;  %v330_v5 = vld [vmem:[#allocation6 + $0x110] sm:$0xff]  ;;  %v331_v60 = vld [vmem:[#allocation6 + $0x118] sm:$0xff]  ;;  %19912 = vst [vmem:[#allocation172_spill] sm:$0xff] %v18482_v29 }
 0x36e   :  { %v14970_v25 = vcombine.high %v330_v5, %v334_v44  ;;  %v14972_v49 = vcombine.high %v331_v60, %v335_v18 }
 0x36f   :  { %7475 = vmatpush1.bf16.msra.mxu0 %v14945_v37  ;;  %8887 = vmatpush1.bf16.msra.mxu1 %v14947_v9  ;;  %v71_v9 = vld [vmem:[#allocation3 + $0xf8] sm:$0xff]  ;;  %v342_v37 = vld [vmem:[#allocation6 + $0x170] sm:$0xff] }
 0x370   :  { %7476 = vmatprep.subr.bf16.mxu0 %v14954_v48  ;;  %8888 = vmatprep.subr.bf16.mxu1 %v14956_v8  ;;  %v14961_v48 = vcombine.low %v322_v22, %v326_v53  ;;  %v14963_v8 = vcombine.low %v323_v2, %v327_v4  ;;  %v14978_v22 = vcombine.high %v338_v56, %v342_v37  ;;  %v347_v2 = vld [vmem:[#allocation6 + $0x198] sm:$0xff] }
 0x371   :  { %v14980_v53 = vcombine.high %v339_v26, %v343_v28  ;;  %v351_v4 = vld [vmem:[#allocation6 + $0x1b8] sm:$0xff] }
 0x372   :  { %5750 = vmatmul.mubr.bf16.gmra.mrb[4].mxu0 %v18474_v40  ;;  %7162 = vmatmul.mubr.bf16.gmra.mrb[4].mxu1 %v18474_v40  ;;  %v18484_v40 = vcombine.high %v67_v11, %v71_v9 }
 0x373   :  { %5759 = vmatprep.mubr.bf16.mxu0 %v18476_v47  ;;  %7171 = vmatprep.mubr.bf16.mxu1 %v18476_v47  ;;  %v14969_v47 = vcombine.low %v330_v5, %v334_v44  ;;  %v14979_v5 = vcombine.low %v339_v26, %v343_v28  ;;  %v14986_v44 = vcombine.high %v346_v63, %v350_v34  ;;  %v362_v26 = vld [vmem:[#allocation6 + $0x210] sm:$0xff] }
 0x374   :  { %7477 = vmatpush1.bf16.msra.mxu0 %v14953_v27  ;;  %8889 = vmatpush1.bf16.msra.mxu1 %v14955_v43  ;;  %19913 = vst [vmem:[#allocation173_spill] sm:$0xff] %v18484_v40  ;;  %v14971_v27 = vcombine.low %v331_v60, %v335_v18  ;;  %v75_v43 = vld [vmem:[#allocation3 + $0x118] sm:$0xff]  ;;  %v18490_v60 = vcombine.low %v67_v11, %v71_v9  ;;  %v366_v11 = vld [vmem:[#allocation6 + $0x230] sm:$0xff] }
 0x375   :  { %7478 = vmatprep.subr.bf16.mxu0 %v14962_v54  ;;  %8890 = vmatprep.subr.bf16.mxu1 %v14964_v3  ;;  %v79_v54 = vld [vmem:[#allocation3 + $0x138] sm:$0xff]  ;;  %v14977_v3 = vcombine.low %v338_v56, %v342_v37  ;;  %v14988_v18 = vcombine.high %v347_v2, %v351_v4 }
 0x376   :  { %19914 = vst [vmem:[#allocation174_spill] sm:$0xff] %v18490_v60  ;;  %v363_v9 = vld [vmem:[#allocation6 + $0x218] sm:$0xff] }
 0x377   :  { %v367_v37 = vld [vmem:[#allocation6 + $0x238] sm:$0xff] }
 0x378   :  { %7479 = vmatpush1.bf16.msra.mxu0 %v14961_v48  ;;  %8891 = vmatpush1.bf16.msra.mxu1 %v14963_v8  ;;  %v354_v48 = vld [vmem:[#allocation6 + $0x1d0] sm:$0xff] }
 0x379   :  { %7480 = vmatprep.subr.bf16.mxu0 %v14970_v25  ;;  %8892 = vmatprep.subr.bf16.mxu1 %v14972_v49  ;;  %v358_v8 = vld [vmem:[#allocation6 + $0x1f0] sm:$0xff]  ;;  %v18492_v25 = vcombine.high %v75_v43, %v79_v54  ;;  %v355_v49 = vld [vmem:[#allocation6 + $0x1d8] sm:$0xff] }
 0x37a   :  { %5760 = vmatmul.mubr.bf16.gmra.mrb[8].mxu0 %v18482_v29  ;;  %7172 = vmatmul.mubr.bf16.gmra.mrb[8].mxu1 %v18482_v29  ;;  %v359_v29 = vld [vmem:[#allocation6 + $0x1f8] sm:$0xff]  ;;  %v14994_v56 = vcombine.high %v354_v48, %v358_v8 }
 0x37b   :  { %5769 = vmatprep.mubr.bf16.mxu0 %v18484_v40  ;;  %7181 = vmatprep.mubr.bf16.mxu1 %v18484_v40  ;;  %19915 = vst [vmem:[#allocation175_spill] sm:$0xff] %v18492_v25  ;;  %v14985_v40 = vcombine.low %v346_v63, %v350_v34  ;;  %v14996_v28 = vcombine.high %v355_v49, %v359_v29 }
 0x37c   :  { %7481 = vmatpush1.bf16.msra.mxu0 %v14969_v47  ;;  %8893 = vmatpush1.bf16.msra.mxu1 %v14971_v27  ;;  %v14987_v47 = vcombine.low %v347_v2, %v351_v4  ;;  %v83_v27 = vld [vmem:[#allocation3 + $0x158] sm:$0xff]  ;;  %v14995_v63 = vcombine.low %v355_v49, %v359_v29  ;;  %v15002_v34 = vcombine.high %v362_v26, %v366_v11 }
 0x37d   :  { %7482 = vmatprep.subr.bf16.mxu0 %v14978_v22  ;;  %8894 = vmatprep.subr.bf16.mxu1 %v14980_v53  ;;  %v87_v22 = vld [vmem:[#allocation3 + $0x178] sm:$0xff]  ;;  %v14993_v53 = vcombine.low %v354_v48, %v358_v8  ;;  %v18498_v2 = vcombine.low %v75_v43, %v79_v54  ;;  %v15004_v4 = vcombine.high %v363_v9, %v367_v37  ;;  %v378_v43 = vld [vmem:[#allocation6 + $0x290] sm:$0xff] }
 0x37e   :  { %v382_v54 = vld [vmem:[#allocation6 + $0x2b0] sm:$0xff]  ;;  %v379_v8 = vld [vmem:[#allocation6 + $0x298] sm:$0xff] }
 0x37f   :  { %v91_v49 = vld [vmem:[#allocation3 + $0x198] sm:$0xff] }
 0x380   :  { %7483 = vmatpush1.bf16.msra.mxu0 %v14977_v3  ;;  %8895 = vmatpush1.bf16.msra.mxu1 %v14979_v5  ;;  %v370_v3 = vld [vmem:[#allocation6 + $0x250] sm:$0xff] }
 0x381   :  { %7484 = vmatprep.subr.bf16.mxu0 %v14986_v44  ;;  %8896 = vmatprep.subr.bf16.mxu1 %v14988_v18  ;;  %v374_v5 = vld [vmem:[#allocation6 + $0x270] sm:$0xff]  ;;  %v18500_v44 = vcombine.high %v83_v27, %v87_v22  ;;  %v371_v18 = vld [vmem:[#allocation6 + $0x258] sm:$0xff] }
 0x382   :  { %5770 = vmatmul.mubr.bf16.gmra.mrb[12].mxu0 %v18490_v60  ;;  %7182 = vmatmul.mubr.bf16.gmra.mrb[12].mxu1 %v18490_v60  ;;  %v375_v60 = vld [vmem:[#allocation6 + $0x278] sm:$0xff]  ;;  %v15010_v48 = vcombine.high %v370_v3, %v374_v5 }
 0x383   :  { %5779 = vmatprep.mubr.bf16.mxu0 %v18492_v25  ;;  %7191 = vmatprep.mubr.bf16.mxu1 %v18492_v25  ;;  %v15001_v25 = vcombine.low %v362_v26, %v366_v11  ;;  %v15012_v29 = vcombine.high %v371_v18, %v375_v60  ;;  %v15011_v26 = vcombine.low %v371_v18, %v375_v60  ;;  %v99_v60 = vld [vmem:[#allocation3 + $0x1d8] sm:$0xff] }
 0x384   :  { %7485 = vmatpush1.bf16.msra.mxu0 %v14985_v40  ;;  %8897 = vmatpush1.bf16.msra.mxu1 %v14987_v47  ;;  %v15003_v40 = vcombine.low %v363_v9, %v367_v37  ;;  %v95_v47 = vld [vmem:[#allocation3 + $0x1b8] sm:$0xff]  ;;  %v15018_v11 = vcombine.high %v378_v43, %v382_v54  ;;  %v18506_v9 = vcombine.low %v83_v27, %v87_v22 }
 0x385   :  { %7486 = vmatprep.subr.bf16.mxu0 %v14994_v56  ;;  %8898 = vmatprep.subr.bf16.mxu1 %v14996_v28  ;;  %v15009_v56 = vcombine.low %v370_v3, %v374_v5  ;;  %v383_v28 = vld [vmem:[#allocation6 + $0x2b8] sm:$0xff]  ;;  %v18514_v27 = vcombine.low %v91_v49, %v95_v47  ;;  %v390_v3 = vld [vmem:[#allocation6 + $0x2f0] sm:$0xff] }
 0x386   :  { %v15020_v37 = vcombine.high %v379_v8, %v383_v28  ;;  %v387_v5 = vld [vmem:[#allocation6 + $0x2d8] sm:$0xff] }
 0x387   :  { %19917 = vst [vmem:[#allocation177_spill] sm:$0xff] %v18514_v27  ;;  %v107_v18 = vld [vmem:[#allocation3 + $0x218] sm:$0xff] }
 0x388   :  { %7487 = vmatpush1.bf16.msra.mxu0 %v14993_v53  ;;  %8899 = vmatpush1.bf16.msra.mxu1 %v14995_v63  ;;  %v18508_v53 = vcombine.high %v91_v49, %v95_v47  ;;  %v15017_v63 = vcombine.low %v378_v43, %v382_v54  ;;  %v391_v43 = vld [vmem:[#allocation6 + $0x2f8] sm:$0xff] }
 0x389   :  { %7488 = vmatprep.subr.bf16.mxu0 %v15002_v34  ;;  %8900 = vmatprep.subr.bf16.mxu1 %v15004_v4  ;;  %v15019_v34 = vcombine.low %v379_v8, %v383_v28  ;;  %v386_v4 = vld [vmem:[#allocation6 + $0x2d0] sm:$0xff]  ;;  %v15027_v54 = vcombine.low %v387_v5, %v391_v43  ;;  %v15028_v8 = vcombine.high %v387_v5, %v391_v43  ;;  %v119_v28 = vld [vmem:[#allocation3 + $0x278] sm:$0xff] }
 0x38a   :  { %5780 = vmatmul.mubr.bf16.gmra.mrb[16].mxu0 %v18498_v2  ;;  %7192 = vmatmul.mubr.bf16.gmra.mrb[16].mxu1 %v18498_v2  ;;  %19916 = vst [vmem:[#allocation176_spill] sm:$0xff] %v18508_v53  ;;  %v399_v5 = vld [vmem:[#allocation6 + $0x338] sm:$0xff] }
 0x38b   :  { %5789 = vmatprep.mubr.bf16.mxu0 %v18500_v44  ;;  %7201 = vmatprep.mubr.bf16.mxu1 %v18500_v44  ;;  %v131_v43 = vld [vmem:[#allocation3 + $0x2d8] sm:$0xff] }
 0x38c   :  { %7489 = vmatpush1.bf16.msra.mxu0 %v15001_v25  ;;  %8901 = vmatpush1.bf16.msra.mxu1 %v15003_v40  ;;  %v103_v25 = vld [vmem:[#allocation3 + $0x1f8] sm:$0xff] }
 0x38d   :  { %7490 = vmatprep.subr.bf16.mxu0 %v15010_v48  ;;  %8902 = vmatprep.subr.bf16.mxu1 %v15012_v29  ;;  %v18516_v22 = vcombine.high %v99_v60, %v103_v25  ;;  %v111_v40 = vld [vmem:[#allocation3 + $0x238] sm:$0xff]  ;;  %v15025_v48 = vcombine.low %v386_v4, %v390_v3  ;;  %v15026_v29 = vcombine.high %v386_v4, %v390_v3 }
 0x38e   :  { %v18522_v49 = vcombine.low %v99_v60, %v103_v25  ;;  %v18524_v47 = vcombine.high %v107_v18, %v111_v40  ;;  %v123_v60 = vld [vmem:[#allocation3 + $0x298] sm:$0xff] }
 0x38f   :  { %19918 = vst [vmem:[#allocation178_spill] sm:$0xff] %v18516_v22  ;;  %v127_v25 = vld [vmem:[#allocation3 + $0x2b8] sm:$0xff] }
 0x390   :  { %7491 = vmatpush1.bf16.msra.mxu0 %v15009_v56  ;;  %8903 = vmatpush1.bf16.msra.mxu1 %v15011_v26  ;;  %19919 = vst [vmem:[#allocation179_spill] sm:$0xff] %v18522_v49  ;;  %19920 = vst [vmem:[#allocation180_spill] sm:$0xff] %v18524_v47  ;;  %v115_v56 = vld [vmem:[#allocation3 + $0x258] sm:$0xff]  ;;  %v18530_v26 = vcombine.low %v107_v18, %v111_v40 }
 0x391   :  { %7492 = vmatprep.subr.bf16.mxu0 %v15018_v11  ;;  %8904 = vmatprep.subr.bf16.mxu1 %v15020_v37  ;;  %v18532_v11 = vcombine.high %v115_v56, %v119_v28  ;;  %v394_v37 = vld [vmem:[#allocation6 + $0x310] sm:$0xff] }
 0x392   :  { %5790 = vmatmul.mubr.bf16.gmra.mrb[20].mxu0 %v18506_v9  ;;  %7202 = vmatmul.mubr.bf16.gmra.mrb[20].mxu1 %v18506_v9  ;;  %19921 = vst [vmem:[#allocation181_spill] sm:$0xff] %v18530_v26 }
 0x393   :  { %5799 = vmatprep.mubr.bf16.mxu0 %v18508_v53  ;;  %7211 = vmatprep.mubr.bf16.mxu1 %v18508_v53  ;;  %19922 = vst [vmem:[#allocation182_spill] sm:$0xff] %v18532_v11  ;;  %v443_v53 = vld [vmem:[#allocation6 + $0x498] sm:$0xff] }
 0x394   :  { %7493 = vmatpush1.bf16.msra.mxu0 %v15017_v63  ;;  %8905 = vmatpush1.bf16.msra.mxu1 %v15019_v34  ;;  %v398_v63 = vld [vmem:[#allocation6 + $0x330] sm:$0xff]  ;;  %v395_v34 = vld [vmem:[#allocation6 + $0x318] sm:$0xff] }
 0x395   :  { %7494 = vmatprep.subr.bf16.mxu0 %v15026_v29  ;;  %8906 = vmatprep.subr.bf16.mxu1 %v15028_v8  ;;  %v15033_v4 = vcombine.low %v394_v37, %v398_v63  ;;  %v15034_v3 = vcombine.high %v394_v37, %v398_v63  ;;  %v15035_v18 = vcombine.low %v395_v34, %v399_v5  ;;  %v406_v37 = vld [vmem:[#allocation6 + $0x370] sm:$0xff]  ;;  %v403_v63 = vld [vmem:[#allocation6 + $0x358] sm:$0xff] }
 0x396   :  { %v15036_v40 = vcombine.high %v395_v34, %v399_v5  ;;  %v18540_v29 = vcombine.high %v123_v60, %v127_v25  ;;  %v18546_v8 = vcombine.low %v123_v60, %v127_v25  ;;  %v139_v34 = vld [vmem:[#allocation3 + $0x318] sm:$0xff] }
 0x398   :  { %7495 = vmatpush1.bf16.msra.mxu0 %v15025_v48  ;;  %8907 = vmatpush1.bf16.msra.mxu1 %v15027_v54  ;;  %v18538_v48 = vcombine.low %v115_v56, %v119_v28  ;;  %19924 = vst [vmem:[#allocation184_spill] sm:$0xff] %v18540_v29  ;;  %v135_v54 = vld [vmem:[#allocation3 + $0x2f8] sm:$0xff]  ;;  %19925 = vst [vmem:[#allocation185_spill] sm:$0xff] %v18546_v8  ;;  %v402_v28 = vld [vmem:[#allocation6 + $0x350] sm:$0xff] }
 0x399   :  { %7496 = vmatprep.subr.bf16.mxu0 %v15034_v3  ;;  %8908 = vmatprep.subr.bf16.mxu1 %v15036_v40  ;;  %v18548_v56 = vcombine.high %v131_v43, %v135_v54  ;;  %v15041_v3 = vcombine.low %v402_v28, %v406_v37  ;;  %v15042_v5 = vcombine.high %v402_v28, %v406_v37  ;;  %v147_v28 = vld [vmem:[#allocation3 + $0x358] sm:$0xff] }
 0x39a   :  { %5800 = vmatmul.mubr.bf16.gmra.mrb[24].mxu0 %v18514_v27  ;;  %7212 = vmatmul.mubr.bf16.gmra.mrb[24].mxu1 %v18514_v27  ;;  %19923 = vst [vmem:[#allocation183_spill] sm:$0xff] %v18538_v48  ;;  %v18554_v40 = vcombine.low %v131_v43, %v135_v54  ;;  %v151_v37 = vld [vmem:[#allocation3 + $0x378] sm:$0xff] }
 0x39b   :  { %5809 = vmatprep.mubr.bf16.mxu0 %v18516_v22  ;;  %7221 = vmatprep.mubr.bf16.mxu1 %v18516_v22  ;;  %19926 = vst [vmem:[#allocation186_spill] sm:$0xff] %v18548_v56  ;;  %v18564_v43 = vcombine.high %v147_v28, %v151_v37  ;;  %v155_v54 = vld [vmem:[#allocation3 + $0x398] sm:$0xff] }
 0x39c   :  { %7497 = vmatpush1.bf16.msra.mxu0 %v15033_v4  ;;  %8909 = vmatpush1.bf16.msra.mxu1 %v15035_v18  ;;  %v143_v4 = vld [vmem:[#allocation3 + $0x338] sm:$0xff]  ;;  %19927 = vst [vmem:[#allocation187_spill] sm:$0xff] %v18554_v40 }
 0x39d   :  { %v407_v18 = vld [vmem:[#allocation6 + $0x378] sm:$0xff]  ;;  %7498 = vmatprep.subr.bf16.mxu0 %v15042_v5  ;;  %19930 = vst [vmem:[#allocation190_spill] sm:$0xff] %v18564_v43  ;;  %v414_v5 = vld [vmem:[#allocation6 + $0x3b0] sm:$0xff] }
 0x39e   :  { %v15043_v60 = vcombine.low %v403_v63, %v407_v18  ;;  %v15044_v25 = vcombine.high %v403_v63, %v407_v18  ;;  %v159_v63 = vld [vmem:[#allocation3 + $0x3b8] sm:$0xff] }
 0x39f   :  { %v411_v18 = vld [vmem:[#allocation6 + $0x398] sm:$0xff] }
 0x3a0   :  { %8910 = vmatprep.subr.bf16.mxu1 %v15044_v25  ;;  %7499 = vmatpush1.bf16.msra.mxu0 %v15041_v3  ;;  %v410_v3 = vld [vmem:[#allocation6 + $0x390] sm:$0xff] }
 0x3a1   :  { %8911 = vmatpush1.bf16.msra.mxu1 %v15043_v60  ;;  %v15049_v60 = vcombine.low %v410_v3, %v414_v5  ;;  %v15050_v25 = vcombine.high %v410_v3, %v414_v5  ;;  %v163_v3 = vld [vmem:[#allocation3 + $0x3d8] sm:$0xff] }
 0x3a2   :  { %5810 = vmatmul.mubr.bf16.gmra.mrb[28].mxu0 %v18522_v49  ;;  %7222 = vmatmul.mubr.bf16.gmra.mrb[28].mxu1 %v18522_v49  ;;  %v167_v5 = vld [vmem:[#allocation3 + $0x3f8] sm:$0xff] }
 0x3a3   :  { %5819 = vmatprep.mubr.bf16.mxu0 %v18524_v47  ;;  %7231 = vmatprep.mubr.bf16.mxu1 %v18524_v47 }
 0x3a4   :  { %7500 = vmatprep.subr.bf16.mxu0 %v15050_v25  ;;  %v419_v25 = vld [vmem:[#allocation6 + $0x3d8] sm:$0xff] }
 0x3a5   :  { %7501 = vmatpush1.bf16.msra.mxu0 %v15049_v60  ;;  %v422_v60 = vld [vmem:[#allocation6 + $0x3f0] sm:$0xff] }
 0x3aa   :  { %5820 = vmatmul.mubr.bf16.gmra.mrb[32].mxu0 %v18530_v26  ;;  %7232 = vmatmul.mubr.bf16.gmra.mrb[32].mxu1 %v18530_v26 }
 0x3ab   :  { %5829 = vmatprep.mubr.bf16.mxu0 %v18532_v11  ;;  %7241 = vmatprep.mubr.bf16.mxu1 %v18532_v11 }
 0x3b2   :  { %5830 = vmatmul.mubr.bf16.gmra.mrb[36].mxu0 %v18538_v48  ;;  %7242 = vmatmul.mubr.bf16.gmra.mrb[36].mxu1 %v18538_v48 }
 0x3b3   :  { %5839 = vmatprep.mubr.bf16.mxu0 %v18540_v29  ;;  %7251 = vmatprep.mubr.bf16.mxu1 %v18540_v29  ;;  %v18556_v29 = vcombine.high %v139_v34, %v143_v4 }
 0x3b5   :  { %19928 = vst [vmem:[#allocation188_spill] sm:$0xff] %v18556_v29 }
 0x3ba   :  { %5840 = vmatmul.mubr.bf16.gmra.mrb[40].mxu0 %v18546_v8  ;;  %7252 = vmatmul.mubr.bf16.gmra.mrb[40].mxu1 %v18546_v8  ;;  %v18572_v8 = vcombine.high %v155_v54, %v159_v63 }
 0x3bb   :  { %5849 = vmatprep.mubr.bf16.mxu0 %v18548_v56  ;;  %7261 = vmatprep.mubr.bf16.mxu1 %v18548_v56  ;;  %v18562_v56 = vcombine.low %v139_v34, %v143_v4  ;;  %v18570_v34 = vcombine.low %v147_v28, %v151_v37  ;;  %v18578_v28 = vcombine.low %v155_v54, %v159_v63 }
 0x3bc   :  { %19932 = vst [vmem:[#allocation192_spill] sm:$0xff] %v18572_v8  ;;  %v18580_v37 = vcombine.high %v163_v3, %v167_v5  ;;  %v18586_v54 = vcombine.low %v163_v3, %v167_v5 }
 0x3bd   :  { %19929 = vst [vmem:[#allocation189_spill] sm:$0xff] %v18562_v56  ;;  %19931 = vst [vmem:[#allocation191_spill] sm:$0xff] %v18570_v34 }
 0x3be   :  { %19933 = vst [vmem:[#allocation193_spill] sm:$0xff] %v18578_v28  ;;  %19934 = vst [vmem:[#allocation194_spill] sm:$0xff] %v18580_v37 }
 0x3bf   :  { %19935 = vst [vmem:[#allocation195_spill] sm:$0xff] %v18586_v54 }
 0x3c2   :  { %5850 = vmatmul.mubr.bf16.gmra.mrb[44].mxu0 %v18554_v40  ;;  %7262 = vmatmul.mubr.bf16.gmra.mrb[44].mxu1 %v18554_v40 }
 0x3c3   :  { %5859 = vmatprep.mubr.bf16.mxu0 %v18556_v29  ;;  %7271 = vmatprep.mubr.bf16.mxu1 %v18556_v29  ;;  %v415_v29 = vld [vmem:[#allocation6 + $0x3b8] sm:$0xff] }
 0x3c4   :  { %v15051_v4 = vcombine.low %v411_v18, %v415_v29  ;;  %v15052_v40 = vcombine.high %v411_v18, %v415_v29  ;;  %v171_v29 = vld [vmem:[#allocation3 + $0x418] sm:$0xff]  ;;  %v418_v18 = vld [vmem:[#allocation6 + $0x3d0] sm:$0xff] }
 0x3c6   :  { %8912 = vmatprep.subr.bf16.mxu1 %v15052_v40  ;;  %v175_v40 = vld [vmem:[#allocation3 + $0x438] sm:$0xff] }
 0x3c7   :  { %8913 = vmatpush1.bf16.msra.mxu1 %v15051_v4  ;;  %v15057_v4 = vcombine.low %v418_v18, %v422_v60  ;;  %v18594_v3 = vcombine.low %v171_v29, %v175_v40 }
 0x3c9   :  { %19937 = vst [vmem:[#allocation197_spill] sm:$0xff] %v18594_v3 }
 0x3ca   :  { %5860 = vmatmul.mubr.bf16.gmra.mrb[48].mxu0 %v18562_v56  ;;  %7272 = vmatmul.mubr.bf16.gmra.mrb[48].mxu1 %v18562_v56  ;;  %v18588_v56 = vcombine.high %v171_v29, %v175_v40 }
 0x3cb   :  { %5869 = vmatprep.mubr.bf16.mxu0 %v18564_v43  ;;  %7281 = vmatprep.mubr.bf16.mxu1 %v18564_v43 }
 0x3cc   :  { %19936 = vst [vmem:[#allocation196_spill] sm:$0xff] %v18588_v56 }
 0x3d2   :  { %5870 = vmatmul.mubr.bf16.gmra.mrb[52].mxu0 %v18570_v34  ;;  %7282 = vmatmul.mubr.bf16.gmra.mrb[52].mxu1 %v18570_v34  ;;  %v423_v34 = vld [vmem:[#allocation6 + $0x3f8] sm:$0xff] }
 0x3d3   :  { %5879 = vmatprep.mubr.bf16.mxu0 %v18572_v8  ;;  %7291 = vmatprep.mubr.bf16.mxu1 %v18572_v8  ;;  %v15058_v8 = vcombine.high %v418_v18, %v422_v60  ;;  %v15059_v63 = vcombine.low %v419_v25, %v423_v34  ;;  %v15060_v43 = vcombine.high %v419_v25, %v423_v34  ;;  %v179_v18 = vld [vmem:[#allocation3 + $0x458] sm:$0xff]  ;;  %v18602_v34 = vld [vmem:[#allocation6 + $0x410] sm:$0xff] }
 0x3d4   :  { %v183_v60 = vld [vmem:[#allocation3 + $0x478] sm:$0xff]  ;;  %v18604_v25 = vld [vmem:[#allocation6 + $0x430] sm:$0xff] }
 0x3d5   :  { %7502 = vmatprep.subr.bf16.mxu0 %v15058_v8  ;;  %8914 = vmatprep.subr.bf16.mxu1 %v15060_v43  ;;  %v18596_v5 = vcombine.high %v179_v18, %v183_v60  ;;  %v187_v8 = vld [vmem:[#allocation3 + $0x498] sm:$0xff]  ;;  %v15066_v40 = vcombine.high %v18602_v34, %v18604_v25 }
 0x3d6   :  { %7503 = vmatpush1.bf16.msra.mxu0 %v15057_v4  ;;  %8915 = vmatpush1.bf16.msra.mxu1 %v15059_v63  ;;  %v191_v43 = vld [vmem:[#allocation3 + $0x4b8] sm:$0xff] }
 0x3d7   :  { %19938 = vst [vmem:[#allocation198_spill] sm:$0xff] %v18596_v5  ;;  %v18606_v4 = vld [vmem:[#allocation6 + $0x418] sm:$0xff]  ;;  %7825 = vmatprep.subr.bf16.mxu0 %v15066_v40  ;;  %v18626_v29 = vcombine.low %v187_v8, %v191_v43 }
 0x3d8   :  { %v18612_v63 = vld [vmem:[#allocation6 + $0x438] sm:$0xff] }
 0x3d9   :  { %19941 = vst [vmem:[#allocation201_spill] sm:$0xff] %v18626_v29  ;;  %v207_v40 = vld [vmem:[#allocation3 + $0x538] sm:$0xff] }
 0x3da   :  { %5880 = vmatmul.mubr.bf16.gmra.mrb[56].mxu0 %v18578_v28  ;;  %7292 = vmatmul.mubr.bf16.gmra.mrb[56].mxu1 %v18578_v28 }
 0x3db   :  { %5889 = vmatprep.mubr.bf16.mxu0 %v18580_v37  ;;  %7301 = vmatprep.mubr.bf16.mxu1 %v18580_v37 }
 0x3e2   :  { %5890 = vmatmul.mubr.bf16.gmra.mrb[60].mxu0 %v18586_v54  ;;  %7302 = vmatmul.mubr.bf16.gmra.mrb[60].mxu1 %v18586_v54  ;;  %v18620_v54 = vcombine.high %v187_v8, %v191_v43  ;;  %v211_v8 = vld [vmem:[#allocation3 + $0x558] sm:$0xff] }
 0x3e3   :  { %5899 = vmatprep.mubr.bf16.mxu0 %v18588_v56  ;;  %7311 = vmatprep.mubr.bf16.mxu1 %v18588_v56  ;;  %v215_v43 = vld [vmem:[#allocation3 + $0x578] sm:$0xff] }
 0x3e4   :  { %19940 = vst [vmem:[#allocation200_spill] sm:$0xff] %v18620_v54 }
 0x3ea   :  { %5900 = vmatmul.mubr.bf16.gmra.mrb[64].mxu0 %v18594_v3  ;;  %7312 = vmatmul.mubr.bf16.gmra.mrb[64].mxu1 %v18594_v3  ;;  %v18614_v3 = vcombine.low %v179_v18, %v183_v60  ;;  %v195_v18 = vld [vmem:[#allocation3 + $0x4d8] sm:$0xff] }
 0x3eb   :  { %5909 = vmatprep.mubr.bf16.mxu0 %v18596_v5  ;;  %7321 = vmatprep.mubr.bf16.mxu1 %v18596_v5  ;;  %v15068_v5 = vcombine.high %v18606_v4, %v18612_v63  ;;  %v199_v60 = vld [vmem:[#allocation3 + $0x4f8] sm:$0xff] }
 0x3ec   :  { %19939 = vst [vmem:[#allocation199_spill] sm:$0xff] %v18614_v3  ;;  %v18628_v56 = vcombine.high %v195_v18, %v199_v60 }
 0x3ed   :  { %9237 = vmatprep.subr.bf16.mxu1 %v15068_v5  ;;  %v203_v5 = vld [vmem:[#allocation3 + $0x518] sm:$0xff] }
 0x3ee   :  { %19942 = vst [vmem:[#allocation202_spill] sm:$0xff] %v18628_v56  ;;  %v18636_v37 = vcombine.high %v203_v5, %v207_v40 }
 0x3f0   :  { %19944 = vst [vmem:[#allocation204_spill] sm:$0xff] %v18636_v37 }
 0x3f2   :  { %5910 = vmatmul.mubr.bf16.gmra.mrb[68].mxu0 %v18614_v3  ;;  %7322 = vmatmul.mubr.bf16.gmra.mrb[68].mxu1 %v18614_v3  ;;  %v18634_v3 = vcombine.low %v195_v18, %v199_v60  ;;  %v219_v18 = vld [vmem:[#allocation3 + $0x598] sm:$0xff] }
 0x3f3   :  { %5919 = vmatprep.mubr.bf16.mxu0 %v18620_v54  ;;  %7331 = vmatprep.mubr.bf16.mxu1 %v18620_v54  ;;  %v18644_v54 = vcombine.high %v211_v8, %v215_v43  ;;  %v223_v60 = vld [vmem:[#allocation3 + $0x5b8] sm:$0xff] }
 0x3f4   :  { %19943 = vst [vmem:[#allocation203_spill] sm:$0xff] %v18634_v3 }
 0x3f5   :  { %19946 = vst [vmem:[#allocation206_spill] sm:$0xff] %v18644_v54 }
 0x3fa   :  { %5920 = vmatmul.mubr.bf16.gmra.mrb[72].mxu0 %v18626_v29  ;;  %7332 = vmatmul.mubr.bf16.gmra.mrb[72].mxu1 %v18626_v29  ;;  %v18642_v29 = vcombine.low %v203_v5, %v207_v40  ;;  %v227_v5 = vld [vmem:[#allocation3 + $0x5d8] sm:$0xff] }
 0x3fb   :  { %5929 = vmatprep.mubr.bf16.mxu0 %v18628_v56  ;;  %7341 = vmatprep.mubr.bf16.mxu1 %v18628_v56  ;;  %v18652_v56 = vcombine.high %v219_v18, %v223_v60  ;;  %v231_v40 = vld [vmem:[#allocation3 + $0x5f8] sm:$0xff] }
 0x3fc   :  { %19945 = vst [vmem:[#allocation205_spill] sm:$0xff] %v18642_v29 }
 0x3fd   :  { %19948 = vst [vmem:[#allocation208_spill] sm:$0xff] %v18652_v56 }
 0x402   :  { %5930 = vmatmul.mubr.bf16.gmra.mrb[76].mxu0 %v18634_v3  ;;  %7342 = vmatmul.mubr.bf16.gmra.mrb[76].mxu1 %v18634_v3  ;;  %v18650_v3 = vcombine.low %v211_v8, %v215_v43  ;;  %v235_v8 = vld [vmem:[#allocation3 + $0x618] sm:$0xff] }
 0x403   :  { %5939 = vmatprep.mubr.bf16.mxu0 %v18636_v37  ;;  %7351 = vmatprep.mubr.bf16.mxu1 %v18636_v37  ;;  %v18660_v37 = vcombine.high %v227_v5, %v231_v40  ;;  %v239_v43 = vld [vmem:[#allocation3 + $0x638] sm:$0xff] }
 0x404   :  { %19947 = vst [vmem:[#allocation207_spill] sm:$0xff] %v18650_v3 }
 0x405   :  { %19950 = vst [vmem:[#allocation210_spill] sm:$0xff] %v18660_v37 }
 0x40a   :  { %5940 = vmatmul.mubr.bf16.gmra.mrb[80].mxu0 %v18642_v29  ;;  %7352 = vmatmul.mubr.bf16.gmra.mrb[80].mxu1 %v18642_v29  ;;  %v18658_v29 = vcombine.low %v219_v18, %v223_v60  ;;  %v243_v18 = vld [vmem:[#allocation3 + $0x658] sm:$0xff] }
 0x40b   :  { %5949 = vmatprep.mubr.bf16.mxu0 %v18644_v54  ;;  %7361 = vmatprep.mubr.bf16.mxu1 %v18644_v54  ;;  %v18668_v54 = vcombine.high %v235_v8, %v239_v43  ;;  %v247_v60 = vld [vmem:[#allocation3 + $0x678] sm:$0xff] }
 0x40c   :  { %19949 = vst [vmem:[#allocation209_spill] sm:$0xff] %v18658_v29 }
 0x40d   :  { %19952 = vst [vmem:[#allocation212_spill] sm:$0xff] %v18668_v54 }
 0x412   :  { %5950 = vmatmul.mubr.bf16.gmra.mrb[84].mxu0 %v18650_v3  ;;  %7362 = vmatmul.mubr.bf16.gmra.mrb[84].mxu1 %v18650_v3  ;;  %v18666_v3 = vcombine.low %v227_v5, %v231_v40  ;;  %v251_v5 = vld [vmem:[#allocation3 + $0x698] sm:$0xff] }
 0x413   :  { %5959 = vmatprep.mubr.bf16.mxu0 %v18652_v56  ;;  %7371 = vmatprep.mubr.bf16.mxu1 %v18652_v56  ;;  %v18676_v56 = vcombine.high %v243_v18, %v247_v60  ;;  %v255_v40 = vld [vmem:[#allocation3 + $0x6b8] sm:$0xff] }
 0x414   :  { %19951 = vst [vmem:[#allocation211_spill] sm:$0xff] %v18666_v3 }
 0x415   :  { %19954 = vst [vmem:[#allocation214_spill] sm:$0xff] %v18676_v56 }
 0x41a   :  { %5960 = vmatmul.mubr.bf16.gmra.mrb[88].mxu0 %v18658_v29  ;;  %7372 = vmatmul.mubr.bf16.gmra.mrb[88].mxu1 %v18658_v29  ;;  %v18674_v29 = vcombine.low %v235_v8, %v239_v43  ;;  %v259_v8 = vld [vmem:[#allocation3 + $0x6d8] sm:$0xff] }
 0x41b   :  { %5969 = vmatprep.mubr.bf16.mxu0 %v18660_v37  ;;  %7381 = vmatprep.mubr.bf16.mxu1 %v18660_v37  ;;  %v18684_v37 = vcombine.high %v251_v5, %v255_v40  ;;  %v263_v43 = vld [vmem:[#allocation3 + $0x6f8] sm:$0xff] }
 0x41c   :  { %19953 = vst [vmem:[#allocation213_spill] sm:$0xff] %v18674_v29 }
 0x41d   :  { %19956 = vst [vmem:[#allocation216_spill] sm:$0xff] %v18684_v37 }
 0x422   :  { %5970 = vmatmul.mubr.bf16.gmra.mrb[92].mxu0 %v18666_v3  ;;  %7382 = vmatmul.mubr.bf16.gmra.mrb[92].mxu1 %v18666_v3  ;;  %v18682_v3 = vcombine.low %v243_v18, %v247_v60  ;;  %v267_v18 = vld [vmem:[#allocation3 + $0x718] sm:$0xff] }
 0x423   :  { %5979 = vmatprep.mubr.bf16.mxu0 %v18668_v54  ;;  %7391 = vmatprep.mubr.bf16.mxu1 %v18668_v54  ;;  %v18692_v54 = vcombine.high %v259_v8, %v263_v43  ;;  %v271_v60 = vld [vmem:[#allocation3 + $0x738] sm:$0xff] }
 0x424   :  { %19955 = vst [vmem:[#allocation215_spill] sm:$0xff] %v18682_v3  ;;  %v18700_v11 = vcombine.high %v267_v18, %v271_v60 }
 0x425   :  { %19958 = vst [vmem:[#allocation218_spill] sm:$0xff] %v18692_v54 }
 0x426   :  { %19960 = vst [vmem:[#allocation220_spill] sm:$0xff] %v18700_v11 }
 0x42a   :  { %5980 = vmatmul.mubr.bf16.gmra.mrb[96].mxu0 %v18674_v29  ;;  %7392 = vmatmul.mubr.bf16.gmra.mrb[96].mxu1 %v18674_v29  ;;  %v18690_v29 = vcombine.low %v251_v5, %v255_v40 }
 0x42b   :  { %5989 = vmatprep.mubr.bf16.mxu0 %v18676_v56  ;;  %7401 = vmatprep.mubr.bf16.mxu1 %v18676_v56 }
 0x42c   :  { %19957 = vst [vmem:[#allocation217_spill] sm:$0xff] %v18690_v29 }
 0x432   :  { %5990 = vmatmul.mubr.bf16.gmra.mrb[100].mxu0 %v18682_v3  ;;  %7402 = vmatmul.mubr.bf16.gmra.mrb[100].mxu1 %v18682_v3 }
 0x433   :  { %5999 = vmatprep.mubr.bf16.mxu0 %v18684_v37  ;;  %7411 = vmatprep.mubr.bf16.mxu1 %v18684_v37  ;;  %v18698_v37 = vcombine.low %v259_v8, %v263_v43 }
 0x435   :  { %19959 = vst [vmem:[#allocation219_spill] sm:$0xff] %v18698_v37 }
 0x43a   :  { %6000 = vmatmul.mubr.bf16.gmra.mrb[104].mxu0 %v18690_v29  ;;  %7412 = vmatmul.mubr.bf16.gmra.mrb[104].mxu1 %v18690_v29 }
 0x43b   :  { %6009 = vmatprep.mubr.bf16.mxu0 %v18692_v54  ;;  %7421 = vmatprep.mubr.bf16.mxu1 %v18692_v54 }
 0x43d   :  { %v5741_v3 = vpop.f32.mrb[0].mxu0  ;;  %v7153_v56 = vpop.f32.mrb[0].mxu1 }
 0x43e   :  { %v5743_v28 = vpop.f32.mrb[1].mxu0  ;;  %v7155_v5 = vpop.f32.mrb[1].mxu1 }
 0x43f   :  { %v15701_v48 = vpack.c.bf16 %v5743_v28, %v5741_v3  ;;  %v5745_v40 = vpop.f32.mrb[2].mxu0  ;;  %v15702_v26 = vpack.c.bf16 %v7155_v5, %v7153_v56  ;;  %v7157_v47 = vpop.f32.mrb[2].mxu1  ;;  %v275_v28 = vld [vmem:[#allocation3 + $0x758] sm:$0xff] }
 0x440   :  { %v5747_v49 = vpop.f32.mrb[3].mxu0  ;;  %v7159_v22 = vpop.f32.mrb[3].mxu1  ;;  %v279_v3 = vld [vmem:[#allocation3 + $0x778] sm:$0xff] }
 0x441   :  { %14403 = vst [vmem:[#allocation8] sm:$0xff] %v15701_v48  ;;  %v15705_v29 = vpack.c.bf16 %v5747_v49, %v5745_v40  ;;  %14404 = vst [vmem:[#allocation8 + $0x8] sm:$0xff] %v15702_v26  ;;  %v15706_v54 = vpack.c.bf16 %v7159_v22, %v7157_v47  ;;  %v18706_v48 = vcombine.low %v267_v18, %v271_v60  ;;  %v283_v18 = vld [vmem:[#allocation3 + $0x798] sm:$0xff] }
 0x442   :  { %6010 = vmatmul.mubr.bf16.gmra.mrb[108].mxu0 %v18698_v37  ;;  %7422 = vmatmul.mubr.bf16.gmra.mrb[108].mxu1 %v18698_v37  ;;  %v18708_v47 = vcombine.high %v275_v28, %v279_v3  ;;  %v287_v60 = vld [vmem:[#allocation3 + $0x7b8] sm:$0xff] }
 0x443   :  { %14407 = vst [vmem:[#allocation8 + $0x20] sm:$0xff] %v15705_v29  ;;  %6019 = vmatprep.mubr.bf16.mxu0 %v18700_v11  ;;  %14408 = vst [vmem:[#allocation8 + $0x28] sm:$0xff] %v15706_v54  ;;  %7431 = vmatprep.mubr.bf16.mxu1 %v18700_v11 }
 0x444   :  { %19961 = vst [vmem:[#allocation221_spill] sm:$0xff] %v18706_v48  ;;  %19962 = vst [vmem:[#allocation222_spill] sm:$0xff] %v18708_v47 }
 0x445   :  { %v5751_v56 = vpop.f32.mrb[4].mxu0  ;;  %v7163_v8 = vpop.f32.mrb[4].mxu1 }
 0x446   :  { %v5753_v43 = vpop.f32.mrb[5].mxu0  ;;  %v7165_v26 = vpop.f32.mrb[5].mxu1 }
 0x447   :  { %v15709_v49 = vpack.c.bf16 %v5753_v43, %v5751_v56  ;;  %v5755_v22 = vpop.f32.mrb[6].mxu0  ;;  %v15710_v29 = vpack.c.bf16 %v7165_v26, %v7163_v8  ;;  %v7167_v5 = vpop.f32.mrb[6].mxu1 }
 0x448   :  { %v5757_v40 = vpop.f32.mrb[7].mxu0  ;;  %v7169_v54 = vpop.f32.mrb[7].mxu1 }
 0x449   :  { %14411 = vst [vmem:[#allocation8 + $0x40] sm:$0xff] %v15709_v49  ;;  %v15713_v37 = vpack.c.bf16 %v5757_v40, %v5755_v22  ;;  %14412 = vst [vmem:[#allocation8 + $0x48] sm:$0xff] %v15710_v29  ;;  %v15714_v11 = vpack.c.bf16 %v7169_v54, %v7167_v5  ;;  %v18714_v49 = vcombine.low %v275_v28, %v279_v3  ;;  %v291_v28 = vld [vmem:[#allocation3 + $0x7d8] sm:$0xff] }
 0x44a   :  { %6020 = vmatmul.mubr.bf16.gmra.mrb[112].mxu0 %v18706_v48  ;;  %7432 = vmatmul.mubr.bf16.gmra.mrb[112].mxu1 %v18706_v48  ;;  %v18716_v5 = vcombine.high %v283_v18, %v287_v60  ;;  %v295_v3 = vld [vmem:[#allocation3 + $0x7f8] sm:$0xff] }
 0x44b   :  { %14415 = vst [vmem:[#allocation8 + $0x60] sm:$0xff] %v15713_v37  ;;  %6029 = vmatprep.mubr.bf16.mxu0 %v18708_v47  ;;  %14416 = vst [vmem:[#allocation8 + $0x68] sm:$0xff] %v15714_v11  ;;  %7441 = vmatprep.mubr.bf16.mxu1 %v18708_v47 }
 0x44c   :  { %19963 = vst [vmem:[#allocation223_spill] sm:$0xff] %v18714_v49  ;;  %19964 = vst [vmem:[#allocation224_spill] sm:$0xff] %v18716_v5 }
 0x44d   :  { %v5761_v56 = vpop.f32.mrb[8].mxu0  ;;  %v7173_v8 = vpop.f32.mrb[8].mxu1 }
 0x44e   :  { %v5763_v43 = vpop.f32.mrb[9].mxu0  ;;  %v7175_v22 = vpop.f32.mrb[9].mxu1 }
 0x44f   :  { %v15717_v26 = vpack.c.bf16 %v5763_v43, %v5761_v56  ;;  %v5765_v29 = vpop.f32.mrb[10].mxu0  ;;  %v15718_v37 = vpack.c.bf16 %v7175_v22, %v7173_v8  ;;  %v7177_v40 = vpop.f32.mrb[10].mxu1 }
 0x450   :  { %v5767_v54 = vpop.f32.mrb[11].mxu0  ;;  %v7179_v11 = vpop.f32.mrb[11].mxu1 }
 0x451   :  { %14419 = vst [vmem:[#allocation8 + $0x80] sm:$0xff] %v15717_v26  ;;  %v15721_v48 = vpack.c.bf16 %v5767_v54, %v5765_v29  ;;  %14420 = vst [vmem:[#allocation8 + $0x88] sm:$0xff] %v15718_v37  ;;  %v15722_v47 = vpack.c.bf16 %v7179_v11, %v7177_v40  ;;  %v18722_v26 = vcombine.low %v283_v18, %v287_v60 }
 0x452   :  { %6030 = vmatmul.mubr.bf16.gmra.mrb[116].mxu0 %v18714_v49  ;;  %7442 = vmatmul.mubr.bf16.gmra.mrb[116].mxu1 %v18714_v49  ;;  %v18724_v40 = vcombine.high %v291_v28, %v295_v3 }
 0x453   :  { %14423 = vst [vmem:[#allocation8 + $0xa0] sm:$0xff] %v15721_v48  ;;  %6039 = vmatprep.mubr.bf16.mxu0 %v18716_v5  ;;  %14424 = vst [vmem:[#allocation8 + $0xa8] sm:$0xff] %v15722_v47  ;;  %7451 = vmatprep.mubr.bf16.mxu1 %v18716_v5 }
 0x454   :  { %19965 = vst [vmem:[#allocation225_spill] sm:$0xff] %v18722_v26  ;;  %19966 = vst [vmem:[#allocation226_spill] sm:$0xff] %v18724_v40 }
 0x455   :  { %v5771_v56 = vpop.f32.mrb[12].mxu0  ;;  %v7183_v8 = vpop.f32.mrb[12].mxu1 }
 0x456   :  { %v5773_v43 = vpop.f32.mrb[13].mxu0  ;;  %v7185_v29 = vpop.f32.mrb[13].mxu1 }
 0x457   :  { %v15725_v22 = vpack.c.bf16 %v5773_v43, %v5771_v56  ;;  %v5775_v37 = vpop.f32.mrb[14].mxu0  ;;  %v15726_v48 = vpack.c.bf16 %v7185_v29, %v7183_v8  ;;  %v7187_v54 = vpop.f32.mrb[14].mxu1  ;;  %v18730_v8 = vcombine.low %v291_v28, %v295_v3 }
 0x458   :  { %v5777_v11 = vpop.f32.mrb[15].mxu0  ;;  %v7189_v47 = vpop.f32.mrb[15].mxu1 }
 0x459   :  { %14427 = vst [vmem:[#allocation8 + $0xc0] sm:$0xff] %v15725_v22  ;;  %v15729_v49 = vpack.c.bf16 %v5777_v11, %v5775_v37  ;;  %14428 = vst [vmem:[#allocation8 + $0xc8] sm:$0xff] %v15726_v48  ;;  %v15730_v5 = vpack.c.bf16 %v7189_v47, %v7187_v54 }
 0x45a   :  { %6040 = vmatmul.mubr.bf16.gmra.mrb[120].mxu0 %v18722_v26  ;;  %7452 = vmatmul.mubr.bf16.gmra.mrb[120].mxu1 %v18722_v26  ;;  %19967 = vst [vmem:[#allocation227_spill] sm:$0xff] %v18730_v8  ;;  %v446_v26 = vld [vmem:[#allocation6 + $0x4b0] sm:$0xff] }
 0x45b   :  { %14431 = vst [vmem:[#allocation8 + $0xe0] sm:$0xff] %v15729_v49  ;;  %6049 = vmatprep.mubr.bf16.mxu0 %v18724_v40  ;;  %14432 = vst [vmem:[#allocation8 + $0xe8] sm:$0xff] %v15730_v5  ;;  %7461 = vmatprep.mubr.bf16.mxu1 %v18724_v40 }
 0x45d   :  { %v5781_v18 = vpop.f32.mrb[16].mxu0  ;;  %v7193_v60 = vpop.f32.mrb[16].mxu1 }
 0x45e   :  { %v5783_v56 = vpop.f32.mrb[17].mxu0  ;;  %v7195_v22 = vpop.f32.mrb[17].mxu1 }
 0x45f   :  { %v15733_v43 = vpack.c.bf16 %v5783_v56, %v5781_v18  ;;  %v5785_v29 = vpop.f32.mrb[18].mxu0  ;;  %v15734_v37 = vpack.c.bf16 %v7195_v22, %v7193_v60  ;;  %v7197_v48 = vpop.f32.mrb[18].mxu1  ;;  %v434_v18 = vld [vmem:[#allocation6 + $0x450] sm:$0xff] }
 0x460   :  { %v5787_v54 = vpop.f32.mrb[19].mxu0  ;;  %v7199_v11 = vpop.f32.mrb[19].mxu1  ;;  %v438_v60 = vld [vmem:[#allocation6 + $0x470] sm:$0xff] }
 0x461   :  { %14435 = vst [vmem:[#allocation8 + $0x100] sm:$0xff] %v15733_v43  ;;  %v15737_v49 = vpack.c.bf16 %v5787_v54, %v5785_v29  ;;  %14436 = vst [vmem:[#allocation8 + $0x108] sm:$0xff] %v15734_v37  ;;  %v15738_v47 = vpack.c.bf16 %v7199_v11, %v7197_v48  ;;  %v435_v29 = vld [vmem:[#allocation6 + $0x458] sm:$0xff]  ;;  %v15074_v40 = vcombine.high %v434_v18, %v438_v60 }
 0x462   :  { %6050 = vmatmul.mubr.bf16.gmra.mrb[124].mxu0 %v18730_v8  ;;  %7462 = vmatmul.mubr.bf16.gmra.mrb[124].mxu1 %v18730_v8  ;;  %v439_v37 = vld [vmem:[#allocation6 + $0x478] sm:$0xff] }
 0x463   :  { %14439 = vst [vmem:[#allocation8 + $0x120] sm:$0xff] %v15737_v49  ;;  %7504 = vmatprep.mubr.bf16.mxu0 %v17626_v58  ;;  %14440 = vst [vmem:[#allocation8 + $0x128] sm:$0xff] %v15738_v47  ;;  %8916 = vmatprep.mubr.bf16.mxu1 %v17626_v58  ;;  %v442_v47 = vld [vmem:[#allocation6 + $0x490] sm:$0xff]  ;;  %v15076_v27 = vcombine.high %v435_v29, %v439_v37 }
 0x465   :  { %v5791_v5 = vpop.f32.mrb[20].mxu0  ;;  %v7203_v28 = vpop.f32.mrb[20].mxu1 }
 0x466   :  { %v5793_v3 = vpop.f32.mrb[21].mxu0  ;;  %v7205_v43 = vpop.f32.mrb[21].mxu1 }
 0x467   :  { %v15741_v56 = vpack.c.bf16 %v5793_v3, %v5791_v5  ;;  %v5795_v22 = vpop.f32.mrb[22].mxu0  ;;  %v15742_v48 = vpack.c.bf16 %v7205_v43, %v7203_v28  ;;  %v7207_v54 = vpop.f32.mrb[22].mxu1  ;;  %v447_v5 = vld [vmem:[#allocation6 + $0x4b8] sm:$0xff]  ;;  %v19968_v28 = vcombine.low %v18602_v34, %v18604_v25  ;;  %v15073_v3 = vcombine.low %v434_v18, %v438_v60  ;;  %v450_v34 = vld [vmem:[#allocation6 + $0x4d0] sm:$0xff] }
 0x468   :  { %v5797_v49 = vpop.f32.mrb[23].mxu0  ;;  %v7209_v8 = vpop.f32.mrb[23].mxu1  ;;  %v15082_v43 = vcombine.high %v442_v47, %v446_v26  ;;  %v454_v25 = vld [vmem:[#allocation6 + $0x4f0] sm:$0xff] }
 0x469   :  { %14443 = vst [vmem:[#allocation8 + $0x140] sm:$0xff] %v15741_v56  ;;  %v15745_v11 = vpack.c.bf16 %v5797_v49, %v5795_v22  ;;  %14444 = vst [vmem:[#allocation8 + $0x148] sm:$0xff] %v15742_v48  ;;  %v15746_v58 = vpack.c.bf16 %v7209_v8, %v7207_v54  ;;  %v19969_v56 = vcombine.low %v18606_v4, %v18612_v63  ;;  %v451_v4 = vld [vmem:[#allocation6 + $0x4d8] sm:$0xff] }
 0x46a   :  { %7505 = vmatmul.mubr.bf16.vlgmr.msra.gmra.mrb[128].mxu0 %v17632_v14  ;;  %8917 = vmatmul.mubr.bf16.vlgmr.msra.gmra.mrb[128].mxu1 %v17632_v14  ;;  %v15075_v8 = vcombine.low %v435_v29, %v439_v37  ;;  %v15084_v48 = vcombine.high %v443_v53, %v447_v5  ;;  %v455_v63 = vld [vmem:[#allocation6 + $0x4f8] sm:$0xff]  ;;  %v15081_v37 = vcombine.low %v442_v47, %v446_v26 }
 0x46b   :  { %14447 = vst [vmem:[#allocation8 + $0x160] sm:$0xff] %v15745_v11  ;;  %7826 = vmatpush1.bf16.msra.mxu0 %v19968_v28  ;;  %14448 = vst [vmem:[#allocation8 + $0x168] sm:$0xff] %v15746_v58  ;;  %9238 = vmatpush1.bf16.msra.mxu1 %v19969_v56  ;;  %v15083_v28 = vcombine.low %v443_v53, %v447_v5  ;;  %v459_v26 = vld [vmem:[#allocation6 + $0x518] sm:$0xff]  ;;  %v15089_v53 = vcombine.low %v450_v34, %v454_v25 }
 0x46c   :  { %7514 = vmatprep.mubr.bf16.mxu0 %v17634_v21  ;;  %8926 = vmatprep.mubr.bf16.mxu1 %v17634_v21  ;;  %v463_v47 = vld [vmem:[#allocation6 + $0x538] sm:$0xff] }
 0x46d   :  { %v5801_v22 = vpop.f32.mrb[24].mxu0  ;;  %7827 = vmatprep.subr.bf16.mxu0 %v15074_v40  ;;  %v7213_v14 = vpop.f32.mrb[24].mxu1  ;;  %9239 = vmatprep.subr.bf16.mxu1 %v15076_v27  ;;  %v15090_v27 = vcombine.high %v450_v34, %v454_v25 }
 0x46e   :  { %v5803_v54 = vpop.f32.mrb[25].mxu0  ;;  %v7215_v60 = vpop.f32.mrb[25].mxu1 }
 0x46f   :  { %v15749_v18 = vpack.c.bf16 %v5803_v54, %v5801_v22  ;;  %v5805_v49 = vpop.f32.mrb[26].mxu0  ;;  %7828 = vmatpush1.bf16.msra.mxu0 %v15073_v3  ;;  %v15750_v11 = vpack.c.bf16 %v7215_v60, %v7213_v14  ;;  %v7217_v58 = vpop.f32.mrb[26].mxu1  ;;  %9240 = vmatpush1.bf16.msra.mxu1 %v15075_v8  ;;  %v15092_v22 = vcombine.high %v451_v4, %v455_v63  ;;  %v458_v3 = vld [vmem:[#allocation6 + $0x510] sm:$0xff] }
 0x470   :  { %v5807_v29 = vpop.f32.mrb[27].mxu0  ;;  %7829 = vmatprep.subr.bf16.mxu0 %v15082_v43  ;;  %v7219_v40 = vpop.f32.mrb[27].mxu1  ;;  %9241 = vmatprep.subr.bf16.mxu1 %v15084_v48  ;;  %v462_v54 = vld [vmem:[#allocation6 + $0x530] sm:$0xff]  ;;  %v15091_v8 = vcombine.low %v451_v4, %v455_v63  ;;  %v15099_v63 = vcombine.low %v459_v26, %v463_v47 }
 0x471   :  { %14451 = vst [vmem:[#allocation8 + $0x180] sm:$0xff] %v15749_v18  ;;  %v15753_v21 = vpack.c.bf16 %v5807_v29, %v5805_v49  ;;  %14452 = vst [vmem:[#allocation8 + $0x188] sm:$0xff] %v15750_v11  ;;  %v15754_v56 = vpack.c.bf16 %v7219_v40, %v7217_v58  ;;  %v15098_v43 = vcombine.high %v458_v3, %v462_v54  ;;  %v466_v60 = vld [vmem:[#allocation6 + $0x550] sm:$0xff]  ;;  %v467_v29 = vld [vmem:[#allocation6 + $0x558] sm:$0xff] }
 0x472   :  { %7515 = vmatmul.mubr.bf16.gmra.mrb[132].mxu0 %v17640_v32  ;;  %8927 = vmatmul.mubr.bf16.gmra.mrb[132].mxu1 %v17640_v32  ;;  %v15100_v18 = vcombine.high %v459_v26, %v463_v47  ;;  %v470_v32 = vld [vmem:[#allocation6 + $0x570] sm:$0xff]  ;;  %v15097_v34 = vcombine.low %v458_v3, %v462_v54  ;;  %v475_v3 = vld [vmem:[#allocation6 + $0x598] sm:$0xff] }
 0x473   :  { %14455 = vst [vmem:[#allocation8 + $0x1a0] sm:$0xff] %v15753_v21  ;;  %7524 = vmatprep.mubr.bf16.mxu0 %v17642_v35  ;;  %14456 = vst [vmem:[#allocation8 + $0x1a8] sm:$0xff] %v15754_v56  ;;  %8936 = vmatprep.mubr.bf16.mxu1 %v17642_v35  ;;  %v471_v21 = vld [vmem:[#allocation6 + $0x578] sm:$0xff]  ;;  %v15105_v26 = vcombine.low %v466_v60, %v470_v32 }
 0x474   :  { %7830 = vmatpush1.bf16.msra.mxu0 %v15081_v37  ;;  %9242 = vmatpush1.bf16.msra.mxu1 %v15083_v28  ;;  %v15106_v28 = vcombine.high %v466_v60, %v470_v32  ;;  %v15108_v56 = vcombine.high %v467_v29, %v471_v21  ;;  %v479_v54 = vld [vmem:[#allocation6 + $0x5b8] sm:$0xff] }
 0x475   :  { %v5811_v5 = vpop.f32.mrb[28].mxu0  ;;  %7831 = vmatprep.subr.bf16.mxu0 %v15090_v27  ;;  %v7223_v48 = vpop.f32.mrb[28].mxu1  ;;  %9243 = vmatprep.subr.bf16.mxu1 %v15092_v22  ;;  %v474_v22 = vld [vmem:[#allocation6 + $0x590] sm:$0xff] }
 0x476   :  { %v5813_v14 = vpop.f32.mrb[29].mxu0  ;;  %v7225_v11 = vpop.f32.mrb[29].mxu1 }
 0x477   :  { %v15757_v49 = vpack.c.bf16 %v5813_v14, %v5811_v5  ;;  %v5815_v58 = vpop.f32.mrb[30].mxu0  ;;  %v15758_v40 = vpack.c.bf16 %v7225_v11, %v7223_v48  ;;  %v7227_v35 = vpop.f32.mrb[30].mxu1  ;;  %v478_v5 = vld [vmem:[#allocation6 + $0x5b0] sm:$0xff]  ;;  %v15116_v14 = vcombine.high %v475_v3, %v479_v54 }
 0x478   :  { %v5817_v37 = vpop.f32.mrb[31].mxu0  ;;  %7832 = vmatpush1.bf16.msra.mxu0 %v15089_v53  ;;  %v7229_v4 = vpop.f32.mrb[31].mxu1  ;;  %9244 = vmatpush1.bf16.msra.mxu1 %v15091_v8  ;;  %v15107_v53 = vcombine.low %v467_v29, %v471_v21  ;;  %v15114_v8 = vcombine.high %v474_v22, %v478_v5  ;;  %v15113_v60 = vcombine.low %v474_v22, %v478_v5  ;;  %v495_v22 = vld [vmem:[#allocation6 + $0x638] sm:$0xff] }
 0x479   :  { %14459 = vst [vmem:[#allocation8 + $0x1c0] sm:$0xff] %v15757_v49  ;;  %v15761_v25 = vpack.c.bf16 %v5817_v37, %v5815_v58  ;;  %7833 = vmatprep.subr.bf16.mxu0 %v15098_v43  ;;  %14460 = vst [vmem:[#allocation8 + $0x1c8] sm:$0xff] %v15758_v40  ;;  %v15762_v27 = vpack.c.bf16 %v7229_v4, %v7227_v35  ;;  %9245 = vmatprep.subr.bf16.mxu1 %v15100_v18  ;;  %v482_v18 = vld [vmem:[#allocation6 + $0x5d0] sm:$0xff]  ;;  %v483_v40 = vld [vmem:[#allocation6 + $0x5d8] sm:$0xff] }
 0x47a   :  { %7525 = vmatmul.mubr.bf16.gmra.mrb[136].mxu0 %v17648_v51  ;;  %8937 = vmatmul.mubr.bf16.gmra.mrb[136].mxu1 %v17648_v51  ;;  %v486_v51 = vld [vmem:[#allocation6 + $0x5f0] sm:$0xff]  ;;  %v487_v35 = vld [vmem:[#allocation6 + $0x5f8] sm:$0xff]  ;;  %v15115_v21 = vcombine.low %v475_v3, %v479_v54 }
 0x47b   :  { %14463 = vst [vmem:[#allocation8 + $0x1e0] sm:$0xff] %v15761_v25  ;;  %7534 = vmatprep.mubr.bf16.mxu0 %v17650_v57  ;;  %14464 = vst [vmem:[#allocation8 + $0x1e8] sm:$0xff] %v15762_v27  ;;  %8946 = vmatprep.mubr.bf16.mxu1 %v17650_v57  ;;  %v15122_v25 = vcombine.high %v482_v18, %v486_v51  ;;  %v494_v27 = vld [vmem:[#allocation6 + $0x630] sm:$0xff]  ;;  %v15121_v5 = vcombine.low %v482_v18, %v486_v51 }
 0x47c   :  { %7834 = vmatpush1.bf16.msra.mxu0 %v15097_v34  ;;  %9246 = vmatpush1.bf16.msra.mxu1 %v15099_v63  ;;  %v15124_v63 = vcombine.high %v483_v40, %v487_v35  ;;  %v15123_v54 = vcombine.low %v483_v40, %v487_v35 }
 0x47d   :  { %v5821_v47 = vpop.f32.mrb[32].mxu0  ;;  %7835 = vmatprep.subr.bf16.mxu0 %v15106_v28  ;;  %v7233_v43 = vpop.f32.mrb[32].mxu1  ;;  %9247 = vmatprep.subr.bf16.mxu1 %v15108_v56  ;;  %v490_v28 = vld [vmem:[#allocation6 + $0x610] sm:$0xff]  ;;  %v491_v56 = vld [vmem:[#allocation6 + $0x618] sm:$0xff] }
 0x47e   :  { %v5823_v48 = vpop.f32.mrb[33].mxu0  ;;  %v7235_v11 = vpop.f32.mrb[33].mxu1  ;;  %v15129_v18 = vcombine.low %v490_v28, %v494_v27  ;;  %v15131_v35 = vcombine.low %v491_v56, %v495_v22 }
 0x47f   :  { %v15765_v49 = vpack.c.bf16 %v5823_v48, %v5821_v47  ;;  %v5825_v58 = vpop.f32.mrb[34].mxu0  ;;  %v15766_v37 = vpack.c.bf16 %v7235_v11, %v7233_v43  ;;  %v7237_v57 = vpop.f32.mrb[34].mxu1  ;;  %v498_v43 = vld [vmem:[#allocation6 + $0x650] sm:$0xff]  ;;  %v499_v11 = vld [vmem:[#allocation6 + $0x658] sm:$0xff] }
 0x480   :  { %v5827_v34 = vpop.f32.mrb[35].mxu0  ;;  %7836 = vmatpush1.bf16.msra.mxu0 %v15105_v26  ;;  %v7239_v29 = vpop.f32.mrb[35].mxu1  ;;  %9248 = vmatpush1.bf16.msra.mxu1 %v15107_v53  ;;  %v15130_v26 = vcombine.high %v490_v28, %v494_v27 }
 0x481   :  { %14467 = vst [vmem:[#allocation8 + $0x200] sm:$0xff] %v15765_v49  ;;  %v15769_v32 = vpack.c.bf16 %v5827_v34, %v5825_v58  ;;  %7837 = vmatprep.subr.bf16.mxu0 %v15114_v8  ;;  %14468 = vst [vmem:[#allocation8 + $0x208] sm:$0xff] %v15766_v37  ;;  %v15770_v4 = vpack.c.bf16 %v7239_v29, %v7237_v57  ;;  %9249 = vmatprep.subr.bf16.mxu1 %v15116_v14  ;;  %v503_v58 = vld [vmem:[#allocation6 + $0x678] sm:$0xff] }
 0x482   :  { %7535 = vmatmul.mubr.bf16.gmra.mrb[140].mxu0 %v17656_v10  ;;  %8947 = vmatmul.mubr.bf16.gmra.mrb[140].mxu1 %v17656_v10  ;;  %v15132_v8 = vcombine.high %v491_v56, %v495_v22  ;;  %v502_v10 = vld [vmem:[#allocation6 + $0x670] sm:$0xff]  ;;  %v15139_v28 = vcombine.low %v499_v11, %v503_v58  ;;  %v511_v56 = vld [vmem:[#allocation6 + $0x6b8] sm:$0xff] }
 0x483   :  { %14471 = vst [vmem:[#allocation8 + $0x220] sm:$0xff] %v15769_v32  ;;  %7544 = vmatprep.mubr.bf16.mxu0 %v17658_v15  ;;  %14472 = vst [vmem:[#allocation8 + $0x228] sm:$0xff] %v15770_v4  ;;  %8956 = vmatprep.mubr.bf16.mxu1 %v17658_v15  ;;  %v15138_v34 = vcombine.high %v498_v43, %v502_v10  ;;  %v15140_v32 = vcombine.high %v499_v11, %v503_v58  ;;  %v507_v4 = vld [vmem:[#allocation6 + $0x698] sm:$0xff] }
 0x484   :  { %7838 = vmatpush1.bf16.msra.mxu0 %v15113_v60  ;;  %9250 = vmatpush1.bf16.msra.mxu1 %v15115_v21  ;;  %v15137_v29 = vcombine.low %v498_v43, %v502_v10  ;;  %v506_v21 = vld [vmem:[#allocation6 + $0x690] sm:$0xff] }
 0x485   :  { %v5831_v3 = vpop.f32.mrb[36].mxu0  ;;  %7839 = vmatprep.subr.bf16.mxu0 %v15122_v25  ;;  %v7243_v47 = vpop.f32.mrb[36].mxu1  ;;  %9251 = vmatprep.subr.bf16.mxu1 %v15124_v63  ;;  %v510_v25 = vld [vmem:[#allocation6 + $0x6b0] sm:$0xff] }
 0x486   :  { %v5833_v53 = vpop.f32.mrb[37].mxu0  ;;  %v7245_v14 = vpop.f32.mrb[37].mxu1  ;;  %v15146_v27 = vcombine.high %v506_v21, %v510_v25 }
 0x487   :  { %v15773_v48 = vpack.c.bf16 %v5833_v53, %v5831_v3  ;;  %v5835_v49 = vpop.f32.mrb[38].mxu0  ;;  %v15774_v37 = vpack.c.bf16 %v7245_v14, %v7243_v47  ;;  %v7247_v15 = vpop.f32.mrb[38].mxu1 }
 0x488   :  { %v5837_v57 = vpop.f32.mrb[39].mxu0  ;;  %7840 = vmatpush1.bf16.msra.mxu0 %v15121_v5  ;;  %v7249_v40 = vpop.f32.mrb[39].mxu1  ;;  %9252 = vmatpush1.bf16.msra.mxu1 %v15123_v54 }
 0x489   :  { %14475 = vst [vmem:[#allocation8 + $0x240] sm:$0xff] %v15773_v48  ;;  %v15777_v51 = vpack.c.bf16 %v5837_v57, %v5835_v49  ;;  %7841 = vmatprep.subr.bf16.mxu0 %v15130_v26  ;;  %14476 = vst [vmem:[#allocation8 + $0x248] sm:$0xff] %v15774_v37  ;;  %v15778_v60 = vpack.c.bf16 %v7249_v40, %v7247_v15  ;;  %9253 = vmatprep.subr.bf16.mxu1 %v15132_v8 }
 0x48a   :  { %7545 = vmatmul.mubr.bf16.gmra.mrb[144].mxu0 %v17664_v30  ;;  %8957 = vmatmul.mubr.bf16.gmra.mrb[144].mxu1 %v17664_v30  ;;  %v15148_v30 = vcombine.high %v507_v4, %v511_v56  ;;  %v15145_v8 = vcombine.low %v506_v21, %v510_v25  ;;  %v15147_v48 = vcombine.low %v507_v4, %v511_v56  ;;  %v519_v4 = vld [vmem:[#allocation6 + $0x6f8] sm:$0xff] }
 0x48b   :  { %14479 = vst [vmem:[#allocation8 + $0x260] sm:$0xff] %v15777_v51  ;;  %7554 = vmatprep.mubr.bf16.mxu0 %v17666_v36  ;;  %14480 = vst [vmem:[#allocation8 + $0x268] sm:$0xff] %v15778_v60  ;;  %8966 = vmatprep.mubr.bf16.mxu1 %v17666_v36  ;;  %v518_v60 = vld [vmem:[#allocation6 + $0x6f0] sm:$0xff] }
 0x48c   :  { %7842 = vmatpush1.bf16.msra.mxu0 %v15129_v18  ;;  %9254 = vmatpush1.bf16.msra.mxu1 %v15131_v35 }
 0x48d   :  { %v5841_v63 = vpop.f32.mrb[40].mxu0  ;;  %7843 = vmatprep.subr.bf16.mxu0 %v15138_v34  ;;  %v7253_v22 = vpop.f32.mrb[40].mxu1  ;;  %9255 = vmatprep.subr.bf16.mxu1 %v15140_v32  ;;  %v515_v32 = vld [vmem:[#allocation6 + $0x6d8] sm:$0xff] }
 0x48e   :  { %v5843_v5 = vpop.f32.mrb[41].mxu0  ;;  %v7255_v54 = vpop.f32.mrb[41].mxu1  ;;  %v15156_v56 = vcombine.high %v515_v32, %v519_v4 }
 0x48f   :  { %v15781_v3 = vpack.c.bf16 %v5843_v5, %v5841_v63  ;;  %v5845_v26 = vpop.f32.mrb[42].mxu0  ;;  %v15782_v47 = vpack.c.bf16 %v7255_v54, %v7253_v22  ;;  %v7257_v36 = vpop.f32.mrb[42].mxu1 }
 0x490   :  { %v5847_v53 = vpop.f32.mrb[43].mxu0  ;;  %7844 = vmatpush1.bf16.msra.mxu0 %v15137_v29  ;;  %v7259_v10 = vpop.f32.mrb[43].mxu1  ;;  %9256 = vmatpush1.bf16.msra.mxu1 %v15139_v28 }
 0x491   :  { %14483 = vst [vmem:[#allocation8 + $0x280] sm:$0xff] %v15781_v3  ;;  %v15785_v43 = vpack.c.bf16 %v5847_v53, %v5845_v26  ;;  %7845 = vmatprep.subr.bf16.mxu0 %v15146_v27  ;;  %14484 = vst [vmem:[#allocation8 + $0x288] sm:$0xff] %v15782_v47  ;;  %v15786_v14 = vpack.c.bf16 %v7259_v10, %v7257_v36  ;;  %9257 = vmatprep.subr.bf16.mxu1 %v15148_v30 }
 0x492   :  { %7555 = vmatmul.mubr.bf16.gmra.mrb[148].mxu0 %v17672_v55  ;;  %8967 = vmatmul.mubr.bf16.gmra.mrb[148].mxu1 %v17672_v55  ;;  %v15155_v27 = vcombine.low %v515_v32, %v519_v4 }
 0x493   :  { %14487 = vst [vmem:[#allocation8 + $0x2a0] sm:$0xff] %v15785_v43  ;;  %7564 = vmatprep.mubr.bf16.mxu0 %v17674_v59  ;;  %14488 = vst [vmem:[#allocation8 + $0x2a8] sm:$0xff] %v15786_v14  ;;  %8976 = vmatprep.mubr.bf16.mxu1 %v17674_v59  ;;  %v514_v59 = vld [vmem:[#allocation6 + $0x6d0] sm:$0xff] }
 0x494   :  { %7846 = vmatpush1.bf16.msra.mxu0 %v15145_v8  ;;  %9258 = vmatpush1.bf16.msra.mxu1 %v15147_v48  ;;  %v15153_v21 = vcombine.low %v514_v59, %v518_v60  ;;  %v15154_v25 = vcombine.high %v514_v59, %v518_v60 }
 0x495   :  { %v5851_v49 = vpop.f32.mrb[44].mxu0  ;;  %v7263_v11 = vpop.f32.mrb[44].mxu1  ;;  %9259 = vmatprep.subr.bf16.mxu1 %v15156_v56 }
 0x496   :  { %v5853_v58 = vpop.f32.mrb[45].mxu0  ;;  %v7265_v15 = vpop.f32.mrb[45].mxu1  ;;  %7847 = vmatprep.subr.bf16.mxu0 %v15154_v25 }
 0x497   :  { %v15789_v37 = vpack.c.bf16 %v5853_v58, %v5851_v49  ;;  %v5855_v57 = vpop.f32.mrb[46].mxu0  ;;  %v15790_v18 = vpack.c.bf16 %v7265_v15, %v7263_v11  ;;  %v7267_v51 = vpop.f32.mrb[46].mxu1 }
 0x498   :  { %v5857_v40 = vpop.f32.mrb[47].mxu0  ;;  %v7269_v34 = vpop.f32.mrb[47].mxu1  ;;  %7848 = vmatpush1.bf16.msra.mxu0 %v15153_v21  ;;  %9260 = vmatpush1.bf16.msra.mxu1 %v15155_v27 }
 0x499   :  { %14491 = vst [vmem:[#allocation8 + $0x2c0] sm:$0xff] %v15789_v37  ;;  %v15793_v35 = vpack.c.bf16 %v5857_v40, %v5855_v57  ;;  %14492 = vst [vmem:[#allocation8 + $0x2c8] sm:$0xff] %v15790_v18  ;;  %v15794_v55 = vpack.c.bf16 %v7269_v34, %v7267_v51  ;;  %v523_v57 = vld [vmem:[#allocation6 + $0x718] sm:$0xff] }
 0x49a   :  { %7565 = vmatmul.mubr.bf16.gmra.mrb[152].mxu0 %v17680_v0  ;;  %8977 = vmatmul.mubr.bf16.gmra.mrb[152].mxu1 %v17680_v0 }
 0x49b   :  { %14495 = vst [vmem:[#allocation8 + $0x2e0] sm:$0xff] %v15793_v35  ;;  %7574 = vmatprep.mubr.bf16.mxu0 %v17682_v1  ;;  %14496 = vst [vmem:[#allocation8 + $0x2e8] sm:$0xff] %v15794_v55  ;;  %8986 = vmatprep.mubr.bf16.mxu1 %v17682_v1  ;;  %v527_v35 = vld [vmem:[#allocation6 + $0x738] sm:$0xff] }
 0x49c   :  { %v15163_v59 = vcombine.low %v523_v57, %v527_v35  ;;  %v15164_v60 = vcombine.high %v523_v57, %v527_v35 }
 0x49d   :  { %v5861_v29 = vpop.f32.mrb[48].mxu0  ;;  %v7273_v63 = vpop.f32.mrb[48].mxu1 }
 0x49e   :  { %v5863_v28 = vpop.f32.mrb[49].mxu0  ;;  %v7275_v5 = vpop.f32.mrb[49].mxu1  ;;  %9261 = vmatprep.subr.bf16.mxu1 %v15164_v60 }
 0x49f   :  { %v15797_v22 = vpack.c.bf16 %v5863_v28, %v5861_v29  ;;  %v5865_v30 = vpop.f32.mrb[50].mxu0  ;;  %v15798_v0 = vpack.c.bf16 %v7275_v5, %v7273_v63  ;;  %v7277_v3 = vpop.f32.mrb[50].mxu1  ;;  %9262 = vmatpush1.bf16.msra.mxu1 %v15163_v59 }
 0x4a0   :  { %v5867_v54 = vpop.f32.mrb[51].mxu0  ;;  %v7279_v26 = vpop.f32.mrb[51].mxu1 }
 0x4a1   :  { %14499 = vst [vmem:[#allocation8 + $0x300] sm:$0xff] %v15797_v22  ;;  %v15801_v1 = vpack.c.bf16 %v5867_v54, %v5865_v30  ;;  %14500 = vst [vmem:[#allocation8 + $0x308] sm:$0xff] %v15798_v0  ;;  %v15802_v47 = vpack.c.bf16 %v7279_v26, %v7277_v3 }
 0x4a2   :  { %7575 = vmatmul.mubr.bf16.gmra.mrb[156].mxu0 %v17688_v13  ;;  %8987 = vmatmul.mubr.bf16.gmra.mrb[156].mxu1 %v17688_v13  ;;  %v522_v13 = vld [vmem:[#allocation6 + $0x710] sm:$0xff] }
 0x4a3   :  { %14503 = vst [vmem:[#allocation8 + $0x320] sm:$0xff] %v15801_v1  ;;  %7584 = vmatprep.mubr.bf16.mxu0 %v17690_v16  ;;  %14504 = vst [vmem:[#allocation8 + $0x328] sm:$0xff] %v15802_v47  ;;  %8996 = vmatprep.mubr.bf16.mxu1 %v17690_v16  ;;  %v526_v16 = vld [vmem:[#allocation6 + $0x730] sm:$0xff] }
 0x4a4   :  { %v15161_v51 = vcombine.low %v522_v13, %v526_v16  ;;  %v15162_v40 = vcombine.high %v522_v13, %v526_v16 }
 0x4a5   :  { %v5871_v36 = vpop.f32.mrb[52].mxu0  ;;  %v7283_v53 = vpop.f32.mrb[52].mxu1 }
 0x4a6   :  { %v5873_v8 = vpop.f32.mrb[53].mxu0  ;;  %v7285_v10 = vpop.f32.mrb[53].mxu1  ;;  %7849 = vmatprep.subr.bf16.mxu0 %v15162_v40 }
 0x4a7   :  { %v15805_v43 = vpack.c.bf16 %v5873_v8, %v5871_v36  ;;  %v5875_v48 = vpop.f32.mrb[54].mxu0  ;;  %v15806_v14 = vpack.c.bf16 %v7285_v10, %v7283_v53  ;;  %v7287_v49 = vpop.f32.mrb[54].mxu1  ;;  %7850 = vmatpush1.bf16.msra.mxu0 %v15161_v51  ;;  %v531_v53 = vld [vmem:[#allocation6 + $0x758] sm:$0xff] }
 0x4a8   :  { %v5877_v11 = vpop.f32.mrb[55].mxu0  ;;  %v7289_v37 = vpop.f32.mrb[55].mxu1 }
 0x4a9   :  { %14507 = vst [vmem:[#allocation8 + $0x340] sm:$0xff] %v15805_v43  ;;  %v15809_v58 = vpack.c.bf16 %v5877_v11, %v5875_v48  ;;  %14508 = vst [vmem:[#allocation8 + $0x348] sm:$0xff] %v15806_v14  ;;  %v15810_v15 = vpack.c.bf16 %v7289_v37, %v7287_v49  ;;  %v535_v48 = vld [vmem:[#allocation6 + $0x778] sm:$0xff] }
 0x4aa   :  { %7585 = vmatmul.mubr.bf16.gmra.mrb[160].mxu0 %v17696_v19  ;;  %8997 = vmatmul.mubr.bf16.gmra.mrb[160].mxu1 %v17696_v19  ;;  %v15171_v11 = vcombine.low %v531_v53, %v535_v48 }
 0x4ab   :  { %14511 = vst [vmem:[#allocation8 + $0x360] sm:$0xff] %v15809_v58  ;;  %7594 = vmatprep.mubr.bf16.mxu0 %v17698_v20  ;;  %14512 = vst [vmem:[#allocation8 + $0x368] sm:$0xff] %v15810_v15  ;;  %9006 = vmatprep.mubr.bf16.mxu1 %v17698_v20  ;;  %v15172_v58 = vcombine.high %v531_v53, %v535_v48 }
 0x4ad   :  { %v5881_v18 = vpop.f32.mrb[56].mxu0  ;;  %v7293_v34 = vpop.f32.mrb[56].mxu1  ;;  %9263 = vmatprep.subr.bf16.mxu1 %v15172_v58 }
 0x4ae   :  { %v5883_v55 = vpop.f32.mrb[57].mxu0  ;;  %v7295_v29 = vpop.f32.mrb[57].mxu1  ;;  %9264 = vmatpush1.bf16.msra.mxu1 %v15171_v11 }
 0x4af   :  { %v15813_v32 = vpack.c.bf16 %v5883_v55, %v5881_v18  ;;  %v5885_v21 = vpop.f32.mrb[58].mxu0  ;;  %v15814_v19 = vpack.c.bf16 %v7295_v29, %v7293_v34  ;;  %v7297_v25 = vpop.f32.mrb[58].mxu1 }
 0x4b0   :  { %v5887_v4 = vpop.f32.mrb[59].mxu0  ;;  %v7299_v63 = vpop.f32.mrb[59].mxu1 }
 0x4b1   :  { %14515 = vst [vmem:[#allocation8 + $0x380] sm:$0xff] %v15813_v32  ;;  %v15817_v20 = vpack.c.bf16 %v5887_v4, %v5885_v21  ;;  %14516 = vst [vmem:[#allocation8 + $0x388] sm:$0xff] %v15814_v19  ;;  %v15818_v28 = vpack.c.bf16 %v7299_v63, %v7297_v25 }
 0x4b2   :  { %7595 = vmatmul.mubr.bf16.gmra.mrb[164].mxu0 %v17704_v31  ;;  %9007 = vmatmul.mubr.bf16.gmra.mrb[164].mxu1 %v17704_v31  ;;  %v530_v31 = vld [vmem:[#allocation6 + $0x750] sm:$0xff] }
 0x4b3   :  { %14519 = vst [vmem:[#allocation8 + $0x3a0] sm:$0xff] %v15817_v20  ;;  %7604 = vmatprep.mubr.bf16.mxu0 %v17706_v33  ;;  %14520 = vst [vmem:[#allocation8 + $0x3a8] sm:$0xff] %v15818_v28  ;;  %9016 = vmatprep.mubr.bf16.mxu1 %v17706_v33  ;;  %v534_v33 = vld [vmem:[#allocation6 + $0x770] sm:$0xff]  ;;  %v539_v28 = vld [vmem:[#allocation6 + $0x798] sm:$0xff] }
 0x4b4   :  { %v15169_v43 = vcombine.low %v530_v31, %v534_v33  ;;  %v15170_v10 = vcombine.high %v530_v31, %v534_v33  ;;  %v542_v20 = vld [vmem:[#allocation6 + $0x7b0] sm:$0xff] }
 0x4b5   :  { %v5891_v27 = vpop.f32.mrb[60].mxu0  ;;  %v7303_v56 = vpop.f32.mrb[60].mxu1 }
 0x4b6   :  { %v5893_v22 = vpop.f32.mrb[61].mxu0  ;;  %v7305_v30 = vpop.f32.mrb[61].mxu1  ;;  %7851 = vmatprep.subr.bf16.mxu0 %v15170_v10 }
 0x4b7   :  { %v15821_v5 = vpack.c.bf16 %v5893_v22, %v5891_v27  ;;  %v5895_v0 = vpop.f32.mrb[62].mxu0  ;;  %v15822_v3 = vpack.c.bf16 %v7305_v30, %v7303_v56  ;;  %v7307_v54 = vpop.f32.mrb[62].mxu1  ;;  %7852 = vmatpush1.bf16.msra.mxu0 %v15169_v43  ;;  %v543_v27 = vld [vmem:[#allocation6 + $0x7b8] sm:$0xff] }
 0x4b8   :  { %v5897_v1 = vpop.f32.mrb[63].mxu0  ;;  %v7309_v47 = vpop.f32.mrb[63].mxu1  ;;  %v15179_v56 = vcombine.low %v539_v28, %v543_v27  ;;  %v15180_v22 = vcombine.high %v539_v28, %v543_v27 }
 0x4b9   :  { %14523 = vst [vmem:[#allocation8 + $0x3c0] sm:$0xff] %v15821_v5  ;;  %v15825_v26 = vpack.c.bf16 %v5897_v1, %v5895_v0  ;;  %14524 = vst [vmem:[#allocation8 + $0x3c8] sm:$0xff] %v15822_v3  ;;  %v15826_v36 = vpack.c.bf16 %v7309_v47, %v7307_v54 }
 0x4ba   :  { %7605 = vmatmul.mubr.bf16.gmra.mrb[168].mxu0 %v17712_v38  ;;  %9017 = vmatmul.mubr.bf16.gmra.mrb[168].mxu1 %v17712_v38 }
 0x4bb   :  { %14527 = vst [vmem:[#allocation8 + $0x3e0] sm:$0xff] %v15825_v26  ;;  %7614 = vmatprep.mubr.bf16.mxu0 %v17714_v39  ;;  %14528 = vst [vmem:[#allocation8 + $0x3e8] sm:$0xff] %v15826_v36  ;;  %9026 = vmatprep.mubr.bf16.mxu1 %v17714_v39 }
 0x4bc   :  { %9265 = vmatprep.subr.bf16.mxu1 %v15180_v22 }
 0x4bd   :  { %v5901_v8 = vpop.f32.mrb[64].mxu0  ;;  %v7313_v14 = vpop.f32.mrb[64].mxu1  ;;  %9266 = vmatpush1.bf16.msra.mxu1 %v15179_v56 }
 0x4be   :  { %v5903_v49 = vpop.f32.mrb[65].mxu0  ;;  %v7315_v15 = vpop.f32.mrb[65].mxu1 }
 0x4bf   :  { %v15829_v37 = vpack.c.bf16 %v5903_v49, %v5901_v8  ;;  %v5905_v13 = vpop.f32.mrb[66].mxu0  ;;  %v15830_v38 = vpack.c.bf16 %v7315_v15, %v7313_v14  ;;  %v7317_v16 = vpop.f32.mrb[66].mxu1 }
 0x4c0   :  { %v5907_v57 = vpop.f32.mrb[67].mxu0  ;;  %v7319_v18 = vpop.f32.mrb[67].mxu1 }
 0x4c1   :  { %14531 = vst [vmem:[#allocation8 + $0x400] sm:$0xff] %v15829_v37  ;;  %v15833_v39 = vpack.c.bf16 %v5907_v57, %v5905_v13  ;;  %14532 = vst [vmem:[#allocation8 + $0x408] sm:$0xff] %v15830_v38  ;;  %v15834_v51 = vpack.c.bf16 %v7319_v18, %v7317_v16  ;;  %v550_v13 = vld [vmem:[#allocation6 + $0x7f0] sm:$0xff]  ;;  %v547_v16 = vld [vmem:[#allocation6 + $0x7d8] sm:$0xff] }
 0x4c2   :  { %7615 = vmatmul.mubr.bf16.gmra.mrb[172].mxu0 %v17720_v50  ;;  %9027 = vmatmul.mubr.bf16.gmra.mrb[172].mxu1 %v17720_v50  ;;  %v538_v50 = vld [vmem:[#allocation6 + $0x790] sm:$0xff]  ;;  %v551_v57 = vld [vmem:[#allocation6 + $0x7f8] sm:$0xff] }
 0x4c3   :  { %14535 = vst [vmem:[#allocation8 + $0x420] sm:$0xff] %v15833_v39  ;;  %7624 = vmatprep.mubr.bf16.mxu0 %v17722_v52  ;;  %14536 = vst [vmem:[#allocation8 + $0x428] sm:$0xff] %v15834_v51  ;;  %9036 = vmatprep.mubr.bf16.mxu1 %v17722_v52  ;;  %v15177_v52 = vcombine.low %v538_v50, %v542_v20  ;;  %v15178_v63 = vcombine.high %v538_v50, %v542_v20 }
 0x4c4   :  { %v15187_v39 = vcombine.low %v547_v16, %v551_v57  ;;  %v15188_v18 = vcombine.high %v547_v16, %v551_v57 }
 0x4c5   :  { %v5911_v40 = vpop.f32.mrb[68].mxu0  ;;  %v7323_v35 = vpop.f32.mrb[68].mxu1  ;;  %7853 = vmatprep.subr.bf16.mxu0 %v15178_v63 }
 0x4c6   :  { %v5913_v34 = vpop.f32.mrb[69].mxu0  ;;  %v7325_v59 = vpop.f32.mrb[69].mxu1  ;;  %7854 = vmatpush1.bf16.msra.mxu0 %v15177_v52  ;;  %9267 = vmatprep.subr.bf16.mxu1 %v15188_v18 }
 0x4c7   :  { %v15837_v55 = vpack.c.bf16 %v5913_v34, %v5911_v40  ;;  %v5915_v60 = vpop.f32.mrb[70].mxu0  ;;  %v15838_v32 = vpack.c.bf16 %v7325_v59, %v7323_v35  ;;  %v7327_v29 = vpop.f32.mrb[70].mxu1  ;;  %9268 = vmatpush1.bf16.msra.mxu1 %v15187_v39 }
 0x4c8   :  { %v5917_v21 = vpop.f32.mrb[71].mxu0  ;;  %v7329_v25 = vpop.f32.mrb[71].mxu1 }
 0x4c9   :  { %14539 = vst [vmem:[#allocation8 + $0x440] sm:$0xff] %v15837_v55  ;;  %v15841_v19 = vpack.c.bf16 %v5917_v21, %v5915_v60  ;;  %14540 = vst [vmem:[#allocation8 + $0x448] sm:$0xff] %v15838_v32  ;;  %v15842_v4 = vpack.c.bf16 %v7329_v25, %v7327_v29 }
 0x4ca   :  { %7625 = vmatmul.mubr.bf16.gmra.mrb[176].mxu0 %v17728_v61  ;;  %9037 = vmatmul.mubr.bf16.gmra.mrb[176].mxu1 %v17728_v61 }
 0x4cb   :  { %14543 = vst [vmem:[#allocation8 + $0x460] sm:$0xff] %v15841_v19  ;;  %7634 = vmatprep.mubr.bf16.mxu0 %v17730_v62  ;;  %14544 = vst [vmem:[#allocation8 + $0x468] sm:$0xff] %v15842_v4  ;;  %9046 = vmatprep.mubr.bf16.mxu1 %v17730_v62 }
 0x4cd   :  { %v5921_v5 = vpop.f32.mrb[72].mxu0  ;;  %v7333_v30 = vpop.f32.mrb[72].mxu1 }
 0x4ce   :  { %v5923_v0 = vpop.f32.mrb[73].mxu0  ;;  %v7335_v54 = vpop.f32.mrb[73].mxu1 }
 0x4cf   :  { %v15845_v3 = vpack.c.bf16 %v5923_v0, %v5921_v5  ;;  %v5925_v61 = vpop.f32.mrb[74].mxu0  ;;  %v15846_v1 = vpack.c.bf16 %v7335_v54, %v7333_v30  ;;  %v7337_v26 = vpop.f32.mrb[74].mxu1  ;;  %v18809_v30 = vld [vmem:[#allocation6 + $0x830] sm:$0xff]  ;;  %v18819_v54 = vld [vmem:[#allocation6 + $0x838] sm:$0xff] }
 0x4d0   :  { %v5927_v47 = vpop.f32.mrb[75].mxu0  ;;  %v7339_v31 = vpop.f32.mrb[75].mxu1 }
 0x4d1   :  { %14547 = vst [vmem:[#allocation8 + $0x480] sm:$0xff] %v15845_v3  ;;  %v15849_v36 = vpack.c.bf16 %v5927_v47, %v5925_v61  ;;  %14548 = vst [vmem:[#allocation8 + $0x488] sm:$0xff] %v15846_v1  ;;  %v15850_v62 = vpack.c.bf16 %v7339_v31, %v7337_v26  ;;  %v18817_v3 = vld [vmem:[#allocation6 + $0x818] sm:$0xff] }
 0x4d2   :  { %7635 = vmatmul.mubr.bf16.gmra.mrb[180].mxu0 %v17736_v12  ;;  %9047 = vmatmul.mubr.bf16.gmra.mrb[180].mxu1 %v17736_v12  ;;  %v546_v12 = vld [vmem:[#allocation6 + $0x7d0] sm:$0xff]  ;;  %v15195_v61 = vcombine.low %v18817_v3, %v18819_v54 }
 0x4d3   :  { %14551 = vst [vmem:[#allocation8 + $0x4a0] sm:$0xff] %v15849_v36  ;;  %7644 = vmatprep.mubr.bf16.mxu0 %v17738_v17  ;;  %14552 = vst [vmem:[#allocation8 + $0x4a8] sm:$0xff] %v15850_v62  ;;  %9056 = vmatprep.mubr.bf16.mxu1 %v17738_v17  ;;  %v15185_v17 = vcombine.low %v546_v12, %v550_v13  ;;  %v15186_v38 = vcombine.high %v546_v12, %v550_v13 }
 0x4d5   :  { %v5931_v33 = vpop.f32.mrb[76].mxu0  ;;  %v7343_v53 = vpop.f32.mrb[76].mxu1  ;;  %7855 = vmatprep.subr.bf16.mxu0 %v15186_v38 }
 0x4d6   :  { %v5933_v8 = vpop.f32.mrb[77].mxu0  ;;  %v7345_v10 = vpop.f32.mrb[77].mxu1  ;;  %7856 = vmatpush1.bf16.msra.mxu0 %v15185_v17 }
 0x4d7   :  { %v15853_v43 = vpack.c.bf16 %v5933_v8, %v5931_v33  ;;  %v5935_v48 = vpop.f32.mrb[78].mxu0  ;;  %v15854_v14 = vpack.c.bf16 %v7345_v10, %v7343_v53  ;;  %v7347_v49 = vpop.f32.mrb[78].mxu1 }
 0x4d8   :  { %v5937_v11 = vpop.f32.mrb[79].mxu0  ;;  %v7349_v37 = vpop.f32.mrb[79].mxu1 }
 0x4d9   :  { %14555 = vst [vmem:[#allocation8 + $0x4c0] sm:$0xff] %v15853_v43  ;;  %v15857_v58 = vpack.c.bf16 %v5937_v11, %v5935_v48  ;;  %14556 = vst [vmem:[#allocation8 + $0x4c8] sm:$0xff] %v15854_v14  ;;  %v15858_v15 = vpack.c.bf16 %v7349_v37, %v7347_v49 }
 0x4da   :  { %7645 = vmatmul.mubr.bf16.gmra.mrb[184].mxu0 %v17744_v23  ;;  %9057 = vmatmul.mubr.bf16.gmra.mrb[184].mxu1 %v17744_v23 }
 0x4db   :  { %14559 = vst [vmem:[#allocation8 + $0x4e0] sm:$0xff] %v15857_v58  ;;  %7654 = vmatprep.mubr.bf16.mxu0 %v17746_v24  ;;  %14560 = vst [vmem:[#allocation8 + $0x4e8] sm:$0xff] %v15858_v15  ;;  %9066 = vmatprep.mubr.bf16.mxu1 %v17746_v24 }
 0x4dd   :  { %v5941_v51 = vpop.f32.mrb[80].mxu0  ;;  %v7353_v40 = vpop.f32.mrb[80].mxu1 }
 0x4de   :  { %v5943_v35 = vpop.f32.mrb[81].mxu0  ;;  %v7355_v55 = vpop.f32.mrb[81].mxu1 }
 0x4df   :  { %v15861_v34 = vpack.c.bf16 %v5943_v35, %v5941_v51  ;;  %v5945_v23 = vpop.f32.mrb[82].mxu0  ;;  %v15862_v59 = vpack.c.bf16 %v7355_v55, %v7353_v40  ;;  %v7357_v60 = vpop.f32.mrb[82].mxu1 }
 0x4e0   :  { %v5947_v32 = vpop.f32.mrb[83].mxu0  ;;  %v7359_v21 = vpop.f32.mrb[83].mxu1 }
 0x4e1   :  { %14563 = vst [vmem:[#allocation8 + $0x500] sm:$0xff] %v15861_v34  ;;  %v15865_v29 = vpack.c.bf16 %v5947_v32, %v5945_v23  ;;  %14564 = vst [vmem:[#allocation8 + $0x508] sm:$0xff] %v15862_v59  ;;  %v15866_v24 = vpack.c.bf16 %v7359_v21, %v7357_v60  ;;  %v19973_v21 = vld [vmem:[#allocation15_spill] sm:$0xff] }
 0x4e2   :  { %7655 = vmatmul.mubr.bf16.gmra.mrb[188].mxu0 %v17752_v41  ;;  %9067 = vmatmul.mubr.bf16.gmra.mrb[188].mxu1 %v17752_v41  ;;  %v18807_v41 = vld [vmem:[#allocation6 + $0x810] sm:$0xff] }
 0x4e3   :  { %14567 = vst [vmem:[#allocation8 + $0x520] sm:$0xff] %v15865_v29  ;;  %7664 = vmatprep.mubr.bf16.mxu0 %v17754_v42  ;;  %14568 = vst [vmem:[#allocation8 + $0x528] sm:$0xff] %v15866_v24  ;;  %9076 = vmatprep.mubr.bf16.mxu1 %v17754_v42  ;;  %v15193_v42 = vcombine.low %v18807_v41, %v18809_v30  ;;  %v15194_v0 = vcombine.high %v18807_v41, %v18809_v30  ;;  %v19972_v29 = vld [vmem:[#allocation14_spill] sm:$0xff]  ;;  %v583_v41 = vld [vmem:[#allocation6 + $0x8f8] sm:$0xff] }
 0x4e5   :  { %v5951_v19 = vpop.f32.mrb[84].mxu0  ;;  %v7363_v25 = vpop.f32.mrb[84].mxu1  ;;  %8178 = vmatprep.subr.bf16.mxu0 %v15194_v0  ;;  %v19975_v0 = vld [vmem:[#allocation17_spill] sm:$0xff] }
 0x4e6   :  { %v5953_v4 = vpop.f32.mrb[85].mxu0  ;;  %v7365_v20 = vpop.f32.mrb[85].mxu1 }
 0x4e7   :  { %v15869_v50 = vpack.c.bf16 %v5953_v4, %v5951_v19  ;;  %v5955_v52 = vpop.f32.mrb[86].mxu0  ;;  %v15870_v63 = vpack.c.bf16 %v7365_v20, %v7363_v25  ;;  %v7367_v28 = vpop.f32.mrb[86].mxu1 }
 0x4e8   :  { %v5957_v27 = vpop.f32.mrb[87].mxu0  ;;  %v7369_v22 = vpop.f32.mrb[87].mxu1 }
 0x4e9   :  { %14571 = vst [vmem:[#allocation8 + $0x540] sm:$0xff] %v15869_v50  ;;  %v15873_v56 = vpack.c.bf16 %v5957_v27, %v5955_v52  ;;  %14572 = vst [vmem:[#allocation8 + $0x548] sm:$0xff] %v15870_v63  ;;  %v15874_v5 = vpack.c.bf16 %v7369_v22, %v7367_v28 }
 0x4ea   :  { %7665 = vmatmul.mubr.bf16.gmra.mrb[192].mxu0 %v17760_v45  ;;  %9077 = vmatmul.mubr.bf16.gmra.mrb[192].mxu1 %v17760_v45  ;;  %v15196_v45 = vcombine.high %v18817_v3, %v18819_v54  ;;  %v20000_v54 = vld [vmem:[#allocation42_spill] sm:$0xff] }
 0x4eb   :  { %14575 = vst [vmem:[#allocation8 + $0x560] sm:$0xff] %v15873_v56  ;;  %7674 = vmatprep.mubr.bf16.mxu0 %v17762_v46  ;;  %14576 = vst [vmem:[#allocation8 + $0x568] sm:$0xff] %v15874_v5  ;;  %9086 = vmatprep.mubr.bf16.mxu1 %v17762_v46  ;;  %v19974_v5 = vld [vmem:[#allocation16_spill] sm:$0xff] }
 0x4ec   :  { %9590 = vmatprep.subr.bf16.mxu1 %v15196_v45 }
 0x4ed   :  { %v5961_v1 = vpop.f32.mrb[88].mxu0  ;;  %v7373_v26 = vpop.f32.mrb[88].mxu1 }
 0x4ee   :  { %v5963_v47 = vpop.f32.mrb[89].mxu0  ;;  %v7375_v31 = vpop.f32.mrb[89].mxu1 }
 0x4ef   :  { %v15877_v36 = vpack.c.bf16 %v5963_v47, %v5961_v1  ;;  %v5965_v62 = vpop.f32.mrb[90].mxu0  ;;  %v15878_v33 = vpack.c.bf16 %v7375_v31, %v7373_v26  ;;  %v7377_v53 = vpop.f32.mrb[90].mxu1 }
 0x4f0   :  { %v5967_v8 = vpop.f32.mrb[91].mxu0  ;;  %v7379_v46 = vpop.f32.mrb[91].mxu1 }
 0x4f1   :  { %14579 = vst [vmem:[#allocation8 + $0x580] sm:$0xff] %v15877_v36  ;;  %v15881_v43 = vpack.c.bf16 %v5967_v8, %v5965_v62  ;;  %14580 = vst [vmem:[#allocation8 + $0x588] sm:$0xff] %v15878_v33  ;;  %v15882_v10 = vpack.c.bf16 %v7379_v46, %v7377_v53 }
 0x4f2   :  { %7675 = vmatmul.mubr.bf16.gmra.mrb[196].mxu0 %v17784_v6  ;;  %9087 = vmatmul.mubr.bf16.gmra.mrb[196].mxu1 %v17784_v6  ;;  %v19970_v6 = vld [vmem:[#allocation12_spill] sm:$0xff] }
 0x4f3   :  { %14583 = vst [vmem:[#allocation8 + $0x5a0] sm:$0xff] %v15881_v43  ;;  %7684 = vmatprep.mubr.bf16.mxu0 %v17786_v7  ;;  %14584 = vst [vmem:[#allocation8 + $0x5a8] sm:$0xff] %v15882_v10  ;;  %9096 = vmatprep.mubr.bf16.mxu1 %v17786_v7  ;;  %v19971_v7 = vld [vmem:[#allocation13_spill] sm:$0xff]  ;;  %v19976_v10 = vld [vmem:[#allocation18_spill] sm:$0xff] }
 0x4f5   :  { %v5971_v48 = vpop.f32.mrb[92].mxu0  ;;  %v7383_v14 = vpop.f32.mrb[92].mxu1 }
 0x4f6   :  { %v5973_v49 = vpop.f32.mrb[93].mxu0  ;;  %v7385_v58 = vpop.f32.mrb[93].mxu1 }
 0x4f7   :  { %v15885_v11 = vpack.c.bf16 %v5973_v49, %v5971_v48  ;;  %v5975_v37 = vpop.f32.mrb[94].mxu0  ;;  %v15886_v15 = vpack.c.bf16 %v7385_v58, %v7383_v14  ;;  %v7387_v12 = vpop.f32.mrb[94].mxu1  ;;  %v19977_v48 = vld [vmem:[#allocation19_spill] sm:$0xff] }
 0x4f8   :  { %v5977_v13 = vpop.f32.mrb[95].mxu0  ;;  %v7389_v38 = vpop.f32.mrb[95].mxu1 }
 0x4f9   :  { %14587 = vst [vmem:[#allocation8 + $0x5c0] sm:$0xff] %v15885_v11  ;;  %v15889_v17 = vpack.c.bf16 %v5977_v13, %v5975_v37  ;;  %14588 = vst [vmem:[#allocation8 + $0x5c8] sm:$0xff] %v15886_v15  ;;  %v15890_v16 = vpack.c.bf16 %v7389_v38, %v7387_v12 }
 0x4fa   :  { %7685 = vmatmul.mubr.bf16.gmra.mrb[200].mxu0 %v19970_v6  ;;  %9097 = vmatmul.mubr.bf16.gmra.mrb[200].mxu1 %v19970_v6 }
 0x4fb   :  { %14591 = vst [vmem:[#allocation8 + $0x5e0] sm:$0xff] %v15889_v17  ;;  %7694 = vmatprep.mubr.bf16.mxu0 %v19971_v7  ;;  %14592 = vst [vmem:[#allocation8 + $0x5e8] sm:$0xff] %v15890_v16  ;;  %9106 = vmatprep.mubr.bf16.mxu1 %v19971_v7  ;;  %v19978_v7 = vld [vmem:[#allocation20_spill] sm:$0xff] }
 0x4fd   :  { %v5981_v57 = vpop.f32.mrb[96].mxu0  ;;  %v7393_v39 = vpop.f32.mrb[96].mxu1 }
 0x4fe   :  { %v5983_v18 = vpop.f32.mrb[97].mxu0  ;;  %v7395_v40 = vpop.f32.mrb[97].mxu1 }
 0x4ff   :  { %v15893_v51 = vpack.c.bf16 %v5983_v18, %v5981_v57  ;;  %v5985_v35 = vpop.f32.mrb[98].mxu0  ;;  %v15894_v34 = vpack.c.bf16 %v7395_v40, %v7393_v39  ;;  %v7397_v55 = vpop.f32.mrb[98].mxu1  ;;  %v19979_v57 = vld [vmem:[#allocation21_spill] sm:$0xff] }
 0x500   :  { %v5987_v23 = vpop.f32.mrb[99].mxu0  ;;  %v7399_v60 = vpop.f32.mrb[99].mxu1 }
 0x501   :  { %14595 = vst [vmem:[#allocation8 + $0x600] sm:$0xff] %v15893_v51  ;;  %v15897_v59 = vpack.c.bf16 %v5987_v23, %v5985_v35  ;;  %14596 = vst [vmem:[#allocation8 + $0x608] sm:$0xff] %v15894_v34  ;;  %v15898_v32 = vpack.c.bf16 %v7399_v60, %v7397_v55 }
 0x502   :  { %7695 = vmatmul.mubr.bf16.gmra.mrb[204].mxu0 %v19972_v29  ;;  %9107 = vmatmul.mubr.bf16.gmra.mrb[204].mxu1 %v19972_v29 }
 0x503   :  { %14599 = vst [vmem:[#allocation8 + $0x620] sm:$0xff] %v15897_v59  ;;  %7704 = vmatprep.mubr.bf16.mxu0 %v19973_v21  ;;  %14600 = vst [vmem:[#allocation8 + $0x628] sm:$0xff] %v15898_v32  ;;  %9116 = vmatprep.mubr.bf16.mxu1 %v19973_v21  ;;  %v19980_v21 = vld [vmem:[#allocation22_spill] sm:$0xff] }
 0x505   :  { %v5991_v24 = vpop.f32.mrb[100].mxu0  ;;  %v7403_v19 = vpop.f32.mrb[100].mxu1 }
 0x506   :  { %v5993_v25 = vpop.f32.mrb[101].mxu0  ;;  %v7405_v50 = vpop.f32.mrb[101].mxu1 }
 0x507   :  { %v15901_v4 = vpack.c.bf16 %v5993_v25, %v5991_v24  ;;  %v5995_v20 = vpop.f32.mrb[102].mxu0  ;;  %v15902_v52 = vpack.c.bf16 %v7405_v50, %v7403_v19  ;;  %v7407_v63 = vpop.f32.mrb[102].mxu1  ;;  %v19981_v24 = vld [vmem:[#allocation23_spill] sm:$0xff] }
 0x508   :  { %v5997_v28 = vpop.f32.mrb[103].mxu0  ;;  %v7409_v56 = vpop.f32.mrb[103].mxu1 }
 0x509   :  { %14603 = vst [vmem:[#allocation8 + $0x640] sm:$0xff] %v15901_v4  ;;  %v15905_v27 = vpack.c.bf16 %v5997_v28, %v5995_v20  ;;  %14604 = vst [vmem:[#allocation8 + $0x648] sm:$0xff] %v15902_v52  ;;  %v15906_v22 = vpack.c.bf16 %v7409_v56, %v7407_v63 }
 0x50a   :  { %7705 = vmatmul.mubr.bf16.gmra.mrb[208].mxu0 %v19974_v5  ;;  %9117 = vmatmul.mubr.bf16.gmra.mrb[208].mxu1 %v19974_v5 }
 0x50b   :  { %14607 = vst [vmem:[#allocation8 + $0x660] sm:$0xff] %v15905_v27  ;;  %7714 = vmatprep.mubr.bf16.mxu0 %v19975_v0  ;;  %14608 = vst [vmem:[#allocation8 + $0x668] sm:$0xff] %v15906_v22  ;;  %9126 = vmatprep.mubr.bf16.mxu1 %v19975_v0  ;;  %v19982_v0 = vld [vmem:[#allocation24_spill] sm:$0xff] }
 0x50d   :  { %v6001_v45 = vpop.f32.mrb[104].mxu0  ;;  %v7413_v1 = vpop.f32.mrb[104].mxu1 }
 0x50e   :  { %v6003_v26 = vpop.f32.mrb[105].mxu0  ;;  %v7415_v36 = vpop.f32.mrb[105].mxu1 }
 0x50f   :  { %v15909_v47 = vpack.c.bf16 %v6003_v26, %v6001_v45  ;;  %v6005_v31 = vpop.f32.mrb[106].mxu0  ;;  %v15910_v62 = vpack.c.bf16 %v7415_v36, %v7413_v1  ;;  %v7417_v33 = vpop.f32.mrb[106].mxu1  ;;  %v19983_v45 = vld [vmem:[#allocation25_spill] sm:$0xff] }
 0x510   :  { %v6007_v53 = vpop.f32.mrb[107].mxu0  ;;  %v7419_v43 = vpop.f32.mrb[107].mxu1 }
 0x511   :  { %14611 = vst [vmem:[#allocation8 + $0x680] sm:$0xff] %v15909_v47  ;;  %v15913_v8 = vpack.c.bf16 %v6007_v53, %v6005_v31  ;;  %14612 = vst [vmem:[#allocation8 + $0x688] sm:$0xff] %v15910_v62  ;;  %v15914_v46 = vpack.c.bf16 %v7419_v43, %v7417_v33 }
 0x512   :  { %7715 = vmatmul.mubr.bf16.gmra.mrb[212].mxu0 %v19976_v10  ;;  %9127 = vmatmul.mubr.bf16.gmra.mrb[212].mxu1 %v19976_v10 }
 0x513   :  { %14615 = vst [vmem:[#allocation8 + $0x6a0] sm:$0xff] %v15913_v8  ;;  %7724 = vmatprep.mubr.bf16.mxu0 %v19977_v48  ;;  %14616 = vst [vmem:[#allocation8 + $0x6a8] sm:$0xff] %v15914_v46  ;;  %9136 = vmatprep.mubr.bf16.mxu1 %v19977_v48  ;;  %v19984_v48 = vld [vmem:[#allocation26_spill] sm:$0xff] }
 0x515   :  { %v6011_v14 = vpop.f32.mrb[108].mxu0  ;;  %v7423_v49 = vpop.f32.mrb[108].mxu1 }
 0x516   :  { %v6013_v11 = vpop.f32.mrb[109].mxu0  ;;  %v7425_v37 = vpop.f32.mrb[109].mxu1 }
 0x517   :  { %v15917_v58 = vpack.c.bf16 %v6013_v11, %v6011_v14  ;;  %v6015_v15 = vpop.f32.mrb[110].mxu0  ;;  %v15918_v12 = vpack.c.bf16 %v7425_v37, %v7423_v49  ;;  %v7427_v13 = vpop.f32.mrb[110].mxu1  ;;  %v19985_v14 = vld [vmem:[#allocation27_spill] sm:$0xff] }
 0x518   :  { %v6017_v17 = vpop.f32.mrb[111].mxu0  ;;  %v7429_v16 = vpop.f32.mrb[111].mxu1 }
 0x519   :  { %14619 = vst [vmem:[#allocation8 + $0x6c0] sm:$0xff] %v15917_v58  ;;  %v15921_v38 = vpack.c.bf16 %v6017_v17, %v6015_v15  ;;  %14620 = vst [vmem:[#allocation8 + $0x6c8] sm:$0xff] %v15918_v12  ;;  %v15922_v6 = vpack.c.bf16 %v7429_v16, %v7427_v13 }
 0x51a   :  { %7725 = vmatmul.mubr.bf16.gmra.mrb[216].mxu0 %v19978_v7  ;;  %9137 = vmatmul.mubr.bf16.gmra.mrb[216].mxu1 %v19978_v7 }
 0x51b   :  { %14623 = vst [vmem:[#allocation8 + $0x6e0] sm:$0xff] %v15921_v38  ;;  %7734 = vmatprep.mubr.bf16.mxu0 %v19979_v57  ;;  %14624 = vst [vmem:[#allocation8 + $0x6e8] sm:$0xff] %v15922_v6  ;;  %9146 = vmatprep.mubr.bf16.mxu1 %v19979_v57  ;;  %v19986_v57 = vld [vmem:[#allocation28_spill] sm:$0xff] }
 0x51d   :  { %v6021_v39 = vpop.f32.mrb[112].mxu0  ;;  %v7433_v18 = vpop.f32.mrb[112].mxu1 }
 0x51e   :  { %v6023_v51 = vpop.f32.mrb[113].mxu0  ;;  %v7435_v35 = vpop.f32.mrb[113].mxu1 }
 0x51f   :  { %v15925_v40 = vpack.c.bf16 %v6023_v51, %v6021_v39  ;;  %v6025_v34 = vpop.f32.mrb[114].mxu0  ;;  %v15926_v55 = vpack.c.bf16 %v7435_v35, %v7433_v18  ;;  %v7437_v23 = vpop.f32.mrb[114].mxu1  ;;  %v19987_v39 = vld [vmem:[#allocation29_spill] sm:$0xff]  ;;  %v19988_v18 = vld [vmem:[#allocation30_spill] sm:$0xff]  ;;  %v19989_v51 = vld [vmem:[#allocation31_spill] sm:$0xff] }
 0x520   :  { %v6027_v59 = vpop.f32.mrb[115].mxu0  ;;  %v7439_v32 = vpop.f32.mrb[115].mxu1  ;;  %v19991_v35 = vld [vmem:[#allocation33_spill] sm:$0xff] }
 0x521   :  { %14627 = vst [vmem:[#allocation8 + $0x700] sm:$0xff] %v15925_v40  ;;  %v15929_v60 = vpack.c.bf16 %v6027_v59, %v6025_v34  ;;  %14628 = vst [vmem:[#allocation8 + $0x708] sm:$0xff] %v15926_v55  ;;  %v15930_v29 = vpack.c.bf16 %v7439_v32, %v7437_v23  ;;  %v19990_v40 = vld [vmem:[#allocation32_spill] sm:$0xff]  ;;  %v19992_v34 = vld [vmem:[#allocation34_spill] sm:$0xff] }
 0x522   :  { %7735 = vmatmul.mubr.bf16.gmra.mrb[220].mxu0 %v19980_v21  ;;  %9147 = vmatmul.mubr.bf16.gmra.mrb[220].mxu1 %v19980_v21  ;;  %v19993_v55 = vld [vmem:[#allocation35_spill] sm:$0xff]  ;;  %v19994_v23 = vld [vmem:[#allocation36_spill] sm:$0xff]  ;;  %v19995_v59 = vld [vmem:[#allocation37_spill] sm:$0xff] }
 0x523   :  { %14631 = vst [vmem:[#allocation8 + $0x720] sm:$0xff] %v15929_v60  ;;  %7744 = vmatprep.mubr.bf16.mxu0 %v19981_v24  ;;  %14632 = vst [vmem:[#allocation8 + $0x728] sm:$0xff] %v15930_v29  ;;  %9156 = vmatprep.mubr.bf16.mxu1 %v19981_v24  ;;  %v19996_v60 = vld [vmem:[#allocation38_spill] sm:$0xff]  ;;  %v19997_v32 = vld [vmem:[#allocation39_spill] sm:$0xff] }
 0x524   :  { %v562_v29 = vld [vmem:[#allocation6 + $0x850] sm:$0xff]  ;;  %v563_v24 = vld [vmem:[#allocation6 + $0x858] sm:$0xff] }
 0x525   :  { %v6031_v19 = vpop.f32.mrb[116].mxu0  ;;  %v7443_v25 = vpop.f32.mrb[116].mxu1  ;;  %v566_v21 = vld [vmem:[#allocation6 + $0x870] sm:$0xff] }
 0x526   :  { %v6033_v4 = vpop.f32.mrb[117].mxu0  ;;  %v7445_v20 = vpop.f32.mrb[117].mxu1 }
 0x527   :  { %v15933_v50 = vpack.c.bf16 %v6033_v4, %v6031_v19  ;;  %v6035_v52 = vpop.f32.mrb[118].mxu0  ;;  %v15934_v63 = vpack.c.bf16 %v7445_v20, %v7443_v25  ;;  %v7447_v28 = vpop.f32.mrb[118].mxu1  ;;  %v567_v19 = vld [vmem:[#allocation6 + $0x878] sm:$0xff]  ;;  %v15202_v25 = vcombine.high %v562_v29, %v566_v21  ;;  %v570_v4 = vld [vmem:[#allocation6 + $0x890] sm:$0xff]  ;;  %v19998_v20 = vld [vmem:[#allocation40_spill] sm:$0xff] }
 0x528   :  { %v6037_v27 = vpop.f32.mrb[119].mxu0  ;;  %v7449_v22 = vpop.f32.mrb[119].mxu1 }
 0x529   :  { %14635 = vst [vmem:[#allocation8 + $0x740] sm:$0xff] %v15933_v50  ;;  %v15937_v56 = vpack.c.bf16 %v6037_v27, %v6035_v52  ;;  %14636 = vst [vmem:[#allocation8 + $0x748] sm:$0xff] %v15934_v63  ;;  %v15938_v5 = vpack.c.bf16 %v7449_v22, %v7447_v28  ;;  %v574_v50 = vld [vmem:[#allocation6 + $0x8b0] sm:$0xff]  ;;  %v15204_v52 = vcombine.high %v563_v24, %v567_v19  ;;  %v571_v63 = vld [vmem:[#allocation6 + $0x898] sm:$0xff] }
 0x52a   :  { %7745 = vmatmul.mubr.bf16.gmra.mrb[224].mxu0 %v19982_v0  ;;  %9157 = vmatmul.mubr.bf16.gmra.mrb[224].mxu1 %v19982_v0  ;;  %v575_v28 = vld [vmem:[#allocation6 + $0x8b8] sm:$0xff]  ;;  %v15201_v27 = vcombine.low %v562_v29, %v566_v21  ;;  %v15203_v22 = vcombine.low %v563_v24, %v567_v19  ;;  %v15209_v30 = vcombine.low %v570_v4, %v574_v50  ;;  %v618_v29 = vld [vmem:[#allocation6 + $0xa10] sm:$0xff] }
 0x52b   :  { %14639 = vst [vmem:[#allocation8 + $0x760] sm:$0xff] %v15937_v56  ;;  %7754 = vmatprep.mubr.bf16.mxu0 %v19983_v45  ;;  %14640 = vst [vmem:[#allocation8 + $0x768] sm:$0xff] %v15938_v5  ;;  %9166 = vmatprep.mubr.bf16.mxu1 %v19983_v45  ;;  %v19999_v56 = vld [vmem:[#allocation41_spill] sm:$0xff]  ;;  %v15210_v5 = vcombine.high %v570_v4, %v574_v50  ;;  %v15212_v0 = vcombine.high %v571_v63, %v575_v28  ;;  %v578_v45 = vld [vmem:[#allocation6 + $0x8d0] sm:$0xff] }
 0x52c   :  { %v622_v21 = vld [vmem:[#allocation6 + $0xa30] sm:$0xff]  ;;  %v20005_v24 = vld [vmem:[#allocation47_spill] sm:$0xff] }
 0x52d   :  { %v6041_v1 = vpop.f32.mrb[120].mxu0  ;;  %v7453_v26 = vpop.f32.mrb[120].mxu1  ;;  %v619_v19 = vld [vmem:[#allocation6 + $0xa18] sm:$0xff] }
 0x52e   :  { %v6043_v47 = vpop.f32.mrb[121].mxu0  ;;  %v7455_v31 = vpop.f32.mrb[121].mxu1 }
 0x52f   :  { %v15941_v36 = vpack.c.bf16 %v6043_v47, %v6041_v1  ;;  %v6045_v62 = vpop.f32.mrb[122].mxu0  ;;  %v15942_v33 = vpack.c.bf16 %v7455_v31, %v7453_v26  ;;  %v7457_v53 = vpop.f32.mrb[122].mxu1  ;;  %v582_v1 = vld [vmem:[#allocation6 + $0x8f0] sm:$0xff]  ;;  %v579_v26 = vld [vmem:[#allocation6 + $0x8d8] sm:$0xff] }
 0x530   :  { %v6047_v8 = vpop.f32.mrb[123].mxu0  ;;  %v7459_v46 = vpop.f32.mrb[123].mxu1  ;;  %v15218_v3 = vcombine.high %v578_v45, %v582_v1  ;;  %v586_v47 = vld [vmem:[#allocation6 + $0x910] sm:$0xff]  ;;  %v20001_v31 = vld [vmem:[#allocation43_spill] sm:$0xff] }
 0x531   :  { %14643 = vst [vmem:[#allocation8 + $0x780] sm:$0xff] %v15941_v36  ;;  %v15945_v43 = vpack.c.bf16 %v6047_v8, %v6045_v62  ;;  %14644 = vst [vmem:[#allocation8 + $0x788] sm:$0xff] %v15942_v33  ;;  %v15946_v10 = vpack.c.bf16 %v7459_v46, %v7457_v53  ;;  %v590_v36 = vld [vmem:[#allocation6 + $0x930] sm:$0xff]  ;;  %v587_v62 = vld [vmem:[#allocation6 + $0x918] sm:$0xff]  ;;  %v15217_v53 = vcombine.low %v578_v45, %v582_v1 }
 0x532   :  { %7755 = vmatmul.mubr.bf16.gmra.mrb[228].mxu0 %v19984_v48  ;;  %9167 = vmatmul.mubr.bf16.gmra.mrb[228].mxu1 %v19984_v48  ;;  %v591_v33 = vld [vmem:[#allocation6 + $0x938] sm:$0xff]  ;;  %v15219_v8 = vcombine.low %v579_v26, %v583_v41  ;;  %v598_v48 = vld [vmem:[#allocation6 + $0x970] sm:$0xff]  ;;  %v20006_v45 = vld [vmem:[#allocation48_spill] sm:$0xff] }
 0x533   :  { %14647 = vst [vmem:[#allocation8 + $0x7a0] sm:$0xff] %v15945_v43  ;;  %7764 = vmatprep.mubr.bf16.mxu0 %v19985_v14  ;;  %14648 = vst [vmem:[#allocation8 + $0x7a8] sm:$0xff] %v15946_v10  ;;  %9176 = vmatprep.mubr.bf16.mxu1 %v19985_v14  ;;  %v15226_v43 = vcombine.high %v586_v47, %v590_v36  ;;  %v15228_v46 = vcombine.high %v587_v62, %v591_v33  ;;  %v594_v10 = vld [vmem:[#allocation6 + $0x950] sm:$0xff]  ;;  %v595_v14 = vld [vmem:[#allocation6 + $0x958] sm:$0xff] }
 0x535   :  { %v6051_v49 = vpop.f32.mrb[124].mxu0  ;;  %v7463_v11 = vpop.f32.mrb[124].mxu1 }
 0x536   :  { %v6053_v58 = vpop.f32.mrb[125].mxu0  ;;  %v7465_v15 = vpop.f32.mrb[125].mxu1 }
 0x537   :  { %v15949_v37 = vpack.c.bf16 %v6053_v58, %v6051_v49  ;;  %v6055_v12 = vpop.f32.mrb[126].mxu0  ;;  %v15950_v13 = vpack.c.bf16 %v7465_v15, %v7463_v11  ;;  %v7467_v17 = vpop.f32.mrb[126].mxu1  ;;  %v599_v49 = vld [vmem:[#allocation6 + $0x978] sm:$0xff]  ;;  %v15225_v11 = vcombine.low %v586_v47, %v590_v36  ;;  %v15227_v58 = vcombine.low %v587_v62, %v591_v33  ;;  %v20002_v15 = vld [vmem:[#allocation44_spill] sm:$0xff]  ;;  %v20008_v33 = vld [vmem:[#allocation50_spill] sm:$0xff] }
 0x538   :  { %v6057_v38 = vpop.f32.mrb[127].mxu0  ;;  %v7469_v6 = vpop.f32.mrb[127].mxu1 }
 0x539   :  { %14651 = vst [vmem:[#allocation8 + $0x7c0] sm:$0xff] %v15949_v37  ;;  %v15953_v16 = vpack.c.bf16 %v6057_v38, %v6055_v12  ;;  %14652 = vst [vmem:[#allocation8 + $0x7c8] sm:$0xff] %v15950_v13  ;;  %v15954_v7 = vpack.c.bf16 %v7469_v6, %v7467_v17  ;;  %v15234_v37 = vcombine.high %v594_v10, %v598_v48  ;;  %v602_v13 = vld [vmem:[#allocation6 + $0x990] sm:$0xff]  ;;  %v20003_v38 = vld [vmem:[#allocation45_spill] sm:$0xff] }
 0x53a   :  { %7765 = vmatmul.mubr.bf16.gmra.mrb[232].mxu0 %v19986_v57  ;;  %9177 = vmatmul.mubr.bf16.gmra.mrb[232].mxu1 %v19986_v57  ;;  %v15236_v12 = vcombine.high %v595_v14, %v599_v49  ;;  %v606_v17 = vld [vmem:[#allocation6 + $0x9b0] sm:$0xff]  ;;  %v607_v6 = vld [vmem:[#allocation6 + $0x9b8] sm:$0xff]  ;;  %v15235_v57 = vcombine.low %v595_v14, %v599_v49 }
 0x53b   :  { %14655 = vst [vmem:[#allocation8 + $0x7e0] sm:$0xff] %v15953_v16  ;;  %7774 = vmatprep.mubr.bf16.mxu0 %v19987_v39  ;;  %14656 = vst [vmem:[#allocation8 + $0x7e8] sm:$0xff] %v15954_v7  ;;  %9186 = vmatprep.mubr.bf16.mxu1 %v19987_v39  ;;  %v603_v16 = vld [vmem:[#allocation6 + $0x998] sm:$0xff]  ;;  %v15233_v7 = vcombine.low %v594_v10, %v598_v48  ;;  %v15242_v39 = vcombine.high %v602_v13, %v606_v17  ;;  %v20011_v10 = vld [vmem:[#allocation53_spill] sm:$0xff] }
 0x53c   :  { %v643_v49 = vld [vmem:[#allocation6 + $0xad8] sm:$0xff] }
 0x542   :  { %7775 = vmatmul.mubr.bf16.gmra.mrb[236].mxu0 %v19988_v18  ;;  %9187 = vmatmul.mubr.bf16.gmra.mrb[236].mxu1 %v19988_v18  ;;  %v15244_v18 = vcombine.high %v603_v16, %v607_v6 }
 0x543   :  { %7784 = vmatprep.mubr.bf16.mxu0 %v19989_v51  ;;  %9196 = vmatprep.mubr.bf16.mxu1 %v19989_v51  ;;  %v610_v51 = vld [vmem:[#allocation6 + $0x9d0] sm:$0xff] }
 0x54a   :  { %7785 = vmatmul.mubr.bf16.gmra.mrb[240].mxu0 %v19990_v40  ;;  %9197 = vmatmul.mubr.bf16.gmra.mrb[240].mxu1 %v19990_v40  ;;  %v614_v40 = vld [vmem:[#allocation6 + $0x9f0] sm:$0xff] }
 0x54b   :  { %7794 = vmatprep.mubr.bf16.mxu0 %v19991_v35  ;;  %9206 = vmatprep.mubr.bf16.mxu1 %v19991_v35  ;;  %v611_v35 = vld [vmem:[#allocation6 + $0x9d8] sm:$0xff]  ;;  %v15249_v4 = vcombine.low %v610_v51, %v614_v40 }
 0x552   :  { %7795 = vmatmul.mubr.bf16.gmra.mrb[244].mxu0 %v19992_v34  ;;  %9207 = vmatmul.mubr.bf16.gmra.mrb[244].mxu1 %v19992_v34  ;;  %v615_v34 = vld [vmem:[#allocation6 + $0x9f8] sm:$0xff] }
 0x553   :  { %7804 = vmatprep.mubr.bf16.mxu0 %v19993_v55  ;;  %9216 = vmatprep.mubr.bf16.mxu1 %v19993_v55  ;;  %v15241_v55 = vcombine.low %v602_v13, %v606_v17  ;;  %v15251_v50 = vcombine.low %v611_v35, %v615_v34  ;;  %v20014_v13 = vld [vmem:[#allocation56_spill] sm:$0xff]  ;;  %v650_v17 = vld [vmem:[#allocation6 + $0xb10] sm:$0xff] }
 0x55a   :  { %7805 = vmatmul.mubr.bf16.gmra.mrb[248].mxu0 %v19994_v23  ;;  %9217 = vmatmul.mubr.bf16.gmra.mrb[248].mxu1 %v19994_v23  ;;  %v15243_v23 = vcombine.low %v603_v16, %v607_v6  ;;  %v20015_v16 = vld [vmem:[#allocation57_spill] sm:$0xff] }
 0x55b   :  { %7814 = vmatprep.mubr.bf16.mxu0 %v19995_v59  ;;  %9226 = vmatprep.mubr.bf16.mxu1 %v19995_v59  ;;  %v15250_v59 = vcombine.high %v610_v51, %v614_v40  ;;  %v20016_v40 = vld [vmem:[#allocation58_spill] sm:$0xff] }
 0x562   :  { %7815 = vmatmul.mubr.bf16.gmra.mrb[252].mxu0 %v19996_v60  ;;  %9227 = vmatmul.mubr.bf16.gmra.mrb[252].mxu1 %v19996_v60  ;;  %v20004_v60 = vld [vmem:[#allocation46_spill] sm:$0xff] }
 0x563   :  { %7857 = vmatprep.mubr.bf16.mxu0 %v19997_v32  ;;  %9269 = vmatprep.mubr.bf16.mxu1 %v19997_v32  ;;  %v15252_v32 = vcombine.high %v611_v35, %v615_v34  ;;  %v20017_v35 = vld [vmem:[#allocation59_spill] sm:$0xff]  ;;  %v20018_v34 = vld [vmem:[#allocation60_spill] sm:$0xff] }
 0x56a   :  { %7858 = vmatmul.mubr.bf16.vlgmr.msra.gmra.mrb[128].mxu0 %v19998_v20  ;;  %9270 = vmatmul.mubr.bf16.vlgmr.msra.gmra.mrb[128].mxu1 %v19998_v20  ;;  %v15258_v20 = vcombine.high %v618_v29, %v622_v21 }
 0x56b   :  { %8179 = vmatpush1.bf16.msra.mxu0 %v15193_v42  ;;  %9591 = vmatpush1.bf16.msra.mxu1 %v15195_v61  ;;  %v15211_v42 = vcombine.low %v571_v63, %v575_v28  ;;  %v15220_v61 = vcombine.high %v579_v26, %v583_v41  ;;  %v626_v63 = vld [vmem:[#allocation6 + $0xa50] sm:$0xff] }
 0x56c   :  { %7867 = vmatprep.mubr.bf16.mxu0 %v19999_v56  ;;  %9279 = vmatprep.mubr.bf16.mxu1 %v19999_v56  ;;  %v630_v28 = vld [vmem:[#allocation6 + $0xa70] sm:$0xff]  ;;  %v631_v56 = vld [vmem:[#allocation6 + $0xa78] sm:$0xff] }
 0x56d   :  { %8180 = vmatprep.subr.bf16.mxu0 %v15202_v25  ;;  %9592 = vmatprep.subr.bf16.mxu1 %v15204_v52  ;;  %v623_v25 = vld [vmem:[#allocation6 + $0xa38] sm:$0xff]  ;;  %v634_v26 = vld [vmem:[#allocation6 + $0xa90] sm:$0xff] }
 0x56e   :  { %v15260_v52 = vcombine.high %v619_v19, %v623_v25  ;;  %v638_v41 = vld [vmem:[#allocation6 + $0xab0] sm:$0xff] }
 0x56f   :  { %8181 = vmatpush1.bf16.msra.mxu0 %v15201_v27  ;;  %9593 = vmatpush1.bf16.msra.mxu1 %v15203_v22  ;;  %v627_v27 = vld [vmem:[#allocation6 + $0xa58] sm:$0xff]  ;;  %v15257_v22 = vcombine.low %v618_v29, %v622_v21  ;;  %v15274_v47 = vcombine.high %v634_v26, %v638_v41 }
 0x570   :  { %8182 = vmatprep.subr.bf16.mxu0 %v15210_v5  ;;  %9594 = vmatprep.subr.bf16.mxu1 %v15212_v0  ;;  %v15259_v5 = vcombine.low %v619_v19, %v623_v25  ;;  %v15266_v0 = vcombine.high %v626_v63, %v630_v28  ;;  %v15268_v1 = vcombine.high %v627_v27, %v631_v56  ;;  %v659_v29 = vld [vmem:[#allocation6 + $0xb58] sm:$0xff]  ;;  %v20020_v25 = vld [vmem:[#allocation62_spill] sm:$0xff] }
 0x571   :  { %v663_v21 = vld [vmem:[#allocation6 + $0xb78] sm:$0xff] }
 0x572   :  { %7868 = vmatmul.mubr.bf16.gmra.mrb[132].mxu0 %v20000_v54  ;;  %9280 = vmatmul.mubr.bf16.gmra.mrb[132].mxu1 %v20000_v54  ;;  %v15265_v54 = vcombine.low %v626_v63, %v630_v28  ;;  %v15300_v19 = vcombine.high %v659_v29, %v663_v21  ;;  %v20023_v63 = vld [vmem:[#allocation65_spill] sm:$0xff] }
 0x573   :  { %7877 = vmatprep.mubr.bf16.mxu0 %v20001_v31  ;;  %9289 = vmatprep.mubr.bf16.mxu1 %v20001_v31  ;;  %v15273_v31 = vcombine.low %v634_v26, %v638_v41  ;;  %v20026_v26 = vld [vmem:[#allocation68_spill] sm:$0xff]  ;;  %v674_v41 = vld [vmem:[#allocation6 + $0xbd0] sm:$0xff] }
 0x574   :  { %8183 = vmatpush1.bf16.msra.mxu0 %v15209_v30  ;;  %9595 = vmatpush1.bf16.msra.mxu1 %v15211_v42  ;;  %v20007_v30 = vld [vmem:[#allocation49_spill] sm:$0xff]  ;;  %v635_v42 = vld [vmem:[#allocation6 + $0xa98] sm:$0xff] }
 0x575   :  { %8184 = vmatprep.subr.bf16.mxu0 %v15218_v3  ;;  %9596 = vmatprep.subr.bf16.mxu1 %v15220_v61  ;;  %v639_v3 = vld [vmem:[#allocation6 + $0xab8] sm:$0xff]  ;;  %v15267_v61 = vcombine.low %v627_v27, %v631_v56 }
 0x576   :  { %v15276_v36 = vcombine.high %v635_v42, %v639_v3  ;;  %v15275_v62 = vcombine.low %v635_v42, %v639_v3  ;;  %v667_v56 = vld [vmem:[#allocation6 + $0xb98] sm:$0xff]  ;;  %v20027_v42 = vld [vmem:[#allocation69_spill] sm:$0xff] }
 0x578   :  { %8185 = vmatpush1.bf16.msra.mxu0 %v15217_v53  ;;  %9597 = vmatpush1.bf16.msra.mxu1 %v15219_v8  ;;  %v20009_v53 = vld [vmem:[#allocation51_spill] sm:$0xff]  ;;  %v20010_v8 = vld [vmem:[#allocation52_spill] sm:$0xff] }
 0x579   :  { %8186 = vmatprep.subr.bf16.mxu0 %v15226_v43  ;;  %9598 = vmatprep.subr.bf16.mxu1 %v15228_v46  ;;  %v642_v43 = vld [vmem:[#allocation6 + $0xad0] sm:$0xff] }
 0x57a   :  { %7878 = vmatmul.mubr.bf16.gmra.mrb[136].mxu0 %v20002_v15  ;;  %9290 = vmatmul.mubr.bf16.gmra.mrb[136].mxu1 %v20002_v15  ;;  %v646_v46 = vld [vmem:[#allocation6 + $0xaf0] sm:$0xff] }
 0x57b   :  { %7887 = vmatprep.mubr.bf16.mxu0 %v20003_v38  ;;  %9299 = vmatprep.mubr.bf16.mxu1 %v20003_v38  ;;  %v15281_v48 = vcombine.low %v642_v43, %v646_v46  ;;  %v15282_v14 = vcombine.high %v642_v43, %v646_v46  ;;  %v20012_v15 = vld [vmem:[#allocation54_spill] sm:$0xff]  ;;  %v20031_v46 = vld [vmem:[#allocation73_spill] sm:$0xff] }
 0x57c   :  { %8187 = vmatpush1.bf16.msra.mxu0 %v15225_v11  ;;  %9599 = vmatpush1.bf16.msra.mxu1 %v15227_v58  ;;  %v647_v11 = vld [vmem:[#allocation6 + $0xaf8] sm:$0xff]  ;;  %v654_v38 = vld [vmem:[#allocation6 + $0xb30] sm:$0xff] }
 0x57d   :  { %8188 = vmatprep.subr.bf16.mxu0 %v15234_v37  ;;  %9600 = vmatprep.subr.bf16.mxu1 %v15236_v12  ;;  %v15283_v58 = vcombine.low %v643_v49, %v647_v11  ;;  %v15284_v37 = vcombine.high %v643_v49, %v647_v11  ;;  %v20013_v12 = vld [vmem:[#allocation55_spill] sm:$0xff]  ;;  %v15289_v6 = vcombine.low %v650_v17, %v654_v38  ;;  %v18959_v43 = vld [vmem:[#allocation6 + $0xc30] sm:$0xff] }
 0x57e   :  { %v18969_v49 = vld [vmem:[#allocation6 + $0xc38] sm:$0xff] }
 0x580   :  { %8189 = vmatpush1.bf16.msra.mxu0 %v15233_v7  ;;  %9601 = vmatpush1.bf16.msra.mxu1 %v15235_v57  ;;  %v15290_v7 = vcombine.high %v650_v17, %v654_v38  ;;  %v651_v57 = vld [vmem:[#allocation6 + $0xb18] sm:$0xff]  ;;  %v20036_v17 = vld [vmem:[#allocation78_spill] sm:$0xff] }
 0x581   :  { %8190 = vmatprep.subr.bf16.mxu0 %v15242_v39  ;;  %9602 = vmatprep.subr.bf16.mxu1 %v15244_v18  ;;  %v655_v39 = vld [vmem:[#allocation6 + $0xb38] sm:$0xff] }
 0x582   :  { %7888 = vmatmul.mubr.bf16.gmra.mrb[140].mxu0 %v20004_v60  ;;  %9300 = vmatmul.mubr.bf16.gmra.mrb[140].mxu1 %v20004_v60  ;;  %v15291_v18 = vcombine.low %v651_v57, %v655_v39  ;;  %v15292_v51 = vcombine.high %v651_v57, %v655_v39  ;;  %v20037_v38 = vld [vmem:[#allocation79_spill] sm:$0xff]  ;;  %v20042_v39 = vld [vmem:[#allocation84_spill] sm:$0xff] }
 0x583   :  { %7897 = vmatprep.mubr.bf16.mxu0 %v20005_v24  ;;  %9309 = vmatprep.mubr.bf16.mxu1 %v20005_v24  ;;  %v15299_v24 = vcombine.low %v659_v29, %v663_v21  ;;  %v20041_v57 = vld [vmem:[#allocation83_spill] sm:$0xff]  ;;  %v20054_v21 = vld [vmem:[#allocation96_spill] sm:$0xff] }
 0x584   :  { %8191 = vmatpush1.bf16.msra.mxu0 %v15241_v55  ;;  %9603 = vmatpush1.bf16.msra.mxu1 %v15243_v23  ;;  %v658_v55 = vld [vmem:[#allocation6 + $0xb50] sm:$0xff]  ;;  %v20053_v29 = vld [vmem:[#allocation95_spill] sm:$0xff] }
 0x585   :  { %8192 = vmatprep.subr.bf16.mxu0 %v15250_v59  ;;  %9604 = vmatprep.subr.bf16.mxu1 %v15252_v32  ;;  %v662_v23 = vld [vmem:[#allocation6 + $0xb70] sm:$0xff]  ;;  %v20019_v59 = vld [vmem:[#allocation61_spill] sm:$0xff] }
 0x586   :  { %v15297_v60 = vcombine.low %v658_v55, %v662_v23  ;;  %v15298_v32 = vcombine.high %v658_v55, %v662_v23  ;;  %v20048_v55 = vld [vmem:[#allocation90_spill] sm:$0xff]  ;;  %v20049_v23 = vld [vmem:[#allocation91_spill] sm:$0xff] }
 0x588   :  { %8193 = vmatpush1.bf16.msra.mxu0 %v15249_v4  ;;  %9605 = vmatpush1.bf16.msra.mxu1 %v15251_v50  ;;  %v20021_v4 = vld [vmem:[#allocation63_spill] sm:$0xff]  ;;  %v20022_v50 = vld [vmem:[#allocation64_spill] sm:$0xff] }
 0x589   :  { %8194 = vmatprep.subr.bf16.mxu0 %v15258_v20  ;;  %9606 = vmatprep.subr.bf16.mxu1 %v15260_v52  ;;  %v666_v20 = vld [vmem:[#allocation6 + $0xb90] sm:$0xff] }
 0x58a   :  { %7898 = vmatmul.mubr.bf16.gmra.mrb[144].mxu0 %v20006_v45  ;;  %9310 = vmatmul.mubr.bf16.gmra.mrb[144].mxu1 %v20006_v45  ;;  %v670_v52 = vld [vmem:[#allocation6 + $0xbb0] sm:$0xff] }
 0x58b   :  { %7907 = vmatprep.mubr.bf16.mxu0 %v20007_v30  ;;  %9319 = vmatprep.mubr.bf16.mxu1 %v20007_v30  ;;  %v15305_v28 = vcombine.low %v666_v20, %v670_v52  ;;  %v15306_v27 = vcombine.high %v666_v20, %v670_v52  ;;  %v20024_v45 = vld [vmem:[#allocation66_spill] sm:$0xff]  ;;  %v20061_v52 = vld [vmem:[#allocation103_spill] sm:$0xff] }
 0x58c   :  { %8195 = vmatpush1.bf16.msra.mxu0 %v15257_v22  ;;  %9607 = vmatpush1.bf16.msra.mxu1 %v15259_v5  ;;  %v671_v22 = vld [vmem:[#allocation6 + $0xbb8] sm:$0xff]  ;;  %v678_v30 = vld [vmem:[#allocation6 + $0xbf0] sm:$0xff] }
 0x58d   :  { %8196 = vmatprep.subr.bf16.mxu0 %v15266_v0  ;;  %9608 = vmatprep.subr.bf16.mxu1 %v15268_v1  ;;  %v15307_v5 = vcombine.low %v667_v56, %v671_v22  ;;  %v15308_v0 = vcombine.high %v667_v56, %v671_v22  ;;  %v20025_v1 = vld [vmem:[#allocation67_spill] sm:$0xff]  ;;  %v15313_v3 = vcombine.low %v674_v41, %v678_v30  ;;  %v20060_v20 = vld [vmem:[#allocation102_spill] sm:$0xff] }
 0x58e   :  { %v695_v56 = vld [vmem:[#allocation6 + $0xc78] sm:$0xff] }
 0x590   :  { %8197 = vmatpush1.bf16.msra.mxu0 %v15265_v54  ;;  %9609 = vmatpush1.bf16.msra.mxu1 %v15267_v61  ;;  %v15314_v54 = vcombine.high %v674_v41, %v678_v30  ;;  %v675_v61 = vld [vmem:[#allocation6 + $0xbd8] sm:$0xff] }
 0x591   :  { %8198 = vmatprep.subr.bf16.mxu0 %v15274_v47  ;;  %9610 = vmatprep.subr.bf16.mxu1 %v15276_v36  ;;  %v679_v47 = vld [vmem:[#allocation6 + $0xbf8] sm:$0xff] }
 0x592   :  { %7908 = vmatmul.mubr.bf16.gmra.mrb[148].mxu0 %v20008_v33  ;;  %9320 = vmatmul.mubr.bf16.gmra.mrb[148].mxu1 %v20008_v33  ;;  %v15315_v36 = vcombine.low %v675_v61, %v679_v47  ;;  %v20029_v33 = vld [vmem:[#allocation71_spill] sm:$0xff] }
 0x593   :  { %7917 = vmatprep.mubr.bf16.mxu0 %v20009_v53  ;;  %9329 = vmatprep.mubr.bf16.mxu1 %v20009_v53  ;;  %v20030_v53 = vld [vmem:[#allocation72_spill] sm:$0xff]  ;;  %v703_v41 = vld [vmem:[#allocation6 + $0xcb8] sm:$0xff] }
 0x594   :  { %8199 = vmatpush1.bf16.msra.mxu0 %v15273_v31  ;;  %9611 = vmatpush1.bf16.msra.mxu1 %v15275_v62  ;;  %v15316_v31 = vcombine.high %v675_v61, %v679_v47  ;;  %v20028_v62 = vld [vmem:[#allocation70_spill] sm:$0xff] }
 0x595   :  { %8200 = vmatprep.subr.bf16.mxu0 %v15282_v14  ;;  %9612 = vmatprep.subr.bf16.mxu1 %v15284_v37  ;;  %v18967_v14 = vld [vmem:[#allocation6 + $0xc18] sm:$0xff]  ;;  %v20032_v37 = vld [vmem:[#allocation74_spill] sm:$0xff] }
 0x596   :  { %v15323_v11 = vcombine.low %v18967_v14, %v18969_v49  ;;  %v706_v47 = vld [vmem:[#allocation6 + $0xcd0] sm:$0xff] }
 0x598   :  { %8201 = vmatpush1.bf16.msra.mxu0 %v15281_v48  ;;  %9613 = vmatpush1.bf16.msra.mxu1 %v15283_v58  ;;  %v15324_v58 = vcombine.high %v18967_v14, %v18969_v49  ;;  %v20065_v14 = vld [vmem:[#allocation107_spill] sm:$0xff] }
 0x599   :  { %8202 = vmatprep.subr.bf16.mxu0 %v15290_v7  ;;  %9614 = vmatprep.subr.bf16.mxu1 %v15292_v51  ;;  %v20040_v7 = vld [vmem:[#allocation82_spill] sm:$0xff]  ;;  %v715_v49 = vld [vmem:[#allocation6 + $0xd18] sm:$0xff] }
 0x59a   :  { %7918 = vmatmul.mubr.bf16.gmra.mrb[152].mxu0 %v20010_v8  ;;  %9330 = vmatmul.mubr.bf16.gmra.mrb[152].mxu1 %v20010_v8  ;;  %v18957_v8 = vld [vmem:[#allocation6 + $0xc10] sm:$0xff] }
 0x59b   :  { %7927 = vmatprep.mubr.bf16.mxu0 %v20011_v10  ;;  %9339 = vmatprep.mubr.bf16.mxu1 %v20011_v10  ;;  %v15321_v10 = vcombine.low %v18957_v8, %v18959_v43  ;;  %v15322_v48 = vcombine.high %v18957_v8, %v18959_v43  ;;  %v20044_v51 = vld [vmem:[#allocation86_spill] sm:$0xff] }
 0x59c   :  { %8203 = vmatpush1.bf16.msra.mxu0 %v15289_v6  ;;  %9615 = vmatpush1.bf16.msra.mxu1 %v15291_v18  ;;  %v20039_v6 = vld [vmem:[#allocation81_spill] sm:$0xff]  ;;  %v20064_v43 = vld [vmem:[#allocation106_spill] sm:$0xff] }
 0x59d   :  { %8204 = vmatprep.subr.bf16.mxu0 %v15298_v32  ;;  %9616 = vmatprep.subr.bf16.mxu1 %v15300_v19  ;;  %v20043_v18 = vld [vmem:[#allocation85_spill] sm:$0xff]  ;;  %v20052_v32 = vld [vmem:[#allocation94_spill] sm:$0xff] }
 0x59e   :  { %v20056_v19 = vld [vmem:[#allocation98_spill] sm:$0xff] }
 0x5a0   :  { %8205 = vmatpush1.bf16.msra.mxu0 %v15297_v60  ;;  %9617 = vmatpush1.bf16.msra.mxu1 %v15299_v24  ;;  %v20051_v60 = vld [vmem:[#allocation93_spill] sm:$0xff] }
 0x5a1   :  { %8206 = vmatprep.subr.bf16.mxu0 %v15306_v27  ;;  %9618 = vmatprep.subr.bf16.mxu1 %v15308_v0  ;;  %v20055_v24 = vld [vmem:[#allocation97_spill] sm:$0xff]  ;;  %v691_v27 = vld [vmem:[#allocation6 + $0xc58] sm:$0xff]  ;;  %v702_v0 = vld [vmem:[#allocation6 + $0xcb0] sm:$0xff] }
 0x5a2   :  { %7928 = vmatmul.mubr.bf16.gmra.mrb[156].mxu0 %v20012_v15  ;;  %9340 = vmatmul.mubr.bf16.gmra.mrb[156].mxu1 %v20012_v15  ;;  %v20033_v15 = vld [vmem:[#allocation75_spill] sm:$0xff] }
 0x5a3   :  { %7937 = vmatprep.mubr.bf16.mxu0 %v20013_v12  ;;  %9349 = vmatprep.mubr.bf16.mxu1 %v20013_v12  ;;  %v20034_v12 = vld [vmem:[#allocation76_spill] sm:$0xff] }
 0x5a4   :  { %8207 = vmatpush1.bf16.msra.mxu0 %v15305_v28  ;;  %9619 = vmatpush1.bf16.msra.mxu1 %v15307_v5  ;;  %v694_v28 = vld [vmem:[#allocation6 + $0xc70] sm:$0xff] }
 0x5a5   :  { %8208 = vmatprep.subr.bf16.mxu0 %v15314_v54  ;;  %9620 = vmatprep.subr.bf16.mxu1 %v15316_v31  ;;  %v698_v5 = vld [vmem:[#allocation6 + $0xc90] sm:$0xff]  ;;  %v707_v31 = vld [vmem:[#allocation6 + $0xcd8] sm:$0xff] }
 0x5a6   :  { %v15338_v54 = vcombine.high %v698_v5, %v702_v0 }
 0x5a8   :  { %8209 = vmatpush1.bf16.msra.mxu0 %v15313_v3  ;;  %9621 = vmatpush1.bf16.msra.mxu1 %v15315_v36  ;;  %v15331_v3 = vcombine.low %v691_v27, %v695_v56  ;;  %v710_v36 = vld [vmem:[#allocation6 + $0xcf0] sm:$0xff] }
 0x5a9   :  { %8531 = vmatprep.subr.bf16.mxu0 %v15322_v48  ;;  %9943 = vmatprep.subr.bf16.mxu1 %v15324_v58  ;;  %v15346_v8 = vcombine.high %v706_v47, %v710_v36  ;;  %v718_v48 = vld [vmem:[#allocation6 + $0xd30] sm:$0xff]  ;;  %v15345_v58 = vcombine.low %v706_v47, %v710_v36  ;;  %v20070_v47 = vld [vmem:[#allocation112_spill] sm:$0xff] }
 0x5aa   :  { %7938 = vmatmul.mubr.bf16.gmra.mrb[160].mxu0 %v20014_v13  ;;  %9350 = vmatmul.mubr.bf16.gmra.mrb[160].mxu1 %v20014_v13  ;;  %v20035_v13 = vld [vmem:[#allocation77_spill] sm:$0xff] }
 0x5ab   :  { %7947 = vmatprep.mubr.bf16.mxu0 %v20015_v16  ;;  %9359 = vmatprep.mubr.bf16.mxu1 %v20015_v16  ;;  %v20038_v16 = vld [vmem:[#allocation80_spill] sm:$0xff] }
 0x5b2   :  { %7948 = vmatmul.mubr.bf16.gmra.mrb[164].mxu0 %v20016_v40  ;;  %9360 = vmatmul.mubr.bf16.gmra.mrb[164].mxu1 %v20016_v40  ;;  %v20045_v40 = vld [vmem:[#allocation87_spill] sm:$0xff] }
 0x5b3   :  { %7957 = vmatprep.mubr.bf16.mxu0 %v20017_v35  ;;  %9369 = vmatprep.mubr.bf16.mxu1 %v20017_v35  ;;  %v20046_v35 = vld [vmem:[#allocation88_spill] sm:$0xff] }
 0x5ba   :  { %7958 = vmatmul.mubr.bf16.gmra.mrb[168].mxu0 %v20018_v34  ;;  %9370 = vmatmul.mubr.bf16.gmra.mrb[168].mxu1 %v20018_v34  ;;  %v20047_v34 = vld [vmem:[#allocation89_spill] sm:$0xff] }
 0x5bb   :  { %7967 = vmatprep.mubr.bf16.mxu0 %v20019_v59  ;;  %9379 = vmatprep.mubr.bf16.mxu1 %v20019_v59  ;;  %v20050_v59 = vld [vmem:[#allocation92_spill] sm:$0xff] }
 0x5c2   :  { %7968 = vmatmul.mubr.bf16.gmra.mrb[172].mxu0 %v20020_v25  ;;  %9380 = vmatmul.mubr.bf16.gmra.mrb[172].mxu1 %v20020_v25  ;;  %v20057_v25 = vld [vmem:[#allocation99_spill] sm:$0xff] }
 0x5c3   :  { %7977 = vmatprep.mubr.bf16.mxu0 %v20021_v4  ;;  %9389 = vmatprep.mubr.bf16.mxu1 %v20021_v4  ;;  %v20058_v4 = vld [vmem:[#allocation100_spill] sm:$0xff] }
 0x5ca   :  { %7978 = vmatmul.mubr.bf16.gmra.mrb[176].mxu0 %v20022_v50  ;;  %9390 = vmatmul.mubr.bf16.gmra.mrb[176].mxu1 %v20022_v50  ;;  %v20059_v50 = vld [vmem:[#allocation101_spill] sm:$0xff] }
 0x5cb   :  { %7987 = vmatprep.mubr.bf16.mxu0 %v20023_v63  ;;  %9399 = vmatprep.mubr.bf16.mxu1 %v20023_v63  ;;  %v690_v63 = vld [vmem:[#allocation6 + $0xc50] sm:$0xff] }
 0x5cc   :  { %v15330_v22 = vcombine.high %v690_v63, %v694_v28  ;;  %v15329_v30 = vcombine.low %v690_v63, %v694_v28  ;;  %v746_v63 = vld [vmem:[#allocation6 + $0xe10] sm:$0xff] }
 0x5cd   :  { %v750_v28 = vld [vmem:[#allocation6 + $0xe30] sm:$0xff] }
 0x5d2   :  { %7988 = vmatmul.mubr.bf16.gmra.mrb[180].mxu0 %v20024_v45  ;;  %9400 = vmatmul.mubr.bf16.gmra.mrb[180].mxu1 %v20024_v45  ;;  %v20062_v45 = vld [vmem:[#allocation104_spill] sm:$0xff] }
 0x5d3   :  { %7997 = vmatprep.mubr.bf16.mxu0 %v20025_v1  ;;  %9409 = vmatprep.mubr.bf16.mxu1 %v20025_v1  ;;  %v15332_v1 = vcombine.high %v691_v27, %v695_v56  ;;  %v20069_v27 = vld [vmem:[#allocation111_spill] sm:$0xff] }
 0x5d4   :  { %v747_v56 = vld [vmem:[#allocation6 + $0xe18] sm:$0xff] }
 0x5da   :  { %7998 = vmatmul.mubr.bf16.gmra.mrb[184].mxu0 %v20026_v26  ;;  %9410 = vmatmul.mubr.bf16.gmra.mrb[184].mxu1 %v20026_v26  ;;  %v699_v26 = vld [vmem:[#allocation6 + $0xc98] sm:$0xff] }
 0x5db   :  { %8007 = vmatprep.mubr.bf16.mxu0 %v20027_v42  ;;  %9419 = vmatprep.mubr.bf16.mxu1 %v20027_v42  ;;  %v20063_v42 = vld [vmem:[#allocation105_spill] sm:$0xff]  ;;  %v15340_v61 = vcombine.high %v699_v26, %v703_v41 }
 0x5e2   :  { %8008 = vmatmul.mubr.bf16.gmra.mrb[188].mxu0 %v20028_v62  ;;  %9420 = vmatmul.mubr.bf16.gmra.mrb[188].mxu1 %v20028_v62  ;;  %v711_v62 = vld [vmem:[#allocation6 + $0xcf8] sm:$0xff] }
 0x5e3   :  { %8017 = vmatprep.mubr.bf16.mxu0 %v20029_v33  ;;  %9429 = vmatprep.mubr.bf16.mxu1 %v20029_v33  ;;  %v15337_v33 = vcombine.low %v698_v5, %v702_v0 }
 0x5ea   :  { %8018 = vmatmul.mubr.bf16.gmra.mrb[192].mxu0 %v20030_v53  ;;  %9430 = vmatmul.mubr.bf16.gmra.mrb[192].mxu1 %v20030_v53  ;;  %v15339_v53 = vcombine.low %v699_v26, %v703_v41  ;;  %v754_v26 = vld [vmem:[#allocation6 + $0xe50] sm:$0xff] }
 0x5eb   :  { %8027 = vmatprep.mubr.bf16.mxu0 %v20031_v46  ;;  %9439 = vmatprep.mubr.bf16.mxu1 %v20031_v46  ;;  %v15348_v46 = vcombine.high %v707_v31, %v711_v62  ;;  %v758_v41 = vld [vmem:[#allocation6 + $0xe70] sm:$0xff] }
 0x5f2   :  { %8028 = vmatmul.mubr.bf16.gmra.mrb[196].mxu0 %v20032_v37  ;;  %9440 = vmatmul.mubr.bf16.gmra.mrb[196].mxu1 %v20032_v37  ;;  %v15347_v37 = vcombine.low %v707_v31, %v711_v62  ;;  %v762_v31 = vld [vmem:[#allocation6 + $0xe90] sm:$0xff] }
 0x5f3   :  { %8037 = vmatprep.mubr.bf16.mxu0 %v20033_v15  ;;  %9449 = vmatprep.mubr.bf16.mxu1 %v20033_v15  ;;  %v766_v62 = vld [vmem:[#allocation6 + $0xeb0] sm:$0xff] }
 0x5fa   :  { %8038 = vmatmul.mubr.bf16.gmra.mrb[200].mxu0 %v20034_v12  ;;  %9450 = vmatmul.mubr.bf16.gmra.mrb[200].mxu1 %v20034_v12 }
 0x5fb   :  { %8047 = vmatprep.mubr.bf16.mxu0 %v20035_v13  ;;  %9459 = vmatprep.mubr.bf16.mxu1 %v20035_v13  ;;  %v722_v13 = vld [vmem:[#allocation6 + $0xd50] sm:$0xff] }
 0x602   :  { %8048 = vmatmul.mubr.bf16.gmra.mrb[204].mxu0 %v20036_v17  ;;  %9460 = vmatmul.mubr.bf16.gmra.mrb[204].mxu1 %v20036_v17  ;;  %v726_v17 = vld [vmem:[#allocation6 + $0xd70] sm:$0xff] }
 0x603   :  { %8057 = vmatprep.mubr.bf16.mxu0 %v20037_v38  ;;  %9469 = vmatprep.mubr.bf16.mxu1 %v20037_v38  ;;  %v723_v38 = vld [vmem:[#allocation6 + $0xd58] sm:$0xff] }
 0x60a   :  { %8058 = vmatmul.mubr.bf16.gmra.mrb[208].mxu0 %v20038_v16  ;;  %9470 = vmatmul.mubr.bf16.gmra.mrb[208].mxu1 %v20038_v16  ;;  %v727_v16 = vld [vmem:[#allocation6 + $0xd78] sm:$0xff] }
 0x60b   :  { %8067 = vmatprep.mubr.bf16.mxu0 %v20039_v6  ;;  %9479 = vmatprep.mubr.bf16.mxu1 %v20039_v6 }
 0x612   :  { %8068 = vmatmul.mubr.bf16.gmra.mrb[212].mxu0 %v20040_v7  ;;  %9480 = vmatmul.mubr.bf16.gmra.mrb[212].mxu1 %v20040_v7 }
 0x613   :  { %8077 = vmatprep.mubr.bf16.mxu0 %v20041_v57  ;;  %9489 = vmatprep.mubr.bf16.mxu1 %v20041_v57  ;;  %v15362_v57 = vcombine.high %v722_v13, %v726_v17 }
 0x61a   :  { %8078 = vmatmul.mubr.bf16.gmra.mrb[216].mxu0 %v20042_v39  ;;  %9490 = vmatmul.mubr.bf16.gmra.mrb[216].mxu1 %v20042_v39  ;;  %v20066_v39 = vld [vmem:[#allocation108_spill] sm:$0xff] }
 0x61b   :  { %8087 = vmatprep.mubr.bf16.mxu0 %v20043_v18  ;;  %9499 = vmatprep.mubr.bf16.mxu1 %v20043_v18  ;;  %v15364_v18 = vcombine.high %v723_v38, %v727_v16 }
 0x622   :  { %8088 = vmatmul.mubr.bf16.gmra.mrb[220].mxu0 %v20044_v51  ;;  %9500 = vmatmul.mubr.bf16.gmra.mrb[220].mxu1 %v20044_v51  ;;  %v730_v51 = vld [vmem:[#allocation6 + $0xd90] sm:$0xff] }
 0x623   :  { %8097 = vmatprep.mubr.bf16.mxu0 %v20045_v40  ;;  %9509 = vmatprep.mubr.bf16.mxu1 %v20045_v40  ;;  %v734_v40 = vld [vmem:[#allocation6 + $0xdb0] sm:$0xff] }
 0x62a   :  { %8098 = vmatmul.mubr.bf16.gmra.mrb[224].mxu0 %v20046_v35  ;;  %9510 = vmatmul.mubr.bf16.gmra.mrb[224].mxu1 %v20046_v35  ;;  %v20067_v35 = vld [vmem:[#allocation109_spill] sm:$0xff] }
 0x62b   :  { %8107 = vmatprep.mubr.bf16.mxu0 %v20047_v34  ;;  %9519 = vmatprep.mubr.bf16.mxu1 %v20047_v34  ;;  %v731_v34 = vld [vmem:[#allocation6 + $0xd98] sm:$0xff] }
 0x632   :  { %8108 = vmatmul.mubr.bf16.gmra.mrb[228].mxu0 %v20048_v55  ;;  %9520 = vmatmul.mubr.bf16.gmra.mrb[228].mxu1 %v20048_v55  ;;  %v735_v55 = vld [vmem:[#allocation6 + $0xdb8] sm:$0xff] }
 0x633   :  { %8117 = vmatprep.mubr.bf16.mxu0 %v20049_v23  ;;  %9529 = vmatprep.mubr.bf16.mxu1 %v20049_v23  ;;  %v15361_v23 = vcombine.low %v722_v13, %v726_v17  ;;  %v20075_v13 = vld [vmem:[#allocation117_spill] sm:$0xff] }
 0x63a   :  { %8118 = vmatmul.mubr.bf16.gmra.mrb[232].mxu0 %v20050_v59  ;;  %9530 = vmatmul.mubr.bf16.gmra.mrb[232].mxu1 %v20050_v59  ;;  %v15363_v59 = vcombine.low %v723_v38, %v727_v16  ;;  %v771_v16 = vld [vmem:[#allocation6 + $0xed8] sm:$0xff] }
 0x63b   :  { %8127 = vmatprep.mubr.bf16.mxu0 %v20051_v60  ;;  %9539 = vmatprep.mubr.bf16.mxu1 %v20051_v60  ;;  %v15370_v60 = vcombine.high %v730_v51, %v734_v40 }
 0x642   :  { %8128 = vmatmul.mubr.bf16.gmra.mrb[236].mxu0 %v20052_v32  ;;  %9540 = vmatmul.mubr.bf16.gmra.mrb[236].mxu1 %v20052_v32  ;;  %v15372_v32 = vcombine.high %v731_v34, %v735_v55 }
 0x643   :  { %8137 = vmatprep.mubr.bf16.mxu0 %v20053_v29  ;;  %9549 = vmatprep.mubr.bf16.mxu1 %v20053_v29  ;;  %v738_v29 = vld [vmem:[#allocation6 + $0xdd0] sm:$0xff] }
 0x64a   :  { %8138 = vmatmul.mubr.bf16.gmra.mrb[240].mxu0 %v20054_v21  ;;  %9550 = vmatmul.mubr.bf16.gmra.mrb[240].mxu1 %v20054_v21  ;;  %v742_v21 = vld [vmem:[#allocation6 + $0xdf0] sm:$0xff] }
 0x64b   :  { %8147 = vmatprep.mubr.bf16.mxu0 %v20055_v24  ;;  %9559 = vmatprep.mubr.bf16.mxu1 %v20055_v24  ;;  %v739_v24 = vld [vmem:[#allocation6 + $0xdd8] sm:$0xff]  ;;  %v15377_v5 = vcombine.low %v738_v29, %v742_v21 }
 0x652   :  { %8148 = vmatmul.mubr.bf16.gmra.mrb[244].mxu0 %v20056_v19  ;;  %9560 = vmatmul.mubr.bf16.gmra.mrb[244].mxu1 %v20056_v19  ;;  %v743_v19 = vld [vmem:[#allocation6 + $0xdf8] sm:$0xff] }
 0x653   :  { %8157 = vmatprep.mubr.bf16.mxu0 %v20057_v25  ;;  %9569 = vmatprep.mubr.bf16.mxu1 %v20057_v25  ;;  %v15369_v25 = vcombine.low %v730_v51, %v734_v40  ;;  %v15379_v0 = vcombine.low %v739_v24, %v743_v19  ;;  %v20078_v51 = vld [vmem:[#allocation120_spill] sm:$0xff]  ;;  %v778_v40 = vld [vmem:[#allocation6 + $0xf10] sm:$0xff] }
 0x65a   :  { %8158 = vmatmul.mubr.bf16.gmra.mrb[248].mxu0 %v20058_v4  ;;  %9570 = vmatmul.mubr.bf16.gmra.mrb[248].mxu1 %v20058_v4  ;;  %v15371_v4 = vcombine.low %v731_v34, %v735_v55  ;;  %v20079_v34 = vld [vmem:[#allocation121_spill] sm:$0xff] }
 0x65b   :  { %8167 = vmatprep.mubr.bf16.mxu0 %v20059_v50  ;;  %9579 = vmatprep.mubr.bf16.mxu1 %v20059_v50  ;;  %v15378_v50 = vcombine.high %v738_v29, %v742_v21  ;;  %v20080_v21 = vld [vmem:[#allocation122_spill] sm:$0xff] }
 0x662   :  { %8168 = vmatmul.mubr.bf16.gmra.mrb[252].mxu0 %v20060_v20  ;;  %9580 = vmatmul.mubr.bf16.gmra.mrb[252].mxu1 %v20060_v20  ;;  %v20068_v20 = vld [vmem:[#allocation110_spill] sm:$0xff] }
 0x663   :  { %8210 = vmatprep.mubr.bf16.mxu0 %v20061_v52  ;;  %9622 = vmatprep.mubr.bf16.mxu1 %v20061_v52  ;;  %v15380_v52 = vcombine.high %v739_v24, %v743_v19  ;;  %v20081_v24 = vld [vmem:[#allocation123_spill] sm:$0xff]  ;;  %v20082_v19 = vld [vmem:[#allocation124_spill] sm:$0xff] }
 0x66a   :  { %8211 = vmatmul.mubr.bf16.vlgmr.msra.gmra.mrb[128].mxu0 %v20062_v45  ;;  %9623 = vmatmul.mubr.bf16.vlgmr.msra.gmra.mrb[128].mxu1 %v20062_v45  ;;  %v15386_v45 = vcombine.high %v746_v63, %v750_v28 }
 0x66b   :  { %8532 = vmatpush1.bf16.msra.mxu0 %v15321_v10  ;;  %9944 = vmatpush1.bf16.msra.mxu1 %v15323_v11  ;;  %v714_v10 = vld [vmem:[#allocation6 + $0xd10] sm:$0xff]  ;;  %v719_v11 = vld [vmem:[#allocation6 + $0xd38] sm:$0xff] }
 0x66c   :  { %8220 = vmatprep.mubr.bf16.mxu0 %v20063_v42  ;;  %9632 = vmatprep.mubr.bf16.mxu1 %v20063_v42  ;;  %v15354_v15 = vcombine.high %v714_v10, %v718_v48  ;;  %v15356_v12 = vcombine.high %v715_v49, %v719_v11  ;;  %v15353_v6 = vcombine.low %v714_v10, %v718_v48  ;;  %v759_v42 = vld [vmem:[#allocation6 + $0xe78] sm:$0xff] }
 0x66d   :  { %8533 = vmatprep.subr.bf16.mxu0 %v15330_v22  ;;  %9945 = vmatprep.subr.bf16.mxu1 %v15332_v1  ;;  %v15355_v7 = vcombine.low %v715_v49, %v719_v11  ;;  %v751_v22 = vld [vmem:[#allocation6 + $0xe38] sm:$0xff]  ;;  %v15402_v10 = vcombine.high %v762_v31, %v766_v62  ;;  %v20072_v11 = vld [vmem:[#allocation114_spill] sm:$0xff] }
 0x66e   :  { %v15388_v1 = vcombine.high %v747_v56, %v751_v22 }
 0x66f   :  { %8534 = vmatpush1.bf16.msra.mxu0 %v15329_v30  ;;  %9946 = vmatpush1.bf16.msra.mxu1 %v15331_v3  ;;  %v755_v30 = vld [vmem:[#allocation6 + $0xe58] sm:$0xff]  ;;  %v15385_v3 = vcombine.low %v746_v63, %v750_v28 }
 0x670   :  { %8535 = vmatprep.subr.bf16.mxu0 %v15338_v54  ;;  %9947 = vmatprep.subr.bf16.mxu1 %v15340_v61  ;;  %v15387_v54 = vcombine.low %v747_v56, %v751_v22  ;;  %v15394_v61 = vcombine.high %v754_v26, %v758_v41  ;;  %v15396_v36 = vcombine.high %v755_v30, %v759_v42  ;;  %v787_v63 = vld [vmem:[#allocation6 + $0xf58] sm:$0xff]  ;;  %v20084_v22 = vld [vmem:[#allocation126_spill] sm:$0xff] }
 0x671   :  { %v791_v28 = vld [vmem:[#allocation6 + $0xf78] sm:$0xff] }
 0x672   :  { %8221 = vmatmul.mubr.bf16.gmra.mrb[132].mxu0 %v20064_v43  ;;  %9633 = vmatmul.mubr.bf16.gmra.mrb[132].mxu1 %v20064_v43  ;;  %v15393_v43 = vcombine.low %v754_v26, %v758_v41  ;;  %v15428_v56 = vcombine.high %v787_v63, %v791_v28  ;;  %v20087_v26 = vld [vmem:[#allocation129_spill] sm:$0xff] }
 0x673   :  { %8230 = vmatprep.mubr.bf16.mxu0 %v20065_v14  ;;  %9642 = vmatprep.mubr.bf16.mxu1 %v20065_v14  ;;  %v15401_v14 = vcombine.low %v762_v31, %v766_v62  ;;  %v20090_v31 = vld [vmem:[#allocation132_spill] sm:$0xff]  ;;  %v802_v62 = vld [vmem:[#allocation6 + $0xfd0] sm:$0xff] }
 0x674   :  { %8536 = vmatpush1.bf16.msra.mxu0 %v15337_v33  ;;  %9948 = vmatpush1.bf16.msra.mxu1 %v15339_v53  ;;  %v20071_v33 = vld [vmem:[#allocation113_spill] sm:$0xff]  ;;  %v763_v53 = vld [vmem:[#allocation6 + $0xe98] sm:$0xff] }
 0x675   :  { %8537 = vmatprep.subr.bf16.mxu0 %v15346_v8  ;;  %9949 = vmatprep.subr.bf16.mxu1 %v15348_v46  ;;  %v767_v8 = vld [vmem:[#allocation6 + $0xeb8] sm:$0xff]  ;;  %v15395_v46 = vcombine.low %v755_v30, %v759_v42 }
 0x676   :  { %v15404_v48 = vcombine.high %v763_v53, %v767_v8  ;;  %v15403_v49 = vcombine.low %v763_v53, %v767_v8  ;;  %v795_v42 = vld [vmem:[#allocation6 + $0xf98] sm:$0xff]  ;;  %v20091_v53 = vld [vmem:[#allocation133_spill] sm:$0xff] }
 0x678   :  { %8538 = vmatpush1.bf16.msra.mxu0 %v15345_v58  ;;  %9950 = vmatpush1.bf16.msra.mxu1 %v15347_v37  ;;  %v20073_v58 = vld [vmem:[#allocation115_spill] sm:$0xff]  ;;  %v20074_v37 = vld [vmem:[#allocation116_spill] sm:$0xff] }
 0x679   :  { %8539 = vmatprep.subr.bf16.mxu0 %v15354_v15  ;;  %9951 = vmatprep.subr.bf16.mxu1 %v15356_v12  ;;  %v770_v15 = vld [vmem:[#allocation6 + $0xed0] sm:$0xff] }
 0x67a   :  { %8231 = vmatmul.mubr.bf16.gmra.mrb[136].mxu0 %v20066_v39  ;;  %9643 = vmatmul.mubr.bf16.gmra.mrb[136].mxu1 %v20066_v39  ;;  %v774_v12 = vld [vmem:[#allocation6 + $0xef0] sm:$0xff] }
 0x67b   :  { %8240 = vmatprep.mubr.bf16.mxu0 %v20067_v35  ;;  %9652 = vmatprep.mubr.bf16.mxu1 %v20067_v35  ;;  %v15409_v17 = vcombine.low %v770_v15, %v774_v12  ;;  %v15410_v38 = vcombine.high %v770_v15, %v774_v12  ;;  %v20076_v39 = vld [vmem:[#allocation118_spill] sm:$0xff]  ;;  %v20097_v12 = vld [vmem:[#allocation139_spill] sm:$0xff] }
 0x67c   :  { %8540 = vmatpush1.bf16.msra.mxu0 %v15353_v6  ;;  %9952 = vmatpush1.bf16.msra.mxu1 %v15355_v7  ;;  %v775_v6 = vld [vmem:[#allocation6 + $0xef8] sm:$0xff]  ;;  %v782_v35 = vld [vmem:[#allocation6 + $0xf30] sm:$0xff] }
 0x67d   :  { %8541 = vmatprep.subr.bf16.mxu0 %v15362_v57  ;;  %9953 = vmatprep.subr.bf16.mxu1 %v15364_v18  ;;  %v15411_v7 = vcombine.low %v771_v16, %v775_v6  ;;  %v15412_v57 = vcombine.high %v771_v16, %v775_v6  ;;  %v20077_v18 = vld [vmem:[#allocation119_spill] sm:$0xff]  ;;  %v15417_v55 = vcombine.low %v778_v40, %v782_v35  ;;  %v20096_v15 = vld [vmem:[#allocation138_spill] sm:$0xff]  ;;  %v20102_v6 = vld [vmem:[#allocation144_spill] sm:$0xff] }
 0x67e   :  { %v20101_v16 = vld [vmem:[#allocation143_spill] sm:$0xff] }
 0x680   :  { %8542 = vmatpush1.bf16.msra.mxu0 %v15361_v23  ;;  %9954 = vmatpush1.bf16.msra.mxu1 %v15363_v59  ;;  %v15418_v23 = vcombine.high %v778_v40, %v782_v35  ;;  %v779_v59 = vld [vmem:[#allocation6 + $0xf18] sm:$0xff]  ;;  %v20108_v40 = vld [vmem:[#allocation150_spill] sm:$0xff] }
 0x681   :  { %8543 = vmatprep.subr.bf16.mxu0 %v15370_v60  ;;  %9955 = vmatprep.subr.bf16.mxu1 %v15372_v32  ;;  %v783_v60 = vld [vmem:[#allocation6 + $0xf38] sm:$0xff] }
 0x682   :  { %8241 = vmatmul.mubr.bf16.gmra.mrb[140].mxu0 %v20068_v20  ;;  %9653 = vmatmul.mubr.bf16.gmra.mrb[140].mxu1 %v20068_v20  ;;  %v15419_v32 = vcombine.low %v779_v59, %v783_v60  ;;  %v15420_v29 = vcombine.high %v779_v59, %v783_v60  ;;  %v20109_v35 = vld [vmem:[#allocation151_spill] sm:$0xff]  ;;  %v20114_v60 = vld [vmem:[#allocation156_spill] sm:$0xff] }
 0x683   :  { %8250 = vmatprep.mubr.bf16.mxu0 %v20069_v27  ;;  %9662 = vmatprep.mubr.bf16.mxu1 %v20069_v27  ;;  %v15427_v27 = vcombine.low %v787_v63, %v791_v28  ;;  %v20113_v59 = vld [vmem:[#allocation155_spill] sm:$0xff]  ;;  %v20126_v28 = vld [vmem:[#allocation168_spill] sm:$0xff] }
 0x684   :  { %8544 = vmatpush1.bf16.msra.mxu0 %v15369_v25  ;;  %9956 = vmatpush1.bf16.msra.mxu1 %v15371_v4  ;;  %v786_v25 = vld [vmem:[#allocation6 + $0xf50] sm:$0xff]  ;;  %v20125_v63 = vld [vmem:[#allocation167_spill] sm:$0xff] }
 0x685   :  { %8545 = vmatprep.subr.bf16.mxu0 %v15378_v50  ;;  %9957 = vmatprep.subr.bf16.mxu1 %v15380_v52  ;;  %v790_v4 = vld [vmem:[#allocation6 + $0xf70] sm:$0xff]  ;;  %v20083_v50 = vld [vmem:[#allocation125_spill] sm:$0xff] }
 0x686   :  { %v15425_v20 = vcombine.low %v786_v25, %v790_v4  ;;  %v15426_v52 = vcombine.high %v786_v25, %v790_v4  ;;  %v20120_v25 = vld [vmem:[#allocation162_spill] sm:$0xff]  ;;  %v20121_v4 = vld [vmem:[#allocation163_spill] sm:$0xff] }
 0x688   :  { %8546 = vmatpush1.bf16.msra.mxu0 %v15377_v5  ;;  %9958 = vmatpush1.bf16.msra.mxu1 %v15379_v0  ;;  %v20085_v5 = vld [vmem:[#allocation127_spill] sm:$0xff]  ;;  %v20086_v0 = vld [vmem:[#allocation128_spill] sm:$0xff] }
 0x689   :  { %8547 = vmatprep.subr.bf16.mxu0 %v15386_v45  ;;  %9959 = vmatprep.subr.bf16.mxu1 %v15388_v1  ;;  %v794_v45 = vld [vmem:[#allocation6 + $0xf90] sm:$0xff] }
 0x68a   :  { %8251 = vmatmul.mubr.bf16.gmra.mrb[144].mxu0 %v20070_v47  ;;  %9663 = vmatmul.mubr.bf16.gmra.mrb[144].mxu1 %v20070_v47  ;;  %v798_v1 = vld [vmem:[#allocation6 + $0xfb0] sm:$0xff] }
 0x68b   :  { %8260 = vmatprep.mubr.bf16.mxu0 %v20071_v33  ;;  %9672 = vmatprep.mubr.bf16.mxu1 %v20071_v33  ;;  %v15433_v41 = vcombine.low %v794_v45, %v798_v1  ;;  %v15434_v30 = vcombine.high %v794_v45, %v798_v1  ;;  %v20088_v47 = vld [vmem:[#allocation130_spill] sm:$0xff]  ;;  %v20133_v1 = vld [vmem:[#allocation175_spill] sm:$0xff] }
 0x68c   :  { %8548 = vmatpush1.bf16.msra.mxu0 %v15385_v3  ;;  %9960 = vmatpush1.bf16.msra.mxu1 %v15387_v54  ;;  %v799_v3 = vld [vmem:[#allocation6 + $0xfb8] sm:$0xff]  ;;  %v806_v33 = vld [vmem:[#allocation6 + $0xff0] sm:$0xff] }
 0x68d   :  { %8549 = vmatprep.subr.bf16.mxu0 %v15394_v61  ;;  %9961 = vmatprep.subr.bf16.mxu1 %v15396_v36  ;;  %v15435_v54 = vcombine.low %v795_v42, %v799_v3  ;;  %v15436_v61 = vcombine.high %v795_v42, %v799_v3  ;;  %v20089_v36 = vld [vmem:[#allocation131_spill] sm:$0xff]  ;;  %v15441_v8 = vcombine.low %v802_v62, %v806_v33  ;;  %v20132_v45 = vld [vmem:[#allocation174_spill] sm:$0xff] }
 0x68e   :  { %v20140_v42 = vld [vmem:[#allocation182_spill] sm:$0xff]  ;;  %v20141_v3 = vld [vmem:[#allocation183_spill] sm:$0xff] }
 0x690   :  { %8550 = vmatpush1.bf16.msra.mxu0 %v15393_v43  ;;  %9962 = vmatpush1.bf16.msra.mxu1 %v15395_v46  ;;  %v15442_v43 = vcombine.high %v802_v62, %v806_v33  ;;  %v803_v46 = vld [vmem:[#allocation6 + $0xfd8] sm:$0xff]  ;;  %v20147_v62 = vld [vmem:[#allocation189_spill] sm:$0xff]  ;;  %v20148_v33 = vld [vmem:[#allocation190_spill] sm:$0xff] }
 0x691   :  { %8551 = vmatprep.subr.bf16.mxu0 %v15402_v10  ;;  %9963 = vmatprep.subr.bf16.mxu1 %v15404_v48  ;;  %v807_v10 = vld [vmem:[#allocation6 + $0xff8] sm:$0xff] }
 0x692   :  { %8261 = vmatmul.mubr.bf16.gmra.mrb[148].mxu0 %v20072_v11  ;;  %9673 = vmatmul.mubr.bf16.gmra.mrb[148].mxu1 %v20072_v11  ;;  %v15443_v48 = vcombine.low %v803_v46, %v807_v10  ;;  %v20093_v11 = vld [vmem:[#allocation135_spill] sm:$0xff] }
 0x693   :  { %8270 = vmatprep.mubr.bf16.mxu0 %v20073_v58  ;;  %9682 = vmatprep.mubr.bf16.mxu1 %v20073_v58  ;;  %v20094_v58 = vld [vmem:[#allocation136_spill] sm:$0xff] }
 0x694   :  { %8552 = vmatpush1.bf16.msra.mxu0 %v15401_v14  ;;  %9964 = vmatpush1.bf16.msra.mxu1 %v15403_v49  ;;  %v15444_v14 = vcombine.high %v803_v46, %v807_v10  ;;  %v20092_v49 = vld [vmem:[#allocation134_spill] sm:$0xff]  ;;  %v20153_v10 = vld [vmem:[#allocation195_spill] sm:$0xff] }
 0x695   :  { %8553 = vmatprep.subr.bf16.mxu0 %v15410_v38  ;;  %9965 = vmatprep.subr.bf16.mxu1 %v15412_v57  ;;  %v20100_v38 = vld [vmem:[#allocation142_spill] sm:$0xff] }
 0x696   :  { %v20104_v57 = vld [vmem:[#allocation146_spill] sm:$0xff] }
 0x697   :  { %v20152_v46 = vld [vmem:[#allocation194_spill] sm:$0xff] }
 0x698   :  { %8554 = vmatpush1.bf16.msra.mxu0 %v15409_v17  ;;  %9966 = vmatpush1.bf16.msra.mxu1 %v15411_v7  ;;  %v20099_v17 = vld [vmem:[#allocation141_spill] sm:$0xff] }
 0x699   :  { %8555 = vmatprep.subr.bf16.mxu0 %v15418_v23  ;;  %9967 = vmatprep.subr.bf16.mxu1 %v15420_v29  ;;  %v20103_v7 = vld [vmem:[#allocation145_spill] sm:$0xff]  ;;  %v20112_v23 = vld [vmem:[#allocation154_spill] sm:$0xff] }
 0x69a   :  { %8271 = vmatmul.mubr.bf16.gmra.mrb[152].mxu0 %v20074_v37  ;;  %9683 = vmatmul.mubr.bf16.gmra.mrb[152].mxu1 %v20074_v37  ;;  %v20095_v37 = vld [vmem:[#allocation137_spill] sm:$0xff]  ;;  %v20116_v29 = vld [vmem:[#allocation158_spill] sm:$0xff] }
 0x69b   :  { %8280 = vmatprep.mubr.bf16.mxu0 %v20075_v13  ;;  %9692 = vmatprep.mubr.bf16.mxu1 %v20075_v13  ;;  %v20098_v13 = vld [vmem:[#allocation140_spill] sm:$0xff] }
 0x69c   :  { %8556 = vmatpush1.bf16.msra.mxu0 %v15417_v55  ;;  %9968 = vmatpush1.bf16.msra.mxu1 %v15419_v32  ;;  %v20111_v55 = vld [vmem:[#allocation153_spill] sm:$0xff] }
 0x69d   :  { %8557 = vmatprep.subr.bf16.mxu0 %v15426_v52  ;;  %9969 = vmatprep.subr.bf16.mxu1 %v15428_v56  ;;  %v20115_v32 = vld [vmem:[#allocation157_spill] sm:$0xff]  ;;  %v20124_v52 = vld [vmem:[#allocation166_spill] sm:$0xff] }
 0x69e   :  { %v20128_v56 = vld [vmem:[#allocation170_spill] sm:$0xff] }
 0x6a0   :  { %8558 = vmatpush1.bf16.msra.mxu0 %v15425_v20  ;;  %9970 = vmatpush1.bf16.msra.mxu1 %v15427_v27  ;;  %v20123_v20 = vld [vmem:[#allocation165_spill] sm:$0xff] }
 0x6a1   :  { %8559 = vmatprep.subr.bf16.mxu0 %v15434_v30  ;;  %9971 = vmatprep.subr.bf16.mxu1 %v15436_v61  ;;  %v20127_v27 = vld [vmem:[#allocation169_spill] sm:$0xff]  ;;  %v20136_v30 = vld [vmem:[#allocation178_spill] sm:$0xff] }
 0x6a2   :  { %8281 = vmatmul.mubr.bf16.gmra.mrb[156].mxu0 %v20076_v39  ;;  %9693 = vmatmul.mubr.bf16.gmra.mrb[156].mxu1 %v20076_v39  ;;  %v20105_v39 = vld [vmem:[#allocation147_spill] sm:$0xff]  ;;  %v20143_v61 = vld [vmem:[#allocation185_spill] sm:$0xff] }
 0x6a3   :  { %8290 = vmatprep.mubr.bf16.mxu0 %v20077_v18  ;;  %9702 = vmatprep.mubr.bf16.mxu1 %v20077_v18  ;;  %v20106_v18 = vld [vmem:[#allocation148_spill] sm:$0xff] }
 0x6a4   :  { %8560 = vmatpush1.bf16.msra.mxu0 %v15433_v41  ;;  %9972 = vmatpush1.bf16.msra.mxu1 %v15435_v54  ;;  %v20135_v41 = vld [vmem:[#allocation177_spill] sm:$0xff]  ;;  %v20142_v54 = vld [vmem:[#allocation184_spill] sm:$0xff] }
 0x6a5   :  { %8561 = vmatprep.subr.bf16.mxu0 %v15442_v43  ;;  %9973 = vmatprep.subr.bf16.mxu1 %v15444_v14  ;;  %v20151_v43 = vld [vmem:[#allocation193_spill] sm:$0xff] }
 0x6a6   :  { %v20155_v14 = vld [vmem:[#allocation197_spill] sm:$0xff] }
 0x6a8   :  { %8562 = vmatpush1.bf16.msra.mxu0 %v15441_v8  ;;  %9974 = vmatpush1.bf16.msra.mxu1 %v15443_v48  ;;  %v20150_v8 = vld [vmem:[#allocation192_spill] sm:$0xff] }
 0x6a9   :  { %v20154_v48 = vld [vmem:[#allocation196_spill] sm:$0xff] }
 0x6aa   :  { %8291 = vmatmul.mubr.bf16.gmra.mrb[160].mxu0 %v20078_v51  ;;  %9703 = vmatmul.mubr.bf16.gmra.mrb[160].mxu1 %v20078_v51  ;;  %v20107_v51 = vld [vmem:[#allocation149_spill] sm:$0xff] }
 0x6ab   :  { %8300 = vmatprep.mubr.bf16.mxu0 %v20079_v34  ;;  %9712 = vmatprep.mubr.bf16.mxu1 %v20079_v34  ;;  %v20110_v34 = vld [vmem:[#allocation152_spill] sm:$0xff] }
 0x6b2   :  { %8301 = vmatmul.mubr.bf16.gmra.mrb[164].mxu0 %v20080_v21  ;;  %9713 = vmatmul.mubr.bf16.gmra.mrb[164].mxu1 %v20080_v21  ;;  %v20117_v21 = vld [vmem:[#allocation159_spill] sm:$0xff] }
 0x6b3   :  { %8310 = vmatprep.mubr.bf16.mxu0 %v20081_v24  ;;  %9722 = vmatprep.mubr.bf16.mxu1 %v20081_v24  ;;  %v20118_v24 = vld [vmem:[#allocation160_spill] sm:$0xff] }
 0x6ba   :  { %8311 = vmatmul.mubr.bf16.gmra.mrb[168].mxu0 %v20082_v19  ;;  %9723 = vmatmul.mubr.bf16.gmra.mrb[168].mxu1 %v20082_v19  ;;  %v20119_v19 = vld [vmem:[#allocation161_spill] sm:$0xff] }
 0x6bb   :  { %8320 = vmatprep.mubr.bf16.mxu0 %v20083_v50  ;;  %9732 = vmatprep.mubr.bf16.mxu1 %v20083_v50  ;;  %v20122_v50 = vld [vmem:[#allocation164_spill] sm:$0xff] }
 0x6c2   :  { %8321 = vmatmul.mubr.bf16.gmra.mrb[172].mxu0 %v20084_v22  ;;  %9733 = vmatmul.mubr.bf16.gmra.mrb[172].mxu1 %v20084_v22  ;;  %v20129_v22 = vld [vmem:[#allocation171_spill] sm:$0xff] }
 0x6c3   :  { %8330 = vmatprep.mubr.bf16.mxu0 %v20085_v5  ;;  %9742 = vmatprep.mubr.bf16.mxu1 %v20085_v5  ;;  %v20130_v5 = vld [vmem:[#allocation172_spill] sm:$0xff] }
 0x6ca   :  { %8331 = vmatmul.mubr.bf16.gmra.mrb[176].mxu0 %v20086_v0  ;;  %9743 = vmatmul.mubr.bf16.gmra.mrb[176].mxu1 %v20086_v0  ;;  %v20131_v0 = vld [vmem:[#allocation173_spill] sm:$0xff] }
 0x6cb   :  { %8340 = vmatprep.mubr.bf16.mxu0 %v20087_v26  ;;  %9752 = vmatprep.mubr.bf16.mxu1 %v20087_v26  ;;  %v20134_v26 = vld [vmem:[#allocation176_spill] sm:$0xff] }
 0x6d2   :  { %8341 = vmatmul.mubr.bf16.gmra.mrb[180].mxu0 %v20088_v47  ;;  %9753 = vmatmul.mubr.bf16.gmra.mrb[180].mxu1 %v20088_v47  ;;  %v20144_v47 = vld [vmem:[#allocation186_spill] sm:$0xff] }
 0x6d3   :  { %8350 = vmatprep.mubr.bf16.mxu0 %v20089_v36  ;;  %9762 = vmatprep.mubr.bf16.mxu1 %v20089_v36  ;;  %v20145_v36 = vld [vmem:[#allocation187_spill] sm:$0xff] }
 0x6da   :  { %8351 = vmatmul.mubr.bf16.gmra.mrb[184].mxu0 %v20090_v31  ;;  %9763 = vmatmul.mubr.bf16.gmra.mrb[184].mxu1 %v20090_v31  ;;  %v20146_v31 = vld [vmem:[#allocation188_spill] sm:$0xff] }
 0x6db   :  { %8360 = vmatprep.mubr.bf16.mxu0 %v20091_v53  ;;  %9772 = vmatprep.mubr.bf16.mxu1 %v20091_v53  ;;  %v20149_v53 = vld [vmem:[#allocation191_spill] sm:$0xff] }
 0x6e2   :  { %8361 = vmatmul.mubr.bf16.gmra.mrb[188].mxu0 %v20092_v49  ;;  %9773 = vmatmul.mubr.bf16.gmra.mrb[188].mxu1 %v20092_v49  ;;  %v20156_v49 = vld [vmem:[#allocation198_spill] sm:$0xff] }
 0x6e3   :  { %8370 = vmatprep.mubr.bf16.mxu0 %v20093_v11  ;;  %9782 = vmatprep.mubr.bf16.mxu1 %v20093_v11  ;;  %v20157_v11 = vld [vmem:[#allocation199_spill] sm:$0xff] }
 0x6ea   :  { %8371 = vmatmul.mubr.bf16.gmra.mrb[192].mxu0 %v20094_v58  ;;  %9783 = vmatmul.mubr.bf16.gmra.mrb[192].mxu1 %v20094_v58  ;;  %v20158_v58 = vld [vmem:[#allocation200_spill] sm:$0xff] }
 0x6eb   :  { %8380 = vmatprep.mubr.bf16.mxu0 %v20095_v37  ;;  %9792 = vmatprep.mubr.bf16.mxu1 %v20095_v37  ;;  %v20159_v37 = vld [vmem:[#allocation201_spill] sm:$0xff] }
 0x6f2   :  { %8381 = vmatmul.mubr.bf16.gmra.mrb[196].mxu0 %v20096_v15  ;;  %9793 = vmatmul.mubr.bf16.gmra.mrb[196].mxu1 %v20096_v15  ;;  %v20160_v15 = vld [vmem:[#allocation202_spill] sm:$0xff] }
 0x6f3   :  { %8390 = vmatprep.mubr.bf16.mxu0 %v20097_v12  ;;  %9802 = vmatprep.mubr.bf16.mxu1 %v20097_v12  ;;  %v20161_v12 = vld [vmem:[#allocation203_spill] sm:$0xff] }
 0x6fa   :  { %8391 = vmatmul.mubr.bf16.gmra.mrb[200].mxu0 %v20098_v13  ;;  %9803 = vmatmul.mubr.bf16.gmra.mrb[200].mxu1 %v20098_v13  ;;  %v20162_v13 = vld [vmem:[#allocation204_spill] sm:$0xff] }
 0x6fb   :  { %8400 = vmatprep.mubr.bf16.mxu0 %v20099_v17  ;;  %9812 = vmatprep.mubr.bf16.mxu1 %v20099_v17  ;;  %v20163_v17 = vld [vmem:[#allocation205_spill] sm:$0xff] }
 0x702   :  { %8401 = vmatmul.mubr.bf16.gmra.mrb[204].mxu0 %v20100_v38  ;;  %9813 = vmatmul.mubr.bf16.gmra.mrb[204].mxu1 %v20100_v38  ;;  %v20164_v38 = vld [vmem:[#allocation206_spill] sm:$0xff] }
 0x703   :  { %8410 = vmatprep.mubr.bf16.mxu0 %v20101_v16  ;;  %9822 = vmatprep.mubr.bf16.mxu1 %v20101_v16  ;;  %v20165_v16 = vld [vmem:[#allocation207_spill] sm:$0xff] }
 0x70a   :  { %8411 = vmatmul.mubr.bf16.gmra.mrb[208].mxu0 %v20102_v6  ;;  %9823 = vmatmul.mubr.bf16.gmra.mrb[208].mxu1 %v20102_v6  ;;  %v20166_v6 = vld [vmem:[#allocation208_spill] sm:$0xff] }
 0x70b   :  { %8420 = vmatprep.mubr.bf16.mxu0 %v20103_v7  ;;  %9832 = vmatprep.mubr.bf16.mxu1 %v20103_v7  ;;  %v20167_v7 = vld [vmem:[#allocation209_spill] sm:$0xff] }
 0x712   :  { %8421 = vmatmul.mubr.bf16.gmra.mrb[212].mxu0 %v20104_v57  ;;  %9833 = vmatmul.mubr.bf16.gmra.mrb[212].mxu1 %v20104_v57  ;;  %v20168_v57 = vld [vmem:[#allocation210_spill] sm:$0xff] }
 0x713   :  { %8430 = vmatprep.mubr.bf16.mxu0 %v20105_v39  ;;  %9842 = vmatprep.mubr.bf16.mxu1 %v20105_v39  ;;  %v20169_v39 = vld [vmem:[#allocation211_spill] sm:$0xff] }
 0x71a   :  { %8431 = vmatmul.mubr.bf16.gmra.mrb[216].mxu0 %v20106_v18  ;;  %9843 = vmatmul.mubr.bf16.gmra.mrb[216].mxu1 %v20106_v18  ;;  %v20170_v18 = vld [vmem:[#allocation212_spill] sm:$0xff] }
 0x71b   :  { %8440 = vmatprep.mubr.bf16.mxu0 %v20107_v51  ;;  %9852 = vmatprep.mubr.bf16.mxu1 %v20107_v51  ;;  %v20171_v51 = vld [vmem:[#allocation213_spill] sm:$0xff] }
 0x722   :  { %8441 = vmatmul.mubr.bf16.gmra.mrb[220].mxu0 %v20108_v40  ;;  %9853 = vmatmul.mubr.bf16.gmra.mrb[220].mxu1 %v20108_v40  ;;  %v20172_v40 = vld [vmem:[#allocation214_spill] sm:$0xff] }
 0x723   :  { %8450 = vmatprep.mubr.bf16.mxu0 %v20109_v35  ;;  %9862 = vmatprep.mubr.bf16.mxu1 %v20109_v35  ;;  %v20173_v35 = vld [vmem:[#allocation215_spill] sm:$0xff] }
 0x72a   :  { %8451 = vmatmul.mubr.bf16.gmra.mrb[224].mxu0 %v20110_v34  ;;  %9863 = vmatmul.mubr.bf16.gmra.mrb[224].mxu1 %v20110_v34  ;;  %v20174_v34 = vld [vmem:[#allocation216_spill] sm:$0xff] }
 0x72b   :  { %8460 = vmatprep.mubr.bf16.mxu0 %v20111_v55  ;;  %9872 = vmatprep.mubr.bf16.mxu1 %v20111_v55  ;;  %v20175_v55 = vld [vmem:[#allocation217_spill] sm:$0xff] }
 0x732   :  { %8461 = vmatmul.mubr.bf16.gmra.mrb[228].mxu0 %v20112_v23  ;;  %9873 = vmatmul.mubr.bf16.gmra.mrb[228].mxu1 %v20112_v23  ;;  %v20176_v23 = vld [vmem:[#allocation218_spill] sm:$0xff] }
 0x733   :  { %8470 = vmatprep.mubr.bf16.mxu0 %v20113_v59  ;;  %9882 = vmatprep.mubr.bf16.mxu1 %v20113_v59 }
 0x73a   :  { %8471 = vmatmul.mubr.bf16.gmra.mrb[232].mxu0 %v20114_v60  ;;  %9883 = vmatmul.mubr.bf16.gmra.mrb[232].mxu1 %v20114_v60 }
 0x73b   :  { %8480 = vmatprep.mubr.bf16.mxu0 %v20115_v32  ;;  %9892 = vmatprep.mubr.bf16.mxu1 %v20115_v32 }
 0x742   :  { %8481 = vmatmul.mubr.bf16.gmra.mrb[236].mxu0 %v20116_v29  ;;  %9893 = vmatmul.mubr.bf16.gmra.mrb[236].mxu1 %v20116_v29 }
 0x743   :  { %8490 = vmatprep.mubr.bf16.mxu0 %v20117_v21  ;;  %9902 = vmatprep.mubr.bf16.mxu1 %v20117_v21 }
 0x74a   :  { %8491 = vmatmul.mubr.bf16.gmra.mrb[240].mxu0 %v20118_v24  ;;  %9903 = vmatmul.mubr.bf16.gmra.mrb[240].mxu1 %v20118_v24 }
 0x74b   :  { %8500 = vmatprep.mubr.bf16.mxu0 %v20119_v19  ;;  %9912 = vmatprep.mubr.bf16.mxu1 %v20119_v19 }
 0x752   :  { %8501 = vmatmul.mubr.bf16.gmra.mrb[244].mxu0 %v20120_v25  ;;  %9913 = vmatmul.mubr.bf16.gmra.mrb[244].mxu1 %v20120_v25 }
 0x753   :  { %8510 = vmatprep.mubr.bf16.mxu0 %v20121_v4  ;;  %9922 = vmatprep.mubr.bf16.mxu1 %v20121_v4 }
 0x75a   :  { %8511 = vmatmul.mubr.bf16.gmra.mrb[248].mxu0 %v20122_v50  ;;  %9923 = vmatmul.mubr.bf16.gmra.mrb[248].mxu1 %v20122_v50 }
 0x75b   :  { %8520 = vmatprep.mubr.bf16.mxu0 %v20123_v20  ;;  %9932 = vmatprep.mubr.bf16.mxu1 %v20123_v20 }
 0x762   :  { %8521 = vmatmul.mubr.bf16.gmra.mrb[252].mxu0 %v20124_v52  ;;  %9933 = vmatmul.mubr.bf16.gmra.mrb[252].mxu1 %v20124_v52 }
 0x763   :  { %8563 = vmatprep.mubr.bf16.mxu0 %v20125_v63  ;;  %9975 = vmatprep.mubr.bf16.mxu1 %v20125_v63  ;;  %v20177_v63 = vld [vmem:[#allocation219_spill] sm:$0xff] }
 0x76a   :  { %8564 = vmatmul.mubr.bf16.vlgmr.msra.gmra.mrb[128].mxu0 %v20126_v28  ;;  %9976 = vmatmul.mubr.bf16.vlgmr.msra.gmra.mrb[128].mxu1 %v20126_v28  ;;  %v20178_v28 = vld [vmem:[#allocation220_spill] sm:$0xff] }
 0x76b   :  { %8573 = vmatprep.mubr.bf16.mxu0 %v20127_v27  ;;  %9985 = vmatprep.mubr.bf16.mxu1 %v20127_v27 }
 0x772   :  { %8574 = vmatmul.mubr.bf16.gmra.mrb[132].mxu0 %v20128_v56  ;;  %9986 = vmatmul.mubr.bf16.gmra.mrb[132].mxu1 %v20128_v56 }
 0x773   :  { %8583 = vmatprep.mubr.bf16.mxu0 %v20129_v22  ;;  %9995 = vmatprep.mubr.bf16.mxu1 %v20129_v22 }
 0x77a   :  { %8584 = vmatmul.mubr.bf16.gmra.mrb[136].mxu0 %v20130_v5  ;;  %9996 = vmatmul.mubr.bf16.gmra.mrb[136].mxu1 %v20130_v5 }
 0x77b   :  { %8593 = vmatprep.mubr.bf16.mxu0 %v20131_v0  ;;  %10005 = vmatprep.mubr.bf16.mxu1 %v20131_v0 }
 0x782   :  { %8594 = vmatmul.mubr.bf16.gmra.mrb[140].mxu0 %v20132_v45  ;;  %10006 = vmatmul.mubr.bf16.gmra.mrb[140].mxu1 %v20132_v45 }
 0x783   :  { %8603 = vmatprep.mubr.bf16.mxu0 %v20133_v1  ;;  %10015 = vmatprep.mubr.bf16.mxu1 %v20133_v1 }
 0x78a   :  { %8604 = vmatmul.mubr.bf16.gmra.mrb[144].mxu0 %v18498_v2  ;;  %10016 = vmatmul.mubr.bf16.gmra.mrb[144].mxu1 %v18498_v2  ;;  %v20137_v2 = vld [vmem:[#allocation179_spill] sm:$0xff] }
 0x78b   :  { %8613 = vmatprep.mubr.bf16.mxu0 %v18500_v44  ;;  %10025 = vmatprep.mubr.bf16.mxu1 %v18500_v44  ;;  %v20138_v44 = vld [vmem:[#allocation180_spill] sm:$0xff] }
 0x792   :  { %8614 = vmatmul.mubr.bf16.gmra.mrb[148].mxu0 %v18506_v9  ;;  %10026 = vmatmul.mubr.bf16.gmra.mrb[148].mxu1 %v18506_v9  ;;  %v20139_v9 = vld [vmem:[#allocation181_spill] sm:$0xff] }
 0x793   :  { %8623 = vmatprep.mubr.bf16.mxu0 %v20134_v26  ;;  %10035 = vmatprep.mubr.bf16.mxu1 %v20134_v26 }
 0x79a   :  { %8624 = vmatmul.mubr.bf16.gmra.mrb[152].mxu0 %v20135_v41  ;;  %10036 = vmatmul.mubr.bf16.gmra.mrb[152].mxu1 %v20135_v41 }
 0x79b   :  { %8633 = vmatprep.mubr.bf16.mxu0 %v20136_v30  ;;  %10045 = vmatprep.mubr.bf16.mxu1 %v20136_v30 }
 0x7a2   :  { %8634 = vmatmul.mubr.bf16.gmra.mrb[156].mxu0 %v20137_v2  ;;  %10046 = vmatmul.mubr.bf16.gmra.mrb[156].mxu1 %v20137_v2 }
 0x7a3   :  { %8643 = vmatprep.mubr.bf16.mxu0 %v20138_v44  ;;  %10055 = vmatprep.mubr.bf16.mxu1 %v20138_v44 }
 0x7aa   :  { %8644 = vmatmul.mubr.bf16.gmra.mrb[160].mxu0 %v20139_v9  ;;  %10056 = vmatmul.mubr.bf16.gmra.mrb[160].mxu1 %v20139_v9  ;;  %v20179_v9 = vld [vmem:[#allocation221_spill] sm:$0xff] }
 0x7ab   :  { %8653 = vmatprep.mubr.bf16.mxu0 %v20140_v42  ;;  %10065 = vmatprep.mubr.bf16.mxu1 %v20140_v42  ;;  %v20180_v42 = vld [vmem:[#allocation222_spill] sm:$0xff] }
 0x7b2   :  { %8654 = vmatmul.mubr.bf16.gmra.mrb[164].mxu0 %v20141_v3  ;;  %10066 = vmatmul.mubr.bf16.gmra.mrb[164].mxu1 %v20141_v3 }
 0x7b3   :  { %8663 = vmatprep.mubr.bf16.mxu0 %v20142_v54  ;;  %10075 = vmatprep.mubr.bf16.mxu1 %v20142_v54 }
 0x7ba   :  { %8664 = vmatmul.mubr.bf16.gmra.mrb[168].mxu0 %v20143_v61  ;;  %10076 = vmatmul.mubr.bf16.gmra.mrb[168].mxu1 %v20143_v61 }
 0x7bb   :  { %8673 = vmatprep.mubr.bf16.mxu0 %v20144_v47  ;;  %10085 = vmatprep.mubr.bf16.mxu1 %v20144_v47 }
 0x7c2   :  { %8674 = vmatmul.mubr.bf16.gmra.mrb[172].mxu0 %v20145_v36  ;;  %10086 = vmatmul.mubr.bf16.gmra.mrb[172].mxu1 %v20145_v36 }
 0x7c3   :  { %8683 = vmatprep.mubr.bf16.mxu0 %v20146_v31  ;;  %10095 = vmatprep.mubr.bf16.mxu1 %v20146_v31 }
 0x7ca   :  { %8684 = vmatmul.mubr.bf16.gmra.mrb[176].mxu0 %v20147_v62  ;;  %10096 = vmatmul.mubr.bf16.gmra.mrb[176].mxu1 %v20147_v62 }
 0x7cb   :  { %8693 = vmatprep.mubr.bf16.mxu0 %v20148_v33  ;;  %10105 = vmatprep.mubr.bf16.mxu1 %v20148_v33 }
 0x7d2   :  { %8694 = vmatmul.mubr.bf16.gmra.mrb[180].mxu0 %v20149_v53  ;;  %10106 = vmatmul.mubr.bf16.gmra.mrb[180].mxu1 %v20149_v53 }
 0x7d3   :  { %8703 = vmatprep.mubr.bf16.mxu0 %v20150_v8  ;;  %10115 = vmatprep.mubr.bf16.mxu1 %v20150_v8 }
 0x7da   :  { %8704 = vmatmul.mubr.bf16.gmra.mrb[184].mxu0 %v20151_v43  ;;  %10116 = vmatmul.mubr.bf16.gmra.mrb[184].mxu1 %v20151_v43 }
 0x7db   :  { %8713 = vmatprep.mubr.bf16.mxu0 %v20152_v46  ;;  %10125 = vmatprep.mubr.bf16.mxu1 %v20152_v46 }
 0x7e2   :  { %8714 = vmatmul.mubr.bf16.gmra.mrb[188].mxu0 %v20153_v10  ;;  %10126 = vmatmul.mubr.bf16.gmra.mrb[188].mxu1 %v20153_v10  ;;  %v20181_v10 = vld [vmem:[#allocation223_spill] sm:$0xff] }
 0x7e3   :  { %8723 = vmatprep.mubr.bf16.mxu0 %v20154_v48  ;;  %10135 = vmatprep.mubr.bf16.mxu1 %v20154_v48  ;;  %v20182_v48 = vld [vmem:[#allocation224_spill] sm:$0xff] }
 0x7ea   :  { %8724 = vmatmul.mubr.bf16.gmra.mrb[192].mxu0 %v20155_v14  ;;  %10136 = vmatmul.mubr.bf16.gmra.mrb[192].mxu1 %v20155_v14 }
 0x7eb   :  { %8733 = vmatprep.mubr.bf16.mxu0 %v20156_v49  ;;  %10145 = vmatprep.mubr.bf16.mxu1 %v20156_v49 }
 0x7f2   :  { %8734 = vmatmul.mubr.bf16.gmra.mrb[196].mxu0 %v20157_v11  ;;  %10146 = vmatmul.mubr.bf16.gmra.mrb[196].mxu1 %v20157_v11 }
 0x7f3   :  { %8743 = vmatprep.mubr.bf16.mxu0 %v20158_v58  ;;  %10155 = vmatprep.mubr.bf16.mxu1 %v20158_v58 }
 0x7fa   :  { %8744 = vmatmul.mubr.bf16.gmra.mrb[200].mxu0 %v20159_v37  ;;  %10156 = vmatmul.mubr.bf16.gmra.mrb[200].mxu1 %v20159_v37 }
 0x7fb   :  { %8753 = vmatprep.mubr.bf16.mxu0 %v20160_v15  ;;  %10165 = vmatprep.mubr.bf16.mxu1 %v20160_v15 }
 0x802   :  { %8754 = vmatmul.mubr.bf16.gmra.mrb[204].mxu0 %v20161_v12  ;;  %10166 = vmatmul.mubr.bf16.gmra.mrb[204].mxu1 %v20161_v12 }
 0x803   :  { %8763 = vmatprep.mubr.bf16.mxu0 %v20162_v13  ;;  %10175 = vmatprep.mubr.bf16.mxu1 %v20162_v13 }
 0x80a   :  { %8764 = vmatmul.mubr.bf16.gmra.mrb[208].mxu0 %v20163_v17  ;;  %10176 = vmatmul.mubr.bf16.gmra.mrb[208].mxu1 %v20163_v17 }
 0x80b   :  { %8773 = vmatprep.mubr.bf16.mxu0 %v20164_v38  ;;  %10185 = vmatprep.mubr.bf16.mxu1 %v20164_v38 }
 0x812   :  { %8774 = vmatmul.mubr.bf16.gmra.mrb[212].mxu0 %v20165_v16  ;;  %10186 = vmatmul.mubr.bf16.gmra.mrb[212].mxu1 %v20165_v16 }
 0x813   :  { %8783 = vmatprep.mubr.bf16.mxu0 %v20166_v6  ;;  %10195 = vmatprep.mubr.bf16.mxu1 %v20166_v6 }
 0x81a   :  { %8784 = vmatmul.mubr.bf16.gmra.mrb[216].mxu0 %v20167_v7  ;;  %10196 = vmatmul.mubr.bf16.gmra.mrb[216].mxu1 %v20167_v7  ;;  %v20183_v7 = vld [vmem:[#allocation225_spill] sm:$0xff] }
 0x81b   :  { %8793 = vmatprep.mubr.bf16.mxu0 %v20168_v57  ;;  %10205 = vmatprep.mubr.bf16.mxu1 %v20168_v57  ;;  %v20184_v57 = vld [vmem:[#allocation226_spill] sm:$0xff] }
 0x822   :  { %8794 = vmatmul.mubr.bf16.gmra.mrb[220].mxu0 %v20169_v39  ;;  %10206 = vmatmul.mubr.bf16.gmra.mrb[220].mxu1 %v20169_v39 }
 0x823   :  { %8803 = vmatprep.mubr.bf16.mxu0 %v20170_v18  ;;  %10215 = vmatprep.mubr.bf16.mxu1 %v20170_v18 }
 0x82a   :  { %8804 = vmatmul.mubr.bf16.gmra.mrb[224].mxu0 %v20171_v51  ;;  %10216 = vmatmul.mubr.bf16.gmra.mrb[224].mxu1 %v20171_v51 }
 0x82b   :  { %8813 = vmatprep.mubr.bf16.mxu0 %v20172_v40  ;;  %10225 = vmatprep.mubr.bf16.mxu1 %v20172_v40 }
 0x832   :  { %8814 = vmatmul.mubr.bf16.gmra.mrb[228].mxu0 %v20173_v35  ;;  %10226 = vmatmul.mubr.bf16.gmra.mrb[228].mxu1 %v20173_v35 }
 0x833   :  { %8823 = vmatprep.mubr.bf16.mxu0 %v20174_v34  ;;  %10235 = vmatprep.mubr.bf16.mxu1 %v20174_v34 }
 0x83a   :  { %8824 = vmatmul.mubr.bf16.gmra.mrb[232].mxu0 %v20175_v55  ;;  %10236 = vmatmul.mubr.bf16.gmra.mrb[232].mxu1 %v20175_v55 }
 0x83b   :  { %8833 = vmatprep.mubr.bf16.mxu0 %v20176_v23  ;;  %10245 = vmatprep.mubr.bf16.mxu1 %v20176_v23 }
 0x83d   :  { %v8565_v59 = vpop.f32.mrb[128].mxu0  ;;  %v9977_v60 = vpop.f32.mrb[128].mxu1 }
 0x83e   :  { %v8567_v32 = vpop.f32.mrb[129].mxu0  ;;  %v9979_v21 = vpop.f32.mrb[129].mxu1 }
 0x83f   :  { %v15703_v29 = vpack.c.bf16 %v8567_v32, %v8565_v59  ;;  %v8569_v24 = vpop.f32.mrb[130].mxu0  ;;  %v15704_v19 = vpack.c.bf16 %v9979_v21, %v9977_v60  ;;  %v9981_v25 = vpop.f32.mrb[130].mxu1  ;;  %v20185_v21 = vld [vmem:[#allocation227_spill] sm:$0xff] }
 0x840   :  { %v8571_v4 = vpop.f32.mrb[131].mxu0  ;;  %v9983_v20 = vpop.f32.mrb[131].mxu1 }
 0x841   :  { %14405 = vst [vmem:[#allocation8 + $0x10] sm:$0xff] %v15703_v29  ;;  %v15707_v50 = vpack.c.bf16 %v8571_v4, %v8569_v24  ;;  %14406 = vst [vmem:[#allocation8 + $0x18] sm:$0xff] %v15704_v19  ;;  %v15708_v52 = vpack.c.bf16 %v9983_v20, %v9981_v25 }
 0x842   :  { %8834 = vmatmul.mubr.bf16.gmra.mrb[236].mxu0 %v20177_v63  ;;  %10246 = vmatmul.mubr.bf16.gmra.mrb[236].mxu1 %v20177_v63 }
 0x843   :  { %14409 = vst [vmem:[#allocation8 + $0x30] sm:$0xff] %v15707_v50  ;;  %8843 = vmatprep.mubr.bf16.mxu0 %v20178_v28  ;;  %14410 = vst [vmem:[#allocation8 + $0x38] sm:$0xff] %v15708_v52  ;;  %10255 = vmatprep.mubr.bf16.mxu1 %v20178_v28 }
 0x845   :  { %v8575_v27 = vpop.f32.mrb[132].mxu0  ;;  %v9987_v56 = vpop.f32.mrb[132].mxu1 }
 0x846   :  { %v8577_v22 = vpop.f32.mrb[133].mxu0  ;;  %v9989_v0 = vpop.f32.mrb[133].mxu1 }
 0x847   :  { %v15711_v5 = vpack.c.bf16 %v8577_v22, %v8575_v27  ;;  %v8579_v45 = vpop.f32.mrb[134].mxu0  ;;  %v15712_v1 = vpack.c.bf16 %v9989_v0, %v9987_v56  ;;  %v9991_v26 = vpop.f32.mrb[134].mxu1 }
 0x848   :  { %v8581_v41 = vpop.f32.mrb[135].mxu0  ;;  %v9993_v2 = vpop.f32.mrb[135].mxu1 }
 0x849   :  { %14413 = vst [vmem:[#allocation8 + $0x50] sm:$0xff] %v15711_v5  ;;  %v15715_v30 = vpack.c.bf16 %v8581_v41, %v8579_v45  ;;  %14414 = vst [vmem:[#allocation8 + $0x58] sm:$0xff] %v15712_v1  ;;  %v15716_v44 = vpack.c.bf16 %v9993_v2, %v9991_v26 }
 0x84a   :  { %8844 = vmatmul.mubr.bf16.gmra.mrb[240].mxu0 %v20179_v9  ;;  %10256 = vmatmul.mubr.bf16.gmra.mrb[240].mxu1 %v20179_v9 }
 0x84b   :  { %14417 = vst [vmem:[#allocation8 + $0x70] sm:$0xff] %v15715_v30  ;;  %8853 = vmatprep.mubr.bf16.mxu0 %v20180_v42  ;;  %14418 = vst [vmem:[#allocation8 + $0x78] sm:$0xff] %v15716_v44  ;;  %10265 = vmatprep.mubr.bf16.mxu1 %v20180_v42 }
 0x84d   :  { %v8585_v3 = vpop.f32.mrb[136].mxu0  ;;  %v9997_v54 = vpop.f32.mrb[136].mxu1 }
 0x84e   :  { %v8587_v61 = vpop.f32.mrb[137].mxu0  ;;  %v9999_v36 = vpop.f32.mrb[137].mxu1 }
 0x84f   :  { %v15719_v47 = vpack.c.bf16 %v8587_v61, %v8585_v3  ;;  %v8589_v31 = vpop.f32.mrb[138].mxu0  ;;  %v15720_v62 = vpack.c.bf16 %v9999_v36, %v9997_v54  ;;  %v10001_v33 = vpop.f32.mrb[138].mxu1 }
 0x850   :  { %v8591_v53 = vpop.f32.mrb[139].mxu0  ;;  %v10003_v43 = vpop.f32.mrb[139].mxu1 }
 0x851   :  { %14421 = vst [vmem:[#allocation8 + $0x90] sm:$0xff] %v15719_v47  ;;  %v15723_v8 = vpack.c.bf16 %v8591_v53, %v8589_v31  ;;  %14422 = vst [vmem:[#allocation8 + $0x98] sm:$0xff] %v15720_v62  ;;  %v15724_v46 = vpack.c.bf16 %v10003_v43, %v10001_v33 }
 0x852   :  { %8854 = vmatmul.mubr.bf16.gmra.mrb[244].mxu0 %v20181_v10  ;;  %10266 = vmatmul.mubr.bf16.gmra.mrb[244].mxu1 %v20181_v10 }
 0x853   :  { %14425 = vst [vmem:[#allocation8 + $0xb0] sm:$0xff] %v15723_v8  ;;  %8863 = vmatprep.mubr.bf16.mxu0 %v20182_v48  ;;  %14426 = vst [vmem:[#allocation8 + $0xb8] sm:$0xff] %v15724_v46  ;;  %10275 = vmatprep.mubr.bf16.mxu1 %v20182_v48 }
 0x855   :  { %v8595_v14 = vpop.f32.mrb[140].mxu0  ;;  %v10007_v49 = vpop.f32.mrb[140].mxu1 }
 0x856   :  { %v8597_v11 = vpop.f32.mrb[141].mxu0  ;;  %v10009_v37 = vpop.f32.mrb[141].mxu1 }
 0x857   :  { %v15727_v58 = vpack.c.bf16 %v8597_v11, %v8595_v14  ;;  %v8599_v15 = vpop.f32.mrb[142].mxu0  ;;  %v15728_v12 = vpack.c.bf16 %v10009_v37, %v10007_v49  ;;  %v10011_v13 = vpop.f32.mrb[142].mxu1 }
 0x858   :  { %v8601_v17 = vpop.f32.mrb[143].mxu0  ;;  %v10013_v16 = vpop.f32.mrb[143].mxu1 }
 0x859   :  { %14429 = vst [vmem:[#allocation8 + $0xd0] sm:$0xff] %v15727_v58  ;;  %v15731_v38 = vpack.c.bf16 %v8601_v17, %v8599_v15  ;;  %14430 = vst [vmem:[#allocation8 + $0xd8] sm:$0xff] %v15728_v12  ;;  %v15732_v6 = vpack.c.bf16 %v10013_v16, %v10011_v13 }
 0x85a   :  { %8864 = vmatmul.mubr.bf16.gmra.mrb[248].mxu0 %v20183_v7  ;;  %10276 = vmatmul.mubr.bf16.gmra.mrb[248].mxu1 %v20183_v7 }
 0x85b   :  { %14433 = vst [vmem:[#allocation8 + $0xf0] sm:$0xff] %v15731_v38  ;;  %8873 = vmatprep.mubr.bf16.mxu0 %v20184_v57  ;;  %14434 = vst [vmem:[#allocation8 + $0xf8] sm:$0xff] %v15732_v6  ;;  %10285 = vmatprep.mubr.bf16.mxu1 %v20184_v57 }
 0x85d   :  { %v8605_v39 = vpop.f32.mrb[144].mxu0  ;;  %v10017_v18 = vpop.f32.mrb[144].mxu1 }
 0x85e   :  { %v8607_v51 = vpop.f32.mrb[145].mxu0  ;;  %v10019_v35 = vpop.f32.mrb[145].mxu1 }
 0x85f   :  { %v15735_v40 = vpack.c.bf16 %v8607_v51, %v8605_v39  ;;  %v8609_v34 = vpop.f32.mrb[146].mxu0  ;;  %v15736_v55 = vpack.c.bf16 %v10019_v35, %v10017_v18  ;;  %v10021_v23 = vpop.f32.mrb[146].mxu1 }
 0x860   :  { %v8611_v59 = vpop.f32.mrb[147].mxu0  ;;  %v10023_v32 = vpop.f32.mrb[147].mxu1 }
 0x861   :  { %14437 = vst [vmem:[#allocation8 + $0x110] sm:$0xff] %v15735_v40  ;;  %v15739_v60 = vpack.c.bf16 %v8611_v59, %v8609_v34  ;;  %14438 = vst [vmem:[#allocation8 + $0x118] sm:$0xff] %v15736_v55  ;;  %v15740_v29 = vpack.c.bf16 %v10023_v32, %v10021_v23 }
 0x862   :  { %8874 = vmatmul.mubr.bf16.gmra.mrb[252].mxu0 %v20185_v21  ;;  %10286 = vmatmul.mubr.bf16.gmra.mrb[252].mxu1 %v20185_v21 }
 0x863   :  { %14441 = vst [vmem:[#allocation8 + $0x130] sm:$0xff] %v15739_v60  ;;  %14442 = vst [vmem:[#allocation8 + $0x138] sm:$0xff] %v15740_v29 }
 0x865   :  { %v8615_v24 = vpop.f32.mrb[148].mxu0  ;;  %v10027_v19 = vpop.f32.mrb[148].mxu1 }
 0x866   :  { %v8617_v25 = vpop.f32.mrb[149].mxu0  ;;  %v10029_v50 = vpop.f32.mrb[149].mxu1 }
 0x867   :  { %v15743_v4 = vpack.c.bf16 %v8617_v25, %v8615_v24  ;;  %v8619_v20 = vpop.f32.mrb[150].mxu0  ;;  %v15744_v52 = vpack.c.bf16 %v10029_v50, %v10027_v19  ;;  %v10031_v63 = vpop.f32.mrb[150].mxu1 }
 0x868   :  { %v8621_v28 = vpop.f32.mrb[151].mxu0  ;;  %v10033_v56 = vpop.f32.mrb[151].mxu1 }
 0x869   :  { %14445 = vst [vmem:[#allocation8 + $0x150] sm:$0xff] %v15743_v4  ;;  %v15747_v27 = vpack.c.bf16 %v8621_v28, %v8619_v20  ;;  %14446 = vst [vmem:[#allocation8 + $0x158] sm:$0xff] %v15744_v52  ;;  %v15748_v22 = vpack.c.bf16 %v10033_v56, %v10031_v63 }
 0x86b   :  { %14449 = vst [vmem:[#allocation8 + $0x170] sm:$0xff] %v15747_v27  ;;  %14450 = vst [vmem:[#allocation8 + $0x178] sm:$0xff] %v15748_v22 }
 0x86d   :  { %v8625_v5 = vpop.f32.mrb[152].mxu0  ;;  %v10037_v0 = vpop.f32.mrb[152].mxu1 }
 0x86e   :  { %v8627_v45 = vpop.f32.mrb[153].mxu0  ;;  %v10039_v26 = vpop.f32.mrb[153].mxu1 }
 0x86f   :  { %v15751_v1 = vpack.c.bf16 %v8627_v45, %v8625_v5  ;;  %v8629_v41 = vpop.f32.mrb[154].mxu0  ;;  %v15752_v30 = vpack.c.bf16 %v10039_v26, %v10037_v0  ;;  %v10041_v2 = vpop.f32.mrb[154].mxu1 }
 0x870   :  { %v8631_v44 = vpop.f32.mrb[155].mxu0  ;;  %v10043_v42 = vpop.f32.mrb[155].mxu1 }
 0x871   :  { %14453 = vst [vmem:[#allocation8 + $0x190] sm:$0xff] %v15751_v1  ;;  %v15755_v9 = vpack.c.bf16 %v8631_v44, %v8629_v41  ;;  %14454 = vst [vmem:[#allocation8 + $0x198] sm:$0xff] %v15752_v30  ;;  %v15756_v3 = vpack.c.bf16 %v10043_v42, %v10041_v2 }
 0x873   :  { %14457 = vst [vmem:[#allocation8 + $0x1b0] sm:$0xff] %v15755_v9  ;;  %14458 = vst [vmem:[#allocation8 + $0x1b8] sm:$0xff] %v15756_v3 }
 0x875   :  { %v8635_v54 = vpop.f32.mrb[156].mxu0  ;;  %v10047_v61 = vpop.f32.mrb[156].mxu1 }
 0x876   :  { %v8637_v47 = vpop.f32.mrb[157].mxu0  ;;  %v10049_v31 = vpop.f32.mrb[157].mxu1 }
 0x877   :  { %v15759_v36 = vpack.c.bf16 %v8637_v47, %v8635_v54  ;;  %v8639_v62 = vpop.f32.mrb[158].mxu0  ;;  %v15760_v33 = vpack.c.bf16 %v10049_v31, %v10047_v61  ;;  %v10051_v53 = vpop.f32.mrb[158].mxu1 }
 0x878   :  { %v8641_v8 = vpop.f32.mrb[159].mxu0  ;;  %v10053_v46 = vpop.f32.mrb[159].mxu1 }
 0x879   :  { %14461 = vst [vmem:[#allocation8 + $0x1d0] sm:$0xff] %v15759_v36  ;;  %v15763_v43 = vpack.c.bf16 %v8641_v8, %v8639_v62  ;;  %14462 = vst [vmem:[#allocation8 + $0x1d8] sm:$0xff] %v15760_v33  ;;  %v15764_v10 = vpack.c.bf16 %v10053_v46, %v10051_v53 }
 0x87b   :  { %14465 = vst [vmem:[#allocation8 + $0x1f0] sm:$0xff] %v15763_v43  ;;  %14466 = vst [vmem:[#allocation8 + $0x1f8] sm:$0xff] %v15764_v10 }
 0x87d   :  { %v8645_v48 = vpop.f32.mrb[160].mxu0  ;;  %v10057_v14 = vpop.f32.mrb[160].mxu1 }
 0x87e   :  { %v8647_v49 = vpop.f32.mrb[161].mxu0  ;;  %v10059_v58 = vpop.f32.mrb[161].mxu1 }
 0x87f   :  { %v15767_v11 = vpack.c.bf16 %v8647_v49, %v8645_v48  ;;  %v8649_v37 = vpop.f32.mrb[162].mxu0  ;;  %v15768_v15 = vpack.c.bf16 %v10059_v58, %v10057_v14  ;;  %v10061_v12 = vpop.f32.mrb[162].mxu1 }
 0x880   :  { %v8651_v13 = vpop.f32.mrb[163].mxu0  ;;  %v10063_v38 = vpop.f32.mrb[163].mxu1 }
 0x881   :  { %14469 = vst [vmem:[#allocation8 + $0x210] sm:$0xff] %v15767_v11  ;;  %v15771_v17 = vpack.c.bf16 %v8651_v13, %v8649_v37  ;;  %14470 = vst [vmem:[#allocation8 + $0x218] sm:$0xff] %v15768_v15  ;;  %v15772_v16 = vpack.c.bf16 %v10063_v38, %v10061_v12 }
 0x883   :  { %14473 = vst [vmem:[#allocation8 + $0x230] sm:$0xff] %v15771_v17  ;;  %14474 = vst [vmem:[#allocation8 + $0x238] sm:$0xff] %v15772_v16 }
 0x885   :  { %v8655_v6 = vpop.f32.mrb[164].mxu0  ;;  %v10067_v7 = vpop.f32.mrb[164].mxu1 }
 0x886   :  { %v8657_v57 = vpop.f32.mrb[165].mxu0  ;;  %v10069_v18 = vpop.f32.mrb[165].mxu1 }
 0x887   :  { %v15775_v39 = vpack.c.bf16 %v8657_v57, %v8655_v6  ;;  %v8659_v51 = vpop.f32.mrb[166].mxu0  ;;  %v15776_v40 = vpack.c.bf16 %v10069_v18, %v10067_v7  ;;  %v10071_v35 = vpop.f32.mrb[166].mxu1 }
 0x888   :  { %v8661_v34 = vpop.f32.mrb[167].mxu0  ;;  %v10073_v23 = vpop.f32.mrb[167].mxu1 }
 0x889   :  { %14477 = vst [vmem:[#allocation8 + $0x250] sm:$0xff] %v15775_v39  ;;  %v15779_v55 = vpack.c.bf16 %v8661_v34, %v8659_v51  ;;  %14478 = vst [vmem:[#allocation8 + $0x258] sm:$0xff] %v15776_v40  ;;  %v15780_v59 = vpack.c.bf16 %v10073_v23, %v10071_v35 }
 0x88b   :  { %14481 = vst [vmem:[#allocation8 + $0x270] sm:$0xff] %v15779_v55  ;;  %14482 = vst [vmem:[#allocation8 + $0x278] sm:$0xff] %v15780_v59 }
 0x88d   :  { %v8665_v60 = vpop.f32.mrb[168].mxu0  ;;  %v10077_v32 = vpop.f32.mrb[168].mxu1 }
 0x88e   :  { %v8667_v29 = vpop.f32.mrb[169].mxu0  ;;  %v10079_v24 = vpop.f32.mrb[169].mxu1 }
 0x88f   :  { %v15783_v21 = vpack.c.bf16 %v8667_v29, %v8665_v60  ;;  %v8669_v19 = vpop.f32.mrb[170].mxu0  ;;  %v15784_v25 = vpack.c.bf16 %v10079_v24, %v10077_v32  ;;  %v10081_v4 = vpop.f32.mrb[170].mxu1 }
 0x890   :  { %v8671_v50 = vpop.f32.mrb[171].mxu0  ;;  %v10083_v52 = vpop.f32.mrb[171].mxu1 }
 0x891   :  { %14485 = vst [vmem:[#allocation8 + $0x290] sm:$0xff] %v15783_v21  ;;  %v15787_v20 = vpack.c.bf16 %v8671_v50, %v8669_v19  ;;  %14486 = vst [vmem:[#allocation8 + $0x298] sm:$0xff] %v15784_v25  ;;  %v15788_v63 = vpack.c.bf16 %v10083_v52, %v10081_v4 }
 0x893   :  { %14489 = vst [vmem:[#allocation8 + $0x2b0] sm:$0xff] %v15787_v20  ;;  %14490 = vst [vmem:[#allocation8 + $0x2b8] sm:$0xff] %v15788_v63 }
 0x895   :  { %v8675_v28 = vpop.f32.mrb[172].mxu0  ;;  %v10087_v27 = vpop.f32.mrb[172].mxu1 }
 0x896   :  { %v8677_v56 = vpop.f32.mrb[173].mxu0  ;;  %v10089_v5 = vpop.f32.mrb[173].mxu1 }
 0x897   :  { %v15791_v22 = vpack.c.bf16 %v8677_v56, %v8675_v28  ;;  %v8679_v0 = vpop.f32.mrb[174].mxu0  ;;  %v15792_v45 = vpack.c.bf16 %v10089_v5, %v10087_v27  ;;  %v10091_v1 = vpop.f32.mrb[174].mxu1 }
 0x898   :  { %v8681_v26 = vpop.f32.mrb[175].mxu0  ;;  %v10093_v30 = vpop.f32.mrb[175].mxu1 }
 0x899   :  { %14493 = vst [vmem:[#allocation8 + $0x2d0] sm:$0xff] %v15791_v22  ;;  %v15795_v41 = vpack.c.bf16 %v8681_v26, %v8679_v0  ;;  %14494 = vst [vmem:[#allocation8 + $0x2d8] sm:$0xff] %v15792_v45  ;;  %v15796_v2 = vpack.c.bf16 %v10093_v30, %v10091_v1 }
 0x89b   :  { %14497 = vst [vmem:[#allocation8 + $0x2f0] sm:$0xff] %v15795_v41  ;;  %14498 = vst [vmem:[#allocation8 + $0x2f8] sm:$0xff] %v15796_v2 }
 0x89d   :  { %v8685_v44 = vpop.f32.mrb[176].mxu0  ;;  %v10097_v9 = vpop.f32.mrb[176].mxu1 }
 0x89e   :  { %v8687_v42 = vpop.f32.mrb[177].mxu0  ;;  %v10099_v54 = vpop.f32.mrb[177].mxu1 }
 0x89f   :  { %v15799_v3 = vpack.c.bf16 %v8687_v42, %v8685_v44  ;;  %v8689_v61 = vpop.f32.mrb[178].mxu0  ;;  %v15800_v47 = vpack.c.bf16 %v10099_v54, %v10097_v9  ;;  %v10101_v36 = vpop.f32.mrb[178].mxu1 }
 0x8a0   :  { %v8691_v31 = vpop.f32.mrb[179].mxu0  ;;  %v10103_v33 = vpop.f32.mrb[179].mxu1 }
 0x8a1   :  { %14501 = vst [vmem:[#allocation8 + $0x310] sm:$0xff] %v15799_v3  ;;  %v15803_v62 = vpack.c.bf16 %v8691_v31, %v8689_v61  ;;  %14502 = vst [vmem:[#allocation8 + $0x318] sm:$0xff] %v15800_v47  ;;  %v15804_v53 = vpack.c.bf16 %v10103_v33, %v10101_v36 }
 0x8a3   :  { %14505 = vst [vmem:[#allocation8 + $0x330] sm:$0xff] %v15803_v62  ;;  %14506 = vst [vmem:[#allocation8 + $0x338] sm:$0xff] %v15804_v53 }
 0x8a5   :  { %v8695_v8 = vpop.f32.mrb[180].mxu0  ;;  %v10107_v43 = vpop.f32.mrb[180].mxu1 }
 0x8a6   :  { %v8697_v46 = vpop.f32.mrb[181].mxu0  ;;  %v10109_v48 = vpop.f32.mrb[181].mxu1 }
 0x8a7   :  { %v15807_v10 = vpack.c.bf16 %v8697_v46, %v8695_v8  ;;  %v8699_v14 = vpop.f32.mrb[182].mxu0  ;;  %v15808_v49 = vpack.c.bf16 %v10109_v48, %v10107_v43  ;;  %v10111_v11 = vpop.f32.mrb[182].mxu1 }
 0x8a8   :  { %v8701_v58 = vpop.f32.mrb[183].mxu0  ;;  %v10113_v15 = vpop.f32.mrb[183].mxu1 }
 0x8a9   :  { %14509 = vst [vmem:[#allocation8 + $0x350] sm:$0xff] %v15807_v10  ;;  %v15811_v37 = vpack.c.bf16 %v8701_v58, %v8699_v14  ;;  %14510 = vst [vmem:[#allocation8 + $0x358] sm:$0xff] %v15808_v49  ;;  %v15812_v12 = vpack.c.bf16 %v10113_v15, %v10111_v11 }
 0x8ab   :  { %14513 = vst [vmem:[#allocation8 + $0x370] sm:$0xff] %v15811_v37  ;;  %14514 = vst [vmem:[#allocation8 + $0x378] sm:$0xff] %v15812_v12 }
 0x8ad   :  { %v8705_v13 = vpop.f32.mrb[184].mxu0  ;;  %v10117_v17 = vpop.f32.mrb[184].mxu1 }
 0x8ae   :  { %v8707_v38 = vpop.f32.mrb[185].mxu0  ;;  %v10119_v6 = vpop.f32.mrb[185].mxu1 }
 0x8af   :  { %v15815_v16 = vpack.c.bf16 %v8707_v38, %v8705_v13  ;;  %v8709_v7 = vpop.f32.mrb[186].mxu0  ;;  %v15816_v57 = vpack.c.bf16 %v10119_v6, %v10117_v17  ;;  %v10121_v39 = vpop.f32.mrb[186].mxu1 }
 0x8b0   :  { %v8711_v18 = vpop.f32.mrb[187].mxu0  ;;  %v10123_v40 = vpop.f32.mrb[187].mxu1 }
 0x8b1   :  { %14517 = vst [vmem:[#allocation8 + $0x390] sm:$0xff] %v15815_v16  ;;  %v15819_v51 = vpack.c.bf16 %v8711_v18, %v8709_v7  ;;  %14518 = vst [vmem:[#allocation8 + $0x398] sm:$0xff] %v15816_v57  ;;  %v15820_v35 = vpack.c.bf16 %v10123_v40, %v10121_v39 }
 0x8b3   :  { %14521 = vst [vmem:[#allocation8 + $0x3b0] sm:$0xff] %v15819_v51  ;;  %14522 = vst [vmem:[#allocation8 + $0x3b8] sm:$0xff] %v15820_v35 }
 0x8b5   :  { %v8715_v34 = vpop.f32.mrb[188].mxu0  ;;  %v10127_v55 = vpop.f32.mrb[188].mxu1 }
 0x8b6   :  { %v8717_v23 = vpop.f32.mrb[189].mxu0  ;;  %v10129_v60 = vpop.f32.mrb[189].mxu1 }
 0x8b7   :  { %v15823_v59 = vpack.c.bf16 %v8717_v23, %v8715_v34  ;;  %v8719_v32 = vpop.f32.mrb[190].mxu0  ;;  %v15824_v29 = vpack.c.bf16 %v10129_v60, %v10127_v55  ;;  %v10131_v21 = vpop.f32.mrb[190].mxu1 }
 0x8b8   :  { %v8721_v24 = vpop.f32.mrb[191].mxu0  ;;  %v10133_v25 = vpop.f32.mrb[191].mxu1 }
 0x8b9   :  { %14525 = vst [vmem:[#allocation8 + $0x3d0] sm:$0xff] %v15823_v59  ;;  %v15827_v19 = vpack.c.bf16 %v8721_v24, %v8719_v32  ;;  %14526 = vst [vmem:[#allocation8 + $0x3d8] sm:$0xff] %v15824_v29  ;;  %v15828_v4 = vpack.c.bf16 %v10133_v25, %v10131_v21 }
 0x8bb   :  { %14529 = vst [vmem:[#allocation8 + $0x3f0] sm:$0xff] %v15827_v19  ;;  %14530 = vst [vmem:[#allocation8 + $0x3f8] sm:$0xff] %v15828_v4 }
 0x8bd   :  { %v8725_v50 = vpop.f32.mrb[192].mxu0  ;;  %v10137_v20 = vpop.f32.mrb[192].mxu1 }
 0x8be   :  { %v8727_v52 = vpop.f32.mrb[193].mxu0  ;;  %v10139_v28 = vpop.f32.mrb[193].mxu1 }
 0x8bf   :  { %v15831_v63 = vpack.c.bf16 %v8727_v52, %v8725_v50  ;;  %v8729_v27 = vpop.f32.mrb[194].mxu0  ;;  %v15832_v56 = vpack.c.bf16 %v10139_v28, %v10137_v20  ;;  %v10141_v22 = vpop.f32.mrb[194].mxu1 }
 0x8c0   :  { %v8731_v5 = vpop.f32.mrb[195].mxu0  ;;  %v10143_v45 = vpop.f32.mrb[195].mxu1 }
 0x8c1   :  { %14533 = vst [vmem:[#allocation8 + $0x410] sm:$0xff] %v15831_v63  ;;  %v15835_v0 = vpack.c.bf16 %v8731_v5, %v8729_v27  ;;  %14534 = vst [vmem:[#allocation8 + $0x418] sm:$0xff] %v15832_v56  ;;  %v15836_v1 = vpack.c.bf16 %v10143_v45, %v10141_v22 }
 0x8c3   :  { %14537 = vst [vmem:[#allocation8 + $0x430] sm:$0xff] %v15835_v0  ;;  %14538 = vst [vmem:[#allocation8 + $0x438] sm:$0xff] %v15836_v1 }
 0x8c5   :  { %v8735_v26 = vpop.f32.mrb[196].mxu0  ;;  %v10147_v41 = vpop.f32.mrb[196].mxu1 }
 0x8c6   :  { %v8737_v30 = vpop.f32.mrb[197].mxu0  ;;  %v10149_v44 = vpop.f32.mrb[197].mxu1 }
 0x8c7   :  { %v15839_v2 = vpack.c.bf16 %v8737_v30, %v8735_v26  ;;  %v8739_v9 = vpop.f32.mrb[198].mxu0  ;;  %v15840_v42 = vpack.c.bf16 %v10149_v44, %v10147_v41  ;;  %v10151_v3 = vpop.f32.mrb[198].mxu1 }
 0x8c8   :  { %v8741_v54 = vpop.f32.mrb[199].mxu0  ;;  %v10153_v47 = vpop.f32.mrb[199].mxu1 }
 0x8c9   :  { %14541 = vst [vmem:[#allocation8 + $0x450] sm:$0xff] %v15839_v2  ;;  %v15843_v61 = vpack.c.bf16 %v8741_v54, %v8739_v9  ;;  %14542 = vst [vmem:[#allocation8 + $0x458] sm:$0xff] %v15840_v42  ;;  %v15844_v36 = vpack.c.bf16 %v10153_v47, %v10151_v3 }
 0x8cb   :  { %14545 = vst [vmem:[#allocation8 + $0x470] sm:$0xff] %v15843_v61  ;;  %14546 = vst [vmem:[#allocation8 + $0x478] sm:$0xff] %v15844_v36 }
 0x8cd   :  { %v8745_v31 = vpop.f32.mrb[200].mxu0  ;;  %v10157_v62 = vpop.f32.mrb[200].mxu1 }
 0x8ce   :  { %v8747_v33 = vpop.f32.mrb[201].mxu0  ;;  %v10159_v8 = vpop.f32.mrb[201].mxu1 }
 0x8cf   :  { %v15847_v53 = vpack.c.bf16 %v8747_v33, %v8745_v31  ;;  %v8749_v43 = vpop.f32.mrb[202].mxu0  ;;  %v15848_v46 = vpack.c.bf16 %v10159_v8, %v10157_v62  ;;  %v10161_v10 = vpop.f32.mrb[202].mxu1 }
 0x8d0   :  { %v8751_v48 = vpop.f32.mrb[203].mxu0  ;;  %v10163_v49 = vpop.f32.mrb[203].mxu1 }
 0x8d1   :  { %14549 = vst [vmem:[#allocation8 + $0x490] sm:$0xff] %v15847_v53  ;;  %v15851_v14 = vpack.c.bf16 %v8751_v48, %v8749_v43  ;;  %14550 = vst [vmem:[#allocation8 + $0x498] sm:$0xff] %v15848_v46  ;;  %v15852_v11 = vpack.c.bf16 %v10163_v49, %v10161_v10 }
 0x8d3   :  { %14553 = vst [vmem:[#allocation8 + $0x4b0] sm:$0xff] %v15851_v14  ;;  %14554 = vst [vmem:[#allocation8 + $0x4b8] sm:$0xff] %v15852_v11 }
 0x8d5   :  { %v8755_v58 = vpop.f32.mrb[204].mxu0  ;;  %v10167_v37 = vpop.f32.mrb[204].mxu1 }
 0x8d6   :  { %v8757_v15 = vpop.f32.mrb[205].mxu0  ;;  %v10169_v13 = vpop.f32.mrb[205].mxu1 }
 0x8d7   :  { %v15855_v12 = vpack.c.bf16 %v8757_v15, %v8755_v58  ;;  %v8759_v17 = vpop.f32.mrb[206].mxu0  ;;  %v15856_v38 = vpack.c.bf16 %v10169_v13, %v10167_v37  ;;  %v10171_v16 = vpop.f32.mrb[206].mxu1 }
 0x8d8   :  { %v8761_v6 = vpop.f32.mrb[207].mxu0  ;;  %v10173_v57 = vpop.f32.mrb[207].mxu1 }
 0x8d9   :  { %14557 = vst [vmem:[#allocation8 + $0x4d0] sm:$0xff] %v15855_v12  ;;  %v15859_v7 = vpack.c.bf16 %v8761_v6, %v8759_v17  ;;  %14558 = vst [vmem:[#allocation8 + $0x4d8] sm:$0xff] %v15856_v38  ;;  %v15860_v39 = vpack.c.bf16 %v10173_v57, %v10171_v16 }
 0x8db   :  { %14561 = vst [vmem:[#allocation8 + $0x4f0] sm:$0xff] %v15859_v7  ;;  %14562 = vst [vmem:[#allocation8 + $0x4f8] sm:$0xff] %v15860_v39 }
 0x8dd   :  { %v8765_v18 = vpop.f32.mrb[208].mxu0  ;;  %v10177_v51 = vpop.f32.mrb[208].mxu1 }
 0x8de   :  { %v8767_v40 = vpop.f32.mrb[209].mxu0  ;;  %v10179_v34 = vpop.f32.mrb[209].mxu1 }
 0x8df   :  { %v15863_v35 = vpack.c.bf16 %v8767_v40, %v8765_v18  ;;  %v8769_v55 = vpop.f32.mrb[210].mxu0  ;;  %v15864_v23 = vpack.c.bf16 %v10179_v34, %v10177_v51  ;;  %v10181_v59 = vpop.f32.mrb[210].mxu1 }
 0x8e0   :  { %v8771_v60 = vpop.f32.mrb[211].mxu0  ;;  %v10183_v29 = vpop.f32.mrb[211].mxu1 }
 0x8e1   :  { %14565 = vst [vmem:[#allocation8 + $0x510] sm:$0xff] %v15863_v35  ;;  %v15867_v32 = vpack.c.bf16 %v8771_v60, %v8769_v55  ;;  %14566 = vst [vmem:[#allocation8 + $0x518] sm:$0xff] %v15864_v23  ;;  %v15868_v21 = vpack.c.bf16 %v10183_v29, %v10181_v59 }
 0x8e3   :  { %14569 = vst [vmem:[#allocation8 + $0x530] sm:$0xff] %v15867_v32  ;;  %14570 = vst [vmem:[#allocation8 + $0x538] sm:$0xff] %v15868_v21 }
 0x8e5   :  { %v8775_v24 = vpop.f32.mrb[212].mxu0  ;;  %v10187_v19 = vpop.f32.mrb[212].mxu1 }
 0x8e6   :  { %v8777_v25 = vpop.f32.mrb[213].mxu0  ;;  %v10189_v50 = vpop.f32.mrb[213].mxu1 }
 0x8e7   :  { %v15871_v4 = vpack.c.bf16 %v8777_v25, %v8775_v24  ;;  %v8779_v20 = vpop.f32.mrb[214].mxu0  ;;  %v15872_v52 = vpack.c.bf16 %v10189_v50, %v10187_v19  ;;  %v10191_v63 = vpop.f32.mrb[214].mxu1 }
 0x8e8   :  { %v8781_v28 = vpop.f32.mrb[215].mxu0  ;;  %v10193_v56 = vpop.f32.mrb[215].mxu1 }
 0x8e9   :  { %14573 = vst [vmem:[#allocation8 + $0x550] sm:$0xff] %v15871_v4  ;;  %v15875_v27 = vpack.c.bf16 %v8781_v28, %v8779_v20  ;;  %14574 = vst [vmem:[#allocation8 + $0x558] sm:$0xff] %v15872_v52  ;;  %v15876_v22 = vpack.c.bf16 %v10193_v56, %v10191_v63 }
 0x8eb   :  { %14577 = vst [vmem:[#allocation8 + $0x570] sm:$0xff] %v15875_v27  ;;  %14578 = vst [vmem:[#allocation8 + $0x578] sm:$0xff] %v15876_v22 }
 0x8ed   :  { %v8785_v5 = vpop.f32.mrb[216].mxu0  ;;  %v10197_v0 = vpop.f32.mrb[216].mxu1 }
 0x8ee   :  { %v8787_v45 = vpop.f32.mrb[217].mxu0  ;;  %v10199_v26 = vpop.f32.mrb[217].mxu1 }
 0x8ef   :  { %v15879_v1 = vpack.c.bf16 %v8787_v45, %v8785_v5  ;;  %v8789_v41 = vpop.f32.mrb[218].mxu0  ;;  %v15880_v30 = vpack.c.bf16 %v10199_v26, %v10197_v0  ;;  %v10201_v2 = vpop.f32.mrb[218].mxu1 }
 0x8f0   :  { %v8791_v44 = vpop.f32.mrb[219].mxu0  ;;  %v10203_v42 = vpop.f32.mrb[219].mxu1 }
 0x8f1   :  { %14581 = vst [vmem:[#allocation8 + $0x590] sm:$0xff] %v15879_v1  ;;  %v15883_v9 = vpack.c.bf16 %v8791_v44, %v8789_v41  ;;  %14582 = vst [vmem:[#allocation8 + $0x598] sm:$0xff] %v15880_v30  ;;  %v15884_v3 = vpack.c.bf16 %v10203_v42, %v10201_v2 }
 0x8f3   :  { %14585 = vst [vmem:[#allocation8 + $0x5b0] sm:$0xff] %v15883_v9  ;;  %14586 = vst [vmem:[#allocation8 + $0x5b8] sm:$0xff] %v15884_v3 }
 0x8f5   :  { %v8795_v54 = vpop.f32.mrb[220].mxu0  ;;  %v10207_v61 = vpop.f32.mrb[220].mxu1 }
 0x8f6   :  { %v8797_v47 = vpop.f32.mrb[221].mxu0  ;;  %v10209_v31 = vpop.f32.mrb[221].mxu1 }
 0x8f7   :  { %v15887_v36 = vpack.c.bf16 %v8797_v47, %v8795_v54  ;;  %v8799_v62 = vpop.f32.mrb[222].mxu0  ;;  %v15888_v33 = vpack.c.bf16 %v10209_v31, %v10207_v61  ;;  %v10211_v53 = vpop.f32.mrb[222].mxu1 }
 0x8f8   :  { %v8801_v8 = vpop.f32.mrb[223].mxu0  ;;  %v10213_v46 = vpop.f32.mrb[223].mxu1 }
 0x8f9   :  { %14589 = vst [vmem:[#allocation8 + $0x5d0] sm:$0xff] %v15887_v36  ;;  %v15891_v43 = vpack.c.bf16 %v8801_v8, %v8799_v62  ;;  %14590 = vst [vmem:[#allocation8 + $0x5d8] sm:$0xff] %v15888_v33  ;;  %v15892_v10 = vpack.c.bf16 %v10213_v46, %v10211_v53 }
 0x8fb   :  { %14593 = vst [vmem:[#allocation8 + $0x5f0] sm:$0xff] %v15891_v43  ;;  %14594 = vst [vmem:[#allocation8 + $0x5f8] sm:$0xff] %v15892_v10 }
 0x8fd   :  { %v8805_v48 = vpop.f32.mrb[224].mxu0  ;;  %v10217_v14 = vpop.f32.mrb[224].mxu1 }
 0x8fe   :  { %v8807_v49 = vpop.f32.mrb[225].mxu0  ;;  %v10219_v58 = vpop.f32.mrb[225].mxu1 }
 0x8ff   :  { %v15895_v11 = vpack.c.bf16 %v8807_v49, %v8805_v48  ;;  %v8809_v37 = vpop.f32.mrb[226].mxu0  ;;  %v15896_v15 = vpack.c.bf16 %v10219_v58, %v10217_v14  ;;  %v10221_v12 = vpop.f32.mrb[226].mxu1 }
 0x900   :  { %v8811_v13 = vpop.f32.mrb[227].mxu0  ;;  %v10223_v38 = vpop.f32.mrb[227].mxu1 }
 0x901   :  { %14597 = vst [vmem:[#allocation8 + $0x610] sm:$0xff] %v15895_v11  ;;  %v15899_v17 = vpack.c.bf16 %v8811_v13, %v8809_v37  ;;  %14598 = vst [vmem:[#allocation8 + $0x618] sm:$0xff] %v15896_v15  ;;  %v15900_v16 = vpack.c.bf16 %v10223_v38, %v10221_v12 }
 0x903   :  { %14601 = vst [vmem:[#allocation8 + $0x630] sm:$0xff] %v15899_v17  ;;  %14602 = vst [vmem:[#allocation8 + $0x638] sm:$0xff] %v15900_v16 }
 0x905   :  { %v8815_v6 = vpop.f32.mrb[228].mxu0  ;;  %v10227_v7 = vpop.f32.mrb[228].mxu1 }
 0x906   :  { %v8817_v57 = vpop.f32.mrb[229].mxu0  ;;  %v10229_v18 = vpop.f32.mrb[229].mxu1 }
 0x907   :  { %v15903_v39 = vpack.c.bf16 %v8817_v57, %v8815_v6  ;;  %v8819_v51 = vpop.f32.mrb[230].mxu0  ;;  %v15904_v40 = vpack.c.bf16 %v10229_v18, %v10227_v7  ;;  %v10231_v35 = vpop.f32.mrb[230].mxu1 }
 0x908   :  { %v8821_v34 = vpop.f32.mrb[231].mxu0  ;;  %v10233_v23 = vpop.f32.mrb[231].mxu1 }
 0x909   :  { %14605 = vst [vmem:[#allocation8 + $0x650] sm:$0xff] %v15903_v39  ;;  %v15907_v55 = vpack.c.bf16 %v8821_v34, %v8819_v51  ;;  %14606 = vst [vmem:[#allocation8 + $0x658] sm:$0xff] %v15904_v40  ;;  %v15908_v59 = vpack.c.bf16 %v10233_v23, %v10231_v35 }
 0x90b   :  { %14609 = vst [vmem:[#allocation8 + $0x670] sm:$0xff] %v15907_v55  ;;  %14610 = vst [vmem:[#allocation8 + $0x678] sm:$0xff] %v15908_v59 }
 0x90d   :  { %v8825_v60 = vpop.f32.mrb[232].mxu0  ;;  %v10237_v32 = vpop.f32.mrb[232].mxu1 }
 0x90e   :  { %v8827_v29 = vpop.f32.mrb[233].mxu0  ;;  %v10239_v24 = vpop.f32.mrb[233].mxu1 }
 0x90f   :  { %v15911_v21 = vpack.c.bf16 %v8827_v29, %v8825_v60  ;;  %v8829_v19 = vpop.f32.mrb[234].mxu0  ;;  %v15912_v25 = vpack.c.bf16 %v10239_v24, %v10237_v32  ;;  %v10241_v4 = vpop.f32.mrb[234].mxu1 }
 0x910   :  { %v8831_v50 = vpop.f32.mrb[235].mxu0  ;;  %v10243_v52 = vpop.f32.mrb[235].mxu1 }
 0x911   :  { %14613 = vst [vmem:[#allocation8 + $0x690] sm:$0xff] %v15911_v21  ;;  %v15915_v20 = vpack.c.bf16 %v8831_v50, %v8829_v19  ;;  %14614 = vst [vmem:[#allocation8 + $0x698] sm:$0xff] %v15912_v25  ;;  %v15916_v63 = vpack.c.bf16 %v10243_v52, %v10241_v4 }
 0x913   :  { %14617 = vst [vmem:[#allocation8 + $0x6b0] sm:$0xff] %v15915_v20  ;;  %14618 = vst [vmem:[#allocation8 + $0x6b8] sm:$0xff] %v15916_v63 }
 0x915   :  { %v8835_v28 = vpop.f32.mrb[236].mxu0  ;;  %v10247_v27 = vpop.f32.mrb[236].mxu1 }
 0x916   :  { %v8837_v56 = vpop.f32.mrb[237].mxu0  ;;  %v10249_v5 = vpop.f32.mrb[237].mxu1 }
 0x917   :  { %v15919_v22 = vpack.c.bf16 %v8837_v56, %v8835_v28  ;;  %v8839_v0 = vpop.f32.mrb[238].mxu0  ;;  %v15920_v45 = vpack.c.bf16 %v10249_v5, %v10247_v27  ;;  %v10251_v1 = vpop.f32.mrb[238].mxu1 }
 0x918   :  { %v8841_v26 = vpop.f32.mrb[239].mxu0  ;;  %v10253_v30 = vpop.f32.mrb[239].mxu1 }
 0x919   :  { %14621 = vst [vmem:[#allocation8 + $0x6d0] sm:$0xff] %v15919_v22  ;;  %v15923_v41 = vpack.c.bf16 %v8841_v26, %v8839_v0  ;;  %14622 = vst [vmem:[#allocation8 + $0x6d8] sm:$0xff] %v15920_v45  ;;  %v15924_v2 = vpack.c.bf16 %v10253_v30, %v10251_v1 }
 0x91b   :  { %14625 = vst [vmem:[#allocation8 + $0x6f0] sm:$0xff] %v15923_v41  ;;  %14626 = vst [vmem:[#allocation8 + $0x6f8] sm:$0xff] %v15924_v2 }
 0x91d   :  { %v8845_v44 = vpop.f32.mrb[240].mxu0  ;;  %v10257_v9 = vpop.f32.mrb[240].mxu1 }
 0x91e   :  { %v8847_v42 = vpop.f32.mrb[241].mxu0  ;;  %v10259_v54 = vpop.f32.mrb[241].mxu1 }
 0x91f   :  { %v15927_v3 = vpack.c.bf16 %v8847_v42, %v8845_v44  ;;  %v8849_v61 = vpop.f32.mrb[242].mxu0  ;;  %v15928_v47 = vpack.c.bf16 %v10259_v54, %v10257_v9  ;;  %v10261_v36 = vpop.f32.mrb[242].mxu1 }
 0x920   :  { %v8851_v31 = vpop.f32.mrb[243].mxu0  ;;  %v10263_v33 = vpop.f32.mrb[243].mxu1 }
 0x921   :  { %14629 = vst [vmem:[#allocation8 + $0x710] sm:$0xff] %v15927_v3  ;;  %v15931_v62 = vpack.c.bf16 %v8851_v31, %v8849_v61  ;;  %14630 = vst [vmem:[#allocation8 + $0x718] sm:$0xff] %v15928_v47  ;;  %v15932_v53 = vpack.c.bf16 %v10263_v33, %v10261_v36 }
 0x923   :  { %14633 = vst [vmem:[#allocation8 + $0x730] sm:$0xff] %v15931_v62  ;;  %14634 = vst [vmem:[#allocation8 + $0x738] sm:$0xff] %v15932_v53 }
 0x925   :  { %v8855_v8 = vpop.f32.mrb[244].mxu0  ;;  %v10267_v43 = vpop.f32.mrb[244].mxu1 }
 0x926   :  { %v8857_v46 = vpop.f32.mrb[245].mxu0  ;;  %v10269_v48 = vpop.f32.mrb[245].mxu1 }
 0x927   :  { %v15935_v10 = vpack.c.bf16 %v8857_v46, %v8855_v8  ;;  %v8859_v14 = vpop.f32.mrb[246].mxu0  ;;  %v15936_v49 = vpack.c.bf16 %v10269_v48, %v10267_v43  ;;  %v10271_v11 = vpop.f32.mrb[246].mxu1 }
 0x928   :  { %v8861_v58 = vpop.f32.mrb[247].mxu0  ;;  %v10273_v15 = vpop.f32.mrb[247].mxu1 }
 0x929   :  { %14637 = vst [vmem:[#allocation8 + $0x750] sm:$0xff] %v15935_v10  ;;  %v15939_v37 = vpack.c.bf16 %v8861_v58, %v8859_v14  ;;  %14638 = vst [vmem:[#allocation8 + $0x758] sm:$0xff] %v15936_v49  ;;  %v15940_v12 = vpack.c.bf16 %v10273_v15, %v10271_v11 }
 0x92b   :  { %14641 = vst [vmem:[#allocation8 + $0x770] sm:$0xff] %v15939_v37  ;;  %14642 = vst [vmem:[#allocation8 + $0x778] sm:$0xff] %v15940_v12 }
 0x92d   :  { %v8865_v13 = vpop.f32.mrb[248].mxu0  ;;  %v10277_v17 = vpop.f32.mrb[248].mxu1 }
 0x92e   :  { %v8867_v38 = vpop.f32.mrb[249].mxu0  ;;  %v10279_v6 = vpop.f32.mrb[249].mxu1 }
 0x92f   :  { %v15943_v16 = vpack.c.bf16 %v8867_v38, %v8865_v13  ;;  %v8869_v7 = vpop.f32.mrb[250].mxu0  ;;  %v15944_v57 = vpack.c.bf16 %v10279_v6, %v10277_v17  ;;  %v10281_v39 = vpop.f32.mrb[250].mxu1 }
 0x930   :  { %v8871_v18 = vpop.f32.mrb[251].mxu0  ;;  %v10283_v40 = vpop.f32.mrb[251].mxu1 }
 0x931   :  { %14645 = vst [vmem:[#allocation8 + $0x790] sm:$0xff] %v15943_v16  ;;  %v15947_v51 = vpack.c.bf16 %v8871_v18, %v8869_v7  ;;  %14646 = vst [vmem:[#allocation8 + $0x798] sm:$0xff] %v15944_v57  ;;  %v15948_v35 = vpack.c.bf16 %v10283_v40, %v10281_v39 }
 0x933   :  { %14649 = vst [vmem:[#allocation8 + $0x7b0] sm:$0xff] %v15947_v51  ;;  %14650 = vst [vmem:[#allocation8 + $0x7b8] sm:$0xff] %v15948_v35 }
 0x935   :  { %v8875_v34 = vpop.f32.mrb[252].mxu0  ;;  %v10287_v55 = vpop.f32.mrb[252].mxu1 }
 0x936   :  { %v8877_v23 = vpop.f32.mrb[253].mxu0  ;;  %v10289_v60 = vpop.f32.mrb[253].mxu1 }
 0x937   :  { %v15951_v59 = vpack.c.bf16 %v8877_v23, %v8875_v34  ;;  %v8879_v32 = vpop.f32.mrb[254].mxu0  ;;  %v15952_v29 = vpack.c.bf16 %v10289_v60, %v10287_v55  ;;  %v10291_v21 = vpop.f32.mrb[254].mxu1 }
 0x938   :  { %v8881_v24 = vpop.f32.mrb[255].mxu0  ;;  %v10293_v25 = vpop.f32.mrb[255].mxu1 }
 0x939   :  { %14653 = vst [vmem:[#allocation8 + $0x7d0] sm:$0xff] %v15951_v59  ;;  %v15955_v19 = vpack.c.bf16 %v8881_v24, %v8879_v32  ;;  %14654 = vst [vmem:[#allocation8 + $0x7d8] sm:$0xff] %v15952_v29  ;;  %v15956_v4 = vpack.c.bf16 %v10293_v25, %v10291_v21 }
 0x93b   :  { %14657 = vst [vmem:[#allocation8 + $0x7f0] sm:$0xff] %v15955_v19  ;;  %14658 = vst [vmem:[#allocation8 + $0x7f8] sm:$0xff] %v15956_v4 }
 0x93c   :  { %17553 = shalt.err (!%p17550_p6)
}
 0x93d   :  { %s17554_s10 = scalar_lea.hbm %s19313_s2, 32768 }
 0x93e   :  { %p17555_p7 = scmp.ne.s32.totalorder %s19313_s2, %s17554_s10  ;;  %p17558_p8 = scmp.lt.u32.totalorder %s17554_s10, %s19313_s2 }
 0x940   :  { %p17560_p9 = pnand %p17558_p8, %p17555_p7 }
 0x942   :  { %17563 = shalt.err (!%p17560_p9)
}
 0x943   :  { %14670 = dma.vmem_to_hbm [thread:$0]  %s14665_s6, 32768, %s19313_s2, [#allocation5], %s17571_s19, %s17571_s19, %s17572_s20  }
 0x944   :  { %17568 = dma.done.wait [#allocation5], 32768  }
 0x945   :  { %17569 = vsyncadd [#allocation5], 4294934528 }
 0x946   :  { %14674 = vsyncpa [#allocation4], 1 }
 0x947   :  { %14675 = vsyncpa [#allocation7], 1 }
 0x948   :  { %14676 = vsyncpa [#allocation5], 1 }

</bundles_post_ra>
